<compile_context>
chip_gen: v5e
topology: v5e:2x2
jax: 0.10.0
libtpu: 0.0.40
codegen_flags: <defaults>
</compile_context>

<pallas_src>
import jax
import jax.numpy as jnp
from jax.experimental import pallas as pl
from jax.experimental.pallas import tpu as pltpu


# ----------------------------- Stage 1: channel mix -----------------------------
def _make_mix_kernel(c_in: int, c_out: int):
    """P1[o] = sum_c f1[o,c] * A[c];  P2[o] = sum_c f2[o,c] * A[c].

    A row-tile is streamed once and reused for all output channels; the mix is
    accumulated in f32 and rounded a single time to bf16 (the matmul dtype).
    """

    def kernel(f1_ref, f2_ref, a_ref, p1_ref, p2_ref):
        # Load each input channel tile once, reuse across all output channels.
        a_tiles = [a_ref[c] for c in range(c_in)]
        for o in range(c_out):                     # c_out small & static -> unrolled
            r1 = f1_ref[o, 0] * a_tiles[0]         # init from c=0 term (no zero-fill)
            r2 = f2_ref[o, 0] * a_tiles[0]
            for c in range(1, c_in):               # c_in small & static -> unrolled
                r1 = r1 + f1_ref[o, c] * a_tiles[c]
                r2 = r2 + f2_ref[o, c] * a_tiles[c]
            p1_ref[o] = r1.astype(p1_ref.dtype)    # single f32 -> bf16 rounding
            p2_ref[o] = r2.astype(p2_ref.dtype)

    return kernel


# ----------------------------- Stage 2: batched matmul ---------------------------
def _matmul_kernel(p1_ref, p2_ref, h_ref, acc_ref):
    k = pl.program_id(3)

    @pl.when(k == 0)
    def _():
        acc_ref[...] = jnp.zeros_like(acc_ref)

    # bf16 operands -> full-rate MXU on v5e/v6e/v7x; f32 accumulation in VMEM.
    acc_ref[...] += jnp.dot(
        p1_ref[...], p2_ref[...], preferred_element_type=jnp.float32
    )

    @pl.when(k == pl.num_programs(3) - 1)
    def _():
        h_ref[...] = acc_ref[...].astype(h_ref.dtype)


# ----------------------------- tile selection ------------------------------------
def _pick_mm_tile(n: int, max_tile: int = 512) -> int:
    """Largest multiple-of-128 divisor of n, capped at max_tile (keeps MXU dims
    >= 256 where N allows it). Full-extent fallback for small/unaligned n."""
    best = None
    for t in range(128, min(n, max_tile) + 1, 128):
        if n % t == 0:
            best = t
    return best if best is not None else n


def _pick_row_tile(n: int, c_in: int, c_out: int, budget_bytes: int) -> int:
    """Largest multiple-of-8 divisor of n whose mix-stage blocks fit the budget."""
    if n % 8 != 0:
        return n  # full-extent block is always legal
    best = 8
    for t in range(8, n + 1, 8):
        if n % t:
            continue
        per = 2 * c_in * t * n * 4 + 2 * 2 * c_out * t * n * 2  # dbl-buf A + P1 + P2
        if per <= budget_bytes:
            best = t
    return best


# ----------------------------- forward -------------------------------------------
def gtlayer_first_forward(A, W1, W2, *, tm=None, tn=None, tk=None):
    """Forward of GTLayer(first=True).

    Args:
      A : (in_channels, N, N) float32 dense adjacency stack.
      W1: (out_channels, in_channels) conv1.weight
      W2: (out_channels, in_channels) conv2.weight
    Returns:
      (H, W) with H: (out_channels, N, N) float32, W = [softmax(W1,1), softmax(W2,1)]
    """
    c_out, c_in = W1.shape
    c_in_a, n, n2 = A.shape
    assert c_in_a == c_in and n == n2

    # Chip-aware VMEM cap (64 MiB physical on v7x, 128 MiB on v5e/v6e).
    try:
        vmem_cap = int(pltpu.get_tpu_info().vmem_capacity_bytes)
    except Exception:  # pragma: no cover - conservative fallback
        vmem_cap = 64 << 20

    A = A.astype(jnp.float32)
    # Parameter glue (tiny): row-softmax of the channel-mixing weights.
    f1 = jax.nn.softmax(W1.astype(jnp.float32), axis=1)
    f2 = jax.nn.softmax(W2.astype(jnp.float32), axis=1)

    # ---------------- Stage 1: one pass over A -> bf16 P1, P2 ----------------
    mix_budget = min(vmem_cap // 2, 32 << 20)
    tr = _pick_row_tile(n, c_in, c_out, mix_budget)
    mix_tile_bytes = 2 * c_in * tr * n * 4 + 2 * 2 * c_out * tr * n * 2
    mix_vmem = int(min(max(mix_tile_bytes + (2 << 20), 16 << 20), vmem_cap - (8 << 20)))

    mix_cost = pl.CostEstimate(
        flops=4 * c_out * c_in * n * n,                       # 2 filters * mul+add
        transcendentals=0,
        bytes_accessed=c_in * n * n * 4 + 2 * c_out * n * n * 2,
    )

    p1, p2 = pl.pallas_call(
        _make_mix_kernel(c_in, c_out),
        out_shape=(
            jax.ShapeDtypeStruct((c_out, n, n), jnp.bfloat16),
            jax.ShapeDtypeStruct((c_out, n, n), jnp.bfloat16),
        ),
        grid=(n // tr,),
        in_specs=[
            # Filters are tiny scalar tables -> SMEM, whole array, no tiling.
            pl.BlockSpec(memory_space=pltpu.MemorySpace.SMEM),
            pl.BlockSpec(memory_space=pltpu.MemorySpace.SMEM),
            # A streamed once as (c_in, TR, N) row tiles (lane dim = full N).
            pl.BlockSpec((c_in, tr, n), lambda i: (0, i, 0)),
        ],
        out_specs=(
            pl.BlockSpec((c_out, tr, n), lambda i: (0, i, 0)),
            pl.BlockSpec((c_out, tr, n), lambda i: (0, i, 0)),
        ),
        compiler_params=pltpu.CompilerParams(
            dimension_semantics=("parallel",),
            vmem_limit_bytes=mix_vmem,
        ),
        cost_estimate=mix_cost,
    )(f1, f2, A)

    # ---------------- Stage 2: batched bf16 matmul H[o] = P1[o] @ P2[o] ------
    tm = _pick_mm_tile(n) if tm is None else tm
    tn = _pick_mm_tile(n) if tn is None else tn
    tk = _pick_mm_tile(n) if tk is None else tk
    assert n % tm == 0 and n % tn == 0 and n % tk == 0

    grid = (c_out, n // tm, n // tn, n // tk)

    mm_tile_bytes = (
        2 * tm * tk * 2          # double-buffered P1 bf16 tiles
        + 2 * tk * tn * 2        # double-buffered P2 bf16 tiles
        + tm * tn * 4            # f32 accumulator scratch
        + 2 * tm * tn * 4        # double-buffered f32 output tile
    )
    mm_vmem = int(min(max(mm_tile_bytes + (4 << 20), 16 << 20), vmem_cap - (8 << 20)))

    p_bytes = c_out * n * n * 2
    mm_cost = pl.CostEstimate(
        flops=2 * c_out * n * n * n,
        transcendentals=0,
        bytes_accessed=(n // tn) * p_bytes       # P1 stream (re-read per N tile)
        + (n // tm) * p_bytes                    # P2 stream (re-read per M tile)
        + c_out * n * n * 4,                     # H writeback
    )

    h = pl.pallas_call(
        _matmul_kernel,
        out_shape=jax.ShapeDtypeStruct((c_out, n, n), jnp.float32),
        grid=grid,
        in_specs=[
            # P1 tile (TM, TK) of output channel o at block (o, i, k) ...
            pl.BlockSpec((None, tm, tk), lambda o, i, j, k: (o, i, k)),
            # ... P2 tile (TK, TN) of output channel o at block (o, k, j).
            pl.BlockSpec((None, tk, tn), lambda o, i, j, k: (o, k, j)),
        ],
        # Lane-dense (TM, TN) output tile per (o, i, j); constant across K so the
        # accumulator stays resident over the reduction.
        out_specs=pl.BlockSpec((None, tm, tn), lambda o, i, j, k: (o, i, j)),
        scratch_shapes=[pltpu.VMEM((tm, tn), jnp.float32)],
        compiler_params=pltpu.CompilerParams(
            # o/M/N independent (o now reads disjoint P slabs -> useful on v7x
            # megacore); K is the reduction -> "arbitrary".
            dimension_semantics=("parallel", "parallel", "parallel", "arbitrary"),
            vmem_limit_bytes=mm_vmem,
        ),
        cost_estimate=mm_cost,
    )(p1, p2)

    return h, [f1, f2]


# ----------------------------- reference & test ----------------------------------
def _reference_forward(A, W1, W2):
    f1 = jax.nn.softmax(W1, axis=1)
    f2 = jax.nn.softmax(W2, axis=1)
    res_a = jnp.einsum("oc,cnm->onm", f1, A)
    res_b = jnp.einsum("oc,cnm->onm", f2, A)
    h = jnp.einsum("onk,okm->onm", res_a, res_b)
    return h, [f1, f2]


if __name__ == "__main__":
    in_channels = 4    # number of edge types / graphs in A
    out_channels = 2
    N = 384            # picks a single 384 full-extent matmul block (no 128 fallback)

    key = jax.random.PRNGKey(0)
    k_a, k_w1, k_w2 = jax.random.split(key, 3)

    # Dense non-negative adjacency weights (stand-in for g.edata['w']).
    A = jax.random.uniform(k_a, (in_channels, N, N), dtype=jnp.float32)
    # nn.init.normal_(weight, std=0.01)
    W1 = 0.01 * jax.random.normal(k_w1, (out_channels, in_channels), dtype=jnp.float32)
    W2 = 0.01 * jax.random.normal(k_w2, (out_channels, in_channels), dtype=jnp.float32)

    H, W = gtlayer_first_forward(A, W1, W2)
    H = jax.block_until_ready(H)

    # Correctness check against a pure-f32 JAX reference. Tolerance is loosened
    # because the matmul runs on bf16 operands (channel mix is accumulated in f32
    # and rounded once; f32 MXU accumulation keeps relative error well under 1%).
    H_ref, W_ref = _reference_forward(A, W1, W2)
    assert jnp.allclose(H, H_ref, rtol=2e-2, atol=1e-2), float(jnp.max(jnp.abs(H - H_ref)))
    assert jnp.allclose(W[0], W_ref[0]) and jnp.allclose(W[1], W_ref[1])

    print("KERNEL_OK")
</pallas_src>

<mosaic_0001>
module attributes {stable_mosaic.version = 11 : i64} {
  func.func @kernel(%arg0: i32, %arg1: memref<2x4xf32, #tpu.memory_space<smem>>, %arg2: memref<2x4xf32, #tpu.memory_space<smem>>, %arg3: memref<4x384x384xf32, #tpu.memory_space<vmem>>, %arg4: memref<2x384x384xbf16, #tpu.memory_space<vmem>>, %arg5: memref<2x384x384xbf16, #tpu.memory_space<vmem>>) attributes {dimension_semantics = [#tpu.dimension_semantics<parallel>], iteration_bounds = array<i64: 1>, scalar_prefetch = 0 : i64, scratch_operands = 0 : i64, tpu.core_type = #tpu.core_type<tc>, window_params = [{transform_indices = @transform_0, window_bounds = array<i64: 2, 4>}, {transform_indices = @transform_1, window_bounds = array<i64: 2, 4>}, {transform_indices = @transform_2, window_bounds = array<i64: 4, 384, 384>}, {transform_indices = @transform_3, window_bounds = array<i64: 2, 384, 384>}, {transform_indices = @transform_4, window_bounds = array<i64: 2, 384, 384>}]} {
    %c0 = arith.constant 0 : index
    %c0_0 = arith.constant 0 : index
    %c0_1 = arith.constant 0 : index
    %0 = vector.load %arg3[%c0, %c0_0, %c0_1] : memref<4x384x384xf32, #tpu.memory_space<vmem>>, vector<1x384x384xf32>
    %1 = vector.shape_cast %0 : vector<1x384x384xf32> to vector<384x384xf32>
    %c1 = arith.constant 1 : index
    %c0_2 = arith.constant 0 : index
    %c0_3 = arith.constant 0 : index
    %2 = vector.load %arg3[%c1, %c0_2, %c0_3] : memref<4x384x384xf32, #tpu.memory_space<vmem>>, vector<1x384x384xf32>
    %3 = vector.shape_cast %2 : vector<1x384x384xf32> to vector<384x384xf32>
    %c2 = arith.constant 2 : index
    %c0_4 = arith.constant 0 : index
    %c0_5 = arith.constant 0 : index
    %4 = vector.load %arg3[%c2, %c0_4, %c0_5] : memref<4x384x384xf32, #tpu.memory_space<vmem>>, vector<1x384x384xf32>
    %5 = vector.shape_cast %4 : vector<1x384x384xf32> to vector<384x384xf32>
    %c3 = arith.constant 3 : index
    %c0_6 = arith.constant 0 : index
    %c0_7 = arith.constant 0 : index
    %6 = vector.load %arg3[%c3, %c0_6, %c0_7] : memref<4x384x384xf32, #tpu.memory_space<vmem>>, vector<1x384x384xf32>
    %7 = vector.shape_cast %6 : vector<1x384x384xf32> to vector<384x384xf32>
    %c0_8 = arith.constant 0 : index
    %c0_9 = arith.constant 0 : index
    %8 = memref.load %arg1[%c0_8, %c0_9] : memref<2x4xf32, #tpu.memory_space<smem>>
    %9 = vector.broadcast %8 : f32 to vector<384x384xf32>
    %10 = arith.mulf %9, %1 : vector<384x384xf32>
    %c0_10 = arith.constant 0 : index
    %c0_11 = arith.constant 0 : index
    %11 = memref.load %arg2[%c0_10, %c0_11] : memref<2x4xf32, #tpu.memory_space<smem>>
    %12 = vector.broadcast %11 : f32 to vector<384x384xf32>
    %13 = arith.mulf %12, %1 : vector<384x384xf32>
    %c0_12 = arith.constant 0 : index
    %c1_13 = arith.constant 1 : index
    %14 = memref.load %arg1[%c0_12, %c1_13] : memref<2x4xf32, #tpu.memory_space<smem>>
    %15 = vector.broadcast %14 : f32 to vector<384x384xf32>
    %16 = arith.mulf %15, %3 : vector<384x384xf32>
    %17 = arith.addf %10, %16 : vector<384x384xf32>
    %c0_14 = arith.constant 0 : index
    %c1_15 = arith.constant 1 : index
    %18 = memref.load %arg2[%c0_14, %c1_15] : memref<2x4xf32, #tpu.memory_space<smem>>
    %19 = vector.broadcast %18 : f32 to vector<384x384xf32>
    %20 = arith.mulf %19, %3 : vector<384x384xf32>
    %21 = arith.addf %13, %20 : vector<384x384xf32>
    %c0_16 = arith.constant 0 : index
    %c2_17 = arith.constant 2 : index
    %22 = memref.load %arg1[%c0_16, %c2_17] : memref<2x4xf32, #tpu.memory_space<smem>>
    %23 = vector.broadcast %22 : f32 to vector<384x384xf32>
    %24 = arith.mulf %23, %5 : vector<384x384xf32>
    %25 = arith.addf %17, %24 : vector<384x384xf32>
    %c0_18 = arith.constant 0 : index
    %c2_19 = arith.constant 2 : index
    %26 = memref.load %arg2[%c0_18, %c2_19] : memref<2x4xf32, #tpu.memory_space<smem>>
    %27 = vector.broadcast %26 : f32 to vector<384x384xf32>
    %28 = arith.mulf %27, %5 : vector<384x384xf32>
    %29 = arith.addf %21, %28 : vector<384x384xf32>
    %c0_20 = arith.constant 0 : index
    %c3_21 = arith.constant 3 : index
    %30 = memref.load %arg1[%c0_20, %c3_21] : memref<2x4xf32, #tpu.memory_space<smem>>
    %31 = vector.broadcast %30 : f32 to vector<384x384xf32>
    %32 = arith.mulf %31, %7 : vector<384x384xf32>
    %33 = arith.addf %25, %32 : vector<384x384xf32>
    %c0_22 = arith.constant 0 : index
    %c3_23 = arith.constant 3 : index
    %34 = memref.load %arg2[%c0_22, %c3_23] : memref<2x4xf32, #tpu.memory_space<smem>>
    %35 = vector.broadcast %34 : f32 to vector<384x384xf32>
    %36 = arith.mulf %35, %7 : vector<384x384xf32>
    %37 = arith.addf %29, %36 : vector<384x384xf32>
    %38 = arith.truncf %33 : vector<384x384xf32> to vector<384x384xbf16>
    %c0_24 = arith.constant 0 : index
    %c0_25 = arith.constant 0 : index
    %c0_26 = arith.constant 0 : index
    %39 = vector.load %arg4[%c0_24, %c0_25, %c0_26] : memref<2x384x384xbf16, #tpu.memory_space<vmem>>, vector<1x384x384xbf16>
    %40 = vector.shape_cast %39 : vector<1x384x384xbf16> to vector<384x384xbf16>
    %41 = vector.shape_cast %38 : vector<384x384xbf16> to vector<1x384x384xbf16>
    tpu.vector_store %arg4[%c0_24, %c0_25, %c0_26], %41 {strides = array<i32>} : memref<2x384x384xbf16, #tpu.memory_space<vmem>>, vector<1x384x384xbf16>,
    %42 = arith.truncf %37 : vector<384x384xf32> to vector<384x384xbf16>
    %c0_27 = arith.constant 0 : index
    %c0_28 = arith.constant 0 : index
    %c0_29 = arith.constant 0 : index
    %43 = vector.load %arg5[%c0_27, %c0_28, %c0_29] : memref<2x384x384xbf16, #tpu.memory_space<vmem>>, vector<1x384x384xbf16>
    %44 = vector.shape_cast %43 : vector<1x384x384xbf16> to vector<384x384xbf16>
    %45 = vector.shape_cast %42 : vector<384x384xbf16> to vector<1x384x384xbf16>
    tpu.vector_store %arg5[%c0_27, %c0_28, %c0_29], %45 {strides = array<i32>} : memref<2x384x384xbf16, #tpu.memory_space<vmem>>, vector<1x384x384xbf16>,
    %c1_30 = arith.constant 1 : index
    %c0_31 = arith.constant 0 : index
    %46 = memref.load %arg1[%c1_30, %c0_31] : memref<2x4xf32, #tpu.memory_space<smem>>
    %47 = vector.broadcast %46 : f32 to vector<384x384xf32>
    %48 = arith.mulf %47, %1 : vector<384x384xf32>
    %c1_32 = arith.constant 1 : index
    %c0_33 = arith.constant 0 : index
    %49 = memref.load %arg2[%c1_32, %c0_33] : memref<2x4xf32, #tpu.memory_space<smem>>
    %50 = vector.broadcast %49 : f32 to vector<384x384xf32>
    %51 = arith.mulf %50, %1 : vector<384x384xf32>
    %c1_34 = arith.constant 1 : index
    %c1_35 = arith.constant 1 : index
    %52 = memref.load %arg1[%c1_34, %c1_35] : memref<2x4xf32, #tpu.memory_space<smem>>
    %53 = vector.broadcast %52 : f32 to vector<384x384xf32>
    %54 = arith.mulf %53, %3 : vector<384x384xf32>
    %55 = arith.addf %48, %54 : vector<384x384xf32>
    %c1_36 = arith.constant 1 : index
    %c1_37 = arith.constant 1 : index
    %56 = memref.load %arg2[%c1_36, %c1_37] : memref<2x4xf32, #tpu.memory_space<smem>>
    %57 = vector.broadcast %56 : f32 to vector<384x384xf32>
    %58 = arith.mulf %57, %3 : vector<384x384xf32>
    %59 = arith.addf %51, %58 : vector<384x384xf32>
    %c1_38 = arith.constant 1 : index
    %c2_39 = arith.constant 2 : index
    %60 = memref.load %arg1[%c1_38, %c2_39] : memref<2x4xf32, #tpu.memory_space<smem>>
    %61 = vector.broadcast %60 : f32 to vector<384x384xf32>
    %62 = arith.mulf %61, %5 : vector<384x384xf32>
    %63 = arith.addf %55, %62 : vector<384x384xf32>
    %c1_40 = arith.constant 1 : index
    %c2_41 = arith.constant 2 : index
    %64 = memref.load %arg2[%c1_40, %c2_41] : memref<2x4xf32, #tpu.memory_space<smem>>
    %65 = vector.broadcast %64 : f32 to vector<384x384xf32>
    %66 = arith.mulf %65, %5 : vector<384x384xf32>
    %67 = arith.addf %59, %66 : vector<384x384xf32>
    %c1_42 = arith.constant 1 : index
    %c3_43 = arith.constant 3 : index
    %68 = memref.load %arg1[%c1_42, %c3_43] : memref<2x4xf32, #tpu.memory_space<smem>>
    %69 = vector.broadcast %68 : f32 to vector<384x384xf32>
    %70 = arith.mulf %69, %7 : vector<384x384xf32>
    %71 = arith.addf %63, %70 : vector<384x384xf32>
    %c1_44 = arith.constant 1 : index
    %c3_45 = arith.constant 3 : index
    %72 = memref.load %arg2[%c1_44, %c3_45] : memref<2x4xf32, #tpu.memory_space<smem>>
    %73 = vector.broadcast %72 : f32 to vector<384x384xf32>
    %74 = arith.mulf %73, %7 : vector<384x384xf32>
    %75 = arith.addf %67, %74 : vector<384x384xf32>
    %76 = arith.truncf %71 : vector<384x384xf32> to vector<384x384xbf16>
    %c1_46 = arith.constant 1 : index
    %c0_47 = arith.constant 0 : index
    %c0_48 = arith.constant 0 : index
    %77 = vector.load %arg4[%c1_46, %c0_47, %c0_48] : memref<2x384x384xbf16, #tpu.memory_space<vmem>>, vector<1x384x384xbf16>
    %78 = vector.shape_cast %77 : vector<1x384x384xbf16> to vector<384x384xbf16>
    %79 = vector.shape_cast %76 : vector<384x384xbf16> to vector<1x384x384xbf16>
    tpu.vector_store %arg4[%c1_46, %c0_47, %c0_48], %79 {strides = array<i32>} : memref<2x384x384xbf16, #tpu.memory_space<vmem>>, vector<1x384x384xbf16>,
    %80 = arith.truncf %75 : vector<384x384xf32> to vector<384x384xbf16>
    %c1_49 = arith.constant 1 : index
    %c0_50 = arith.constant 0 : index
    %c0_51 = arith.constant 0 : index
    %81 = vector.load %arg5[%c1_49, %c0_50, %c0_51] : memref<2x384x384xbf16, #tpu.memory_space<vmem>>, vector<1x384x384xbf16>
    %82 = vector.shape_cast %81 : vector<1x384x384xbf16> to vector<384x384xbf16>
    %83 = vector.shape_cast %80 : vector<384x384xbf16> to vector<1x384x384xbf16>
    tpu.vector_store %arg5[%c1_49, %c0_50, %c0_51], %83 {strides = array<i32>} : memref<2x384x384xbf16, #tpu.memory_space<vmem>>, vector<1x384x384xbf16>,
    return
  }
  func.func @transform_0(%arg0: i32) -> (i32, i32) {
    %c0_i32 = arith.constant 0 : i32
    %c0_i32_0 = arith.constant 0 : i32
    %c0_i32_1 = arith.constant 0 : i32
    return %c0_i32, %c0_i32_0 : i32, i32
  }
  func.func @transform_1(%arg0: i32) -> (i32, i32) {
    %c0_i32 = arith.constant 0 : i32
    %c0_i32_0 = arith.constant 0 : i32
    %c0_i32_1 = arith.constant 0 : i32
    return %c0_i32, %c0_i32_0 : i32, i32
  }
  func.func @transform_2(%arg0: i32) -> (i32, i32, i32) {
    %c0_i32 = arith.constant 0 : i32
    %c0_i32_0 = arith.constant 0 : i32
    %c0_i32_1 = arith.constant 0 : i32
    return %c0_i32, %arg0, %c0_i32_0 : i32, i32, i32
  }
  func.func @transform_3(%arg0: i32) -> (i32, i32, i32) {
    %c0_i32 = arith.constant 0 : i32
    %c0_i32_0 = arith.constant 0 : i32
    %c0_i32_1 = arith.constant 0 : i32
    return %c0_i32, %arg0, %c0_i32_0 : i32, i32, i32
  }
  func.func @transform_4(%arg0: i32) -> (i32, i32, i32) {
    %c0_i32 = arith.constant 0 : i32
    %c0_i32_0 = arith.constant 0 : i32
    %c0_i32_1 = arith.constant 0 : i32
    return %c0_i32, %arg0, %c0_i32_0 : i32, i32, i32
  }
}

</mosaic_0001>

<bundles_post_ra>
// kernel: tpu_custom_call.1
= control target key start
LH: loop header
LB: loop body
LE: loop exit
PB: predicated region body
PF: predicated region fallthrough
CT: control target
= control target key end

     0   :  { %10 = vsyncpa [#allocation5], 0  ;;  %s9798_s0 = inlined_call_operand.hbm [shape: f32[2,4], index: 0, kind: input, shape index: {}]   ;;  %s9799_s1 = inlined_call_operand.hbm [shape: f32[2,4], index: 1, kind: input, shape index: {}]   ;;  %s9800_s2 = inlined_call_operand.hbm [shape: f32[4,384,384], index: 2, kind: input, shape index: {}]   ;;  %s9801_s3 = inlined_call_operand.hbm [shape: bf16[2,384,384], index: 3, kind: output, shape index: {0}]   ;;  %s9802_s4 = inlined_call_operand.hbm [shape: bf16[2,384,384], index: 4, kind: output, shape index: {1}]  }
   0x1   :  { %11 = vsyncpa [#allocation7], 0 }
   0x2   :  { %12 = vsyncpa [#allocation3], 0 }
   0x3   :  { %13 = vsyncpa [#allocation4], 0 }
   0x4   :  { %14 = vsyncpa [#allocation11], 0  ;;  %s20_s17 = sshll.u32 %s9798_s0, 4  ;;  %s29_s20 = sshll.u32 %s9799_s1, 4  ;;  %s21_s17 = int_to_ptr.hbm [resolvable:$true] %s20_s17  ;;  %s30_s20 = int_to_ptr.hbm [resolvable:$true] %s29_s20 }
   0x5   :  { %s7368_s21 = smov [#allocation2]   ;;  %s7369_s22 = smov [#allocation6]  }
   0x6   :  { %23 = dma.hbm_to_smem %s21_s17, 32, %s7368_s21, [#allocation5]  }
   0x7   :  { %32 = dma.hbm_to_smem %s30_s20, 32, %s7369_s22, [#allocation7]  }
   0x8   :  { %s37_s25 = sshll.u32 %s9800_s2, 4  ;;  %s7370_s26 = smov [#allocation8]   ;;  %s38_s25 = int_to_ptr.hbm [resolvable:$true] %s37_s25 }
   0x9   :  { %s39_s27 = sshll.u32 %s7370_s26, 4  ;;  %s7371_s28 = smov 384   ;;  %s40_s27 = int_to_ptr.vmem [resolvable:$true] %s39_s27 }
   0xa   :  { %s7372_s0 = smov 24  }
   0xb   :  { %45 = dma.hbm_to_vmem [thread:$0]  %s38_s25, 73728, %s40_s27, [#allocation3], %s7371_s28, %s7371_s28, %s7372_s0  }
   0xc   :  { %7358 = dma.done.wait [#allocation5], 32  }
   0xd   :  { %7359 = vsyncadd [#allocation5], 4294967264 }
   0xe   :  { %7360 = dma.done.wait [#allocation7], 32  }
   0xf   :  { %7361 = vsyncadd [#allocation7], 4294967264 }
  0x10   :  { %7362 = dma.done.wait [#allocation3], 73728  }
  0x11   :  { %7363 = vsyncadd [#allocation3], 4294893568 }
  0x12   :  { %58 = sfence }
  0x13   :  { %s638_s1 = sld [smem:[#allocation2]]  ;;  %v59_v0 = vld [vmem:[#allocation8] sm:$0xff]  ;;  %v60_v1 = vld [vmem:[#allocation8 + $0x8] sm:$0xff]  ;;  %v61_v2 = vld [vmem:[#allocation8 + $0x10] sm:$0xff]  ;;  %s7373_s17 = smov [#allocation9]  }
  0x14   :  { %s5511_s29 = sld [smem:[#allocation2 + $0x1]]  ;;  %v204_v3 = vld [vmem:[#allocation8 + $0x480] sm:$0xff]  ;;  %v205_v4 = vld [vmem:[#allocation8 + $0x488] sm:$0xff]  ;;  %v206_v5 = vld [vmem:[#allocation8 + $0x490] sm:$0xff]  ;;  %s9533_s18 = sshll.u32 %s7373_s17, 4  ;;  %s5477_s18 = int_to_ptr.vmem [resolvable:$true] %s9533_s18 }
  0x15   :  { %s5513_s30 = sld [smem:[#allocation2 + $0x2]]  ;;  %v349_v6 = vld [vmem:[#allocation8 + $0x900] sm:$0xff]  ;;  %v350_v7 = vld [vmem:[#allocation8 + $0x908] sm:$0xff]  ;;  %v351_v9 = vld [vmem:[#allocation8 + $0x910] sm:$0xff]  ;;  %s5478_s21 = sshll.u32 %s9801_s3, 4  ;;  %s5479_s21 = int_to_ptr.hbm [resolvable:$true] %s5478_s21 }
  0x16   :  { %s5515_s5 = sld [smem:[#allocation2 + $0x3]]  ;;  %v494_v10 = vld [vmem:[#allocation8 + $0xd80] sm:$0xff]  ;;  %v495_v11 = vld [vmem:[#allocation8 + $0xd88] sm:$0xff]  ;;  %v496_v19 = vld [vmem:[#allocation8 + $0xd90] sm:$0xff]  ;;  %s7374_s3 = smov 192  }
  0x17   :  { %v62_v21 = vld [vmem:[#allocation8 + $0x18] sm:$0xff]  ;;  %v63_v22 = vld [vmem:[#allocation8 + $0x20] sm:$0xff]  ;;  %v64_v45 = vld [vmem:[#allocation8 + $0x28] sm:$0xff]  ;;  %s7979_s2 = sld [smem:[#allocation6]]  ;;  %s7375_s22 = smov 12  }
  0x18   :  { %v207_v27 = vld [vmem:[#allocation8 + $0x498] sm:$0xff]  ;;  %v208_v28 = vld [vmem:[#allocation8 + $0x4a0] sm:$0xff]  ;;  %v209_v46 = vld [vmem:[#allocation8 + $0x4a8] sm:$0xff]  ;;  %s7983_s6 = sld [smem:[#allocation6 + $0x1]]  ;;  %s7376_s23 = smov [#allocation10]  }
  0x19   :  { %v7411_v8 = vstv %s638_s1  ;;  %v352_v33 = vld [vmem:[#allocation8 + $0x918] sm:$0xff]  ;;  %v353_v34 = vld [vmem:[#allocation8 + $0x920] sm:$0xff]  ;;  %v354_v51 = vld [vmem:[#allocation8 + $0x928] sm:$0xff]  ;;  %s7987_s7 = sld [smem:[#allocation6 + $0x2]]  ;;  %s5489_s24 = sshll.u32 %s7376_s23, 4  ;;  %s5490_s24 = int_to_ptr.vmem [resolvable:$true] %s5489_s24 }
  0x1a   :  { %v640_v12 = vmul.f32 %v7411_v8, %v59_v0  ;;  %v641_v13 = vmul.f32 %v7411_v8, %v60_v1  ;;  %v7415_v14 = vstv %s5511_s29  ;;  %v642_v15 = vmul.f32 %v7411_v8, %v61_v2  ;;  %v497_v35 = vld [vmem:[#allocation8 + $0xd98] sm:$0xff]  ;;  %v498_v42 = vld [vmem:[#allocation8 + $0xda0] sm:$0xff]  ;;  %v499_v56 = vld [vmem:[#allocation8 + $0xda8] sm:$0xff]  ;;  %s7993_s8 = sld [smem:[#allocation6 + $0x3]]  ;;  %s5491_s27 = sshll.u32 %s9802_s4, 4  ;;  %s5492_s27 = int_to_ptr.hbm [resolvable:$true] %s5491_s27 }
  0x1b   :  { %v932_v16 = vmul.f32 %v7415_v14, %v204_v3  ;;  %v933_v17 = vmul.f32 %v7415_v14, %v205_v4  ;;  %v7420_v18 = vstv %s5513_s30  ;;  %v934_v20 = vmul.f32 %v7415_v14, %v206_v5  ;;  %v65_v57 = vld [vmem:[#allocation8 + $0x30] sm:$0xff]  ;;  %v66_v62 = vld [vmem:[#allocation8 + $0x38] sm:$0xff]  ;;  %s8575_s9 = sld [smem:[#allocation2 + $0x80]] }
  0x1c   :  { %v1512_v23 = vmul.f32 %v7420_v18, %v349_v6  ;;  %v1513_v24 = vmul.f32 %v7420_v18, %v350_v7  ;;  %v7425_v25 = vstv %s5515_s5  ;;  %v1514_v26 = vmul.f32 %v7420_v18, %v351_v9  ;;  %v210_v63 = vld [vmem:[#allocation8 + $0x4b0] sm:$0xff]  ;;  %v211_v4 = vld [vmem:[#allocation8 + $0x4b8] sm:$0xff]  ;;  %s8579_s10 = sld [smem:[#allocation2 + $0x81]] }
  0x1d   :  { %v1076_v29 = vadd.f32 %v932_v16, %v640_v12  ;;  %v1077_v30 = vadd.f32 %v933_v17, %v641_v13  ;;  %v2092_v31 = vmul.f32 %v7425_v25, %v494_v10  ;;  %v2093_v32 = vmul.f32 %v7425_v25, %v495_v11  ;;  %v355_v5 = vld [vmem:[#allocation8 + $0x930] sm:$0xff]  ;;  %v356_v6 = vld [vmem:[#allocation8 + $0x938] sm:$0xff]  ;;  %s8583_s11 = sld [smem:[#allocation2 + $0x82]] }
  0x1e   :  { %v1078_v36 = vadd.f32 %v934_v20, %v642_v15  ;;  %v2094_v37 = vmul.f32 %v7425_v25, %v496_v19  ;;  %v643_v38 = vmul.f32 %v7411_v8, %v62_v21  ;;  %v644_v39 = vmul.f32 %v7411_v8, %v63_v22  ;;  %v500_v11 = vld [vmem:[#allocation8 + $0xdb0] sm:$0xff]  ;;  %v501_v12 = vld [vmem:[#allocation8 + $0xdb8] sm:$0xff]  ;;  %v67_v20 = vld [vmem:[#allocation8 + $0x40] sm:$0xff]  ;;  %s8589_s12 = sld [smem:[#allocation2 + $0x83]] }
  0x1f   :  { %v1656_v40 = vadd.f32 %v1512_v23, %v1076_v29  ;;  %v1657_v41 = vadd.f32 %v1513_v24, %v1077_v30  ;;  %v935_v43 = vmul.f32 %v7415_v14, %v207_v27  ;;  %v936_v44 = vmul.f32 %v7415_v14, %v208_v28  ;;  %v212_v21 = vld [vmem:[#allocation8 + $0x4c0] sm:$0xff]  ;;  %v68_v29 = vld [vmem:[#allocation8 + $0x48] sm:$0xff]  ;;  %s9171_s13 = sld [smem:[#allocation6 + $0x80]] }
  0x20   :  { %v1658_v47 = vadd.f32 %v1514_v26, %v1078_v36  ;;  %v1515_v48 = vmul.f32 %v7420_v18, %v352_v33  ;;  %v1516_v49 = vmul.f32 %v7420_v18, %v353_v34  ;;  %v2095_v50 = vmul.f32 %v7425_v25, %v497_v35  ;;  %v357_v27 = vld [vmem:[#allocation8 + $0x940] sm:$0xff]  ;;  %v69_v34 = vld [vmem:[#allocation8 + $0x50] sm:$0xff]  ;;  %s9175_s14 = sld [smem:[#allocation6 + $0x81]] }
  0x21   :  { %v2236_v52 = vadd.f32 %v2092_v31, %v1656_v40  ;;  %v2237_v53 = vadd.f32 %v2093_v32, %v1657_v41  ;;  %v1079_v54 = vadd.f32 %v935_v43, %v643_v38  ;;  %v1080_v55 = vadd.f32 %v936_v44, %v644_v39  ;;  %v502_v28 = vld [vmem:[#allocation8 + $0xdc0] sm:$0xff]  ;;  %v213_v39 = vld [vmem:[#allocation8 + $0x4c8] sm:$0xff]  ;;  %v214_v40 = vld [vmem:[#allocation8 + $0x4d0] sm:$0xff]  ;;  %s9179_s15 = sld [smem:[#allocation6 + $0x82]] }
  0x22   :  { %v2238_v58 = vadd.f32 %v2094_v37, %v1658_v47  ;;  %v2096_v59 = vmul.f32 %v7425_v25, %v498_v42  ;;  %v645_v60 = vmul.f32 %v7411_v8, %v64_v45  ;;  %v937_v61 = vmul.f32 %v7415_v14, %v209_v46  ;;  %v358_v41 = vld [vmem:[#allocation8 + $0x948] sm:$0xff]  ;;  %v359_v45 = vld [vmem:[#allocation8 + $0x950] sm:$0xff]  ;;  %s9185_s16 = sld [smem:[#allocation6 + $0x83]] }
  0x23   :  { %v2670_v0 = vpack.c.bf16 %v2237_v53, %v2236_v52  ;;  %v1659_v1 = vadd.f32 %v1515_v48, %v1079_v54  ;;  %v1660_v2 = vadd.f32 %v1516_v49, %v1080_v55  ;;  %v1517_v3 = vmul.f32 %v7420_v18, %v354_v51  ;;  %v503_v46 = vld [vmem:[#allocation8 + $0xdc8] sm:$0xff]  ;;  %v504_v51 = vld [vmem:[#allocation8 + $0xdd0] sm:$0xff]  ;;  %v70_v53 = vld [vmem:[#allocation8 + $0x58] sm:$0xff] }
  0x24   :  { %v2671_v7 = vpack.c.bf16 %v2238_v58, %v2238_v58  ;;  %v1081_v9 = vadd.f32 %v937_v61, %v645_v60  ;;  %v2097_v10 = vmul.f32 %v7425_v25, %v499_v56  ;;  %v646_v13 = vmul.f32 %v7411_v8, %v65_v57  ;;  %v215_v58 = vld [vmem:[#allocation8 + $0x4d8] sm:$0xff] }
  0x25   :  { %2766 = vst [vmem:[#allocation9] sm:$0xff] %v2670_v0  ;;  %v2239_v15 = vadd.f32 %v2095_v50, %v1659_v1  ;;  %v2240_v16 = vadd.f32 %v2096_v59, %v1660_v2  ;;  %v647_v17 = vmul.f32 %v7411_v8, %v66_v62  ;;  %v938_v19 = vmul.f32 %v7415_v14, %v210_v63  ;;  %v360_v59 = vld [vmem:[#allocation8 + $0x958] sm:$0xff]  ;;  %v71_v1 = vld [vmem:[#allocation8 + $0x60] sm:$0xff] }
  0x26   :  { %2767 = vst [vmem:[#allocation9 + $0x8] sm:$0xf] %v2671_v7  ;;  %v1661_v22 = vadd.f32 %v1517_v3, %v1081_v9  ;;  %v939_v23 = vmul.f32 %v7415_v14, %v211_v4  ;;  %v1518_v24 = vmul.f32 %v7420_v18, %v355_v5  ;;  %v1519_v26 = vmul.f32 %v7420_v18, %v356_v6  ;;  %v505_v0 = vld [vmem:[#allocation8 + $0xdd8] sm:$0xff]  ;;  %v72_v6 = vld [vmem:[#allocation8 + $0x68] sm:$0xff]  ;;  %v216_v7 = vld [vmem:[#allocation8 + $0x4e0] sm:$0xff] }
  0x27   :  { %v2672_v30 = vpack.c.bf16 %v2240_v16, %v2239_v15  ;;  %v1082_v31 = vadd.f32 %v938_v19, %v646_v13  ;;  %v2098_v32 = vmul.f32 %v7425_v25, %v500_v11  ;;  %v2099_v33 = vmul.f32 %v7425_v25, %v501_v12  ;;  %v217_v13 = vld [vmem:[#allocation8 + $0x4e8] sm:$0xff]  ;;  %v361_v15 = vld [vmem:[#allocation8 + $0x960] sm:$0xff] }
  0x28   :  { %v2241_v35 = vadd.f32 %v2097_v10, %v1661_v22  ;;  %v1083_v36 = vadd.f32 %v939_v23, %v647_v17  ;;  %v648_v37 = vmul.f32 %v7411_v8, %v67_v20  ;;  %v940_v38 = vmul.f32 %v7415_v14, %v212_v21  ;;  %v362_v20 = vld [vmem:[#allocation8 + $0x968] sm:$0xff]  ;;  %v506_v21 = vld [vmem:[#allocation8 + $0xde0] sm:$0xff] }
  0x29   :  { %2768 = vst [vmem:[#allocation9 + $0xc] sm:$0xff] %v2672_v30  ;;  %v1662_v42 = vadd.f32 %v1518_v24, %v1082_v31  ;;  %v1520_v43 = vmul.f32 %v7420_v18, %v357_v27  ;;  %v2100_v44 = vmul.f32 %v7425_v25, %v502_v28  ;;  %v649_v47 = vmul.f32 %v7411_v8, %v68_v29  ;;  %v73_v29 = vld [vmem:[#allocation8 + $0x70] sm:$0xff] }
  0x2a   :  { %v2673_v48 = vpack.c.bf16 %v2241_v35, %v2241_v35  ;;  %v1663_v49 = vadd.f32 %v1519_v26, %v1083_v36  ;;  %v1084_v50 = vadd.f32 %v940_v38, %v648_v37  ;;  %v650_v52 = vmul.f32 %v7411_v8, %v69_v34  ;;  %v507_v26 = vld [vmem:[#allocation8 + $0xde8] sm:$0xff]  ;;  %v218_v34 = vld [vmem:[#allocation8 + $0x4f0] sm:$0xff] }
  0x2b   :  { %v2242_v54 = vadd.f32 %v2098_v32, %v1662_v42  ;;  %v941_v55 = vmul.f32 %v7415_v14, %v213_v39  ;;  %v942_v56 = vmul.f32 %v7415_v14, %v214_v40  ;;  %v1521_v57 = vmul.f32 %v7420_v18, %v358_v41  ;;  %v363_v35 = vld [vmem:[#allocation8 + $0x970] sm:$0xff]  ;;  %v74_v41 = vld [vmem:[#allocation8 + $0x78] sm:$0xff]  ;;  %v75_v42 = vld [vmem:[#allocation8 + $0x80] sm:$0xff] }
  0x2c   :  { %2769 = vst [vmem:[#allocation9 + $0x14] sm:$0xf] %v2673_v48  ;;  %v2243_v60 = vadd.f32 %v2099_v33, %v1663_v49  ;;  %v1664_v61 = vadd.f32 %v1520_v43, %v1084_v50  ;;  %v1522_v62 = vmul.f32 %v7420_v18, %v359_v45  ;;  %v2101_v63 = vmul.f32 %v7425_v25, %v503_v46  ;;  %v508_v40 = vld [vmem:[#allocation8 + $0xdf0] sm:$0xff] }
  0x2d   :  { %v1085_v2 = vadd.f32 %v941_v55, %v649_v47  ;;  %v1086_v3 = vadd.f32 %v942_v56, %v650_v52  ;;  %v2102_v4 = vmul.f32 %v7425_v25, %v504_v51  ;;  %v651_v5 = vmul.f32 %v7411_v8, %v70_v53  ;;  %v219_v47 = vld [vmem:[#allocation8 + $0x4f8] sm:$0xff]  ;;  %v220_v52 = vld [vmem:[#allocation8 + $0x500] sm:$0xff] }
  0x2e   :  { %v2674_v9 = vpack.c.bf16 %v2243_v60, %v2242_v54  ;;  %v2244_v10 = vadd.f32 %v2100_v44, %v1664_v61  ;;  %v943_v11 = vmul.f32 %v7415_v14, %v215_v58  ;;  %v1523_v12 = vmul.f32 %v7420_v18, %v360_v59  ;;  %v364_v53 = vld [vmem:[#allocation8 + $0x978] sm:$0xff]  ;;  %v365_v54 = vld [vmem:[#allocation8 + $0x980] sm:$0xff] }
  0x2f   :  { %v1665_v16 = vadd.f32 %v1521_v57, %v1085_v2  ;;  %v1666_v17 = vadd.f32 %v1522_v62, %v1086_v3  ;;  %v2103_v19 = vmul.f32 %v7425_v25, %v505_v0  ;;  %v652_v22 = vmul.f32 %v7411_v8, %v71_v1  ;;  %v509_v57 = vld [vmem:[#allocation8 + $0xdf8] sm:$0xff]  ;;  %v510_v58 = vld [vmem:[#allocation8 + $0xe00] sm:$0xff]  ;;  %v76_v1 = vld [vmem:[#allocation8 + $0x88] sm:$0xff] }
  0x30   :  { %2770 = vst [vmem:[#allocation9 + $0x18] sm:$0xff] %v2674_v9  ;;  %v2675_v23 = vpack.c.bf16 %v2244_v10, %v2244_v10  ;;  %v1087_v24 = vadd.f32 %v943_v11, %v651_v5  ;;  %v653_v27 = vmul.f32 %v7411_v8, %v72_v6  ;;  %v944_v28 = vmul.f32 %v7415_v14, %v216_v7  ;;  %v221_v2 = vld [vmem:[#allocation8 + $0x508] sm:$0xff] }
  0x31   :  { %v2245_v30 = vadd.f32 %v2101_v63, %v1665_v16  ;;  %v2246_v31 = vadd.f32 %v2102_v4, %v1666_v17  ;;  %v945_v32 = vmul.f32 %v7415_v14, %v217_v13  ;;  %v1524_v33 = vmul.f32 %v7420_v18, %v361_v15  ;;  %v366_v7 = vld [vmem:[#allocation8 + $0x988] sm:$0xff]  ;;  %v77_v15 = vld [vmem:[#allocation8 + $0x90] sm:$0xff]  ;;  %v78_v16 = vld [vmem:[#allocation8 + $0x98] sm:$0xff] }
  0x32   :  { %2771 = vst [vmem:[#allocation9 + $0x20] sm:$0xf] %v2675_v23  ;;  %v1667_v36 = vadd.f32 %v1523_v12, %v1087_v24  ;;  %v1088_v37 = vadd.f32 %v944_v28, %v652_v22  ;;  %v1525_v38 = vmul.f32 %v7420_v18, %v362_v20  ;;  %v2104_v39 = vmul.f32 %v7425_v25, %v506_v21  ;;  %v511_v9 = vld [vmem:[#allocation8 + $0xe08] sm:$0xff]  ;;  %v222_v22 = vld [vmem:[#allocation8 + $0x510] sm:$0xff]  ;;  %v223_v23 = vld [vmem:[#allocation8 + $0x518] sm:$0xff] }
  0x33   :  { %v2676_v43 = vpack.c.bf16 %v2246_v31, %v2245_v30  ;;  %v1089_v44 = vadd.f32 %v945_v32, %v653_v27  ;;  %v2105_v45 = vmul.f32 %v7425_v25, %v507_v26  ;;  %v654_v46 = vmul.f32 %v7411_v8, %v73_v29  ;;  %v367_v29 = vld [vmem:[#allocation8 + $0x990] sm:$0xff]  ;;  %v368_v30 = vld [vmem:[#allocation8 + $0x998] sm:$0xff] }
  0x34   :  { %v2247_v48 = vadd.f32 %v2103_v19, %v1667_v36  ;;  %v1668_v49 = vadd.f32 %v1524_v33, %v1088_v37  ;;  %v946_v50 = vmul.f32 %v7415_v14, %v218_v34  ;;  %v1526_v51 = vmul.f32 %v7420_v18, %v363_v35  ;;  %v512_v33 = vld [vmem:[#allocation8 + $0xe10] sm:$0xff]  ;;  %v513_v34 = vld [vmem:[#allocation8 + $0xe18] sm:$0xff] }
  0x35   :  { %2772 = vst [vmem:[#allocation9 + $0x24] sm:$0xff] %v2676_v43  ;;  %v1669_v55 = vadd.f32 %v1525_v38, %v1089_v44  ;;  %v2106_v56 = vmul.f32 %v7425_v25, %v508_v40  ;;  %v655_v59 = vmul.f32 %v7411_v8, %v74_v41  ;;  %v656_v60 = vmul.f32 %v7411_v8, %v75_v42  ;;  %v79_v41 = vld [vmem:[#allocation8 + $0xa0] sm:$0xff] }
  0x36   :  { %v2677_v61 = vpack.c.bf16 %v2247_v48, %v2247_v48  ;;  %v2248_v62 = vadd.f32 %v2104_v39, %v1668_v49  ;;  %v1090_v63 = vadd.f32 %v946_v50, %v654_v46  ;;  %v947_v0 = vmul.f32 %v7415_v14, %v219_v47  ;;  %v224_v42 = vld [vmem:[#allocation8 + $0x520] sm:$0xff] }
  0x37   :  { %v2249_v3 = vadd.f32 %v2105_v45, %v1669_v55  ;;  %v948_v4 = vmul.f32 %v7415_v14, %v220_v52  ;;  %v1527_v5 = vmul.f32 %v7420_v18, %v364_v53  ;;  %v1528_v6 = vmul.f32 %v7420_v18, %v365_v54  ;;  %v369_v47 = vld [vmem:[#allocation8 + $0x9a0] sm:$0xff]  ;;  %v80_v53 = vld [vmem:[#allocation8 + $0xa8] sm:$0xff]  ;;  %v81_v54 = vld [vmem:[#allocation8 + $0xb0] sm:$0xff] }
  0x38   :  { %2773 = vst [vmem:[#allocation9 + $0x2c] sm:$0xf] %v2677_v61  ;;  %v1670_v10 = vadd.f32 %v1526_v51, %v1090_v63  ;;  %v1091_v11 = vadd.f32 %v947_v0, %v655_v59  ;;  %v2107_v12 = vmul.f32 %v7425_v25, %v509_v57  ;;  %v2108_v13 = vmul.f32 %v7425_v25, %v510_v58  ;;  %v514_v48 = vld [vmem:[#allocation8 + $0xe20] sm:$0xff]  ;;  %v225_v59 = vld [vmem:[#allocation8 + $0x528] sm:$0xff] }
  0x39   :  { %v2678_v17 = vpack.c.bf16 %v2249_v3, %v2248_v62  ;;  %v1092_v19 = vadd.f32 %v948_v4, %v656_v60  ;;  %v657_v20 = vmul.f32 %v7411_v8, %v76_v1  ;;  %v949_v21 = vmul.f32 %v7415_v14, %v221_v2  ;;  %v226_v60 = vld [vmem:[#allocation8 + $0x530] sm:$0xff]  ;;  %v370_v1 = vld [vmem:[#allocation8 + $0x9a8] sm:$0xff] }
  0x3a   :  { %v2250_v24 = vadd.f32 %v2106_v56, %v1670_v10  ;;  %v1671_v26 = vadd.f32 %v1527_v5, %v1091_v11  ;;  %v1529_v27 = vmul.f32 %v7420_v18, %v366_v7  ;;  %v2109_v28 = vmul.f32 %v7425_v25, %v511_v9  ;;  %v371_v2 = vld [vmem:[#allocation8 + $0x9b0] sm:$0xff]  ;;  %v515_v3 = vld [vmem:[#allocation8 + $0xe28] sm:$0xff] }
  0x3b   :  { %2774 = vst [vmem:[#allocation9 + $0x30] sm:$0xff] %v2678_v17  ;;  %v1672_v31 = vadd.f32 %v1528_v6, %v1092_v19  ;;  %v1093_v32 = vadd.f32 %v949_v21, %v657_v20  ;;  %v658_v35 = vmul.f32 %v7411_v8, %v77_v15  ;;  %v659_v36 = vmul.f32 %v7411_v8, %v78_v16  ;;  %v516_v6 = vld [vmem:[#allocation8 + $0xe30] sm:$0xff]  ;;  %v82_v15 = vld [vmem:[#allocation8 + $0xb8] sm:$0xff] }
  0x3c   :  { %v2679_v37 = vpack.c.bf16 %v2250_v24, %v2250_v24  ;;  %v2251_v38 = vadd.f32 %v2107_v12, %v1671_v26  ;;  %v950_v39 = vmul.f32 %v7415_v14, %v222_v22  ;;  %v951_v40 = vmul.f32 %v7415_v14, %v223_v23  ;;  %v227_v16 = vld [vmem:[#allocation8 + $0x538] sm:$0xff]  ;;  %v83_v24 = vld [vmem:[#allocation8 + $0xc0] sm:$0xff] }
  0x3d   :  { %v2252_v43 = vadd.f32 %v2108_v13, %v1672_v31  ;;  %v1673_v44 = vadd.f32 %v1529_v27, %v1093_v32  ;;  %v1530_v45 = vmul.f32 %v7420_v18, %v367_v29  ;;  %v1531_v46 = vmul.f32 %v7420_v18, %v368_v30  ;;  %v372_v17 = vld [vmem:[#allocation8 + $0x9b8] sm:$0xff]  ;;  %v84_v30 = vld [vmem:[#allocation8 + $0xc8] sm:$0xff]  ;;  %v228_v31 = vld [vmem:[#allocation8 + $0x540] sm:$0xff] }
  0x3e   :  { %2775 = vst [vmem:[#allocation9 + $0x38] sm:$0xf] %v2679_v37  ;;  %v1094_v49 = vadd.f32 %v950_v39, %v658_v35  ;;  %v1095_v50 = vadd.f32 %v951_v40, %v659_v36  ;;  %v2110_v51 = vmul.f32 %v7425_v25, %v512_v33  ;;  %v2111_v52 = vmul.f32 %v7425_v25, %v513_v34  ;;  %v517_v23 = vld [vmem:[#allocation8 + $0xe38] sm:$0xff]  ;;  %v229_v36 = vld [vmem:[#allocation8 + $0x548] sm:$0xff]  ;;  %v373_v37 = vld [vmem:[#allocation8 + $0x9c0] sm:$0xff] }
  0x3f   :  { %v2680_v55 = vpack.c.bf16 %v2252_v43, %v2251_v38  ;;  %v2253_v56 = vadd.f32 %v2109_v28, %v1673_v44  ;;  %v660_v57 = vmul.f32 %v7411_v8, %v79_v41  ;;  %v952_v58 = vmul.f32 %v7415_v14, %v224_v42  ;;  %v374_v41 = vld [vmem:[#allocation8 + $0x9c8] sm:$0xff]  ;;  %v518_v42 = vld [vmem:[#allocation8 + $0xe40] sm:$0xff] }
  0x40   :  { %v1674_v61 = vadd.f32 %v1530_v45, %v1094_v49  ;;  %v1675_v62 = vadd.f32 %v1531_v46, %v1095_v50  ;;  %v1532_v63 = vmul.f32 %v7420_v18, %v369_v47  ;;  %v2112_v0 = vmul.f32 %v7425_v25, %v514_v48  ;;  %v519_v46 = vld [vmem:[#allocation8 + $0xe48] sm:$0xff]  ;;  %v85_v49 = vld [vmem:[#allocation8 + $0xd0] sm:$0xff] }
  0x41   :  { %2776 = vst [vmem:[#allocation9 + $0x3c] sm:$0xff] %v2680_v55  ;;  %v2681_v4 = vpack.c.bf16 %v2253_v56, %v2253_v56  ;;  %v1096_v5 = vadd.f32 %v952_v58, %v660_v57  ;;  %v661_v7 = vmul.f32 %v7411_v8, %v80_v53  ;;  %v662_v9 = vmul.f32 %v7411_v8, %v81_v54  ;;  %v230_v54 = vld [vmem:[#allocation8 + $0x550] sm:$0xff] }
  0x42   :  { %v2254_v10 = vadd.f32 %v2110_v51, %v1674_v61  ;;  %v2255_v11 = vadd.f32 %v2111_v52, %v1675_v62  ;;  %v953_v12 = vmul.f32 %v7415_v14, %v225_v59  ;;  %v954_v13 = vmul.f32 %v7415_v14, %v226_v60  ;;  %v375_v55 = vld [vmem:[#allocation8 + $0x9d0] sm:$0xff]  ;;  %v86_v61 = vld [vmem:[#allocation8 + $0xd8] sm:$0xff]  ;;  %v87_v62 = vld [vmem:[#allocation8 + $0xe0] sm:$0xff] }
  0x43   :  { %2777 = vst [vmem:[#allocation9 + $0x44] sm:$0xf] %v2681_v4  ;;  %v1676_v19 = vadd.f32 %v1532_v63, %v1096_v5  ;;  %v1533_v20 = vmul.f32 %v7420_v18, %v370_v1  ;;  %v1534_v21 = vmul.f32 %v7420_v18, %v371_v2  ;;  %v2113_v22 = vmul.f32 %v7425_v25, %v515_v3  ;;  %v520_v60 = vld [vmem:[#allocation8 + $0xe50] sm:$0xff]  ;;  %v231_v3 = vld [vmem:[#allocation8 + $0x558] sm:$0xff] }
  0x44   :  { %v2682_v26 = vpack.c.bf16 %v2255_v11, %v2254_v10  ;;  %v1097_v27 = vadd.f32 %v953_v12, %v661_v7  ;;  %v1098_v28 = vadd.f32 %v954_v13, %v662_v9  ;;  %v2114_v29 = vmul.f32 %v7425_v25, %v516_v6  ;;  %v232_v9 = vld [vmem:[#allocation8 + $0x560] sm:$0xff]  ;;  %v376_v10 = vld [vmem:[#allocation8 + $0x9d8] sm:$0xff] }
  0x45   :  { %v2256_v32 = vadd.f32 %v2112_v0, %v1676_v19  ;;  %v663_v33 = vmul.f32 %v7411_v8, %v82_v15  ;;  %v955_v34 = vmul.f32 %v7415_v14, %v227_v16  ;;  %v1535_v35 = vmul.f32 %v7420_v18, %v372_v17  ;;  %v377_v11 = vld [vmem:[#allocation8 + $0x9e0] sm:$0xff]  ;;  %v521_v15 = vld [vmem:[#allocation8 + $0xe58] sm:$0xff] }
  0x46   :  { %2778 = vst [vmem:[#allocation9 + $0x48] sm:$0xff] %v2682_v26  ;;  %v1677_v38 = vadd.f32 %v1533_v20, %v1097_v27  ;;  %v1678_v39 = vadd.f32 %v1534_v21, %v1098_v28  ;;  %v2115_v40 = vmul.f32 %v7425_v25, %v517_v23  ;;  %v664_v43 = vmul.f32 %v7411_v8, %v83_v24  ;;  %v522_v16 = vld [vmem:[#allocation8 + $0xe60] sm:$0xff]  ;;  %v88_v24 = vld [vmem:[#allocation8 + $0xe8] sm:$0xff] }
  0x47   :  { %v2683_v44 = vpack.c.bf16 %v2256_v32, %v2256_v32  ;;  %v1099_v45 = vadd.f32 %v955_v34, %v663_v33  ;;  %v665_v47 = vmul.f32 %v7411_v8, %v84_v30  ;;  %v956_v48 = vmul.f32 %v7415_v14, %v228_v31  ;;  %v233_v26 = vld [vmem:[#allocation8 + $0x568] sm:$0xff] }
  0x48   :  { %v2257_v50 = vadd.f32 %v2113_v22, %v1677_v38  ;;  %v2258_v51 = vadd.f32 %v2114_v29, %v1678_v39  ;;  %v957_v52 = vmul.f32 %v7415_v14, %v229_v36  ;;  %v1536_v53 = vmul.f32 %v7420_v18, %v373_v37  ;;  %v378_v31 = vld [vmem:[#allocation8 + $0x9e8] sm:$0xff]  ;;  %v89_v37 = vld [vmem:[#allocation8 + $0xf0] sm:$0xff]  ;;  %v90_v38 = vld [vmem:[#allocation8 + $0xf8] sm:$0xff] }
  0x49   :  { %2779 = vst [vmem:[#allocation9 + $0x50] sm:$0xf] %v2683_v44  ;;  %v1679_v56 = vadd.f32 %v1535_v35, %v1099_v45  ;;  %v1100_v57 = vadd.f32 %v956_v48, %v664_v43  ;;  %v1537_v58 = vmul.f32 %v7420_v18, %v374_v41  ;;  %v2116_v59 = vmul.f32 %v7425_v25, %v518_v42  ;;  %v523_v32 = vld [vmem:[#allocation8 + $0xe68] sm:$0xff]  ;;  %v234_v43 = vld [vmem:[#allocation8 + $0x570] sm:$0xff]  ;;  %v235_v44 = vld [vmem:[#allocation8 + $0x578] sm:$0xff] }
  0x4a   :  { %v2684_v63 = vpack.c.bf16 %v2258_v51, %v2257_v50  ;;  %v1101_v0 = vadd.f32 %v957_v52, %v665_v47  ;;  %v2117_v1 = vmul.f32 %v7425_v25, %v519_v46  ;;  %v666_v2 = vmul.f32 %v7411_v8, %v85_v49  ;;  %v379_v49 = vld [vmem:[#allocation8 + $0x9f0] sm:$0xff]  ;;  %v380_v50 = vld [vmem:[#allocation8 + $0x9f8] sm:$0xff] }
  0x4b   :  { %v2259_v4 = vadd.f32 %v2115_v40, %v1679_v56  ;;  %v1680_v5 = vadd.f32 %v1536_v53, %v1100_v57  ;;  %v958_v6 = vmul.f32 %v7415_v14, %v230_v54  ;;  %v1538_v7 = vmul.f32 %v7420_v18, %v375_v55  ;;  %v524_v53 = vld [vmem:[#allocation8 + $0xe70] sm:$0xff]  ;;  %v525_v54 = vld [vmem:[#allocation8 + $0xe78] sm:$0xff] }
  0x4c   :  { %2780 = vst [vmem:[#allocation9 + $0x54] sm:$0xff] %v2684_v63  ;;  %v1681_v12 = vadd.f32 %v1537_v58, %v1101_v0  ;;  %v2118_v13 = vmul.f32 %v7425_v25, %v520_v60  ;;  %v667_v17 = vmul.f32 %v7411_v8, %v86_v61  ;;  %v668_v19 = vmul.f32 %v7411_v8, %v87_v62  ;;  %v91_v61 = vld [vmem:[#allocation8 + $0x100] sm:$0xff] }
  0x4d   :  { %v2685_v20 = vpack.c.bf16 %v2259_v4, %v2259_v4  ;;  %v2260_v21 = vadd.f32 %v2116_v59, %v1680_v5  ;;  %v1102_v22 = vadd.f32 %v958_v6, %v666_v2  ;;  %v959_v23 = vmul.f32 %v7415_v14, %v231_v3  ;;  %v236_v62 = vld [vmem:[#allocation8 + $0x580] sm:$0xff] }
  0x4e   :  { %v2261_v27 = vadd.f32 %v2117_v1, %v1681_v12  ;;  %v960_v28 = vmul.f32 %v7415_v14, %v232_v9  ;;  %v1539_v29 = vmul.f32 %v7420_v18, %v376_v10  ;;  %v1540_v30 = vmul.f32 %v7420_v18, %v377_v11  ;;  %v381_v3 = vld [vmem:[#allocation8 + $0xa00] sm:$0xff]  ;;  %v92_v10 = vld [vmem:[#allocation8 + $0x108] sm:$0xff]  ;;  %v93_v11 = vld [vmem:[#allocation8 + $0x110] sm:$0xff] }
  0x4f   :  { %2781 = vst [vmem:[#allocation9 + $0x5c] sm:$0xf] %v2685_v20  ;;  %v1682_v33 = vadd.f32 %v1538_v7, %v1102_v22  ;;  %v1103_v34 = vadd.f32 %v959_v23, %v667_v17  ;;  %v2119_v35 = vmul.f32 %v7425_v25, %v521_v15  ;;  %v2120_v36 = vmul.f32 %v7425_v25, %v522_v16  ;;  %v526_v4 = vld [vmem:[#allocation8 + $0xe80] sm:$0xff]  ;;  %v237_v17 = vld [vmem:[#allocation8 + $0x588] sm:$0xff] }
  0x50   :  { %v2686_v39 = vpack.c.bf16 %v2261_v27, %v2260_v21  ;;  %v1104_v40 = vadd.f32 %v960_v28, %v668_v19  ;;  %v669_v41 = vmul.f32 %v7411_v8, %v88_v24  ;;  %v961_v42 = vmul.f32 %v7415_v14, %v233_v26  ;;  %v238_v19 = vld [vmem:[#allocation8 + $0x590] sm:$0xff]  ;;  %v382_v24 = vld [vmem:[#allocation8 + $0xa08] sm:$0xff] }
  0x51   :  { %v2262_v45 = vadd.f32 %v2118_v13, %v1682_v33  ;;  %v1683_v46 = vadd.f32 %v1539_v29, %v1103_v34  ;;  %v1541_v47 = vmul.f32 %v7420_v18, %v378_v31  ;;  %v2121_v48 = vmul.f32 %v7425_v25, %v523_v32  ;;  %v383_v26 = vld [vmem:[#allocation8 + $0xa10] sm:$0xff]  ;;  %v527_v27 = vld [vmem:[#allocation8 + $0xe88] sm:$0xff] }
  0x52   :  { %2782 = vst [vmem:[#allocation9 + $0x60] sm:$0xff] %v2686_v39  ;;  %v1684_v51 = vadd.f32 %v1540_v30, %v1104_v40  ;;  %v1105_v52 = vadd.f32 %v961_v42, %v669_v41  ;;  %v670_v55 = vmul.f32 %v7411_v8, %v89_v37  ;;  %v671_v56 = vmul.f32 %v7411_v8, %v90_v38  ;;  %v528_v30 = vld [vmem:[#allocation8 + $0xe90] sm:$0xff]  ;;  %v94_v37 = vld [vmem:[#allocation8 + $0x118] sm:$0xff] }
  0x53   :  { %v2687_v57 = vpack.c.bf16 %v2262_v45, %v2262_v45  ;;  %v2263_v58 = vadd.f32 %v2119_v35, %v1683_v46  ;;  %v962_v59 = vmul.f32 %v7415_v14, %v234_v43  ;;  %v963_v60 = vmul.f32 %v7415_v14, %v235_v44  ;;  %v239_v38 = vld [vmem:[#allocation8 + $0x598] sm:$0xff]  ;;  %v95_v45 = vld [vmem:[#allocation8 + $0x120] sm:$0xff] }
  0x54   :  { %v2264_v63 = vadd.f32 %v2120_v36, %v1684_v51  ;;  %v1685_v0 = vadd.f32 %v1541_v47, %v1105_v52  ;;  %v1542_v1 = vmul.f32 %v7420_v18, %v379_v49  ;;  %v1543_v2 = vmul.f32 %v7420_v18, %v380_v50  ;;  %v384_v39 = vld [vmem:[#allocation8 + $0xa18] sm:$0xff]  ;;  %v96_v50 = vld [vmem:[#allocation8 + $0x128] sm:$0xff]  ;;  %v240_v51 = vld [vmem:[#allocation8 + $0x5a0] sm:$0xff] }
  0x55   :  { %2783 = vst [vmem:[#allocation9 + $0x68] sm:$0xf] %v2687_v57  ;;  %v1106_v5 = vadd.f32 %v962_v59, %v670_v55  ;;  %v1107_v6 = vadd.f32 %v963_v60, %v671_v56  ;;  %v2122_v7 = vmul.f32 %v7425_v25, %v524_v53  ;;  %v2123_v9 = vmul.f32 %v7425_v25, %v525_v54  ;;  %v529_v44 = vld [vmem:[#allocation8 + $0xe98] sm:$0xff]  ;;  %v241_v56 = vld [vmem:[#allocation8 + $0x5a8] sm:$0xff]  ;;  %v385_v57 = vld [vmem:[#allocation8 + $0xa20] sm:$0xff] }
  0x56   :  { %v2688_v12 = vpack.c.bf16 %v2264_v63, %v2263_v58  ;;  %v2265_v13 = vadd.f32 %v2121_v48, %v1685_v0  ;;  %v672_v15 = vmul.f32 %v7411_v8, %v91_v61  ;;  %v964_v16 = vmul.f32 %v7415_v14, %v236_v62  ;;  %v386_v61 = vld [vmem:[#allocation8 + $0xa28] sm:$0xff]  ;;  %v530_v62 = vld [vmem:[#allocation8 + $0xea0] sm:$0xff] }
  0x57   :  { %v1686_v20 = vadd.f32 %v1542_v1, %v1106_v5  ;;  %v1687_v21 = vadd.f32 %v1543_v2, %v1107_v6  ;;  %v1544_v22 = vmul.f32 %v7420_v18, %v381_v3  ;;  %v2124_v23 = vmul.f32 %v7425_v25, %v526_v4  ;;  %v531_v2 = vld [vmem:[#allocation8 + $0xea8] sm:$0xff]  ;;  %v97_v5 = vld [vmem:[#allocation8 + $0x130] sm:$0xff] }
  0x58   :  { %2784 = vst [vmem:[#allocation9 + $0x6c] sm:$0xff] %v2688_v12  ;;  %v2689_v28 = vpack.c.bf16 %v2265_v13, %v2265_v13  ;;  %v1108_v29 = vadd.f32 %v964_v16, %v672_v15  ;;  %v673_v31 = vmul.f32 %v7411_v8, %v92_v10  ;;  %v674_v32 = vmul.f32 %v7411_v8, %v93_v11  ;;  %v242_v11 = vld [vmem:[#allocation8 + $0x5b0] sm:$0xff] }
  0x59   :  { %v2266_v33 = vadd.f32 %v2122_v7, %v1686_v20  ;;  %v2267_v34 = vadd.f32 %v2123_v9, %v1687_v21  ;;  %v965_v35 = vmul.f32 %v7415_v14, %v237_v17  ;;  %v966_v36 = vmul.f32 %v7415_v14, %v238_v19  ;;  %v387_v12 = vld [vmem:[#allocation8 + $0xa30] sm:$0xff]  ;;  %v98_v20 = vld [vmem:[#allocation8 + $0x138] sm:$0xff]  ;;  %v99_v21 = vld [vmem:[#allocation8 + $0x140] sm:$0xff] }
  0x5a   :  { %2785 = vst [vmem:[#allocation9 + $0x74] sm:$0xf] %v2689_v28  ;;  %v1688_v40 = vadd.f32 %v1544_v22, %v1108_v29  ;;  %v1545_v41 = vmul.f32 %v7420_v18, %v382_v24  ;;  %v1546_v42 = vmul.f32 %v7420_v18, %v383_v26  ;;  %v2125_v43 = vmul.f32 %v7425_v25, %v527_v27  ;;  %v532_v19 = vld [vmem:[#allocation8 + $0xeb0] sm:$0xff]  ;;  %v243_v27 = vld [vmem:[#allocation8 + $0x5b8] sm:$0xff] }
  0x5b   :  { %v2690_v46 = vpack.c.bf16 %v2267_v34, %v2266_v33  ;;  %v1109_v47 = vadd.f32 %v965_v35, %v673_v31  ;;  %v1110_v48 = vadd.f32 %v966_v36, %v674_v32  ;;  %v2126_v49 = vmul.f32 %v7425_v25, %v528_v30  ;;  %v244_v32 = vld [vmem:[#allocation8 + $0x5c0] sm:$0xff]  ;;  %v388_v33 = vld [vmem:[#allocation8 + $0xa38] sm:$0xff] }
  0x5c   :  { %v2268_v52 = vadd.f32 %v2124_v23, %v1688_v40  ;;  %v675_v53 = vmul.f32 %v7411_v8, %v94_v37  ;;  %v967_v54 = vmul.f32 %v7415_v14, %v239_v38  ;;  %v1547_v55 = vmul.f32 %v7420_v18, %v384_v39  ;;  %v389_v34 = vld [vmem:[#allocation8 + $0xa40] sm:$0xff]  ;;  %v533_v37 = vld [vmem:[#allocation8 + $0xeb8] sm:$0xff] }
  0x5d   :  { %2786 = vst [vmem:[#allocation9 + $0x78] sm:$0xff] %v2690_v46  ;;  %v1689_v58 = vadd.f32 %v1545_v41, %v1109_v47  ;;  %v1690_v59 = vadd.f32 %v1546_v42, %v1110_v48  ;;  %v2127_v60 = vmul.f32 %v7425_v25, %v529_v44  ;;  %v676_v63 = vmul.f32 %v7411_v8, %v95_v45  ;;  %v534_v38 = vld [vmem:[#allocation8 + $0xec0] sm:$0xff]  ;;  %v100_v45 = vld [vmem:[#allocation8 + $0x148] sm:$0xff] }
  0x5e   :  { %v2691_v0 = vpack.c.bf16 %v2268_v52, %v2268_v52  ;;  %v1111_v1 = vadd.f32 %v967_v54, %v675_v53  ;;  %v677_v3 = vmul.f32 %v7411_v8, %v96_v50  ;;  %v968_v4 = vmul.f32 %v7415_v14, %v240_v51  ;;  %v245_v46 = vld [vmem:[#allocation8 + $0x5c8] sm:$0xff] }
  0x5f   :  { %v2269_v6 = vadd.f32 %v2125_v43, %v1689_v58  ;;  %v2270_v7 = vadd.f32 %v2126_v49, %v1690_v59  ;;  %v969_v9 = vmul.f32 %v7415_v14, %v241_v56  ;;  %v1548_v10 = vmul.f32 %v7420_v18, %v385_v57  ;;  %v390_v51 = vld [vmem:[#allocation8 + $0xa48] sm:$0xff]  ;;  %v101_v57 = vld [vmem:[#allocation8 + $0x150] sm:$0xff]  ;;  %v102_v58 = vld [vmem:[#allocation8 + $0x158] sm:$0xff] }
  0x60   :  { %2787 = vst [vmem:[#allocation9 + $0x80] sm:$0xf] %v2691_v0  ;;  %v1691_v13 = vadd.f32 %v1547_v55, %v1111_v1  ;;  %v1112_v15 = vadd.f32 %v968_v4, %v676_v63  ;;  %v1549_v16 = vmul.f32 %v7420_v18, %v386_v61  ;;  %v2128_v17 = vmul.f32 %v7425_v25, %v530_v62  ;;  %v535_v52 = vld [vmem:[#allocation8 + $0xec8] sm:$0xff]  ;;  %v246_v63 = vld [vmem:[#allocation8 + $0x5d0] sm:$0xff]  ;;  %v247_v0 = vld [vmem:[#allocation8 + $0x5d8] sm:$0xff] }
  0x61   :  { %v2692_v22 = vpack.c.bf16 %v2270_v7, %v2269_v6  ;;  %v1113_v23 = vadd.f32 %v969_v9, %v677_v3  ;;  %v2129_v24 = vmul.f32 %v7425_v25, %v531_v2  ;;  %v678_v26 = vmul.f32 %v7411_v8, %v97_v5  ;;  %v391_v5 = vld [vmem:[#allocation8 + $0xa50] sm:$0xff]  ;;  %v392_v6 = vld [vmem:[#allocation8 + $0xa58] sm:$0xff] }
  0x62   :  { %v2271_v28 = vadd.f32 %v2127_v60, %v1691_v13  ;;  %v1692_v29 = vadd.f32 %v1548_v10, %v1112_v15  ;;  %v970_v30 = vmul.f32 %v7415_v14, %v242_v11  ;;  %v1550_v31 = vmul.f32 %v7420_v18, %v387_v12  ;;  %v536_v10 = vld [vmem:[#allocation8 + $0xed0] sm:$0xff]  ;;  %v537_v11 = vld [vmem:[#allocation8 + $0xed8] sm:$0xff] }
  0x63   :  { %2788 = vst [vmem:[#allocation9 + $0x84] sm:$0xff] %v2692_v22  ;;  %v1693_v35 = vadd.f32 %v1549_v16, %v1113_v23  ;;  %v2130_v36 = vmul.f32 %v7425_v25, %v532_v19  ;;  %v679_v39 = vmul.f32 %v7411_v8, %v98_v20  ;;  %v680_v40 = vmul.f32 %v7411_v8, %v99_v21  ;;  %v103_v20 = vld [vmem:[#allocation8 + $0x160] sm:$0xff] }
  0x64   :  { %v2693_v41 = vpack.c.bf16 %v2271_v28, %v2271_v28  ;;  %v2272_v42 = vadd.f32 %v2128_v17, %v1692_v29  ;;  %v1114_v43 = vadd.f32 %v970_v30, %v678_v26  ;;  %v971_v44 = vmul.f32 %v7415_v14, %v243_v27  ;;  %v248_v21 = vld [vmem:[#allocation8 + $0x5e0] sm:$0xff] }
  0x65   :  { %v2273_v47 = vadd.f32 %v2129_v24, %v1693_v35  ;;  %v972_v48 = vmul.f32 %v7415_v14, %v244_v32  ;;  %v1551_v49 = vmul.f32 %v7420_v18, %v388_v33  ;;  %v1552_v50 = vmul.f32 %v7420_v18, %v389_v34  ;;  %v393_v27 = vld [vmem:[#allocation8 + $0xa60] sm:$0xff]  ;;  %v104_v33 = vld [vmem:[#allocation8 + $0x168] sm:$0xff]  ;;  %v105_v34 = vld [vmem:[#allocation8 + $0x170] sm:$0xff] }
  0x66   :  { %2789 = vst [vmem:[#allocation9 + $0x8c] sm:$0xf] %v2693_v41  ;;  %v1694_v53 = vadd.f32 %v1550_v31, %v1114_v43  ;;  %v1115_v54 = vadd.f32 %v971_v44, %v679_v39  ;;  %v2131_v55 = vmul.f32 %v7425_v25, %v533_v37  ;;  %v2132_v56 = vmul.f32 %v7425_v25, %v534_v38  ;;  %v538_v28 = vld [vmem:[#allocation8 + $0xee0] sm:$0xff]  ;;  %v249_v39 = vld [vmem:[#allocation8 + $0x5e8] sm:$0xff] }
  0x67   :  { %v2694_v59 = vpack.c.bf16 %v2273_v47, %v2272_v42  ;;  %v1116_v60 = vadd.f32 %v972_v48, %v680_v40  ;;  %v681_v61 = vmul.f32 %v7411_v8, %v100_v45  ;;  %v973_v62 = vmul.f32 %v7415_v14, %v245_v46  ;;  %v250_v40 = vld [vmem:[#allocation8 + $0x5f0] sm:$0xff]  ;;  %v394_v45 = vld [vmem:[#allocation8 + $0xa68] sm:$0xff] }
  0x68   :  { %v2274_v1 = vadd.f32 %v2130_v36, %v1694_v53  ;;  %v1695_v2 = vadd.f32 %v1551_v49, %v1115_v54  ;;  %v1553_v3 = vmul.f32 %v7420_v18, %v390_v51  ;;  %v2133_v4 = vmul.f32 %v7425_v25, %v535_v52  ;;  %v395_v46 = vld [vmem:[#allocation8 + $0xa70] sm:$0xff]  ;;  %v539_v47 = vld [vmem:[#allocation8 + $0xee8] sm:$0xff] }
  0x69   :  { %2790 = vst [vmem:[#allocation9 + $0x90] sm:$0xff] %v2694_v59  ;;  %v1696_v7 = vadd.f32 %v1552_v50, %v1116_v60  ;;  %v1117_v9 = vadd.f32 %v973_v62, %v681_v61  ;;  %v682_v12 = vmul.f32 %v7411_v8, %v101_v57  ;;  %v683_v13 = vmul.f32 %v7411_v8, %v102_v58  ;;  %v540_v50 = vld [vmem:[#allocation8 + $0xef0] sm:$0xff]  ;;  %v106_v57 = vld [vmem:[#allocation8 + $0x178] sm:$0xff] }
  0x6a   :  { %v2695_v15 = vpack.c.bf16 %v2274_v1, %v2274_v1  ;;  %v2275_v16 = vadd.f32 %v2131_v55, %v1695_v2  ;;  %v974_v17 = vmul.f32 %v7415_v14, %v246_v63  ;;  %v975_v19 = vmul.f32 %v7415_v14, %v247_v0  ;;  %v251_v58 = vld [vmem:[#allocation8 + $0x5f8] sm:$0xff]  ;;  %v107_v1 = vld [vmem:[#allocation8 + $0x180] sm:$0xff] }
  0x6b   :  { %v2276_v22 = vadd.f32 %v2132_v56, %v1696_v7  ;;  %v1697_v23 = vadd.f32 %v1553_v3, %v1117_v9  ;;  %v1554_v24 = vmul.f32 %v7420_v18, %v391_v5  ;;  %v1555_v26 = vmul.f32 %v7420_v18, %v392_v6  ;;  %v396_v59 = vld [vmem:[#allocation8 + $0xa78] sm:$0xff]  ;;  %v108_v6 = vld [vmem:[#allocation8 + $0x188] sm:$0xff]  ;;  %v252_v7 = vld [vmem:[#allocation8 + $0x600] sm:$0xff] }
  0x6c   :  { %2791 = vst [vmem:[#allocation9 + $0x98] sm:$0xf] %v2695_v15  ;;  %v1118_v29 = vadd.f32 %v974_v17, %v682_v12  ;;  %v1119_v30 = vadd.f32 %v975_v19, %v683_v13  ;;  %v2134_v31 = vmul.f32 %v7425_v25, %v536_v10  ;;  %v2135_v32 = vmul.f32 %v7425_v25, %v537_v11  ;;  %v541_v0 = vld [vmem:[#allocation8 + $0xef8] sm:$0xff]  ;;  %v253_v13 = vld [vmem:[#allocation8 + $0x608] sm:$0xff]  ;;  %v397_v15 = vld [vmem:[#allocation8 + $0xa80] sm:$0xff] }
  0x6d   :  { %v2696_v35 = vpack.c.bf16 %v2276_v22, %v2275_v16  ;;  %v2277_v36 = vadd.f32 %v2133_v4, %v1697_v23  ;;  %v684_v37 = vmul.f32 %v7411_v8, %v103_v20  ;;  %v976_v38 = vmul.f32 %v7415_v14, %v248_v21  ;;  %v398_v20 = vld [vmem:[#allocation8 + $0xa88] sm:$0xff]  ;;  %v542_v21 = vld [vmem:[#allocation8 + $0xf00] sm:$0xff] }
  0x6e   :  { %v1698_v41 = vadd.f32 %v1554_v24, %v1118_v29  ;;  %v1699_v42 = vadd.f32 %v1555_v26, %v1119_v30  ;;  %v1556_v43 = vmul.f32 %v7420_v18, %v393_v27  ;;  %v2136_v44 = vmul.f32 %v7425_v25, %v538_v28  ;;  %v543_v26 = vld [vmem:[#allocation8 + $0xf08] sm:$0xff]  ;;  %v109_v29 = vld [vmem:[#allocation8 + $0x190] sm:$0xff] }
  0x6f   :  { %2792 = vst [vmem:[#allocation9 + $0x9c] sm:$0xff] %v2696_v35  ;;  %v2697_v48 = vpack.c.bf16 %v2277_v36, %v2277_v36  ;;  %v1120_v49 = vadd.f32 %v976_v38, %v684_v37  ;;  %v685_v51 = vmul.f32 %v7411_v8, %v104_v33  ;;  %v686_v52 = vmul.f32 %v7411_v8, %v105_v34  ;;  %v254_v34 = vld [vmem:[#allocation8 + $0x610] sm:$0xff] }
  0x70   :  { %v2278_v53 = vadd.f32 %v2134_v31, %v1698_v41  ;;  %v2279_v54 = vadd.f32 %v2135_v32, %v1699_v42  ;;  %v977_v55 = vmul.f32 %v7415_v14, %v249_v39  ;;  %v978_v56 = vmul.f32 %v7415_v14, %v250_v40  ;;  %v399_v35 = vld [vmem:[#allocation8 + $0xa90] sm:$0xff]  ;;  %v110_v41 = vld [vmem:[#allocation8 + $0x198] sm:$0xff]  ;;  %v111_v42 = vld [vmem:[#allocation8 + $0x1a0] sm:$0xff] }
  0x71   :  { %2793 = vst [vmem:[#allocation9 + $0xa4] sm:$0xf] %v2697_v48  ;;  %v1700_v60 = vadd.f32 %v1556_v43, %v1120_v49  ;;  %v1557_v61 = vmul.f32 %v7420_v18, %v394_v45  ;;  %v1558_v62 = vmul.f32 %v7420_v18, %v395_v46  ;;  %v2137_v63 = vmul.f32 %v7425_v25, %v539_v47  ;;  %v544_v40 = vld [vmem:[#allocation8 + $0xf10] sm:$0xff]  ;;  %v255_v47 = vld [vmem:[#allocation8 + $0x618] sm:$0xff] }
  0x72   :  { %v2698_v2 = vpack.c.bf16 %v2279_v54, %v2278_v53  ;;  %v1121_v3 = vadd.f32 %v977_v55, %v685_v51  ;;  %v1122_v4 = vadd.f32 %v978_v56, %v686_v52  ;;  %v2138_v5 = vmul.f32 %v7425_v25, %v540_v50  ;;  %v256_v52 = vld [vmem:[#allocation8 + $0x620] sm:$0xff]  ;;  %v400_v53 = vld [vmem:[#allocation8 + $0xa98] sm:$0xff] }
  0x73   :  { %v2280_v9 = vadd.f32 %v2136_v44, %v1700_v60  ;;  %v687_v10 = vmul.f32 %v7411_v8, %v106_v57  ;;  %v979_v11 = vmul.f32 %v7415_v14, %v251_v58  ;;  %v1559_v12 = vmul.f32 %v7420_v18, %v396_v59  ;;  %v401_v54 = vld [vmem:[#allocation8 + $0xaa0] sm:$0xff]  ;;  %v545_v57 = vld [vmem:[#allocation8 + $0xf18] sm:$0xff] }
  0x74   :  { %2794 = vst [vmem:[#allocation9 + $0xa8] sm:$0xff] %v2698_v2  ;;  %v1701_v16 = vadd.f32 %v1557_v61, %v1121_v3  ;;  %v1702_v17 = vadd.f32 %v1558_v62, %v1122_v4  ;;  %v2139_v19 = vmul.f32 %v7425_v25, %v541_v0  ;;  %v688_v22 = vmul.f32 %v7411_v8, %v107_v1  ;;  %v546_v58 = vld [vmem:[#allocation8 + $0xf20] sm:$0xff]  ;;  %v112_v1 = vld [vmem:[#allocation8 + $0x1a8] sm:$0xff] }
  0x75   :  { %v2699_v23 = vpack.c.bf16 %v2280_v9, %v2280_v9  ;;  %v1123_v24 = vadd.f32 %v979_v11, %v687_v10  ;;  %v689_v27 = vmul.f32 %v7411_v8, %v108_v6  ;;  %v980_v28 = vmul.f32 %v7415_v14, %v252_v7  ;;  %v257_v2 = vld [vmem:[#allocation8 + $0x628] sm:$0xff] }
  0x76   :  { %v2281_v30 = vadd.f32 %v2137_v63, %v1701_v16  ;;  %v2282_v31 = vadd.f32 %v2138_v5, %v1702_v17  ;;  %v981_v32 = vmul.f32 %v7415_v14, %v253_v13  ;;  %v1560_v33 = vmul.f32 %v7420_v18, %v397_v15  ;;  %v402_v7 = vld [vmem:[#allocation8 + $0xaa8] sm:$0xff]  ;;  %v113_v15 = vld [vmem:[#allocation8 + $0x1b0] sm:$0xff]  ;;  %v114_v16 = vld [vmem:[#allocation8 + $0x1b8] sm:$0xff] }
  0x77   :  { %2795 = vst [vmem:[#allocation9 + $0xb0] sm:$0xf] %v2699_v23  ;;  %v1703_v36 = vadd.f32 %v1559_v12, %v1123_v24  ;;  %v1124_v37 = vadd.f32 %v980_v28, %v688_v22  ;;  %v1561_v38 = vmul.f32 %v7420_v18, %v398_v20  ;;  %v2140_v39 = vmul.f32 %v7425_v25, %v542_v21  ;;  %v547_v9 = vld [vmem:[#allocation8 + $0xf28] sm:$0xff]  ;;  %v258_v22 = vld [vmem:[#allocation8 + $0x630] sm:$0xff]  ;;  %v259_v23 = vld [vmem:[#allocation8 + $0x638] sm:$0xff] }
  0x78   :  { %v2700_v43 = vpack.c.bf16 %v2282_v31, %v2281_v30  ;;  %v1125_v44 = vadd.f32 %v981_v32, %v689_v27  ;;  %v2141_v45 = vmul.f32 %v7425_v25, %v543_v26  ;;  %v690_v46 = vmul.f32 %v7411_v8, %v109_v29  ;;  %v403_v29 = vld [vmem:[#allocation8 + $0xab0] sm:$0xff]  ;;  %v404_v30 = vld [vmem:[#allocation8 + $0xab8] sm:$0xff] }
  0x79   :  { %v2283_v48 = vadd.f32 %v2139_v19, %v1703_v36  ;;  %v1704_v49 = vadd.f32 %v1560_v33, %v1124_v37  ;;  %v982_v50 = vmul.f32 %v7415_v14, %v254_v34  ;;  %v1562_v51 = vmul.f32 %v7420_v18, %v399_v35  ;;  %v548_v33 = vld [vmem:[#allocation8 + $0xf30] sm:$0xff]  ;;  %v549_v34 = vld [vmem:[#allocation8 + $0xf38] sm:$0xff] }
  0x7a   :  { %2796 = vst [vmem:[#allocation9 + $0xb4] sm:$0xff] %v2700_v43  ;;  %v1705_v55 = vadd.f32 %v1561_v38, %v1125_v44  ;;  %v2142_v56 = vmul.f32 %v7425_v25, %v544_v40  ;;  %v691_v59 = vmul.f32 %v7411_v8, %v110_v41  ;;  %v692_v60 = vmul.f32 %v7411_v8, %v111_v42  ;;  %v115_v41 = vld [vmem:[#allocation8 + $0x1c0] sm:$0xff] }
  0x7b   :  { %v2701_v61 = vpack.c.bf16 %v2283_v48, %v2283_v48  ;;  %v2284_v62 = vadd.f32 %v2140_v39, %v1704_v49  ;;  %v1126_v63 = vadd.f32 %v982_v50, %v690_v46  ;;  %v983_v0 = vmul.f32 %v7415_v14, %v255_v47  ;;  %v260_v42 = vld [vmem:[#allocation8 + $0x640] sm:$0xff] }
  0x7c   :  { %v2285_v3 = vadd.f32 %v2141_v45, %v1705_v55  ;;  %v984_v4 = vmul.f32 %v7415_v14, %v256_v52  ;;  %v1563_v5 = vmul.f32 %v7420_v18, %v400_v53  ;;  %v1564_v6 = vmul.f32 %v7420_v18, %v401_v54  ;;  %v405_v47 = vld [vmem:[#allocation8 + $0xac0] sm:$0xff]  ;;  %v116_v53 = vld [vmem:[#allocation8 + $0x1c8] sm:$0xff]  ;;  %v117_v54 = vld [vmem:[#allocation8 + $0x1d0] sm:$0xff] }
  0x7d   :  { %2797 = vst [vmem:[#allocation9 + $0xbc] sm:$0xf] %v2701_v61  ;;  %v1706_v10 = vadd.f32 %v1562_v51, %v1126_v63  ;;  %v1127_v11 = vadd.f32 %v983_v0, %v691_v59  ;;  %v2143_v12 = vmul.f32 %v7425_v25, %v545_v57  ;;  %v2144_v13 = vmul.f32 %v7425_v25, %v546_v58  ;;  %v550_v48 = vld [vmem:[#allocation8 + $0xf40] sm:$0xff]  ;;  %v261_v59 = vld [vmem:[#allocation8 + $0x648] sm:$0xff] }
  0x7e   :  { %v2702_v17 = vpack.c.bf16 %v2285_v3, %v2284_v62  ;;  %v1128_v19 = vadd.f32 %v984_v4, %v692_v60  ;;  %v693_v20 = vmul.f32 %v7411_v8, %v112_v1  ;;  %v985_v21 = vmul.f32 %v7415_v14, %v257_v2  ;;  %v262_v60 = vld [vmem:[#allocation8 + $0x650] sm:$0xff]  ;;  %v406_v1 = vld [vmem:[#allocation8 + $0xac8] sm:$0xff] }
  0x7f   :  { %v2286_v24 = vadd.f32 %v2142_v56, %v1706_v10  ;;  %v1707_v26 = vadd.f32 %v1563_v5, %v1127_v11  ;;  %v1565_v27 = vmul.f32 %v7420_v18, %v402_v7  ;;  %v2145_v28 = vmul.f32 %v7425_v25, %v547_v9  ;;  %v407_v2 = vld [vmem:[#allocation8 + $0xad0] sm:$0xff]  ;;  %v551_v3 = vld [vmem:[#allocation8 + $0xf48] sm:$0xff] }
  0x80   :  { %2798 = vst [vmem:[#allocation9 + $0xc0] sm:$0xff] %v2702_v17  ;;  %v1708_v31 = vadd.f32 %v1564_v6, %v1128_v19  ;;  %v1129_v32 = vadd.f32 %v985_v21, %v693_v20  ;;  %v694_v35 = vmul.f32 %v7411_v8, %v113_v15  ;;  %v695_v36 = vmul.f32 %v7411_v8, %v114_v16  ;;  %v552_v6 = vld [vmem:[#allocation8 + $0xf50] sm:$0xff]  ;;  %v118_v15 = vld [vmem:[#allocation8 + $0x1d8] sm:$0xff] }
  0x81   :  { %v2703_v37 = vpack.c.bf16 %v2286_v24, %v2286_v24  ;;  %v2287_v38 = vadd.f32 %v2143_v12, %v1707_v26  ;;  %v986_v39 = vmul.f32 %v7415_v14, %v258_v22  ;;  %v987_v40 = vmul.f32 %v7415_v14, %v259_v23  ;;  %v263_v16 = vld [vmem:[#allocation8 + $0x658] sm:$0xff]  ;;  %v119_v24 = vld [vmem:[#allocation8 + $0x1e0] sm:$0xff] }
  0x82   :  { %v2288_v43 = vadd.f32 %v2144_v13, %v1708_v31  ;;  %v1709_v44 = vadd.f32 %v1565_v27, %v1129_v32  ;;  %v1566_v45 = vmul.f32 %v7420_v18, %v403_v29  ;;  %v1567_v46 = vmul.f32 %v7420_v18, %v404_v30  ;;  %v408_v17 = vld [vmem:[#allocation8 + $0xad8] sm:$0xff]  ;;  %v120_v30 = vld [vmem:[#allocation8 + $0x1e8] sm:$0xff]  ;;  %v264_v31 = vld [vmem:[#allocation8 + $0x660] sm:$0xff] }
  0x83   :  { %2799 = vst [vmem:[#allocation9 + $0xc8] sm:$0xf] %v2703_v37  ;;  %v1130_v49 = vadd.f32 %v986_v39, %v694_v35  ;;  %v1131_v50 = vadd.f32 %v987_v40, %v695_v36  ;;  %v2146_v51 = vmul.f32 %v7425_v25, %v548_v33  ;;  %v2147_v52 = vmul.f32 %v7425_v25, %v549_v34  ;;  %v553_v23 = vld [vmem:[#allocation8 + $0xf58] sm:$0xff]  ;;  %v265_v36 = vld [vmem:[#allocation8 + $0x668] sm:$0xff]  ;;  %v409_v37 = vld [vmem:[#allocation8 + $0xae0] sm:$0xff] }
  0x84   :  { %v2704_v55 = vpack.c.bf16 %v2288_v43, %v2287_v38  ;;  %v2289_v56 = vadd.f32 %v2145_v28, %v1709_v44  ;;  %v696_v57 = vmul.f32 %v7411_v8, %v115_v41  ;;  %v988_v58 = vmul.f32 %v7415_v14, %v260_v42  ;;  %v410_v41 = vld [vmem:[#allocation8 + $0xae8] sm:$0xff]  ;;  %v554_v42 = vld [vmem:[#allocation8 + $0xf60] sm:$0xff] }
  0x85   :  { %v1710_v61 = vadd.f32 %v1566_v45, %v1130_v49  ;;  %v1711_v62 = vadd.f32 %v1567_v46, %v1131_v50  ;;  %v1568_v63 = vmul.f32 %v7420_v18, %v405_v47  ;;  %v2148_v0 = vmul.f32 %v7425_v25, %v550_v48  ;;  %v555_v46 = vld [vmem:[#allocation8 + $0xf68] sm:$0xff]  ;;  %v121_v49 = vld [vmem:[#allocation8 + $0x1f0] sm:$0xff] }
  0x86   :  { %2800 = vst [vmem:[#allocation9 + $0xcc] sm:$0xff] %v2704_v55  ;;  %v2705_v4 = vpack.c.bf16 %v2289_v56, %v2289_v56  ;;  %v1132_v5 = vadd.f32 %v988_v58, %v696_v57  ;;  %v697_v7 = vmul.f32 %v7411_v8, %v116_v53  ;;  %v698_v9 = vmul.f32 %v7411_v8, %v117_v54  ;;  %v266_v54 = vld [vmem:[#allocation8 + $0x670] sm:$0xff] }
  0x87   :  { %v2290_v10 = vadd.f32 %v2146_v51, %v1710_v61  ;;  %v2291_v11 = vadd.f32 %v2147_v52, %v1711_v62  ;;  %v989_v12 = vmul.f32 %v7415_v14, %v261_v59  ;;  %v990_v13 = vmul.f32 %v7415_v14, %v262_v60  ;;  %v411_v55 = vld [vmem:[#allocation8 + $0xaf0] sm:$0xff]  ;;  %v122_v61 = vld [vmem:[#allocation8 + $0x1f8] sm:$0xff]  ;;  %v123_v62 = vld [vmem:[#allocation8 + $0x200] sm:$0xff] }
  0x88   :  { %2801 = vst [vmem:[#allocation9 + $0xd4] sm:$0xf] %v2705_v4  ;;  %v1712_v19 = vadd.f32 %v1568_v63, %v1132_v5  ;;  %v1569_v20 = vmul.f32 %v7420_v18, %v406_v1  ;;  %v1570_v21 = vmul.f32 %v7420_v18, %v407_v2  ;;  %v2149_v22 = vmul.f32 %v7425_v25, %v551_v3  ;;  %v556_v60 = vld [vmem:[#allocation8 + $0xf70] sm:$0xff]  ;;  %v267_v3 = vld [vmem:[#allocation8 + $0x678] sm:$0xff] }
  0x89   :  { %v2706_v26 = vpack.c.bf16 %v2291_v11, %v2290_v10  ;;  %v1133_v27 = vadd.f32 %v989_v12, %v697_v7  ;;  %v1134_v28 = vadd.f32 %v990_v13, %v698_v9  ;;  %v2150_v29 = vmul.f32 %v7425_v25, %v552_v6  ;;  %v268_v9 = vld [vmem:[#allocation8 + $0x680] sm:$0xff]  ;;  %v412_v10 = vld [vmem:[#allocation8 + $0xaf8] sm:$0xff] }
  0x8a   :  { %v2292_v32 = vadd.f32 %v2148_v0, %v1712_v19  ;;  %v699_v33 = vmul.f32 %v7411_v8, %v118_v15  ;;  %v991_v34 = vmul.f32 %v7415_v14, %v263_v16  ;;  %v1571_v35 = vmul.f32 %v7420_v18, %v408_v17  ;;  %v413_v11 = vld [vmem:[#allocation8 + $0xb00] sm:$0xff]  ;;  %v557_v15 = vld [vmem:[#allocation8 + $0xf78] sm:$0xff] }
  0x8b   :  { %2802 = vst [vmem:[#allocation9 + $0xd8] sm:$0xff] %v2706_v26  ;;  %v1713_v38 = vadd.f32 %v1569_v20, %v1133_v27  ;;  %v1714_v39 = vadd.f32 %v1570_v21, %v1134_v28  ;;  %v2151_v40 = vmul.f32 %v7425_v25, %v553_v23  ;;  %v700_v43 = vmul.f32 %v7411_v8, %v119_v24  ;;  %v558_v16 = vld [vmem:[#allocation8 + $0xf80] sm:$0xff]  ;;  %v124_v24 = vld [vmem:[#allocation8 + $0x208] sm:$0xff] }
  0x8c   :  { %v2707_v44 = vpack.c.bf16 %v2292_v32, %v2292_v32  ;;  %v1135_v45 = vadd.f32 %v991_v34, %v699_v33  ;;  %v701_v47 = vmul.f32 %v7411_v8, %v120_v30  ;;  %v992_v48 = vmul.f32 %v7415_v14, %v264_v31  ;;  %v269_v26 = vld [vmem:[#allocation8 + $0x688] sm:$0xff] }
  0x8d   :  { %v2293_v50 = vadd.f32 %v2149_v22, %v1713_v38  ;;  %v2294_v51 = vadd.f32 %v2150_v29, %v1714_v39  ;;  %v993_v52 = vmul.f32 %v7415_v14, %v265_v36  ;;  %v1572_v53 = vmul.f32 %v7420_v18, %v409_v37  ;;  %v414_v31 = vld [vmem:[#allocation8 + $0xb08] sm:$0xff]  ;;  %v125_v37 = vld [vmem:[#allocation8 + $0x210] sm:$0xff]  ;;  %v126_v38 = vld [vmem:[#allocation8 + $0x218] sm:$0xff] }
  0x8e   :  { %2803 = vst [vmem:[#allocation9 + $0xe0] sm:$0xf] %v2707_v44  ;;  %v1715_v56 = vadd.f32 %v1571_v35, %v1135_v45  ;;  %v1136_v57 = vadd.f32 %v992_v48, %v700_v43  ;;  %v1573_v58 = vmul.f32 %v7420_v18, %v410_v41  ;;  %v2152_v59 = vmul.f32 %v7425_v25, %v554_v42  ;;  %v559_v32 = vld [vmem:[#allocation8 + $0xf88] sm:$0xff]  ;;  %v270_v43 = vld [vmem:[#allocation8 + $0x690] sm:$0xff]  ;;  %v271_v44 = vld [vmem:[#allocation8 + $0x698] sm:$0xff] }
  0x8f   :  { %v2708_v63 = vpack.c.bf16 %v2294_v51, %v2293_v50  ;;  %v1137_v0 = vadd.f32 %v993_v52, %v701_v47  ;;  %v2153_v1 = vmul.f32 %v7425_v25, %v555_v46  ;;  %v702_v2 = vmul.f32 %v7411_v8, %v121_v49  ;;  %v415_v49 = vld [vmem:[#allocation8 + $0xb10] sm:$0xff]  ;;  %v416_v50 = vld [vmem:[#allocation8 + $0xb18] sm:$0xff] }
  0x90   :  { %v2295_v4 = vadd.f32 %v2151_v40, %v1715_v56  ;;  %v1716_v5 = vadd.f32 %v1572_v53, %v1136_v57  ;;  %v994_v6 = vmul.f32 %v7415_v14, %v266_v54  ;;  %v1574_v7 = vmul.f32 %v7420_v18, %v411_v55  ;;  %v560_v53 = vld [vmem:[#allocation8 + $0xf90] sm:$0xff]  ;;  %v561_v54 = vld [vmem:[#allocation8 + $0xf98] sm:$0xff] }
  0x91   :  { %2804 = vst [vmem:[#allocation9 + $0xe4] sm:$0xff] %v2708_v63  ;;  %v1717_v12 = vadd.f32 %v1573_v58, %v1137_v0  ;;  %v2154_v13 = vmul.f32 %v7425_v25, %v556_v60  ;;  %v703_v17 = vmul.f32 %v7411_v8, %v122_v61  ;;  %v704_v19 = vmul.f32 %v7411_v8, %v123_v62  ;;  %v127_v61 = vld [vmem:[#allocation8 + $0x220] sm:$0xff] }
  0x92   :  { %v2709_v20 = vpack.c.bf16 %v2295_v4, %v2295_v4  ;;  %v2296_v21 = vadd.f32 %v2152_v59, %v1716_v5  ;;  %v1138_v22 = vadd.f32 %v994_v6, %v702_v2  ;;  %v995_v23 = vmul.f32 %v7415_v14, %v267_v3  ;;  %v272_v62 = vld [vmem:[#allocation8 + $0x6a0] sm:$0xff] }
  0x93   :  { %v2297_v27 = vadd.f32 %v2153_v1, %v1717_v12  ;;  %v996_v28 = vmul.f32 %v7415_v14, %v268_v9  ;;  %v1575_v29 = vmul.f32 %v7420_v18, %v412_v10  ;;  %v1576_v30 = vmul.f32 %v7420_v18, %v413_v11  ;;  %v417_v3 = vld [vmem:[#allocation8 + $0xb20] sm:$0xff]  ;;  %v128_v10 = vld [vmem:[#allocation8 + $0x228] sm:$0xff]  ;;  %v129_v11 = vld [vmem:[#allocation8 + $0x230] sm:$0xff] }
  0x94   :  { %2805 = vst [vmem:[#allocation9 + $0xec] sm:$0xf] %v2709_v20  ;;  %v1718_v33 = vadd.f32 %v1574_v7, %v1138_v22  ;;  %v1139_v34 = vadd.f32 %v995_v23, %v703_v17  ;;  %v2155_v35 = vmul.f32 %v7425_v25, %v557_v15  ;;  %v2156_v36 = vmul.f32 %v7425_v25, %v558_v16  ;;  %v562_v4 = vld [vmem:[#allocation8 + $0xfa0] sm:$0xff]  ;;  %v273_v17 = vld [vmem:[#allocation8 + $0x6a8] sm:$0xff] }
  0x95   :  { %v2710_v39 = vpack.c.bf16 %v2297_v27, %v2296_v21  ;;  %v1140_v40 = vadd.f32 %v996_v28, %v704_v19  ;;  %v705_v41 = vmul.f32 %v7411_v8, %v124_v24  ;;  %v997_v42 = vmul.f32 %v7415_v14, %v269_v26  ;;  %v274_v19 = vld [vmem:[#allocation8 + $0x6b0] sm:$0xff]  ;;  %v418_v24 = vld [vmem:[#allocation8 + $0xb28] sm:$0xff] }
  0x96   :  { %v2298_v45 = vadd.f32 %v2154_v13, %v1718_v33  ;;  %v1719_v46 = vadd.f32 %v1575_v29, %v1139_v34  ;;  %v1577_v47 = vmul.f32 %v7420_v18, %v414_v31  ;;  %v2157_v48 = vmul.f32 %v7425_v25, %v559_v32  ;;  %v419_v26 = vld [vmem:[#allocation8 + $0xb30] sm:$0xff]  ;;  %v563_v27 = vld [vmem:[#allocation8 + $0xfa8] sm:$0xff] }
  0x97   :  { %2806 = vst [vmem:[#allocation9 + $0xf0] sm:$0xff] %v2710_v39  ;;  %v1720_v51 = vadd.f32 %v1576_v30, %v1140_v40  ;;  %v1141_v52 = vadd.f32 %v997_v42, %v705_v41  ;;  %v706_v55 = vmul.f32 %v7411_v8, %v125_v37  ;;  %v707_v56 = vmul.f32 %v7411_v8, %v126_v38  ;;  %v564_v30 = vld [vmem:[#allocation8 + $0xfb0] sm:$0xff]  ;;  %v130_v37 = vld [vmem:[#allocation8 + $0x238] sm:$0xff] }
  0x98   :  { %v2711_v57 = vpack.c.bf16 %v2298_v45, %v2298_v45  ;;  %v2299_v58 = vadd.f32 %v2155_v35, %v1719_v46  ;;  %v998_v59 = vmul.f32 %v7415_v14, %v270_v43  ;;  %v999_v60 = vmul.f32 %v7415_v14, %v271_v44  ;;  %v275_v38 = vld [vmem:[#allocation8 + $0x6b8] sm:$0xff]  ;;  %v131_v45 = vld [vmem:[#allocation8 + $0x240] sm:$0xff] }
  0x99   :  { %v2300_v63 = vadd.f32 %v2156_v36, %v1720_v51  ;;  %v1721_v0 = vadd.f32 %v1577_v47, %v1141_v52  ;;  %v1578_v1 = vmul.f32 %v7420_v18, %v415_v49  ;;  %v1579_v2 = vmul.f32 %v7420_v18, %v416_v50  ;;  %v420_v39 = vld [vmem:[#allocation8 + $0xb38] sm:$0xff]  ;;  %v132_v50 = vld [vmem:[#allocation8 + $0x248] sm:$0xff]  ;;  %v276_v51 = vld [vmem:[#allocation8 + $0x6c0] sm:$0xff] }
  0x9a   :  { %2807 = vst [vmem:[#allocation9 + $0xf8] sm:$0xf] %v2711_v57  ;;  %v1142_v5 = vadd.f32 %v998_v59, %v706_v55  ;;  %v1143_v6 = vadd.f32 %v999_v60, %v707_v56  ;;  %v2158_v7 = vmul.f32 %v7425_v25, %v560_v53  ;;  %v2159_v9 = vmul.f32 %v7425_v25, %v561_v54  ;;  %v565_v44 = vld [vmem:[#allocation8 + $0xfb8] sm:$0xff]  ;;  %v277_v56 = vld [vmem:[#allocation8 + $0x6c8] sm:$0xff]  ;;  %v421_v57 = vld [vmem:[#allocation8 + $0xb40] sm:$0xff] }
  0x9b   :  { %v2712_v12 = vpack.c.bf16 %v2300_v63, %v2299_v58  ;;  %v2301_v13 = vadd.f32 %v2157_v48, %v1721_v0  ;;  %v708_v15 = vmul.f32 %v7411_v8, %v127_v61  ;;  %v1000_v16 = vmul.f32 %v7415_v14, %v272_v62  ;;  %v422_v61 = vld [vmem:[#allocation8 + $0xb48] sm:$0xff]  ;;  %v566_v62 = vld [vmem:[#allocation8 + $0xfc0] sm:$0xff] }
  0x9c   :  { %v1722_v20 = vadd.f32 %v1578_v1, %v1142_v5  ;;  %v1723_v21 = vadd.f32 %v1579_v2, %v1143_v6  ;;  %v1580_v22 = vmul.f32 %v7420_v18, %v417_v3  ;;  %v2160_v23 = vmul.f32 %v7425_v25, %v562_v4  ;;  %v567_v2 = vld [vmem:[#allocation8 + $0xfc8] sm:$0xff]  ;;  %v133_v5 = vld [vmem:[#allocation8 + $0x250] sm:$0xff] }
  0x9d   :  { %2808 = vst [vmem:[#allocation9 + $0xfc] sm:$0xff] %v2712_v12  ;;  %v2713_v28 = vpack.c.bf16 %v2301_v13, %v2301_v13  ;;  %v1144_v29 = vadd.f32 %v1000_v16, %v708_v15  ;;  %v709_v31 = vmul.f32 %v7411_v8, %v128_v10  ;;  %v710_v32 = vmul.f32 %v7411_v8, %v129_v11  ;;  %v278_v11 = vld [vmem:[#allocation8 + $0x6d0] sm:$0xff] }
  0x9e   :  { %v2302_v33 = vadd.f32 %v2158_v7, %v1722_v20  ;;  %v2303_v34 = vadd.f32 %v2159_v9, %v1723_v21  ;;  %v1001_v35 = vmul.f32 %v7415_v14, %v273_v17  ;;  %v1002_v36 = vmul.f32 %v7415_v14, %v274_v19  ;;  %v423_v12 = vld [vmem:[#allocation8 + $0xb50] sm:$0xff]  ;;  %v134_v20 = vld [vmem:[#allocation8 + $0x258] sm:$0xff]  ;;  %v135_v21 = vld [vmem:[#allocation8 + $0x260] sm:$0xff] }
  0x9f   :  { %2809 = vst [vmem:[#allocation9 + $0x104] sm:$0xf] %v2713_v28  ;;  %v1724_v40 = vadd.f32 %v1580_v22, %v1144_v29  ;;  %v1581_v41 = vmul.f32 %v7420_v18, %v418_v24  ;;  %v1582_v42 = vmul.f32 %v7420_v18, %v419_v26  ;;  %v2161_v43 = vmul.f32 %v7425_v25, %v563_v27  ;;  %v568_v19 = vld [vmem:[#allocation8 + $0xfd0] sm:$0xff]  ;;  %v279_v27 = vld [vmem:[#allocation8 + $0x6d8] sm:$0xff] }
  0xa0   :  { %v2714_v46 = vpack.c.bf16 %v2303_v34, %v2302_v33  ;;  %v1145_v47 = vadd.f32 %v1001_v35, %v709_v31  ;;  %v1146_v48 = vadd.f32 %v1002_v36, %v710_v32  ;;  %v2162_v49 = vmul.f32 %v7425_v25, %v564_v30  ;;  %v280_v32 = vld [vmem:[#allocation8 + $0x6e0] sm:$0xff]  ;;  %v424_v33 = vld [vmem:[#allocation8 + $0xb58] sm:$0xff] }
  0xa1   :  { %v2304_v52 = vadd.f32 %v2160_v23, %v1724_v40  ;;  %v711_v53 = vmul.f32 %v7411_v8, %v130_v37  ;;  %v1003_v54 = vmul.f32 %v7415_v14, %v275_v38  ;;  %v1583_v55 = vmul.f32 %v7420_v18, %v420_v39  ;;  %v425_v34 = vld [vmem:[#allocation8 + $0xb60] sm:$0xff]  ;;  %v569_v37 = vld [vmem:[#allocation8 + $0xfd8] sm:$0xff] }
  0xa2   :  { %2810 = vst [vmem:[#allocation9 + $0x108] sm:$0xff] %v2714_v46  ;;  %v1725_v58 = vadd.f32 %v1581_v41, %v1145_v47  ;;  %v1726_v59 = vadd.f32 %v1582_v42, %v1146_v48  ;;  %v2163_v60 = vmul.f32 %v7425_v25, %v565_v44  ;;  %v712_v63 = vmul.f32 %v7411_v8, %v131_v45  ;;  %v570_v38 = vld [vmem:[#allocation8 + $0xfe0] sm:$0xff]  ;;  %v136_v45 = vld [vmem:[#allocation8 + $0x268] sm:$0xff] }
  0xa3   :  { %v2715_v0 = vpack.c.bf16 %v2304_v52, %v2304_v52  ;;  %v1147_v1 = vadd.f32 %v1003_v54, %v711_v53  ;;  %v713_v3 = vmul.f32 %v7411_v8, %v132_v50  ;;  %v1004_v4 = vmul.f32 %v7415_v14, %v276_v51  ;;  %v281_v46 = vld [vmem:[#allocation8 + $0x6e8] sm:$0xff] }
  0xa4   :  { %v2305_v6 = vadd.f32 %v2161_v43, %v1725_v58  ;;  %v2306_v7 = vadd.f32 %v2162_v49, %v1726_v59  ;;  %v1005_v9 = vmul.f32 %v7415_v14, %v277_v56  ;;  %v1584_v10 = vmul.f32 %v7420_v18, %v421_v57  ;;  %v426_v51 = vld [vmem:[#allocation8 + $0xb68] sm:$0xff]  ;;  %v137_v57 = vld [vmem:[#allocation8 + $0x270] sm:$0xff]  ;;  %v138_v58 = vld [vmem:[#allocation8 + $0x278] sm:$0xff] }
  0xa5   :  { %2811 = vst [vmem:[#allocation9 + $0x110] sm:$0xf] %v2715_v0  ;;  %v1727_v13 = vadd.f32 %v1583_v55, %v1147_v1  ;;  %v1148_v15 = vadd.f32 %v1004_v4, %v712_v63  ;;  %v1585_v16 = vmul.f32 %v7420_v18, %v422_v61  ;;  %v2164_v17 = vmul.f32 %v7425_v25, %v566_v62  ;;  %v571_v52 = vld [vmem:[#allocation8 + $0xfe8] sm:$0xff]  ;;  %v282_v63 = vld [vmem:[#allocation8 + $0x6f0] sm:$0xff]  ;;  %v283_v0 = vld [vmem:[#allocation8 + $0x6f8] sm:$0xff] }
  0xa6   :  { %v2716_v22 = vpack.c.bf16 %v2306_v7, %v2305_v6  ;;  %v1149_v23 = vadd.f32 %v1005_v9, %v713_v3  ;;  %v2165_v24 = vmul.f32 %v7425_v25, %v567_v2  ;;  %v714_v26 = vmul.f32 %v7411_v8, %v133_v5  ;;  %v427_v5 = vld [vmem:[#allocation8 + $0xb70] sm:$0xff]  ;;  %v428_v6 = vld [vmem:[#allocation8 + $0xb78] sm:$0xff] }
  0xa7   :  { %v2307_v28 = vadd.f32 %v2163_v60, %v1727_v13  ;;  %v1728_v29 = vadd.f32 %v1584_v10, %v1148_v15  ;;  %v1006_v30 = vmul.f32 %v7415_v14, %v278_v11  ;;  %v1586_v31 = vmul.f32 %v7420_v18, %v423_v12  ;;  %v572_v10 = vld [vmem:[#allocation8 + $0xff0] sm:$0xff]  ;;  %v573_v11 = vld [vmem:[#allocation8 + $0xff8] sm:$0xff] }
  0xa8   :  { %2812 = vst [vmem:[#allocation9 + $0x114] sm:$0xff] %v2716_v22  ;;  %v1729_v35 = vadd.f32 %v1585_v16, %v1149_v23  ;;  %v2166_v36 = vmul.f32 %v7425_v25, %v568_v19  ;;  %v715_v39 = vmul.f32 %v7411_v8, %v134_v20  ;;  %v716_v40 = vmul.f32 %v7411_v8, %v135_v21  ;;  %v139_v20 = vld [vmem:[#allocation8 + $0x280] sm:$0xff] }
  0xa9   :  { %v2717_v41 = vpack.c.bf16 %v2307_v28, %v2307_v28  ;;  %v2308_v42 = vadd.f32 %v2164_v17, %v1728_v29  ;;  %v1150_v43 = vadd.f32 %v1006_v30, %v714_v26  ;;  %v1007_v44 = vmul.f32 %v7415_v14, %v279_v27  ;;  %v284_v21 = vld [vmem:[#allocation8 + $0x700] sm:$0xff] }
  0xaa   :  { %v2309_v47 = vadd.f32 %v2165_v24, %v1729_v35  ;;  %v1008_v48 = vmul.f32 %v7415_v14, %v280_v32  ;;  %v1587_v49 = vmul.f32 %v7420_v18, %v424_v33  ;;  %v1588_v50 = vmul.f32 %v7420_v18, %v425_v34  ;;  %v429_v27 = vld [vmem:[#allocation8 + $0xb80] sm:$0xff]  ;;  %v140_v33 = vld [vmem:[#allocation8 + $0x288] sm:$0xff]  ;;  %v141_v34 = vld [vmem:[#allocation8 + $0x290] sm:$0xff] }
  0xab   :  { %2813 = vst [vmem:[#allocation9 + $0x11c] sm:$0xf] %v2717_v41  ;;  %v1730_v53 = vadd.f32 %v1586_v31, %v1150_v43  ;;  %v1151_v54 = vadd.f32 %v1007_v44, %v715_v39  ;;  %v2167_v55 = vmul.f32 %v7425_v25, %v569_v37  ;;  %v2168_v56 = vmul.f32 %v7425_v25, %v570_v38  ;;  %v574_v28 = vld [vmem:[#allocation8 + $0x1000] sm:$0xff]  ;;  %v285_v39 = vld [vmem:[#allocation8 + $0x708] sm:$0xff] }
  0xac   :  { %v2718_v59 = vpack.c.bf16 %v2309_v47, %v2308_v42  ;;  %v1152_v60 = vadd.f32 %v1008_v48, %v716_v40  ;;  %v717_v61 = vmul.f32 %v7411_v8, %v136_v45  ;;  %v1009_v62 = vmul.f32 %v7415_v14, %v281_v46  ;;  %v286_v40 = vld [vmem:[#allocation8 + $0x710] sm:$0xff]  ;;  %v430_v45 = vld [vmem:[#allocation8 + $0xb88] sm:$0xff] }
  0xad   :  { %v2310_v1 = vadd.f32 %v2166_v36, %v1730_v53  ;;  %v1731_v2 = vadd.f32 %v1587_v49, %v1151_v54  ;;  %v1589_v3 = vmul.f32 %v7420_v18, %v426_v51  ;;  %v2169_v4 = vmul.f32 %v7425_v25, %v571_v52  ;;  %v431_v46 = vld [vmem:[#allocation8 + $0xb90] sm:$0xff]  ;;  %v575_v47 = vld [vmem:[#allocation8 + $0x1008] sm:$0xff] }
  0xae   :  { %2814 = vst [vmem:[#allocation9 + $0x120] sm:$0xff] %v2718_v59  ;;  %v1732_v7 = vadd.f32 %v1588_v50, %v1152_v60  ;;  %v1153_v9 = vadd.f32 %v1009_v62, %v717_v61  ;;  %v718_v12 = vmul.f32 %v7411_v8, %v137_v57  ;;  %v719_v13 = vmul.f32 %v7411_v8, %v138_v58  ;;  %v576_v50 = vld [vmem:[#allocation8 + $0x1010] sm:$0xff]  ;;  %v142_v57 = vld [vmem:[#allocation8 + $0x298] sm:$0xff] }
  0xaf   :  { %v2719_v15 = vpack.c.bf16 %v2310_v1, %v2310_v1  ;;  %v2311_v16 = vadd.f32 %v2167_v55, %v1731_v2  ;;  %v1010_v17 = vmul.f32 %v7415_v14, %v282_v63  ;;  %v1011_v19 = vmul.f32 %v7415_v14, %v283_v0  ;;  %v287_v58 = vld [vmem:[#allocation8 + $0x718] sm:$0xff]  ;;  %v143_v1 = vld [vmem:[#allocation8 + $0x2a0] sm:$0xff] }
  0xb0   :  { %v2312_v22 = vadd.f32 %v2168_v56, %v1732_v7  ;;  %v1733_v23 = vadd.f32 %v1589_v3, %v1153_v9  ;;  %v1590_v24 = vmul.f32 %v7420_v18, %v427_v5  ;;  %v1591_v26 = vmul.f32 %v7420_v18, %v428_v6  ;;  %v432_v59 = vld [vmem:[#allocation8 + $0xb98] sm:$0xff]  ;;  %v144_v6 = vld [vmem:[#allocation8 + $0x2a8] sm:$0xff]  ;;  %v288_v7 = vld [vmem:[#allocation8 + $0x720] sm:$0xff] }
  0xb1   :  { %2815 = vst [vmem:[#allocation9 + $0x128] sm:$0xf] %v2719_v15  ;;  %v1154_v29 = vadd.f32 %v1010_v17, %v718_v12  ;;  %v1155_v30 = vadd.f32 %v1011_v19, %v719_v13  ;;  %v2170_v31 = vmul.f32 %v7425_v25, %v572_v10  ;;  %v2171_v32 = vmul.f32 %v7425_v25, %v573_v11  ;;  %v577_v0 = vld [vmem:[#allocation8 + $0x1018] sm:$0xff]  ;;  %v289_v13 = vld [vmem:[#allocation8 + $0x728] sm:$0xff]  ;;  %v433_v15 = vld [vmem:[#allocation8 + $0xba0] sm:$0xff] }
  0xb2   :  { %v2720_v35 = vpack.c.bf16 %v2312_v22, %v2311_v16  ;;  %v2313_v36 = vadd.f32 %v2169_v4, %v1733_v23  ;;  %v720_v37 = vmul.f32 %v7411_v8, %v139_v20  ;;  %v1012_v38 = vmul.f32 %v7415_v14, %v284_v21  ;;  %v434_v20 = vld [vmem:[#allocation8 + $0xba8] sm:$0xff]  ;;  %v578_v21 = vld [vmem:[#allocation8 + $0x1020] sm:$0xff] }
  0xb3   :  { %v1734_v41 = vadd.f32 %v1590_v24, %v1154_v29  ;;  %v1735_v42 = vadd.f32 %v1591_v26, %v1155_v30  ;;  %v1592_v43 = vmul.f32 %v7420_v18, %v429_v27  ;;  %v2172_v44 = vmul.f32 %v7425_v25, %v574_v28  ;;  %v579_v26 = vld [vmem:[#allocation8 + $0x1028] sm:$0xff]  ;;  %v145_v29 = vld [vmem:[#allocation8 + $0x2b0] sm:$0xff] }
  0xb4   :  { %2816 = vst [vmem:[#allocation9 + $0x12c] sm:$0xff] %v2720_v35  ;;  %v2721_v48 = vpack.c.bf16 %v2313_v36, %v2313_v36  ;;  %v1156_v49 = vadd.f32 %v1012_v38, %v720_v37  ;;  %v721_v51 = vmul.f32 %v7411_v8, %v140_v33  ;;  %v722_v52 = vmul.f32 %v7411_v8, %v141_v34  ;;  %v290_v34 = vld [vmem:[#allocation8 + $0x730] sm:$0xff] }
  0xb5   :  { %v2314_v53 = vadd.f32 %v2170_v31, %v1734_v41  ;;  %v2315_v54 = vadd.f32 %v2171_v32, %v1735_v42  ;;  %v1013_v55 = vmul.f32 %v7415_v14, %v285_v39  ;;  %v1014_v56 = vmul.f32 %v7415_v14, %v286_v40  ;;  %v435_v35 = vld [vmem:[#allocation8 + $0xbb0] sm:$0xff]  ;;  %v146_v41 = vld [vmem:[#allocation8 + $0x2b8] sm:$0xff]  ;;  %v147_v42 = vld [vmem:[#allocation8 + $0x2c0] sm:$0xff] }
  0xb6   :  { %2817 = vst [vmem:[#allocation9 + $0x134] sm:$0xf] %v2721_v48  ;;  %v1736_v60 = vadd.f32 %v1592_v43, %v1156_v49  ;;  %v1593_v61 = vmul.f32 %v7420_v18, %v430_v45  ;;  %v1594_v62 = vmul.f32 %v7420_v18, %v431_v46  ;;  %v2173_v63 = vmul.f32 %v7425_v25, %v575_v47  ;;  %v580_v40 = vld [vmem:[#allocation8 + $0x1030] sm:$0xff]  ;;  %v291_v47 = vld [vmem:[#allocation8 + $0x738] sm:$0xff] }
  0xb7   :  { %v2722_v2 = vpack.c.bf16 %v2315_v54, %v2314_v53  ;;  %v1157_v3 = vadd.f32 %v1013_v55, %v721_v51  ;;  %v1158_v4 = vadd.f32 %v1014_v56, %v722_v52  ;;  %v2174_v5 = vmul.f32 %v7425_v25, %v576_v50  ;;  %v292_v52 = vld [vmem:[#allocation8 + $0x740] sm:$0xff]  ;;  %v436_v53 = vld [vmem:[#allocation8 + $0xbb8] sm:$0xff] }
  0xb8   :  { %v2316_v9 = vadd.f32 %v2172_v44, %v1736_v60  ;;  %v723_v10 = vmul.f32 %v7411_v8, %v142_v57  ;;  %v1015_v11 = vmul.f32 %v7415_v14, %v287_v58  ;;  %v1595_v12 = vmul.f32 %v7420_v18, %v432_v59  ;;  %v437_v54 = vld [vmem:[#allocation8 + $0xbc0] sm:$0xff]  ;;  %v581_v57 = vld [vmem:[#allocation8 + $0x1038] sm:$0xff] }
  0xb9   :  { %2818 = vst [vmem:[#allocation9 + $0x138] sm:$0xff] %v2722_v2  ;;  %v1737_v16 = vadd.f32 %v1593_v61, %v1157_v3  ;;  %v1738_v17 = vadd.f32 %v1594_v62, %v1158_v4  ;;  %v2175_v19 = vmul.f32 %v7425_v25, %v577_v0  ;;  %v724_v22 = vmul.f32 %v7411_v8, %v143_v1  ;;  %v582_v58 = vld [vmem:[#allocation8 + $0x1040] sm:$0xff]  ;;  %v148_v1 = vld [vmem:[#allocation8 + $0x2c8] sm:$0xff] }
  0xba   :  { %v2723_v23 = vpack.c.bf16 %v2316_v9, %v2316_v9  ;;  %v1159_v24 = vadd.f32 %v1015_v11, %v723_v10  ;;  %v725_v27 = vmul.f32 %v7411_v8, %v144_v6  ;;  %v1016_v28 = vmul.f32 %v7415_v14, %v288_v7  ;;  %v293_v2 = vld [vmem:[#allocation8 + $0x748] sm:$0xff] }
  0xbb   :  { %v2317_v30 = vadd.f32 %v2173_v63, %v1737_v16  ;;  %v2318_v31 = vadd.f32 %v2174_v5, %v1738_v17  ;;  %v1017_v32 = vmul.f32 %v7415_v14, %v289_v13  ;;  %v1596_v33 = vmul.f32 %v7420_v18, %v433_v15  ;;  %v438_v7 = vld [vmem:[#allocation8 + $0xbc8] sm:$0xff]  ;;  %v149_v15 = vld [vmem:[#allocation8 + $0x2d0] sm:$0xff]  ;;  %v150_v16 = vld [vmem:[#allocation8 + $0x2d8] sm:$0xff] }
  0xbc   :  { %2819 = vst [vmem:[#allocation9 + $0x140] sm:$0xf] %v2723_v23  ;;  %v1739_v36 = vadd.f32 %v1595_v12, %v1159_v24  ;;  %v1160_v37 = vadd.f32 %v1016_v28, %v724_v22  ;;  %v1597_v38 = vmul.f32 %v7420_v18, %v434_v20  ;;  %v2176_v39 = vmul.f32 %v7425_v25, %v578_v21  ;;  %v583_v9 = vld [vmem:[#allocation8 + $0x1048] sm:$0xff]  ;;  %v294_v22 = vld [vmem:[#allocation8 + $0x750] sm:$0xff]  ;;  %v295_v23 = vld [vmem:[#allocation8 + $0x758] sm:$0xff] }
  0xbd   :  { %v2724_v43 = vpack.c.bf16 %v2318_v31, %v2317_v30  ;;  %v1161_v44 = vadd.f32 %v1017_v32, %v725_v27  ;;  %v2177_v45 = vmul.f32 %v7425_v25, %v579_v26  ;;  %v726_v46 = vmul.f32 %v7411_v8, %v145_v29  ;;  %v439_v29 = vld [vmem:[#allocation8 + $0xbd0] sm:$0xff]  ;;  %v440_v30 = vld [vmem:[#allocation8 + $0xbd8] sm:$0xff] }
  0xbe   :  { %v2319_v48 = vadd.f32 %v2175_v19, %v1739_v36  ;;  %v1740_v49 = vadd.f32 %v1596_v33, %v1160_v37  ;;  %v1018_v50 = vmul.f32 %v7415_v14, %v290_v34  ;;  %v1598_v51 = vmul.f32 %v7420_v18, %v435_v35  ;;  %v584_v33 = vld [vmem:[#allocation8 + $0x1050] sm:$0xff]  ;;  %v585_v34 = vld [vmem:[#allocation8 + $0x1058] sm:$0xff] }
  0xbf   :  { %2820 = vst [vmem:[#allocation9 + $0x144] sm:$0xff] %v2724_v43  ;;  %v1741_v55 = vadd.f32 %v1597_v38, %v1161_v44  ;;  %v2178_v56 = vmul.f32 %v7425_v25, %v580_v40  ;;  %v727_v59 = vmul.f32 %v7411_v8, %v146_v41  ;;  %v728_v60 = vmul.f32 %v7411_v8, %v147_v42  ;;  %v151_v41 = vld [vmem:[#allocation8 + $0x2e0] sm:$0xff] }
  0xc0   :  { %v2725_v61 = vpack.c.bf16 %v2319_v48, %v2319_v48  ;;  %v2320_v62 = vadd.f32 %v2176_v39, %v1740_v49  ;;  %v1162_v63 = vadd.f32 %v1018_v50, %v726_v46  ;;  %v1019_v0 = vmul.f32 %v7415_v14, %v291_v47  ;;  %v296_v42 = vld [vmem:[#allocation8 + $0x760] sm:$0xff] }
  0xc1   :  { %v2321_v3 = vadd.f32 %v2177_v45, %v1741_v55  ;;  %v1020_v4 = vmul.f32 %v7415_v14, %v292_v52  ;;  %v1599_v5 = vmul.f32 %v7420_v18, %v436_v53  ;;  %v1600_v6 = vmul.f32 %v7420_v18, %v437_v54  ;;  %v441_v47 = vld [vmem:[#allocation8 + $0xbe0] sm:$0xff]  ;;  %v152_v53 = vld [vmem:[#allocation8 + $0x2e8] sm:$0xff]  ;;  %v153_v54 = vld [vmem:[#allocation8 + $0x2f0] sm:$0xff] }
  0xc2   :  { %2821 = vst [vmem:[#allocation9 + $0x14c] sm:$0xf] %v2725_v61  ;;  %v1742_v10 = vadd.f32 %v1598_v51, %v1162_v63  ;;  %v1163_v11 = vadd.f32 %v1019_v0, %v727_v59  ;;  %v2179_v12 = vmul.f32 %v7425_v25, %v581_v57  ;;  %v2180_v13 = vmul.f32 %v7425_v25, %v582_v58  ;;  %v586_v48 = vld [vmem:[#allocation8 + $0x1060] sm:$0xff]  ;;  %v297_v59 = vld [vmem:[#allocation8 + $0x768] sm:$0xff] }
  0xc3   :  { %v2726_v17 = vpack.c.bf16 %v2321_v3, %v2320_v62  ;;  %v1164_v19 = vadd.f32 %v1020_v4, %v728_v60  ;;  %v729_v20 = vmul.f32 %v7411_v8, %v148_v1  ;;  %v1021_v21 = vmul.f32 %v7415_v14, %v293_v2  ;;  %v298_v60 = vld [vmem:[#allocation8 + $0x770] sm:$0xff]  ;;  %v442_v1 = vld [vmem:[#allocation8 + $0xbe8] sm:$0xff] }
  0xc4   :  { %v2322_v24 = vadd.f32 %v2178_v56, %v1742_v10  ;;  %v1743_v26 = vadd.f32 %v1599_v5, %v1163_v11  ;;  %v1601_v27 = vmul.f32 %v7420_v18, %v438_v7  ;;  %v2181_v28 = vmul.f32 %v7425_v25, %v583_v9  ;;  %v443_v2 = vld [vmem:[#allocation8 + $0xbf0] sm:$0xff]  ;;  %v587_v3 = vld [vmem:[#allocation8 + $0x1068] sm:$0xff] }
  0xc5   :  { %2822 = vst [vmem:[#allocation9 + $0x150] sm:$0xff] %v2726_v17  ;;  %v1744_v31 = vadd.f32 %v1600_v6, %v1164_v19  ;;  %v1165_v32 = vadd.f32 %v1021_v21, %v729_v20  ;;  %v730_v35 = vmul.f32 %v7411_v8, %v149_v15  ;;  %v731_v36 = vmul.f32 %v7411_v8, %v150_v16  ;;  %v588_v6 = vld [vmem:[#allocation8 + $0x1070] sm:$0xff]  ;;  %v154_v15 = vld [vmem:[#allocation8 + $0x2f8] sm:$0xff] }
  0xc6   :  { %v2727_v37 = vpack.c.bf16 %v2322_v24, %v2322_v24  ;;  %v2323_v38 = vadd.f32 %v2179_v12, %v1743_v26  ;;  %v1022_v39 = vmul.f32 %v7415_v14, %v294_v22  ;;  %v1023_v40 = vmul.f32 %v7415_v14, %v295_v23  ;;  %v299_v16 = vld [vmem:[#allocation8 + $0x778] sm:$0xff]  ;;  %v155_v24 = vld [vmem:[#allocation8 + $0x300] sm:$0xff] }
  0xc7   :  { %v2324_v43 = vadd.f32 %v2180_v13, %v1744_v31  ;;  %v1745_v44 = vadd.f32 %v1601_v27, %v1165_v32  ;;  %v1602_v45 = vmul.f32 %v7420_v18, %v439_v29  ;;  %v1603_v46 = vmul.f32 %v7420_v18, %v440_v30  ;;  %v444_v17 = vld [vmem:[#allocation8 + $0xbf8] sm:$0xff]  ;;  %v156_v30 = vld [vmem:[#allocation8 + $0x308] sm:$0xff]  ;;  %v300_v31 = vld [vmem:[#allocation8 + $0x780] sm:$0xff] }
  0xc8   :  { %2823 = vst [vmem:[#allocation9 + $0x158] sm:$0xf] %v2727_v37  ;;  %v1166_v49 = vadd.f32 %v1022_v39, %v730_v35  ;;  %v1167_v50 = vadd.f32 %v1023_v40, %v731_v36  ;;  %v2182_v51 = vmul.f32 %v7425_v25, %v584_v33  ;;  %v2183_v52 = vmul.f32 %v7425_v25, %v585_v34  ;;  %v589_v23 = vld [vmem:[#allocation8 + $0x1078] sm:$0xff]  ;;  %v301_v36 = vld [vmem:[#allocation8 + $0x788] sm:$0xff]  ;;  %v445_v37 = vld [vmem:[#allocation8 + $0xc00] sm:$0xff] }
  0xc9   :  { %v2728_v55 = vpack.c.bf16 %v2324_v43, %v2323_v38  ;;  %v2325_v56 = vadd.f32 %v2181_v28, %v1745_v44  ;;  %v732_v57 = vmul.f32 %v7411_v8, %v151_v41  ;;  %v1024_v58 = vmul.f32 %v7415_v14, %v296_v42  ;;  %v446_v41 = vld [vmem:[#allocation8 + $0xc08] sm:$0xff]  ;;  %v590_v42 = vld [vmem:[#allocation8 + $0x1080] sm:$0xff] }
  0xca   :  { %v1746_v61 = vadd.f32 %v1602_v45, %v1166_v49  ;;  %v1747_v62 = vadd.f32 %v1603_v46, %v1167_v50  ;;  %v1604_v63 = vmul.f32 %v7420_v18, %v441_v47  ;;  %v2184_v0 = vmul.f32 %v7425_v25, %v586_v48  ;;  %v591_v46 = vld [vmem:[#allocation8 + $0x1088] sm:$0xff]  ;;  %v157_v49 = vld [vmem:[#allocation8 + $0x310] sm:$0xff] }
  0xcb   :  { %2824 = vst [vmem:[#allocation9 + $0x15c] sm:$0xff] %v2728_v55  ;;  %v2729_v4 = vpack.c.bf16 %v2325_v56, %v2325_v56  ;;  %v1168_v5 = vadd.f32 %v1024_v58, %v732_v57  ;;  %v733_v7 = vmul.f32 %v7411_v8, %v152_v53  ;;  %v734_v9 = vmul.f32 %v7411_v8, %v153_v54  ;;  %v302_v54 = vld [vmem:[#allocation8 + $0x790] sm:$0xff] }
  0xcc   :  { %v2326_v10 = vadd.f32 %v2182_v51, %v1746_v61  ;;  %v2327_v11 = vadd.f32 %v2183_v52, %v1747_v62  ;;  %v1025_v12 = vmul.f32 %v7415_v14, %v297_v59  ;;  %v1026_v13 = vmul.f32 %v7415_v14, %v298_v60  ;;  %v447_v55 = vld [vmem:[#allocation8 + $0xc10] sm:$0xff]  ;;  %v158_v61 = vld [vmem:[#allocation8 + $0x318] sm:$0xff]  ;;  %v159_v62 = vld [vmem:[#allocation8 + $0x320] sm:$0xff] }
  0xcd   :  { %2825 = vst [vmem:[#allocation9 + $0x164] sm:$0xf] %v2729_v4  ;;  %v1748_v19 = vadd.f32 %v1604_v63, %v1168_v5  ;;  %v1605_v20 = vmul.f32 %v7420_v18, %v442_v1  ;;  %v1606_v21 = vmul.f32 %v7420_v18, %v443_v2  ;;  %v2185_v22 = vmul.f32 %v7425_v25, %v587_v3  ;;  %v592_v60 = vld [vmem:[#allocation8 + $0x1090] sm:$0xff]  ;;  %v303_v3 = vld [vmem:[#allocation8 + $0x798] sm:$0xff] }
  0xce   :  { %v2730_v26 = vpack.c.bf16 %v2327_v11, %v2326_v10  ;;  %v1169_v27 = vadd.f32 %v1025_v12, %v733_v7  ;;  %v1170_v28 = vadd.f32 %v1026_v13, %v734_v9  ;;  %v2186_v29 = vmul.f32 %v7425_v25, %v588_v6  ;;  %v304_v9 = vld [vmem:[#allocation8 + $0x7a0] sm:$0xff]  ;;  %v448_v10 = vld [vmem:[#allocation8 + $0xc18] sm:$0xff] }
  0xcf   :  { %v2328_v32 = vadd.f32 %v2184_v0, %v1748_v19  ;;  %v735_v33 = vmul.f32 %v7411_v8, %v154_v15  ;;  %v1027_v34 = vmul.f32 %v7415_v14, %v299_v16  ;;  %v1607_v35 = vmul.f32 %v7420_v18, %v444_v17  ;;  %v449_v11 = vld [vmem:[#allocation8 + $0xc20] sm:$0xff]  ;;  %v593_v15 = vld [vmem:[#allocation8 + $0x1098] sm:$0xff] }
  0xd0   :  { %2826 = vst [vmem:[#allocation9 + $0x168] sm:$0xff] %v2730_v26  ;;  %v1749_v38 = vadd.f32 %v1605_v20, %v1169_v27  ;;  %v1750_v39 = vadd.f32 %v1606_v21, %v1170_v28  ;;  %v2187_v40 = vmul.f32 %v7425_v25, %v589_v23  ;;  %v736_v43 = vmul.f32 %v7411_v8, %v155_v24  ;;  %v594_v16 = vld [vmem:[#allocation8 + $0x10a0] sm:$0xff]  ;;  %v160_v24 = vld [vmem:[#allocation8 + $0x328] sm:$0xff] }
  0xd1   :  { %v2731_v44 = vpack.c.bf16 %v2328_v32, %v2328_v32  ;;  %v1171_v45 = vadd.f32 %v1027_v34, %v735_v33  ;;  %v737_v47 = vmul.f32 %v7411_v8, %v156_v30  ;;  %v1028_v48 = vmul.f32 %v7415_v14, %v300_v31  ;;  %v305_v26 = vld [vmem:[#allocation8 + $0x7a8] sm:$0xff] }
  0xd2   :  { %v2329_v50 = vadd.f32 %v2185_v22, %v1749_v38  ;;  %v2330_v51 = vadd.f32 %v2186_v29, %v1750_v39  ;;  %v1029_v52 = vmul.f32 %v7415_v14, %v301_v36  ;;  %v1608_v53 = vmul.f32 %v7420_v18, %v445_v37  ;;  %v450_v31 = vld [vmem:[#allocation8 + $0xc28] sm:$0xff]  ;;  %v161_v37 = vld [vmem:[#allocation8 + $0x330] sm:$0xff]  ;;  %v162_v38 = vld [vmem:[#allocation8 + $0x338] sm:$0xff] }
  0xd3   :  { %2827 = vst [vmem:[#allocation9 + $0x170] sm:$0xf] %v2731_v44  ;;  %v1751_v56 = vadd.f32 %v1607_v35, %v1171_v45  ;;  %v1172_v57 = vadd.f32 %v1028_v48, %v736_v43  ;;  %v1609_v58 = vmul.f32 %v7420_v18, %v446_v41  ;;  %v2188_v59 = vmul.f32 %v7425_v25, %v590_v42  ;;  %v595_v32 = vld [vmem:[#allocation8 + $0x10a8] sm:$0xff]  ;;  %v306_v43 = vld [vmem:[#allocation8 + $0x7b0] sm:$0xff]  ;;  %v307_v44 = vld [vmem:[#allocation8 + $0x7b8] sm:$0xff] }
  0xd4   :  { %v2732_v63 = vpack.c.bf16 %v2330_v51, %v2329_v50  ;;  %v1173_v0 = vadd.f32 %v1029_v52, %v737_v47  ;;  %v2189_v1 = vmul.f32 %v7425_v25, %v591_v46  ;;  %v738_v2 = vmul.f32 %v7411_v8, %v157_v49  ;;  %v451_v49 = vld [vmem:[#allocation8 + $0xc30] sm:$0xff]  ;;  %v452_v50 = vld [vmem:[#allocation8 + $0xc38] sm:$0xff] }
  0xd5   :  { %v2331_v4 = vadd.f32 %v2187_v40, %v1751_v56  ;;  %v1752_v5 = vadd.f32 %v1608_v53, %v1172_v57  ;;  %v1030_v6 = vmul.f32 %v7415_v14, %v302_v54  ;;  %v1610_v7 = vmul.f32 %v7420_v18, %v447_v55  ;;  %v596_v53 = vld [vmem:[#allocation8 + $0x10b0] sm:$0xff]  ;;  %v597_v54 = vld [vmem:[#allocation8 + $0x10b8] sm:$0xff] }
  0xd6   :  { %2828 = vst [vmem:[#allocation9 + $0x174] sm:$0xff] %v2732_v63  ;;  %v1753_v12 = vadd.f32 %v1609_v58, %v1173_v0  ;;  %v2190_v13 = vmul.f32 %v7425_v25, %v592_v60  ;;  %v739_v17 = vmul.f32 %v7411_v8, %v158_v61  ;;  %v740_v19 = vmul.f32 %v7411_v8, %v159_v62  ;;  %v163_v61 = vld [vmem:[#allocation8 + $0x340] sm:$0xff] }
  0xd7   :  { %v2733_v20 = vpack.c.bf16 %v2331_v4, %v2331_v4  ;;  %v2332_v21 = vadd.f32 %v2188_v59, %v1752_v5  ;;  %v1174_v22 = vadd.f32 %v1030_v6, %v738_v2  ;;  %v1031_v23 = vmul.f32 %v7415_v14, %v303_v3  ;;  %v308_v62 = vld [vmem:[#allocation8 + $0x7c0] sm:$0xff] }
  0xd8   :  { %v2333_v27 = vadd.f32 %v2189_v1, %v1753_v12  ;;  %v1032_v28 = vmul.f32 %v7415_v14, %v304_v9  ;;  %v1611_v29 = vmul.f32 %v7420_v18, %v448_v10  ;;  %v1612_v30 = vmul.f32 %v7420_v18, %v449_v11  ;;  %v453_v3 = vld [vmem:[#allocation8 + $0xc40] sm:$0xff]  ;;  %v164_v10 = vld [vmem:[#allocation8 + $0x348] sm:$0xff]  ;;  %v165_v11 = vld [vmem:[#allocation8 + $0x350] sm:$0xff] }
  0xd9   :  { %2829 = vst [vmem:[#allocation9 + $0x17c] sm:$0xf] %v2733_v20  ;;  %v1754_v33 = vadd.f32 %v1610_v7, %v1174_v22  ;;  %v1175_v34 = vadd.f32 %v1031_v23, %v739_v17  ;;  %v2191_v35 = vmul.f32 %v7425_v25, %v593_v15  ;;  %v2192_v36 = vmul.f32 %v7425_v25, %v594_v16  ;;  %v598_v4 = vld [vmem:[#allocation8 + $0x10c0] sm:$0xff]  ;;  %v309_v17 = vld [vmem:[#allocation8 + $0x7c8] sm:$0xff] }
  0xda   :  { %v2734_v39 = vpack.c.bf16 %v2333_v27, %v2332_v21  ;;  %v1176_v40 = vadd.f32 %v1032_v28, %v740_v19  ;;  %v741_v41 = vmul.f32 %v7411_v8, %v160_v24  ;;  %v1033_v42 = vmul.f32 %v7415_v14, %v305_v26  ;;  %v310_v19 = vld [vmem:[#allocation8 + $0x7d0] sm:$0xff]  ;;  %v454_v24 = vld [vmem:[#allocation8 + $0xc48] sm:$0xff] }
  0xdb   :  { %v2334_v45 = vadd.f32 %v2190_v13, %v1754_v33  ;;  %v1755_v46 = vadd.f32 %v1611_v29, %v1175_v34  ;;  %v1613_v47 = vmul.f32 %v7420_v18, %v450_v31  ;;  %v2193_v48 = vmul.f32 %v7425_v25, %v595_v32  ;;  %v455_v26 = vld [vmem:[#allocation8 + $0xc50] sm:$0xff]  ;;  %v599_v27 = vld [vmem:[#allocation8 + $0x10c8] sm:$0xff] }
  0xdc   :  { %2830 = vst [vmem:[#allocation9 + $0x180] sm:$0xff] %v2734_v39  ;;  %v1756_v51 = vadd.f32 %v1612_v30, %v1176_v40  ;;  %v1177_v52 = vadd.f32 %v1033_v42, %v741_v41  ;;  %v742_v55 = vmul.f32 %v7411_v8, %v161_v37  ;;  %v743_v56 = vmul.f32 %v7411_v8, %v162_v38  ;;  %v600_v30 = vld [vmem:[#allocation8 + $0x10d0] sm:$0xff]  ;;  %v166_v37 = vld [vmem:[#allocation8 + $0x358] sm:$0xff] }
  0xdd   :  { %v2735_v57 = vpack.c.bf16 %v2334_v45, %v2334_v45  ;;  %v2335_v58 = vadd.f32 %v2191_v35, %v1755_v46  ;;  %v1034_v59 = vmul.f32 %v7415_v14, %v306_v43  ;;  %v1035_v60 = vmul.f32 %v7415_v14, %v307_v44  ;;  %v311_v38 = vld [vmem:[#allocation8 + $0x7d8] sm:$0xff]  ;;  %v167_v45 = vld [vmem:[#allocation8 + $0x360] sm:$0xff] }
  0xde   :  { %v2336_v63 = vadd.f32 %v2192_v36, %v1756_v51  ;;  %v1757_v0 = vadd.f32 %v1613_v47, %v1177_v52  ;;  %v1614_v1 = vmul.f32 %v7420_v18, %v451_v49  ;;  %v1615_v2 = vmul.f32 %v7420_v18, %v452_v50  ;;  %v456_v39 = vld [vmem:[#allocation8 + $0xc58] sm:$0xff]  ;;  %v168_v50 = vld [vmem:[#allocation8 + $0x368] sm:$0xff]  ;;  %v312_v51 = vld [vmem:[#allocation8 + $0x7e0] sm:$0xff] }
  0xdf   :  { %2831 = vst [vmem:[#allocation9 + $0x188] sm:$0xf] %v2735_v57  ;;  %v1178_v5 = vadd.f32 %v1034_v59, %v742_v55  ;;  %v1179_v6 = vadd.f32 %v1035_v60, %v743_v56  ;;  %v2194_v7 = vmul.f32 %v7425_v25, %v596_v53  ;;  %v2195_v9 = vmul.f32 %v7425_v25, %v597_v54  ;;  %v601_v44 = vld [vmem:[#allocation8 + $0x10d8] sm:$0xff]  ;;  %v313_v56 = vld [vmem:[#allocation8 + $0x7e8] sm:$0xff]  ;;  %v457_v57 = vld [vmem:[#allocation8 + $0xc60] sm:$0xff] }
  0xe0   :  { %v2736_v12 = vpack.c.bf16 %v2336_v63, %v2335_v58  ;;  %v2337_v13 = vadd.f32 %v2193_v48, %v1757_v0  ;;  %v744_v15 = vmul.f32 %v7411_v8, %v163_v61  ;;  %v1036_v16 = vmul.f32 %v7415_v14, %v308_v62  ;;  %v458_v61 = vld [vmem:[#allocation8 + $0xc68] sm:$0xff]  ;;  %v602_v62 = vld [vmem:[#allocation8 + $0x10e0] sm:$0xff] }
  0xe1   :  { %v1758_v20 = vadd.f32 %v1614_v1, %v1178_v5  ;;  %v1759_v21 = vadd.f32 %v1615_v2, %v1179_v6  ;;  %v1616_v22 = vmul.f32 %v7420_v18, %v453_v3  ;;  %v2196_v23 = vmul.f32 %v7425_v25, %v598_v4  ;;  %v603_v2 = vld [vmem:[#allocation8 + $0x10e8] sm:$0xff]  ;;  %v169_v5 = vld [vmem:[#allocation8 + $0x370] sm:$0xff] }
  0xe2   :  { %2832 = vst [vmem:[#allocation9 + $0x18c] sm:$0xff] %v2736_v12  ;;  %v2737_v28 = vpack.c.bf16 %v2337_v13, %v2337_v13  ;;  %v1180_v29 = vadd.f32 %v1036_v16, %v744_v15  ;;  %v745_v31 = vmul.f32 %v7411_v8, %v164_v10  ;;  %v746_v32 = vmul.f32 %v7411_v8, %v165_v11  ;;  %v314_v11 = vld [vmem:[#allocation8 + $0x7f0] sm:$0xff] }
  0xe3   :  { %v2338_v33 = vadd.f32 %v2194_v7, %v1758_v20  ;;  %v2339_v34 = vadd.f32 %v2195_v9, %v1759_v21  ;;  %v1037_v35 = vmul.f32 %v7415_v14, %v309_v17  ;;  %v1038_v36 = vmul.f32 %v7415_v14, %v310_v19  ;;  %v459_v12 = vld [vmem:[#allocation8 + $0xc70] sm:$0xff]  ;;  %v170_v20 = vld [vmem:[#allocation8 + $0x378] sm:$0xff]  ;;  %v171_v21 = vld [vmem:[#allocation8 + $0x380] sm:$0xff] }
  0xe4   :  { %2833 = vst [vmem:[#allocation9 + $0x194] sm:$0xf] %v2737_v28  ;;  %v1760_v40 = vadd.f32 %v1616_v22, %v1180_v29  ;;  %v1617_v41 = vmul.f32 %v7420_v18, %v454_v24  ;;  %v1618_v42 = vmul.f32 %v7420_v18, %v455_v26  ;;  %v2197_v43 = vmul.f32 %v7425_v25, %v599_v27  ;;  %v604_v19 = vld [vmem:[#allocation8 + $0x10f0] sm:$0xff]  ;;  %v315_v27 = vld [vmem:[#allocation8 + $0x7f8] sm:$0xff] }
  0xe5   :  { %v2738_v46 = vpack.c.bf16 %v2339_v34, %v2338_v33  ;;  %v1181_v47 = vadd.f32 %v1037_v35, %v745_v31  ;;  %v1182_v48 = vadd.f32 %v1038_v36, %v746_v32  ;;  %v2198_v49 = vmul.f32 %v7425_v25, %v600_v30  ;;  %v316_v32 = vld [vmem:[#allocation8 + $0x800] sm:$0xff]  ;;  %v460_v33 = vld [vmem:[#allocation8 + $0xc78] sm:$0xff] }
  0xe6   :  { %v2340_v52 = vadd.f32 %v2196_v23, %v1760_v40  ;;  %v747_v53 = vmul.f32 %v7411_v8, %v166_v37  ;;  %v1039_v54 = vmul.f32 %v7415_v14, %v311_v38  ;;  %v1619_v55 = vmul.f32 %v7420_v18, %v456_v39  ;;  %v461_v34 = vld [vmem:[#allocation8 + $0xc80] sm:$0xff]  ;;  %v605_v37 = vld [vmem:[#allocation8 + $0x10f8] sm:$0xff] }
  0xe7   :  { %2834 = vst [vmem:[#allocation9 + $0x198] sm:$0xff] %v2738_v46  ;;  %v1761_v58 = vadd.f32 %v1617_v41, %v1181_v47  ;;  %v1762_v59 = vadd.f32 %v1618_v42, %v1182_v48  ;;  %v2199_v60 = vmul.f32 %v7425_v25, %v601_v44  ;;  %v748_v63 = vmul.f32 %v7411_v8, %v167_v45  ;;  %v606_v38 = vld [vmem:[#allocation8 + $0x1100] sm:$0xff]  ;;  %v172_v45 = vld [vmem:[#allocation8 + $0x388] sm:$0xff] }
  0xe8   :  { %v2739_v0 = vpack.c.bf16 %v2340_v52, %v2340_v52  ;;  %v1183_v1 = vadd.f32 %v1039_v54, %v747_v53  ;;  %v749_v3 = vmul.f32 %v7411_v8, %v168_v50  ;;  %v1040_v4 = vmul.f32 %v7415_v14, %v312_v51  ;;  %v317_v46 = vld [vmem:[#allocation8 + $0x808] sm:$0xff] }
  0xe9   :  { %v2341_v6 = vadd.f32 %v2197_v43, %v1761_v58  ;;  %v2342_v7 = vadd.f32 %v2198_v49, %v1762_v59  ;;  %v1041_v9 = vmul.f32 %v7415_v14, %v313_v56  ;;  %v1620_v10 = vmul.f32 %v7420_v18, %v457_v57  ;;  %v462_v51 = vld [vmem:[#allocation8 + $0xc88] sm:$0xff]  ;;  %v173_v57 = vld [vmem:[#allocation8 + $0x390] sm:$0xff]  ;;  %v174_v58 = vld [vmem:[#allocation8 + $0x398] sm:$0xff] }
  0xea   :  { %2835 = vst [vmem:[#allocation9 + $0x1a0] sm:$0xf] %v2739_v0  ;;  %v1763_v13 = vadd.f32 %v1619_v55, %v1183_v1  ;;  %v1184_v15 = vadd.f32 %v1040_v4, %v748_v63  ;;  %v1621_v16 = vmul.f32 %v7420_v18, %v458_v61  ;;  %v2200_v17 = vmul.f32 %v7425_v25, %v602_v62  ;;  %v607_v52 = vld [vmem:[#allocation8 + $0x1108] sm:$0xff]  ;;  %v318_v63 = vld [vmem:[#allocation8 + $0x810] sm:$0xff]  ;;  %v319_v0 = vld [vmem:[#allocation8 + $0x818] sm:$0xff] }
  0xeb   :  { %v2740_v22 = vpack.c.bf16 %v2342_v7, %v2341_v6  ;;  %v1185_v23 = vadd.f32 %v1041_v9, %v749_v3  ;;  %v2201_v24 = vmul.f32 %v7425_v25, %v603_v2  ;;  %v750_v26 = vmul.f32 %v7411_v8, %v169_v5  ;;  %v463_v5 = vld [vmem:[#allocation8 + $0xc90] sm:$0xff]  ;;  %v464_v6 = vld [vmem:[#allocation8 + $0xc98] sm:$0xff] }
  0xec   :  { %v2343_v28 = vadd.f32 %v2199_v60, %v1763_v13  ;;  %v1764_v29 = vadd.f32 %v1620_v10, %v1184_v15  ;;  %v1042_v30 = vmul.f32 %v7415_v14, %v314_v11  ;;  %v1622_v31 = vmul.f32 %v7420_v18, %v459_v12  ;;  %v608_v10 = vld [vmem:[#allocation8 + $0x1110] sm:$0xff]  ;;  %v609_v11 = vld [vmem:[#allocation8 + $0x1118] sm:$0xff] }
  0xed   :  { %2836 = vst [vmem:[#allocation9 + $0x1a4] sm:$0xff] %v2740_v22  ;;  %v1765_v35 = vadd.f32 %v1621_v16, %v1185_v23  ;;  %v2202_v36 = vmul.f32 %v7425_v25, %v604_v19  ;;  %v751_v39 = vmul.f32 %v7411_v8, %v170_v20  ;;  %v752_v40 = vmul.f32 %v7411_v8, %v171_v21  ;;  %v175_v20 = vld [vmem:[#allocation8 + $0x3a0] sm:$0xff] }
  0xee   :  { %v2741_v41 = vpack.c.bf16 %v2343_v28, %v2343_v28  ;;  %v2344_v42 = vadd.f32 %v2200_v17, %v1764_v29  ;;  %v1186_v43 = vadd.f32 %v1042_v30, %v750_v26  ;;  %v1043_v44 = vmul.f32 %v7415_v14, %v315_v27  ;;  %v320_v21 = vld [vmem:[#allocation8 + $0x820] sm:$0xff] }
  0xef   :  { %v2345_v47 = vadd.f32 %v2201_v24, %v1765_v35  ;;  %v1044_v48 = vmul.f32 %v7415_v14, %v316_v32  ;;  %v1623_v49 = vmul.f32 %v7420_v18, %v460_v33  ;;  %v1624_v50 = vmul.f32 %v7420_v18, %v461_v34  ;;  %v465_v27 = vld [vmem:[#allocation8 + $0xca0] sm:$0xff]  ;;  %v176_v33 = vld [vmem:[#allocation8 + $0x3a8] sm:$0xff]  ;;  %v177_v34 = vld [vmem:[#allocation8 + $0x3b0] sm:$0xff] }
  0xf0   :  { %2837 = vst [vmem:[#allocation9 + $0x1ac] sm:$0xf] %v2741_v41  ;;  %v1766_v53 = vadd.f32 %v1622_v31, %v1186_v43  ;;  %v1187_v54 = vadd.f32 %v1043_v44, %v751_v39  ;;  %v2203_v55 = vmul.f32 %v7425_v25, %v605_v37  ;;  %v2204_v56 = vmul.f32 %v7425_v25, %v606_v38  ;;  %v610_v28 = vld [vmem:[#allocation8 + $0x1120] sm:$0xff]  ;;  %v321_v39 = vld [vmem:[#allocation8 + $0x828] sm:$0xff] }
  0xf1   :  { %v2742_v59 = vpack.c.bf16 %v2345_v47, %v2344_v42  ;;  %v1188_v60 = vadd.f32 %v1044_v48, %v752_v40  ;;  %v753_v61 = vmul.f32 %v7411_v8, %v172_v45  ;;  %v1045_v62 = vmul.f32 %v7415_v14, %v317_v46  ;;  %v322_v40 = vld [vmem:[#allocation8 + $0x830] sm:$0xff]  ;;  %v466_v45 = vld [vmem:[#allocation8 + $0xca8] sm:$0xff] }
  0xf2   :  { %v2346_v1 = vadd.f32 %v2202_v36, %v1766_v53  ;;  %v1767_v2 = vadd.f32 %v1623_v49, %v1187_v54  ;;  %v1625_v3 = vmul.f32 %v7420_v18, %v462_v51  ;;  %v2205_v4 = vmul.f32 %v7425_v25, %v607_v52  ;;  %v467_v46 = vld [vmem:[#allocation8 + $0xcb0] sm:$0xff]  ;;  %v611_v47 = vld [vmem:[#allocation8 + $0x1128] sm:$0xff] }
  0xf3   :  { %2838 = vst [vmem:[#allocation9 + $0x1b0] sm:$0xff] %v2742_v59  ;;  %v1768_v7 = vadd.f32 %v1624_v50, %v1188_v60  ;;  %v1189_v9 = vadd.f32 %v1045_v62, %v753_v61  ;;  %v754_v12 = vmul.f32 %v7411_v8, %v173_v57  ;;  %v755_v13 = vmul.f32 %v7411_v8, %v174_v58  ;;  %v612_v50 = vld [vmem:[#allocation8 + $0x1130] sm:$0xff]  ;;  %v178_v57 = vld [vmem:[#allocation8 + $0x3b8] sm:$0xff] }
  0xf4   :  { %v2743_v15 = vpack.c.bf16 %v2346_v1, %v2346_v1  ;;  %v2347_v16 = vadd.f32 %v2203_v55, %v1767_v2  ;;  %v1046_v17 = vmul.f32 %v7415_v14, %v318_v63  ;;  %v1047_v19 = vmul.f32 %v7415_v14, %v319_v0  ;;  %v323_v58 = vld [vmem:[#allocation8 + $0x838] sm:$0xff]  ;;  %v179_v1 = vld [vmem:[#allocation8 + $0x3c0] sm:$0xff] }
  0xf5   :  { %v2348_v22 = vadd.f32 %v2204_v56, %v1768_v7  ;;  %v1769_v23 = vadd.f32 %v1625_v3, %v1189_v9  ;;  %v1626_v24 = vmul.f32 %v7420_v18, %v463_v5  ;;  %v1627_v26 = vmul.f32 %v7420_v18, %v464_v6  ;;  %v468_v59 = vld [vmem:[#allocation8 + $0xcb8] sm:$0xff]  ;;  %v180_v6 = vld [vmem:[#allocation8 + $0x3c8] sm:$0xff]  ;;  %v324_v7 = vld [vmem:[#allocation8 + $0x840] sm:$0xff] }
  0xf6   :  { %2839 = vst [vmem:[#allocation9 + $0x1b8] sm:$0xf] %v2743_v15  ;;  %v1190_v29 = vadd.f32 %v1046_v17, %v754_v12  ;;  %v1191_v30 = vadd.f32 %v1047_v19, %v755_v13  ;;  %v2206_v31 = vmul.f32 %v7425_v25, %v608_v10  ;;  %v2207_v32 = vmul.f32 %v7425_v25, %v609_v11  ;;  %v613_v0 = vld [vmem:[#allocation8 + $0x1138] sm:$0xff]  ;;  %v325_v13 = vld [vmem:[#allocation8 + $0x848] sm:$0xff]  ;;  %v469_v15 = vld [vmem:[#allocation8 + $0xcc0] sm:$0xff] }
  0xf7   :  { %v2744_v35 = vpack.c.bf16 %v2348_v22, %v2347_v16  ;;  %v2349_v36 = vadd.f32 %v2205_v4, %v1769_v23  ;;  %v756_v37 = vmul.f32 %v7411_v8, %v175_v20  ;;  %v1048_v38 = vmul.f32 %v7415_v14, %v320_v21  ;;  %v470_v20 = vld [vmem:[#allocation8 + $0xcc8] sm:$0xff]  ;;  %v614_v21 = vld [vmem:[#allocation8 + $0x1140] sm:$0xff] }
  0xf8   :  { %v1770_v41 = vadd.f32 %v1626_v24, %v1190_v29  ;;  %v1771_v42 = vadd.f32 %v1627_v26, %v1191_v30  ;;  %v1628_v43 = vmul.f32 %v7420_v18, %v465_v27  ;;  %v2208_v44 = vmul.f32 %v7425_v25, %v610_v28  ;;  %v615_v26 = vld [vmem:[#allocation8 + $0x1148] sm:$0xff]  ;;  %v181_v29 = vld [vmem:[#allocation8 + $0x3d0] sm:$0xff] }
  0xf9   :  { %2840 = vst [vmem:[#allocation9 + $0x1bc] sm:$0xff] %v2744_v35  ;;  %v2745_v48 = vpack.c.bf16 %v2349_v36, %v2349_v36  ;;  %v1192_v49 = vadd.f32 %v1048_v38, %v756_v37  ;;  %v757_v51 = vmul.f32 %v7411_v8, %v176_v33  ;;  %v758_v52 = vmul.f32 %v7411_v8, %v177_v34  ;;  %v326_v34 = vld [vmem:[#allocation8 + $0x850] sm:$0xff] }
  0xfa   :  { %v2350_v53 = vadd.f32 %v2206_v31, %v1770_v41  ;;  %v2351_v54 = vadd.f32 %v2207_v32, %v1771_v42  ;;  %v1049_v55 = vmul.f32 %v7415_v14, %v321_v39  ;;  %v1050_v56 = vmul.f32 %v7415_v14, %v322_v40  ;;  %v471_v35 = vld [vmem:[#allocation8 + $0xcd0] sm:$0xff]  ;;  %v182_v41 = vld [vmem:[#allocation8 + $0x3d8] sm:$0xff]  ;;  %v183_v42 = vld [vmem:[#allocation8 + $0x3e0] sm:$0xff] }
  0xfb   :  { %2841 = vst [vmem:[#allocation9 + $0x1c4] sm:$0xf] %v2745_v48  ;;  %v1772_v60 = vadd.f32 %v1628_v43, %v1192_v49  ;;  %v1629_v61 = vmul.f32 %v7420_v18, %v466_v45  ;;  %v1630_v62 = vmul.f32 %v7420_v18, %v467_v46  ;;  %v2209_v63 = vmul.f32 %v7425_v25, %v611_v47  ;;  %v616_v40 = vld [vmem:[#allocation8 + $0x1150] sm:$0xff]  ;;  %v327_v47 = vld [vmem:[#allocation8 + $0x858] sm:$0xff] }
  0xfc   :  { %v2746_v2 = vpack.c.bf16 %v2351_v54, %v2350_v53  ;;  %v1193_v3 = vadd.f32 %v1049_v55, %v757_v51  ;;  %v1194_v4 = vadd.f32 %v1050_v56, %v758_v52  ;;  %v2210_v5 = vmul.f32 %v7425_v25, %v612_v50  ;;  %v328_v52 = vld [vmem:[#allocation8 + $0x860] sm:$0xff]  ;;  %v472_v53 = vld [vmem:[#allocation8 + $0xcd8] sm:$0xff] }
  0xfd   :  { %v2352_v9 = vadd.f32 %v2208_v44, %v1772_v60  ;;  %v759_v10 = vmul.f32 %v7411_v8, %v178_v57  ;;  %v1051_v11 = vmul.f32 %v7415_v14, %v323_v58  ;;  %v1631_v12 = vmul.f32 %v7420_v18, %v468_v59  ;;  %v473_v54 = vld [vmem:[#allocation8 + $0xce0] sm:$0xff]  ;;  %v617_v57 = vld [vmem:[#allocation8 + $0x1158] sm:$0xff] }
  0xfe   :  { %2842 = vst [vmem:[#allocation9 + $0x1c8] sm:$0xff] %v2746_v2  ;;  %v1773_v16 = vadd.f32 %v1629_v61, %v1193_v3  ;;  %v1774_v17 = vadd.f32 %v1630_v62, %v1194_v4  ;;  %v2211_v19 = vmul.f32 %v7425_v25, %v613_v0  ;;  %v760_v22 = vmul.f32 %v7411_v8, %v179_v1  ;;  %v618_v58 = vld [vmem:[#allocation8 + $0x1160] sm:$0xff]  ;;  %v184_v1 = vld [vmem:[#allocation8 + $0x3e8] sm:$0xff] }
  0xff   :  { %v2747_v23 = vpack.c.bf16 %v2352_v9, %v2352_v9  ;;  %v1195_v24 = vadd.f32 %v1051_v11, %v759_v10  ;;  %v761_v27 = vmul.f32 %v7411_v8, %v180_v6  ;;  %v1052_v28 = vmul.f32 %v7415_v14, %v324_v7  ;;  %v329_v2 = vld [vmem:[#allocation8 + $0x868] sm:$0xff] }
 0x100   :  { %v2353_v30 = vadd.f32 %v2209_v63, %v1773_v16  ;;  %v2354_v31 = vadd.f32 %v2210_v5, %v1774_v17  ;;  %v1053_v32 = vmul.f32 %v7415_v14, %v325_v13  ;;  %v1632_v33 = vmul.f32 %v7420_v18, %v469_v15  ;;  %v474_v7 = vld [vmem:[#allocation8 + $0xce8] sm:$0xff]  ;;  %v185_v15 = vld [vmem:[#allocation8 + $0x3f0] sm:$0xff]  ;;  %v186_v16 = vld [vmem:[#allocation8 + $0x3f8] sm:$0xff] }
 0x101   :  { %2843 = vst [vmem:[#allocation9 + $0x1d0] sm:$0xf] %v2747_v23  ;;  %v1775_v36 = vadd.f32 %v1631_v12, %v1195_v24  ;;  %v1196_v37 = vadd.f32 %v1052_v28, %v760_v22  ;;  %v1633_v38 = vmul.f32 %v7420_v18, %v470_v20  ;;  %v2212_v39 = vmul.f32 %v7425_v25, %v614_v21  ;;  %v619_v9 = vld [vmem:[#allocation8 + $0x1168] sm:$0xff]  ;;  %v330_v22 = vld [vmem:[#allocation8 + $0x870] sm:$0xff]  ;;  %v331_v23 = vld [vmem:[#allocation8 + $0x878] sm:$0xff] }
 0x102   :  { %v2748_v43 = vpack.c.bf16 %v2354_v31, %v2353_v30  ;;  %v1197_v44 = vadd.f32 %v1053_v32, %v761_v27  ;;  %v2213_v45 = vmul.f32 %v7425_v25, %v615_v26  ;;  %v762_v46 = vmul.f32 %v7411_v8, %v181_v29  ;;  %v475_v29 = vld [vmem:[#allocation8 + $0xcf0] sm:$0xff]  ;;  %v476_v30 = vld [vmem:[#allocation8 + $0xcf8] sm:$0xff] }
 0x103   :  { %v2355_v48 = vadd.f32 %v2211_v19, %v1775_v36  ;;  %v1776_v49 = vadd.f32 %v1632_v33, %v1196_v37  ;;  %v1054_v50 = vmul.f32 %v7415_v14, %v326_v34  ;;  %v1634_v51 = vmul.f32 %v7420_v18, %v471_v35  ;;  %v620_v33 = vld [vmem:[#allocation8 + $0x1170] sm:$0xff]  ;;  %v621_v34 = vld [vmem:[#allocation8 + $0x1178] sm:$0xff] }
 0x104   :  { %2844 = vst [vmem:[#allocation9 + $0x1d4] sm:$0xff] %v2748_v43  ;;  %v1777_v55 = vadd.f32 %v1633_v38, %v1197_v44  ;;  %v2214_v56 = vmul.f32 %v7425_v25, %v616_v40  ;;  %v763_v59 = vmul.f32 %v7411_v8, %v182_v41  ;;  %v764_v60 = vmul.f32 %v7411_v8, %v183_v42  ;;  %v187_v41 = vld [vmem:[#allocation8 + $0x400] sm:$0xff] }
 0x105   :  { %v2749_v61 = vpack.c.bf16 %v2355_v48, %v2355_v48  ;;  %v2356_v62 = vadd.f32 %v2212_v39, %v1776_v49  ;;  %v1198_v63 = vadd.f32 %v1054_v50, %v762_v46  ;;  %v1055_v0 = vmul.f32 %v7415_v14, %v327_v47  ;;  %v332_v42 = vld [vmem:[#allocation8 + $0x880] sm:$0xff] }
 0x106   :  { %v2357_v3 = vadd.f32 %v2213_v45, %v1777_v55  ;;  %v1056_v4 = vmul.f32 %v7415_v14, %v328_v52  ;;  %v1635_v5 = vmul.f32 %v7420_v18, %v472_v53  ;;  %v1636_v6 = vmul.f32 %v7420_v18, %v473_v54  ;;  %v477_v47 = vld [vmem:[#allocation8 + $0xd00] sm:$0xff]  ;;  %v188_v53 = vld [vmem:[#allocation8 + $0x408] sm:$0xff]  ;;  %v189_v54 = vld [vmem:[#allocation8 + $0x410] sm:$0xff] }
 0x107   :  { %2845 = vst [vmem:[#allocation9 + $0x1dc] sm:$0xf] %v2749_v61  ;;  %v1778_v10 = vadd.f32 %v1634_v51, %v1198_v63  ;;  %v1199_v11 = vadd.f32 %v1055_v0, %v763_v59  ;;  %v2215_v12 = vmul.f32 %v7425_v25, %v617_v57  ;;  %v2216_v13 = vmul.f32 %v7425_v25, %v618_v58  ;;  %v622_v48 = vld [vmem:[#allocation8 + $0x1180] sm:$0xff]  ;;  %v333_v59 = vld [vmem:[#allocation8 + $0x888] sm:$0xff] }
 0x108   :  { %v2750_v17 = vpack.c.bf16 %v2357_v3, %v2356_v62  ;;  %v1200_v19 = vadd.f32 %v1056_v4, %v764_v60  ;;  %v765_v20 = vmul.f32 %v7411_v8, %v184_v1  ;;  %v1057_v21 = vmul.f32 %v7415_v14, %v329_v2  ;;  %v334_v60 = vld [vmem:[#allocation8 + $0x890] sm:$0xff]  ;;  %v478_v1 = vld [vmem:[#allocation8 + $0xd08] sm:$0xff] }
 0x109   :  { %v2358_v24 = vadd.f32 %v2214_v56, %v1778_v10  ;;  %v1779_v26 = vadd.f32 %v1635_v5, %v1199_v11  ;;  %v1637_v27 = vmul.f32 %v7420_v18, %v474_v7  ;;  %v2217_v28 = vmul.f32 %v7425_v25, %v619_v9  ;;  %v479_v2 = vld [vmem:[#allocation8 + $0xd10] sm:$0xff]  ;;  %v623_v3 = vld [vmem:[#allocation8 + $0x1188] sm:$0xff] }
 0x10a   :  { %2846 = vst [vmem:[#allocation9 + $0x1e0] sm:$0xff] %v2750_v17  ;;  %v1780_v31 = vadd.f32 %v1636_v6, %v1200_v19  ;;  %v1201_v32 = vadd.f32 %v1057_v21, %v765_v20  ;;  %v766_v35 = vmul.f32 %v7411_v8, %v185_v15  ;;  %v767_v36 = vmul.f32 %v7411_v8, %v186_v16  ;;  %v624_v6 = vld [vmem:[#allocation8 + $0x1190] sm:$0xff]  ;;  %v190_v15 = vld [vmem:[#allocation8 + $0x418] sm:$0xff] }
 0x10b   :  { %v2751_v37 = vpack.c.bf16 %v2358_v24, %v2358_v24  ;;  %v2359_v38 = vadd.f32 %v2215_v12, %v1779_v26  ;;  %v1058_v39 = vmul.f32 %v7415_v14, %v330_v22  ;;  %v1059_v40 = vmul.f32 %v7415_v14, %v331_v23  ;;  %v335_v16 = vld [vmem:[#allocation8 + $0x898] sm:$0xff]  ;;  %v191_v24 = vld [vmem:[#allocation8 + $0x420] sm:$0xff] }
 0x10c   :  { %v2360_v43 = vadd.f32 %v2216_v13, %v1780_v31  ;;  %v1781_v44 = vadd.f32 %v1637_v27, %v1201_v32  ;;  %v1638_v45 = vmul.f32 %v7420_v18, %v475_v29  ;;  %v1639_v46 = vmul.f32 %v7420_v18, %v476_v30  ;;  %v480_v17 = vld [vmem:[#allocation8 + $0xd18] sm:$0xff]  ;;  %v192_v30 = vld [vmem:[#allocation8 + $0x428] sm:$0xff]  ;;  %v336_v31 = vld [vmem:[#allocation8 + $0x8a0] sm:$0xff] }
 0x10d   :  { %2847 = vst [vmem:[#allocation9 + $0x1e8] sm:$0xf] %v2751_v37  ;;  %v1202_v49 = vadd.f32 %v1058_v39, %v766_v35  ;;  %v1203_v50 = vadd.f32 %v1059_v40, %v767_v36  ;;  %v2218_v51 = vmul.f32 %v7425_v25, %v620_v33  ;;  %v2219_v52 = vmul.f32 %v7425_v25, %v621_v34  ;;  %v625_v23 = vld [vmem:[#allocation8 + $0x1198] sm:$0xff]  ;;  %v337_v36 = vld [vmem:[#allocation8 + $0x8a8] sm:$0xff]  ;;  %v481_v37 = vld [vmem:[#allocation8 + $0xd20] sm:$0xff] }
 0x10e   :  { %v2752_v55 = vpack.c.bf16 %v2360_v43, %v2359_v38  ;;  %v2361_v56 = vadd.f32 %v2217_v28, %v1781_v44  ;;  %v768_v57 = vmul.f32 %v7411_v8, %v187_v41  ;;  %v1060_v58 = vmul.f32 %v7415_v14, %v332_v42  ;;  %v482_v41 = vld [vmem:[#allocation8 + $0xd28] sm:$0xff]  ;;  %v626_v42 = vld [vmem:[#allocation8 + $0x11a0] sm:$0xff] }
 0x10f   :  { %v1782_v61 = vadd.f32 %v1638_v45, %v1202_v49  ;;  %v1783_v62 = vadd.f32 %v1639_v46, %v1203_v50  ;;  %v1640_v63 = vmul.f32 %v7420_v18, %v477_v47  ;;  %v2220_v0 = vmul.f32 %v7425_v25, %v622_v48  ;;  %v627_v46 = vld [vmem:[#allocation8 + $0x11a8] sm:$0xff]  ;;  %v193_v49 = vld [vmem:[#allocation8 + $0x430] sm:$0xff] }
 0x110   :  { %2848 = vst [vmem:[#allocation9 + $0x1ec] sm:$0xff] %v2752_v55  ;;  %v2753_v4 = vpack.c.bf16 %v2361_v56, %v2361_v56  ;;  %v1204_v5 = vadd.f32 %v1060_v58, %v768_v57  ;;  %v769_v7 = vmul.f32 %v7411_v8, %v188_v53  ;;  %v770_v9 = vmul.f32 %v7411_v8, %v189_v54  ;;  %v338_v54 = vld [vmem:[#allocation8 + $0x8b0] sm:$0xff] }
 0x111   :  { %v2362_v10 = vadd.f32 %v2218_v51, %v1782_v61  ;;  %v2363_v11 = vadd.f32 %v2219_v52, %v1783_v62  ;;  %v1061_v12 = vmul.f32 %v7415_v14, %v333_v59  ;;  %v1062_v13 = vmul.f32 %v7415_v14, %v334_v60  ;;  %v483_v55 = vld [vmem:[#allocation8 + $0xd30] sm:$0xff]  ;;  %v194_v61 = vld [vmem:[#allocation8 + $0x438] sm:$0xff]  ;;  %v195_v62 = vld [vmem:[#allocation8 + $0x440] sm:$0xff] }
 0x112   :  { %2849 = vst [vmem:[#allocation9 + $0x1f4] sm:$0xf] %v2753_v4  ;;  %v1784_v19 = vadd.f32 %v1640_v63, %v1204_v5  ;;  %v1641_v20 = vmul.f32 %v7420_v18, %v478_v1  ;;  %v1642_v21 = vmul.f32 %v7420_v18, %v479_v2  ;;  %v2221_v22 = vmul.f32 %v7425_v25, %v623_v3  ;;  %v628_v60 = vld [vmem:[#allocation8 + $0x11b0] sm:$0xff]  ;;  %v339_v3 = vld [vmem:[#allocation8 + $0x8b8] sm:$0xff] }
 0x113   :  { %v2754_v26 = vpack.c.bf16 %v2363_v11, %v2362_v10  ;;  %v1205_v27 = vadd.f32 %v1061_v12, %v769_v7  ;;  %v1206_v28 = vadd.f32 %v1062_v13, %v770_v9  ;;  %v2222_v29 = vmul.f32 %v7425_v25, %v624_v6  ;;  %v340_v9 = vld [vmem:[#allocation8 + $0x8c0] sm:$0xff]  ;;  %v484_v10 = vld [vmem:[#allocation8 + $0xd38] sm:$0xff] }
 0x114   :  { %v2364_v32 = vadd.f32 %v2220_v0, %v1784_v19  ;;  %v771_v33 = vmul.f32 %v7411_v8, %v190_v15  ;;  %v1063_v34 = vmul.f32 %v7415_v14, %v335_v16  ;;  %v1643_v35 = vmul.f32 %v7420_v18, %v480_v17  ;;  %v485_v11 = vld [vmem:[#allocation8 + $0xd40] sm:$0xff]  ;;  %v629_v15 = vld [vmem:[#allocation8 + $0x11b8] sm:$0xff] }
 0x115   :  { %2850 = vst [vmem:[#allocation9 + $0x1f8] sm:$0xff] %v2754_v26  ;;  %v1785_v38 = vadd.f32 %v1641_v20, %v1205_v27  ;;  %v1786_v39 = vadd.f32 %v1642_v21, %v1206_v28  ;;  %v2223_v40 = vmul.f32 %v7425_v25, %v625_v23  ;;  %v772_v43 = vmul.f32 %v7411_v8, %v191_v24  ;;  %v630_v16 = vld [vmem:[#allocation8 + $0x11c0] sm:$0xff]  ;;  %v196_v24 = vld [vmem:[#allocation8 + $0x448] sm:$0xff] }
 0x116   :  { %v2755_v44 = vpack.c.bf16 %v2364_v32, %v2364_v32  ;;  %v1207_v45 = vadd.f32 %v1063_v34, %v771_v33  ;;  %v773_v47 = vmul.f32 %v7411_v8, %v192_v30  ;;  %v1064_v48 = vmul.f32 %v7415_v14, %v336_v31  ;;  %v341_v26 = vld [vmem:[#allocation8 + $0x8c8] sm:$0xff] }
 0x117   :  { %v2365_v50 = vadd.f32 %v2221_v22, %v1785_v38  ;;  %v2366_v51 = vadd.f32 %v2222_v29, %v1786_v39  ;;  %v1065_v52 = vmul.f32 %v7415_v14, %v337_v36  ;;  %v1644_v53 = vmul.f32 %v7420_v18, %v481_v37  ;;  %v486_v31 = vld [vmem:[#allocation8 + $0xd48] sm:$0xff]  ;;  %v197_v37 = vld [vmem:[#allocation8 + $0x450] sm:$0xff]  ;;  %v198_v38 = vld [vmem:[#allocation8 + $0x458] sm:$0xff] }
 0x118   :  { %2851 = vst [vmem:[#allocation9 + $0x200] sm:$0xf] %v2755_v44  ;;  %v1787_v56 = vadd.f32 %v1643_v35, %v1207_v45  ;;  %v1208_v57 = vadd.f32 %v1064_v48, %v772_v43  ;;  %v1645_v58 = vmul.f32 %v7420_v18, %v482_v41  ;;  %v2224_v59 = vmul.f32 %v7425_v25, %v626_v42  ;;  %v631_v32 = vld [vmem:[#allocation8 + $0x11c8] sm:$0xff]  ;;  %v342_v43 = vld [vmem:[#allocation8 + $0x8d0] sm:$0xff]  ;;  %v343_v44 = vld [vmem:[#allocation8 + $0x8d8] sm:$0xff] }
 0x119   :  { %v2756_v63 = vpack.c.bf16 %v2366_v51, %v2365_v50  ;;  %v1209_v0 = vadd.f32 %v1065_v52, %v773_v47  ;;  %v2225_v1 = vmul.f32 %v7425_v25, %v627_v46  ;;  %v774_v2 = vmul.f32 %v7411_v8, %v193_v49  ;;  %v487_v49 = vld [vmem:[#allocation8 + $0xd50] sm:$0xff]  ;;  %v488_v50 = vld [vmem:[#allocation8 + $0xd58] sm:$0xff] }
 0x11a   :  { %v2367_v4 = vadd.f32 %v2223_v40, %v1787_v56  ;;  %v1788_v5 = vadd.f32 %v1644_v53, %v1208_v57  ;;  %v1066_v6 = vmul.f32 %v7415_v14, %v338_v54  ;;  %v1646_v7 = vmul.f32 %v7420_v18, %v483_v55  ;;  %v632_v53 = vld [vmem:[#allocation8 + $0x11d0] sm:$0xff]  ;;  %v633_v54 = vld [vmem:[#allocation8 + $0x11d8] sm:$0xff] }
 0x11b   :  { %2852 = vst [vmem:[#allocation9 + $0x204] sm:$0xff] %v2756_v63  ;;  %v1789_v12 = vadd.f32 %v1645_v58, %v1209_v0  ;;  %v2226_v13 = vmul.f32 %v7425_v25, %v628_v60  ;;  %v775_v17 = vmul.f32 %v7411_v8, %v194_v61  ;;  %v776_v19 = vmul.f32 %v7411_v8, %v195_v62  ;;  %v199_v61 = vld [vmem:[#allocation8 + $0x460] sm:$0xff] }
 0x11c   :  { %v2757_v20 = vpack.c.bf16 %v2367_v4, %v2367_v4  ;;  %v2368_v21 = vadd.f32 %v2224_v59, %v1788_v5  ;;  %v1210_v22 = vadd.f32 %v1066_v6, %v774_v2  ;;  %v1067_v23 = vmul.f32 %v7415_v14, %v339_v3  ;;  %v344_v62 = vld [vmem:[#allocation8 + $0x8e0] sm:$0xff] }
 0x11d   :  { %v2369_v27 = vadd.f32 %v2225_v1, %v1789_v12  ;;  %v1068_v28 = vmul.f32 %v7415_v14, %v340_v9  ;;  %v1647_v29 = vmul.f32 %v7420_v18, %v484_v10  ;;  %v1648_v30 = vmul.f32 %v7420_v18, %v485_v11  ;;  %v489_v3 = vld [vmem:[#allocation8 + $0xd60] sm:$0xff]  ;;  %v200_v10 = vld [vmem:[#allocation8 + $0x468] sm:$0xff]  ;;  %v201_v11 = vld [vmem:[#allocation8 + $0x470] sm:$0xff] }
 0x11e   :  { %2853 = vst [vmem:[#allocation9 + $0x20c] sm:$0xf] %v2757_v20  ;;  %v1790_v33 = vadd.f32 %v1646_v7, %v1210_v22  ;;  %v1211_v34 = vadd.f32 %v1067_v23, %v775_v17  ;;  %v2227_v35 = vmul.f32 %v7425_v25, %v629_v15  ;;  %v2228_v36 = vmul.f32 %v7425_v25, %v630_v16  ;;  %v634_v4 = vld [vmem:[#allocation8 + $0x11e0] sm:$0xff]  ;;  %v345_v17 = vld [vmem:[#allocation8 + $0x8e8] sm:$0xff] }
 0x11f   :  { %v2758_v39 = vpack.c.bf16 %v2369_v27, %v2368_v21  ;;  %v1212_v40 = vadd.f32 %v1068_v28, %v776_v19  ;;  %v777_v41 = vmul.f32 %v7411_v8, %v196_v24  ;;  %v1069_v42 = vmul.f32 %v7415_v14, %v341_v26  ;;  %v346_v19 = vld [vmem:[#allocation8 + $0x8f0] sm:$0xff]  ;;  %v490_v24 = vld [vmem:[#allocation8 + $0xd68] sm:$0xff] }
 0x120   :  { %v2370_v45 = vadd.f32 %v2226_v13, %v1790_v33  ;;  %v1791_v46 = vadd.f32 %v1647_v29, %v1211_v34  ;;  %v1649_v47 = vmul.f32 %v7420_v18, %v486_v31  ;;  %v2229_v48 = vmul.f32 %v7425_v25, %v631_v32  ;;  %v491_v26 = vld [vmem:[#allocation8 + $0xd70] sm:$0xff]  ;;  %v635_v27 = vld [vmem:[#allocation8 + $0x11e8] sm:$0xff] }
 0x121   :  { %2854 = vst [vmem:[#allocation9 + $0x210] sm:$0xff] %v2758_v39  ;;  %v1792_v51 = vadd.f32 %v1648_v30, %v1212_v40  ;;  %v1213_v52 = vadd.f32 %v1069_v42, %v777_v41  ;;  %v778_v55 = vmul.f32 %v7411_v8, %v197_v37  ;;  %v779_v56 = vmul.f32 %v7411_v8, %v198_v38  ;;  %v636_v30 = vld [vmem:[#allocation8 + $0x11f0] sm:$0xff]  ;;  %v202_v37 = vld [vmem:[#allocation8 + $0x478] sm:$0xff] }
 0x122   :  { %v2759_v57 = vpack.c.bf16 %v2370_v45, %v2370_v45  ;;  %v2371_v58 = vadd.f32 %v2227_v35, %v1791_v46  ;;  %v1070_v59 = vmul.f32 %v7415_v14, %v342_v43  ;;  %v1071_v60 = vmul.f32 %v7415_v14, %v343_v44  ;;  %v347_v38 = vld [vmem:[#allocation8 + $0x8f8] sm:$0xff] }
 0x123   :  { %v2372_v63 = vadd.f32 %v2228_v36, %v1792_v51  ;;  %v1793_v0 = vadd.f32 %v1649_v47, %v1213_v52  ;;  %v1650_v1 = vmul.f32 %v7420_v18, %v487_v49  ;;  %v1651_v2 = vmul.f32 %v7420_v18, %v488_v50  ;;  %v492_v39 = vld [vmem:[#allocation8 + $0xd78] sm:$0xff] }
 0x124   :  { %2855 = vst [vmem:[#allocation9 + $0x218] sm:$0xf] %v2759_v57  ;;  %v1214_v5 = vadd.f32 %v1070_v59, %v778_v55  ;;  %v1215_v6 = vadd.f32 %v1071_v60, %v779_v56  ;;  %v2230_v7 = vmul.f32 %v7425_v25, %v632_v53  ;;  %v2231_v9 = vmul.f32 %v7425_v25, %v633_v54  ;;  %v637_v44 = vld [vmem:[#allocation8 + $0x11f8] sm:$0xff]  ;;  %v5534_v59 = vld [vmem:[#allocation8] sm:$0xff] }
 0x125   :  { %v2760_v12 = vpack.c.bf16 %v2372_v63, %v2371_v58  ;;  %v2373_v13 = vadd.f32 %v2229_v48, %v1793_v0  ;;  %v780_v15 = vmul.f32 %v7411_v8, %v199_v61  ;;  %v1072_v16 = vmul.f32 %v7415_v14, %v344_v62  ;;  %v5535_v61 = vld [vmem:[#allocation8 + $0x8] sm:$0xff] }
 0x126   :  { %v1794_v20 = vadd.f32 %v1650_v1, %v1214_v5  ;;  %v1795_v21 = vadd.f32 %v1651_v2, %v1215_v6  ;;  %v1652_v22 = vmul.f32 %v7420_v18, %v489_v3  ;;  %v2232_v23 = vmul.f32 %v7425_v25, %v634_v4  ;;  %v5537_v2 = vld [vmem:[#allocation8 + $0x488] sm:$0xff]  ;;  %v5538_v4 = vld [vmem:[#allocation8 + $0x900] sm:$0xff] }
 0x127   :  { %2856 = vst [vmem:[#allocation9 + $0x21c] sm:$0xff] %v2760_v12  ;;  %v2761_v28 = vpack.c.bf16 %v2373_v13, %v2373_v13  ;;  %v1216_v29 = vadd.f32 %v1072_v16, %v780_v15  ;;  %v781_v31 = vmul.f32 %v7411_v8, %v200_v10  ;;  %v782_v32 = vmul.f32 %v7411_v8, %v201_v11  ;;  %v5540_v11 = vld [vmem:[#allocation8 + $0x10] sm:$0xff] }
 0x128   :  { %v2374_v33 = vadd.f32 %v2230_v7, %v1794_v20  ;;  %v2375_v34 = vadd.f32 %v2231_v9, %v1795_v21  ;;  %v1073_v35 = vmul.f32 %v7415_v14, %v345_v17  ;;  %v1074_v36 = vmul.f32 %v7415_v14, %v346_v19  ;;  %v5539_v7 = vld [vmem:[#allocation8 + $0x908] sm:$0xff]  ;;  %v5541_v17 = vld [vmem:[#allocation8 + $0xd80] sm:$0xff] }
 0x129   :  { %2857 = vst [vmem:[#allocation9 + $0x224] sm:$0xf] %v2761_v28  ;;  %v1796_v40 = vadd.f32 %v1652_v22, %v1216_v29  ;;  %v1653_v41 = vmul.f32 %v7420_v18, %v490_v24  ;;  %v1654_v42 = vmul.f32 %v7420_v18, %v491_v26  ;;  %v2233_v43 = vmul.f32 %v7425_v25, %v635_v27  ;;  %v5542_v20 = vld [vmem:[#allocation8 + $0xd88] sm:$0xff]  ;;  %v5543_v22 = vld [vmem:[#allocation8 + $0x490] sm:$0xff] }
 0x12a   :  { %v2762_v45 = vpack.c.bf16 %v2375_v34, %v2374_v33  ;;  %v1217_v46 = vadd.f32 %v1073_v35, %v781_v31  ;;  %v1218_v47 = vadd.f32 %v1074_v36, %v782_v32  ;;  %v2234_v48 = vmul.f32 %v7425_v25, %v636_v30  ;;  %v5544_v24 = vld [vmem:[#allocation8 + $0x910] sm:$0xff]  ;;  %v5546_v32 = vld [vmem:[#allocation8 + $0x18] sm:$0xff]  ;;  %v5547_v35 = vld [vmem:[#allocation8 + $0x20] sm:$0xff] }
 0x12b   :  { %v2376_v49 = vadd.f32 %v2232_v23, %v1796_v40  ;;  %v783_v50 = vmul.f32 %v7411_v8, %v202_v37  ;;  %v1075_v51 = vmul.f32 %v7415_v14, %v347_v38  ;;  %v1655_v52 = vmul.f32 %v7420_v18, %v492_v39  ;;  %v5545_v27 = vld [vmem:[#allocation8 + $0xd90] sm:$0xff]  ;;  %v5548_v37 = vld [vmem:[#allocation8 + $0x498] sm:$0xff]  ;;  %v5549_v39 = vld [vmem:[#allocation8 + $0x4a0] sm:$0xff] }
 0x12c   :  { %2858 = vst [vmem:[#allocation9 + $0x228] sm:$0xff] %v2762_v45  ;;  %v1797_v53 = vadd.f32 %v1653_v41, %v1217_v46  ;;  %v1798_v54 = vadd.f32 %v1654_v42, %v1218_v47  ;;  %v2235_v55 = vmul.f32 %v7425_v25, %v637_v44  ;;  %v8004_v56 = vstv %s7979_s2  ;;  %v5536_v25 = vld [vmem:[#allocation8 + $0x480] sm:$0xff] }
 0x12d   :  { %v2763_v57 = vpack.c.bf16 %v2376_v49, %v2376_v49  ;;  %v1219_v58 = vadd.f32 %v1075_v51, %v783_v50  ;;  %v786_v60 = vmul.f32 %v5534_v59, %v8004_v56  ;;  %v787_v8 = vmul.f32 %v5535_v61, %v8004_v56  ;;  %v5551_v45 = vld [vmem:[#allocation8 + $0x920] sm:$0xff]  ;;  %v5552_v50 = vld [vmem:[#allocation8 + $0xd98] sm:$0xff] }
 0x12e   :  { %v2377_v14 = vadd.f32 %v2233_v43, %v1797_v53  ;;  %v2378_v62 = vadd.f32 %v2234_v48, %v1798_v54  ;;  %v8009_v63 = vstv %s7983_s6  ;;  %v8012_v18 = vstv %s7987_s7  ;;  %v5550_v43 = vld [vmem:[#allocation8 + $0x918] sm:$0xff]  ;;  %v5553_v53 = vld [vmem:[#allocation8 + $0xda0] sm:$0xff] }
 0x12f   :  { %2859 = vst [vmem:[#allocation9 + $0x230] sm:$0xf] %v2763_v57  ;;  %v1799_v0 = vadd.f32 %v1655_v52, %v1219_v58  ;;  %v1222_v1 = vmul.f32 %v5536_v25, %v8009_v63  ;;  %v1223_v3 = vmul.f32 %v5537_v2, %v8009_v63  ;;  %v1802_v5 = vmul.f32 %v5538_v4, %v8012_v18  ;;  %v5555_v58 = vld [vmem:[#allocation8 + $0x4a8] sm:$0xff]  ;;  %v5558_v2 = vld [vmem:[#allocation8 + $0x30] sm:$0xff]  ;;  %v5559_v4 = vld [vmem:[#allocation8 + $0x38] sm:$0xff] }
 0x130   :  { %v2764_v6 = vpack.c.bf16 %v2378_v62, %v2377_v14  ;;  %v1803_v9 = vmul.f32 %v5539_v7, %v8012_v18  ;;  %v8019_v10 = vstv %s7993_s8  ;;  %v788_v12 = vmul.f32 %v5540_v11, %v8004_v56  ;;  %v5556_v14 = vld [vmem:[#allocation8 + $0x928] sm:$0xff]  ;;  %v5560_v11 = vld [vmem:[#allocation8 + $0x4b0] sm:$0xff] }
 0x131   :  { %v2379_v13 = vadd.f32 %v2235_v55, %v1799_v0  ;;  %v1366_v15 = vadd.f32 %v1222_v1, %v786_v60  ;;  %v1367_v16 = vadd.f32 %v1223_v3, %v787_v8  ;;  %v2382_v19 = vmul.f32 %v5541_v17, %v8019_v10  ;;  %v5554_v55 = vld [vmem:[#allocation8 + $0x28] sm:$0xff]  ;;  %v5562_v17 = vld [vmem:[#allocation8 + $0x930] sm:$0xff] }
 0x132   :  { %2860 = vst [vmem:[#allocation9 + $0x234] sm:$0xff] %v2764_v6  ;;  %v2383_v21 = vmul.f32 %v5542_v20, %v8019_v10  ;;  %v1224_v23 = vmul.f32 %v5543_v22, %v8009_v63  ;;  %v1804_v26 = vmul.f32 %v5544_v24, %v8012_v18  ;;  %v2384_v28 = vmul.f32 %v5545_v27, %v8019_v10  ;;  %v5557_v25 = vld [vmem:[#allocation8 + $0xda8] sm:$0xff]  ;;  %v5563_v20 = vld [vmem:[#allocation8 + $0x938] sm:$0xff]  ;;  %v5564_v24 = vld [vmem:[#allocation8 + $0xdb0] sm:$0xff] }
 0x133   :  { %v2765_v29 = vpack.c.bf16 %v2379_v13, %v2379_v13  ;;  %v1946_v30 = vadd.f32 %v1802_v5, %v1366_v15  ;;  %v1947_v31 = vadd.f32 %v1803_v9, %v1367_v16  ;;  %v789_v33 = vmul.f32 %v5546_v32, %v8004_v56  ;;  %v5561_v15 = vld [vmem:[#allocation8 + $0x4b8] sm:$0xff] }
 0x134   :  { %v1368_v34 = vadd.f32 %v1224_v23, %v788_v12  ;;  %v790_v36 = vmul.f32 %v5547_v35, %v8004_v56  ;;  %v1225_v38 = vmul.f32 %v5548_v37, %v8009_v63  ;;  %v1226_v40 = vmul.f32 %v5549_v39, %v8009_v63  ;;  %v5565_v27 = vld [vmem:[#allocation8 + $0xdb8] sm:$0xff] }
 0x135   :  { %2861 = vst [vmem:[#allocation9 + $0x23c] sm:$0xf] %v2765_v29  ;;  %v2526_v41 = vadd.f32 %v2382_v19, %v1946_v30  ;;  %v2527_v42 = vadd.f32 %v2383_v21, %v1947_v31  ;;  %v1805_v44 = vmul.f32 %v5550_v43, %v8012_v18  ;;  %v1806_v46 = vmul.f32 %v5551_v45, %v8012_v18  ;;  %v5566_v31 = vld [vmem:[#allocation8 + $0x40] sm:$0xff]  ;;  %v5571_v45 = vld [vmem:[#allocation8 + $0x50] sm:$0xff] }
 0x136   :  { %v1948_v47 = vadd.f32 %v1804_v26, %v1368_v34  ;;  %v1369_v48 = vadd.f32 %v1225_v38, %v789_v33  ;;  %v1370_v49 = vadd.f32 %v1226_v40, %v790_v36  ;;  %v2385_v51 = vmul.f32 %v5552_v50, %v8019_v10  ;;  %v5567_v33 = vld [vmem:[#allocation8 + $0x4c0] sm:$0xff]  ;;  %v5570_v40 = vld [vmem:[#allocation8 + $0x48] sm:$0xff]  ;;  %v5573_v50 = vld [vmem:[#allocation8 + $0x4d0] sm:$0xff] }
 0x137   :  { %v2862_v52 = vpack.c.bf16 %v2527_v42, %v2526_v41  ;;  %v2386_v54 = vmul.f32 %v5553_v53, %v8019_v10  ;;  %v791_v57 = vmul.f32 %v5554_v55, %v8004_v56  ;;  %v1227_v59 = vmul.f32 %v5555_v58, %v8009_v63  ;;  %v5568_v36 = vld [vmem:[#allocation8 + $0x940] sm:$0xff] }
 0x138   :  { %v2528_v60 = vadd.f32 %v2384_v28, %v1948_v47  ;;  %v1949_v61 = vadd.f32 %v1805_v44, %v1369_v48  ;;  %v1950_v8 = vadd.f32 %v1806_v46, %v1370_v49  ;;  %v1807_v62 = vmul.f32 %v5556_v14, %v8012_v18  ;;  %v5569_v38 = vld [vmem:[#allocation8 + $0xdc0] sm:$0xff]  ;;  %v5572_v48 = vld [vmem:[#allocation8 + $0x4c8] sm:$0xff]  ;;  %v5577_v14 = vld [vmem:[#allocation8 + $0xdd0] sm:$0xff] }
 0x139   :  { %2958 = vst [vmem:[#allocation10] sm:$0xff] %v2862_v52  ;;  %v1371_v0 = vadd.f32 %v1227_v59, %v791_v57  ;;  %v2387_v1 = vmul.f32 %v5557_v25, %v8019_v10  ;;  %v792_v3 = vmul.f32 %v5558_v2, %v8004_v56  ;;  %v793_v5 = vmul.f32 %v5559_v4, %v8004_v56  ;;  %v5574_v52 = vld [vmem:[#allocation8 + $0x948] sm:$0xff]  ;;  %v5575_v57 = vld [vmem:[#allocation8 + $0x950] sm:$0xff] }
 0x13a   :  { %v2863_v6 = vpack.c.bf16 %v2528_v60, %v2528_v60  ;;  %v2529_v7 = vadd.f32 %v2385_v51, %v1949_v61  ;;  %v2530_v9 = vadd.f32 %v2386_v54, %v1950_v8  ;;  %v1228_v12 = vmul.f32 %v5560_v11, %v8009_v63  ;;  %v5576_v59 = vld [vmem:[#allocation8 + $0xdc8] sm:$0xff]  ;;  %v5581_v11 = vld [vmem:[#allocation8 + $0xdd8] sm:$0xff] }
 0x13b   :  { %v1951_v13 = vadd.f32 %v1807_v62, %v1371_v0  ;;  %v1229_v16 = vmul.f32 %v5561_v15, %v8009_v63  ;;  %v1808_v19 = vmul.f32 %v5562_v17, %v8012_v18  ;;  %v1809_v21 = vmul.f32 %v5563_v20, %v8012_v18  ;;  %v5578_v0 = vld [vmem:[#allocation8 + $0x58] sm:$0xff] }
 0x13c   :  { %2959 = vst [vmem:[#allocation10 + $0x8] sm:$0xf] %v2863_v6  ;;  %v2864_v22 = vpack.c.bf16 %v2530_v9, %v2529_v7  ;;  %v1372_v23 = vadd.f32 %v1228_v12, %v792_v3  ;;  %v2388_v26 = vmul.f32 %v5564_v24, %v8019_v10  ;;  %v2389_v28 = vmul.f32 %v5565_v27, %v8019_v10  ;;  %v5579_v3 = vld [vmem:[#allocation8 + $0x4d8] sm:$0xff] }
 0x13d   :  { %v2531_v29 = vadd.f32 %v2387_v1, %v1951_v13  ;;  %v1373_v30 = vadd.f32 %v1229_v16, %v793_v5  ;;  %v794_v32 = vmul.f32 %v5566_v31, %v8004_v56  ;;  %v1230_v34 = vmul.f32 %v5567_v33, %v8009_v63  ;;  %v5580_v5 = vld [vmem:[#allocation8 + $0x958] sm:$0xff]  ;;  %v5582_v13 = vld [vmem:[#allocation8 + $0x60] sm:$0xff] }
 0x13e   :  { %2960 = vst [vmem:[#allocation10 + $0xc] sm:$0xff] %v2864_v22  ;;  %v1952_v35 = vadd.f32 %v1808_v19, %v1372_v23  ;;  %v1810_v37 = vmul.f32 %v5568_v36, %v8012_v18  ;;  %v2390_v39 = vmul.f32 %v5569_v38, %v8019_v10  ;;  %v795_v41 = vmul.f32 %v5570_v40, %v8004_v56  ;;  %v5583_v19 = vld [vmem:[#allocation8 + $0x68] sm:$0xff]  ;;  %v5590_v40 = vld [vmem:[#allocation8 + $0x70] sm:$0xff] }
 0x13f   :  { %v2865_v42 = vpack.c.bf16 %v2531_v29, %v2531_v29  ;;  %v1953_v43 = vadd.f32 %v1809_v21, %v1373_v30  ;;  %v1374_v44 = vadd.f32 %v1230_v34, %v794_v32  ;;  %v796_v46 = vmul.f32 %v5571_v45, %v8004_v56  ;;  %v5584_v21 = vld [vmem:[#allocation8 + $0x4e0] sm:$0xff]  ;;  %v5587_v32 = vld [vmem:[#allocation8 + $0x968] sm:$0xff] }
 0x140   :  { %v2532_v47 = vadd.f32 %v2388_v26, %v1952_v35  ;;  %v1231_v49 = vmul.f32 %v5572_v48, %v8009_v63  ;;  %v1232_v51 = vmul.f32 %v5573_v50, %v8009_v63  ;;  %v1811_v53 = vmul.f32 %v5574_v52, %v8012_v18  ;;  %v5585_v26 = vld [vmem:[#allocation8 + $0x4e8] sm:$0xff]  ;;  %v5588_v34 = vld [vmem:[#allocation8 + $0xde0] sm:$0xff] }
 0x141   :  { %2961 = vst [vmem:[#allocation10 + $0x14] sm:$0xf] %v2865_v42  ;;  %v2533_v54 = vadd.f32 %v2389_v28, %v1953_v43  ;;  %v1954_v55 = vadd.f32 %v1810_v37, %v1374_v44  ;;  %v1812_v58 = vmul.f32 %v5575_v57, %v8012_v18  ;;  %v2391_v60 = vmul.f32 %v5576_v59, %v8019_v10  ;;  %v5586_v28 = vld [vmem:[#allocation8 + $0x960] sm:$0xff]  ;;  %v5589_v38 = vld [vmem:[#allocation8 + $0xde8] sm:$0xff]  ;;  %v5591_v44 = vld [vmem:[#allocation8 + $0x4f0] sm:$0xff] }
 0x142   :  { %v1375_v61 = vadd.f32 %v1231_v49, %v795_v41  ;;  %v1376_v8 = vadd.f32 %v1232_v51, %v796_v46  ;;  %v2392_v62 = vmul.f32 %v5577_v14, %v8019_v10  ;;  %v797_v25 = vmul.f32 %v5578_v0, %v8004_v56  ;;  %v5592_v46 = vld [vmem:[#allocation8 + $0x970] sm:$0xff]  ;;  %v5594_v51 = vld [vmem:[#allocation8 + $0x78] sm:$0xff] }
 0x143   :  { %v2866_v1 = vpack.c.bf16 %v2533_v54, %v2532_v47  ;;  %v2534_v2 = vadd.f32 %v2390_v39, %v1954_v55  ;;  %v1233_v4 = vmul.f32 %v5579_v3, %v8009_v63  ;;  %v1813_v6 = vmul.f32 %v5580_v5, %v8012_v18  ;;  %v5593_v49 = vld [vmem:[#allocation8 + $0xdf0] sm:$0xff]  ;;  %v5596_v59 = vld [vmem:[#allocation8 + $0x4f8] sm:$0xff] }
 0x144   :  { %v1955_v7 = vadd.f32 %v1811_v53, %v1375_v61  ;;  %v1956_v9 = vadd.f32 %v1812_v58, %v1376_v8  ;;  %v2393_v12 = vmul.f32 %v5581_v11, %v8019_v10  ;;  %v798_v15 = vmul.f32 %v5582_v13, %v8004_v56  ;;  %v5595_v53 = vld [vmem:[#allocation8 + $0x80] sm:$0xff] }
 0x145   :  { %2962 = vst [vmem:[#allocation10 + $0x18] sm:$0xff] %v2866_v1  ;;  %v2867_v16 = vpack.c.bf16 %v2534_v2, %v2534_v2  ;;  %v1377_v17 = vadd.f32 %v1233_v4, %v797_v25  ;;  %v799_v20 = vmul.f32 %v5583_v19, %v8004_v56  ;;  %v1234_v22 = vmul.f32 %v5584_v21, %v8009_v63  ;;  %v5597_v8 = vld [vmem:[#allocation8 + $0x500] sm:$0xff]  ;;  %v5600_v4 = vld [vmem:[#allocation8 + $0xdf8] sm:$0xff] }
 0x146   :  { %v2535_v23 = vadd.f32 %v2391_v60, %v1955_v7  ;;  %v2536_v24 = vadd.f32 %v2392_v62, %v1956_v9  ;;  %v1235_v27 = vmul.f32 %v5585_v26, %v8009_v63  ;;  %v1814_v29 = vmul.f32 %v5586_v28, %v8012_v18  ;;  %v5598_v62 = vld [vmem:[#allocation8 + $0x978] sm:$0xff]  ;;  %v5599_v25 = vld [vmem:[#allocation8 + $0x980] sm:$0xff] }
 0x147   :  { %2963 = vst [vmem:[#allocation10 + $0x20] sm:$0xf] %v2867_v16  ;;  %v1957_v30 = vadd.f32 %v1813_v6, %v1377_v17  ;;  %v1378_v31 = vadd.f32 %v1234_v22, %v798_v15  ;;  %v1815_v33 = vmul.f32 %v5587_v32, %v8012_v18  ;;  %v2394_v35 = vmul.f32 %v5588_v34, %v8019_v10  ;;  %v5601_v6 = vld [vmem:[#allocation8 + $0xe00] sm:$0xff]  ;;  %v5603_v15 = vld [vmem:[#allocation8 + $0x508] sm:$0xff] }
 0x148   :  { %v2868_v36 = vpack.c.bf16 %v2536_v24, %v2535_v23  ;;  %v1379_v37 = vadd.f32 %v1235_v27, %v799_v20  ;;  %v2395_v39 = vmul.f32 %v5589_v38, %v8019_v10  ;;  %v800_v41 = vmul.f32 %v5590_v40, %v8004_v56  ;;  %v5604_v20 = vld [vmem:[#allocation8 + $0x988] sm:$0xff]  ;;  %v5606_v27 = vld [vmem:[#allocation8 + $0x90] sm:$0xff] }
 0x149   :  { %v2537_v42 = vadd.f32 %v2393_v12, %v1957_v30  ;;  %v1958_v43 = vadd.f32 %v1814_v29, %v1378_v31  ;;  %v1236_v45 = vmul.f32 %v5591_v44, %v8009_v63  ;;  %v1816_v47 = vmul.f32 %v5592_v46, %v8012_v18  ;;  %v5602_v12 = vld [vmem:[#allocation8 + $0x88] sm:$0xff]  ;;  %v5607_v29 = vld [vmem:[#allocation8 + $0x98] sm:$0xff] }
 0x14a   :  { %2964 = vst [vmem:[#allocation10 + $0x24] sm:$0xff] %v2868_v36  ;;  %v1959_v48 = vadd.f32 %v1815_v33, %v1379_v37  ;;  %v2396_v50 = vmul.f32 %v5593_v49, %v8019_v10  ;;  %v801_v52 = vmul.f32 %v5594_v51, %v8004_v56  ;;  %v802_v54 = vmul.f32 %v5595_v53, %v8004_v56  ;;  %v5605_v22 = vld [vmem:[#allocation8 + $0xe08] sm:$0xff]  ;;  %v5608_v33 = vld [vmem:[#allocation8 + $0x510] sm:$0xff]  ;;  %v5614_v51 = vld [vmem:[#allocation8 + $0xa0] sm:$0xff] }
 0x14b   :  { %v2869_v55 = vpack.c.bf16 %v2537_v42, %v2537_v42  ;;  %v2538_v57 = vadd.f32 %v2394_v35, %v1958_v43  ;;  %v1380_v58 = vadd.f32 %v1236_v45, %v800_v41  ;;  %v1237_v60 = vmul.f32 %v5596_v59, %v8009_v63  ;;  %v5609_v35 = vld [vmem:[#allocation8 + $0x518] sm:$0xff]  ;;  %v5612_v45 = vld [vmem:[#allocation8 + $0xe10] sm:$0xff]  ;;  %v5615_v53 = vld [vmem:[#allocation8 + $0x520] sm:$0xff] }
 0x14c   :  { %v2539_v61 = vadd.f32 %v2395_v39, %v1959_v48  ;;  %v1238_v14 = vmul.f32 %v5597_v8, %v8009_v63  ;;  %v1817_v0 = vmul.f32 %v5598_v62, %v8012_v18  ;;  %v1818_v1 = vmul.f32 %v5599_v25, %v8012_v18  ;;  %v5610_v39 = vld [vmem:[#allocation8 + $0x990] sm:$0xff]  ;;  %v5611_v41 = vld [vmem:[#allocation8 + $0x998] sm:$0xff]  ;;  %v5618_v62 = vld [vmem:[#allocation8 + $0xa8] sm:$0xff] }
 0x14d   :  { %2965 = vst [vmem:[#allocation10 + $0x2c] sm:$0xf] %v2869_v55  ;;  %v1960_v2 = vadd.f32 %v1816_v47, %v1380_v58  ;;  %v1381_v3 = vadd.f32 %v1237_v60, %v801_v52  ;;  %v2397_v5 = vmul.f32 %v5600_v4, %v8019_v10  ;;  %v2398_v7 = vmul.f32 %v5601_v6, %v8019_v10  ;;  %v5613_v47 = vld [vmem:[#allocation8 + $0xe18] sm:$0xff]  ;;  %v5616_v58 = vld [vmem:[#allocation8 + $0x9a0] sm:$0xff]  ;;  %v5619_v25 = vld [vmem:[#allocation8 + $0xb0] sm:$0xff] }
 0x14e   :  { %v2870_v9 = vpack.c.bf16 %v2539_v61, %v2538_v57  ;;  %v1382_v11 = vadd.f32 %v1238_v14, %v802_v54  ;;  %v803_v13 = vmul.f32 %v5602_v12, %v8004_v56  ;;  %v1239_v16 = vmul.f32 %v5603_v15, %v8009_v63  ;;  %v5617_v60 = vld [vmem:[#allocation8 + $0xe20] sm:$0xff]  ;;  %v5620_v4 = vld [vmem:[#allocation8 + $0x528] sm:$0xff]  ;;  %v5621_v6 = vld [vmem:[#allocation8 + $0x530] sm:$0xff] }
 0x14f   :  { %v2540_v17 = vadd.f32 %v2396_v50, %v1960_v2  ;;  %v1961_v19 = vadd.f32 %v1817_v0, %v1381_v3  ;;  %v1819_v21 = vmul.f32 %v5604_v20, %v8012_v18  ;;  %v2399_v23 = vmul.f32 %v5605_v22, %v8019_v10  ;;  %v5625_v22 = vld [vmem:[#allocation8 + $0xe30] sm:$0xff] }
 0x150   :  { %2966 = vst [vmem:[#allocation10 + $0x30] sm:$0xff] %v2870_v9  ;;  %v1962_v24 = vadd.f32 %v1818_v1, %v1382_v11  ;;  %v1383_v26 = vadd.f32 %v1239_v16, %v803_v13  ;;  %v804_v28 = vmul.f32 %v5606_v27, %v8004_v56  ;;  %v805_v30 = vmul.f32 %v5607_v29, %v8004_v56  ;;  %v5622_v11 = vld [vmem:[#allocation8 + $0x9a8] sm:$0xff]  ;;  %v5623_v13 = vld [vmem:[#allocation8 + $0x9b0] sm:$0xff] }
 0x151   :  { %v2871_v31 = vpack.c.bf16 %v2540_v17, %v2540_v17  ;;  %v2541_v32 = vadd.f32 %v2397_v5, %v1961_v19  ;;  %v1240_v34 = vmul.f32 %v5608_v33, %v8009_v63  ;;  %v1241_v36 = vmul.f32 %v5609_v35, %v8009_v63  ;;  %v5624_v16 = vld [vmem:[#allocation8 + $0xe28] sm:$0xff] }
 0x152   :  { %v2542_v37 = vadd.f32 %v2398_v7, %v1962_v24  ;;  %v1963_v38 = vadd.f32 %v1819_v21, %v1383_v26  ;;  %v1820_v40 = vmul.f32 %v5610_v39, %v8012_v18  ;;  %v1821_v42 = vmul.f32 %v5611_v41, %v8012_v18  ;;  %v5626_v26 = vld [vmem:[#allocation8 + $0xb8] sm:$0xff] }
 0x153   :  { %2967 = vst [vmem:[#allocation10 + $0x38] sm:$0xf] %v2871_v31  ;;  %v1384_v43 = vadd.f32 %v1240_v34, %v804_v28  ;;  %v1385_v44 = vadd.f32 %v1241_v36, %v805_v30  ;;  %v2400_v46 = vmul.f32 %v5612_v45, %v8019_v10  ;;  %v2401_v48 = vmul.f32 %v5613_v47, %v8019_v10  ;;  %v5627_v28 = vld [vmem:[#allocation8 + $0x538] sm:$0xff]  ;;  %v5630_v36 = vld [vmem:[#allocation8 + $0xc0] sm:$0xff] }
 0x154   :  { %v2872_v49 = vpack.c.bf16 %v2542_v37, %v2541_v32  ;;  %v2543_v50 = vadd.f32 %v2399_v23, %v1963_v38  ;;  %v806_v52 = vmul.f32 %v5614_v51, %v8004_v56  ;;  %v1242_v54 = vmul.f32 %v5615_v53, %v8009_v63  ;;  %v5628_v30 = vld [vmem:[#allocation8 + $0x9b8] sm:$0xff] }
 0x155   :  { %v1964_v55 = vadd.f32 %v1820_v40, %v1384_v43  ;;  %v1965_v57 = vadd.f32 %v1821_v42, %v1385_v44  ;;  %v1822_v59 = vmul.f32 %v5616_v58, %v8012_v18  ;;  %v2402_v61 = vmul.f32 %v5617_v60, %v8019_v10  ;;  %v5629_v34 = vld [vmem:[#allocation8 + $0xe38] sm:$0xff]  ;;  %v5631_v40 = vld [vmem:[#allocation8 + $0xc8] sm:$0xff]  ;;  %v5632_v42 = vld [vmem:[#allocation8 + $0x540] sm:$0xff] }
 0x156   :  { %2968 = vst [vmem:[#allocation10 + $0x3c] sm:$0xff] %v2872_v49  ;;  %v2873_v8 = vpack.c.bf16 %v2543_v50, %v2543_v50  ;;  %v1386_v14 = vadd.f32 %v1242_v54, %v806_v52  ;;  %v807_v0 = vmul.f32 %v5618_v62, %v8004_v56  ;;  %v808_v1 = vmul.f32 %v5619_v25, %v8004_v56  ;;  %v5635_v52 = vld [vmem:[#allocation8 + $0x9c8] sm:$0xff]  ;;  %v5636_v54 = vld [vmem:[#allocation8 + $0xe40] sm:$0xff] }
 0x157   :  { %v2544_v2 = vadd.f32 %v2400_v46, %v1964_v55  ;;  %v2545_v3 = vadd.f32 %v2401_v48, %v1965_v57  ;;  %v1243_v5 = vmul.f32 %v5620_v4, %v8009_v63  ;;  %v1244_v7 = vmul.f32 %v5621_v6, %v8009_v63  ;;  %v5633_v46 = vld [vmem:[#allocation8 + $0x548] sm:$0xff]  ;;  %v5634_v48 = vld [vmem:[#allocation8 + $0x9c0] sm:$0xff]  ;;  %v5641_v4 = vld [vmem:[#allocation8 + $0xe50] sm:$0xff] }
 0x158   :  { %2969 = vst [vmem:[#allocation10 + $0x44] sm:$0xf] %v2873_v8  ;;  %v1966_v9 = vadd.f32 %v1822_v59, %v1386_v14  ;;  %v1823_v12 = vmul.f32 %v5622_v11, %v8012_v18  ;;  %v1824_v15 = vmul.f32 %v5623_v13, %v8012_v18  ;;  %v2403_v17 = vmul.f32 %v5624_v16, %v8019_v10  ;;  %v5637_v59 = vld [vmem:[#allocation8 + $0xe48] sm:$0xff]  ;;  %v5642_v6 = vld [vmem:[#allocation8 + $0xd8] sm:$0xff] }
 0x159   :  { %v2874_v19 = vpack.c.bf16 %v2545_v3, %v2544_v2  ;;  %v1387_v20 = vadd.f32 %v1243_v5, %v807_v0  ;;  %v1388_v21 = vadd.f32 %v1244_v7, %v808_v1  ;;  %v2404_v23 = vmul.f32 %v5625_v22, %v8019_v10  ;;  %v5639_v0 = vld [vmem:[#allocation8 + $0x550] sm:$0xff]  ;;  %v5644_v16 = vld [vmem:[#allocation8 + $0x558] sm:$0xff] }
 0x15a   :  { %v2546_v24 = vadd.f32 %v2402_v61, %v1966_v9  ;;  %v809_v27 = vmul.f32 %v5626_v26, %v8004_v56  ;;  %v1245_v29 = vmul.f32 %v5627_v28, %v8009_v63  ;;  %v1825_v31 = vmul.f32 %v5628_v30, %v8012_v18  ;;  %v5638_v61 = vld [vmem:[#allocation8 + $0xd0] sm:$0xff]  ;;  %v5643_v9 = vld [vmem:[#allocation8 + $0xe0] sm:$0xff]  ;;  %v5646_v22 = vld [vmem:[#allocation8 + $0x9d8] sm:$0xff] }
 0x15b   :  { %2970 = vst [vmem:[#allocation10 + $0x48] sm:$0xff] %v2874_v19  ;;  %v1967_v32 = vadd.f32 %v1823_v12, %v1387_v20  ;;  %v1968_v33 = vadd.f32 %v1824_v15, %v1388_v21  ;;  %v2405_v35 = vmul.f32 %v5629_v34, %v8019_v10  ;;  %v810_v37 = vmul.f32 %v5630_v36, %v8004_v56  ;;  %v5640_v1 = vld [vmem:[#allocation8 + $0x9d0] sm:$0xff]  ;;  %v5645_v20 = vld [vmem:[#allocation8 + $0x560] sm:$0xff] }
 0x15c   :  { %v2875_v38 = vpack.c.bf16 %v2546_v24, %v2546_v24  ;;  %v1389_v39 = vadd.f32 %v1245_v29, %v809_v27  ;;  %v811_v41 = vmul.f32 %v5631_v40, %v8004_v56  ;;  %v1246_v43 = vmul.f32 %v5632_v42, %v8009_v63  ;;  %v5647_v24 = vld [vmem:[#allocation8 + $0x9e0] sm:$0xff]  ;;  %v5648_v29 = vld [vmem:[#allocation8 + $0xe58] sm:$0xff] }
 0x15d   :  { %v2547_v44 = vadd.f32 %v2403_v17, %v1967_v32  ;;  %v2548_v45 = vadd.f32 %v2404_v23, %v1968_v33  ;;  %v1247_v47 = vmul.f32 %v5633_v46, %v8009_v63  ;;  %v1826_v49 = vmul.f32 %v5634_v48, %v8012_v18 }
 0x15e   :  { %2971 = vst [vmem:[#allocation10 + $0x50] sm:$0xf] %v2875_v38  ;;  %v1969_v50 = vadd.f32 %v1825_v31, %v1389_v39  ;;  %v1390_v51 = vadd.f32 %v1246_v43, %v810_v37  ;;  %v1827_v53 = vmul.f32 %v5635_v52, %v8012_v18  ;;  %v2406_v55 = vmul.f32 %v5636_v54, %v8019_v10  ;;  %v5649_v31 = vld [vmem:[#allocation8 + $0xe60] sm:$0xff]  ;;  %v5651_v37 = vld [vmem:[#allocation8 + $0x568] sm:$0xff] }
 0x15f   :  { %v2876_v57 = vpack.c.bf16 %v2548_v45, %v2547_v44  ;;  %v1391_v58 = vadd.f32 %v1247_v47, %v811_v41  ;;  %v2407_v60 = vmul.f32 %v5637_v59, %v8019_v10  ;;  %v812_v8 = vmul.f32 %v5638_v61, %v8004_v56  ;;  %v5652_v41 = vld [vmem:[#allocation8 + $0x9e8] sm:$0xff]  ;;  %v5654_v47 = vld [vmem:[#allocation8 + $0xf0] sm:$0xff] }
 0x160   :  { %v2549_v14 = vadd.f32 %v2405_v35, %v1969_v50  ;;  %v1970_v62 = vadd.f32 %v1826_v49, %v1390_v51  ;;  %v1248_v25 = vmul.f32 %v5639_v0, %v8009_v63  ;;  %v1828_v2 = vmul.f32 %v5640_v1, %v8012_v18  ;;  %v5650_v35 = vld [vmem:[#allocation8 + $0xe8] sm:$0xff]  ;;  %v5655_v49 = vld [vmem:[#allocation8 + $0xf8] sm:$0xff] }
 0x161   :  { %2972 = vst [vmem:[#allocation10 + $0x54] sm:$0xff] %v2876_v57  ;;  %v1971_v3 = vadd.f32 %v1827_v53, %v1391_v58  ;;  %v2408_v5 = vmul.f32 %v5641_v4, %v8019_v10  ;;  %v813_v7 = vmul.f32 %v5642_v6, %v8004_v56  ;;  %v814_v11 = vmul.f32 %v5643_v9, %v8004_v56  ;;  %v5653_v43 = vld [vmem:[#allocation8 + $0xe68] sm:$0xff]  ;;  %v5656_v53 = vld [vmem:[#allocation8 + $0x570] sm:$0xff]  ;;  %v5662_v6 = vld [vmem:[#allocation8 + $0x100] sm:$0xff] }
 0x162   :  { %v2877_v12 = vpack.c.bf16 %v2549_v14, %v2549_v14  ;;  %v2550_v13 = vadd.f32 %v2406_v55, %v1970_v62  ;;  %v1392_v15 = vadd.f32 %v1248_v25, %v812_v8  ;;  %v1249_v17 = vmul.f32 %v5644_v16, %v8009_v63  ;;  %v5657_v55 = vld [vmem:[#allocation8 + $0x578] sm:$0xff]  ;;  %v5660_v25 = vld [vmem:[#allocation8 + $0xe70] sm:$0xff]  ;;  %v5663_v9 = vld [vmem:[#allocation8 + $0x580] sm:$0xff] }
 0x163   :  { %v2551_v19 = vadd.f32 %v2407_v60, %v1971_v3  ;;  %v1250_v21 = vmul.f32 %v5645_v20, %v8009_v63  ;;  %v1829_v23 = vmul.f32 %v5646_v22, %v8012_v18  ;;  %v1830_v26 = vmul.f32 %v5647_v24, %v8012_v18  ;;  %v5658_v60 = vld [vmem:[#allocation8 + $0x9f0] sm:$0xff]  ;;  %v5659_v8 = vld [vmem:[#allocation8 + $0x9f8] sm:$0xff]  ;;  %v5666_v22 = vld [vmem:[#allocation8 + $0x108] sm:$0xff] }
 0x164   :  { %2973 = vst [vmem:[#allocation10 + $0x5c] sm:$0xf] %v2877_v12  ;;  %v1972_v27 = vadd.f32 %v1828_v2, %v1392_v15  ;;  %v1393_v28 = vadd.f32 %v1249_v17, %v813_v7  ;;  %v2409_v30 = vmul.f32 %v5648_v29, %v8019_v10  ;;  %v2410_v32 = vmul.f32 %v5649_v31, %v8019_v10  ;;  %v5661_v2 = vld [vmem:[#allocation8 + $0xe78] sm:$0xff]  ;;  %v5664_v15 = vld [vmem:[#allocation8 + $0xa00] sm:$0xff]  ;;  %v5667_v24 = vld [vmem:[#allocation8 + $0x110] sm:$0xff] }
 0x165   :  { %v2878_v33 = vpack.c.bf16 %v2551_v19, %v2550_v13  ;;  %v1394_v34 = vadd.f32 %v1250_v21, %v814_v11  ;;  %v815_v36 = vmul.f32 %v5650_v35, %v8004_v56  ;;  %v1251_v38 = vmul.f32 %v5651_v37, %v8009_v63  ;;  %v5665_v17 = vld [vmem:[#allocation8 + $0xe80] sm:$0xff]  ;;  %v5668_v29 = vld [vmem:[#allocation8 + $0x588] sm:$0xff]  ;;  %v5669_v31 = vld [vmem:[#allocation8 + $0x590] sm:$0xff] }
 0x166   :  { %v2552_v39 = vadd.f32 %v2408_v5, %v1972_v27  ;;  %v1973_v40 = vadd.f32 %v1829_v23, %v1393_v28  ;;  %v1831_v42 = vmul.f32 %v5652_v41, %v8012_v18  ;;  %v2411_v44 = vmul.f32 %v5653_v43, %v8019_v10  ;;  %v5673_v43 = vld [vmem:[#allocation8 + $0xe90] sm:$0xff] }
 0x167   :  { %2974 = vst [vmem:[#allocation10 + $0x60] sm:$0xff] %v2878_v33  ;;  %v1974_v45 = vadd.f32 %v1830_v26, %v1394_v34  ;;  %v1395_v46 = vadd.f32 %v1251_v38, %v815_v36  ;;  %v816_v48 = vmul.f32 %v5654_v47, %v8004_v56  ;;  %v817_v50 = vmul.f32 %v5655_v49, %v8004_v56  ;;  %v5670_v34 = vld [vmem:[#allocation8 + $0xa08] sm:$0xff]  ;;  %v5671_v36 = vld [vmem:[#allocation8 + $0xa10] sm:$0xff] }
 0x168   :  { %v2879_v51 = vpack.c.bf16 %v2552_v39, %v2552_v39  ;;  %v2553_v52 = vadd.f32 %v2409_v30, %v1973_v40  ;;  %v1252_v54 = vmul.f32 %v5656_v53, %v8009_v63  ;;  %v1253_v57 = vmul.f32 %v5657_v55, %v8009_v63  ;;  %v5672_v38 = vld [vmem:[#allocation8 + $0xe88] sm:$0xff] }
 0x169   :  { %v2554_v58 = vadd.f32 %v2410_v32, %v1974_v45  ;;  %v1975_v59 = vadd.f32 %v1831_v42, %v1395_v46  ;;  %v1832_v61 = vmul.f32 %v5658_v60, %v8012_v18  ;;  %v1833_v14 = vmul.f32 %v5659_v8, %v8012_v18  ;;  %v5674_v46 = vld [vmem:[#allocation8 + $0x118] sm:$0xff] }
 0x16a   :  { %2975 = vst [vmem:[#allocation10 + $0x68] sm:$0xf] %v2879_v51  ;;  %v1396_v62 = vadd.f32 %v1252_v54, %v816_v48  ;;  %v1397_v0 = vadd.f32 %v1253_v57, %v817_v50  ;;  %v2412_v1 = vmul.f32 %v5660_v25, %v8019_v10  ;;  %v2413_v3 = vmul.f32 %v5661_v2, %v8019_v10  ;;  %v5675_v48 = vld [vmem:[#allocation8 + $0x598] sm:$0xff]  ;;  %v5678_v57 = vld [vmem:[#allocation8 + $0x120] sm:$0xff] }
 0x16b   :  { %v2880_v4 = vpack.c.bf16 %v2554_v58, %v2553_v52  ;;  %v2555_v5 = vadd.f32 %v2411_v44, %v1975_v59  ;;  %v818_v7 = vmul.f32 %v5662_v6, %v8004_v56  ;;  %v1254_v11 = vmul.f32 %v5663_v9, %v8009_v63  ;;  %v5676_v50 = vld [vmem:[#allocation8 + $0xa18] sm:$0xff] }
 0x16c   :  { %v1976_v12 = vadd.f32 %v1832_v61, %v1396_v62  ;;  %v1977_v13 = vadd.f32 %v1833_v14, %v1397_v0  ;;  %v1834_v16 = vmul.f32 %v5664_v15, %v8012_v18  ;;  %v2414_v19 = vmul.f32 %v5665_v17, %v8019_v10  ;;  %v5677_v54 = vld [vmem:[#allocation8 + $0xe98] sm:$0xff]  ;;  %v5679_v61 = vld [vmem:[#allocation8 + $0x128] sm:$0xff]  ;;  %v5680_v14 = vld [vmem:[#allocation8 + $0x5a0] sm:$0xff] }
 0x16d   :  { %2976 = vst [vmem:[#allocation10 + $0x6c] sm:$0xff] %v2880_v4  ;;  %v2881_v20 = vpack.c.bf16 %v2555_v5, %v2555_v5  ;;  %v1398_v21 = vadd.f32 %v1254_v11, %v818_v7  ;;  %v819_v23 = vmul.f32 %v5666_v22, %v8004_v56  ;;  %v820_v26 = vmul.f32 %v5667_v24, %v8004_v56  ;;  %v5683_v7 = vld [vmem:[#allocation8 + $0xa28] sm:$0xff]  ;;  %v5684_v11 = vld [vmem:[#allocation8 + $0xea0] sm:$0xff] }
 0x16e   :  { %v2556_v27 = vadd.f32 %v2412_v1, %v1976_v12  ;;  %v2557_v28 = vadd.f32 %v2413_v3, %v1977_v13  ;;  %v1255_v30 = vmul.f32 %v5668_v29, %v8009_v63  ;;  %v1256_v32 = vmul.f32 %v5669_v31, %v8009_v63  ;;  %v5681_v1 = vld [vmem:[#allocation8 + $0x5a8] sm:$0xff]  ;;  %v5682_v3 = vld [vmem:[#allocation8 + $0xa20] sm:$0xff]  ;;  %v5689_v29 = vld [vmem:[#allocation8 + $0xeb0] sm:$0xff] }
 0x16f   :  { %2977 = vst [vmem:[#allocation10 + $0x74] sm:$0xf] %v2881_v20  ;;  %v1978_v33 = vadd.f32 %v1834_v16, %v1398_v21  ;;  %v1835_v35 = vmul.f32 %v5670_v34, %v8012_v18  ;;  %v1836_v37 = vmul.f32 %v5671_v36, %v8012_v18  ;;  %v2415_v39 = vmul.f32 %v5672_v38, %v8019_v10  ;;  %v5685_v16 = vld [vmem:[#allocation8 + $0xea8] sm:$0xff]  ;;  %v5690_v31 = vld [vmem:[#allocation8 + $0x138] sm:$0xff] }
 0x170   :  { %v2882_v40 = vpack.c.bf16 %v2557_v28, %v2556_v27  ;;  %v1399_v41 = vadd.f32 %v1255_v30, %v819_v23  ;;  %v1400_v42 = vadd.f32 %v1256_v32, %v820_v26  ;;  %v2416_v44 = vmul.f32 %v5673_v43, %v8019_v10  ;;  %v5687_v23 = vld [vmem:[#allocation8 + $0x5b0] sm:$0xff]  ;;  %v5692_v38 = vld [vmem:[#allocation8 + $0x5b8] sm:$0xff] }
 0x171   :  { %v2558_v45 = vadd.f32 %v2414_v19, %v1978_v33  ;;  %v821_v47 = vmul.f32 %v5674_v46, %v8004_v56  ;;  %v1257_v49 = vmul.f32 %v5675_v48, %v8009_v63  ;;  %v1837_v51 = vmul.f32 %v5676_v50, %v8012_v18  ;;  %v5686_v19 = vld [vmem:[#allocation8 + $0x130] sm:$0xff]  ;;  %v5691_v33 = vld [vmem:[#allocation8 + $0x140] sm:$0xff]  ;;  %v5694_v43 = vld [vmem:[#allocation8 + $0xa38] sm:$0xff] }
 0x172   :  { %2978 = vst [vmem:[#allocation10 + $0x78] sm:$0xff] %v2882_v40  ;;  %v1979_v52 = vadd.f32 %v1835_v35, %v1399_v41  ;;  %v1980_v53 = vadd.f32 %v1836_v37, %v1400_v42  ;;  %v2417_v55 = vmul.f32 %v5677_v54, %v8019_v10  ;;  %v822_v58 = vmul.f32 %v5678_v57, %v8004_v56  ;;  %v5688_v26 = vld [vmem:[#allocation8 + $0xa30] sm:$0xff]  ;;  %v5693_v41 = vld [vmem:[#allocation8 + $0x5c0] sm:$0xff] }
 0x173   :  { %v2883_v59 = vpack.c.bf16 %v2558_v45, %v2558_v45  ;;  %v1401_v60 = vadd.f32 %v1257_v49, %v821_v47  ;;  %v823_v8 = vmul.f32 %v5679_v61, %v8004_v56  ;;  %v1258_v62 = vmul.f32 %v5680_v14, %v8009_v63  ;;  %v5695_v45 = vld [vmem:[#allocation8 + $0xa40] sm:$0xff]  ;;  %v5696_v49 = vld [vmem:[#allocation8 + $0xeb8] sm:$0xff] }
 0x174   :  { %v2559_v0 = vadd.f32 %v2415_v39, %v1979_v52  ;;  %v2560_v25 = vadd.f32 %v2416_v44, %v1980_v53  ;;  %v1259_v2 = vmul.f32 %v5681_v1, %v8009_v63  ;;  %v1838_v4 = vmul.f32 %v5682_v3, %v8012_v18 }
 0x175   :  { %2979 = vst [vmem:[#allocation10 + $0x80] sm:$0xf] %v2883_v59  ;;  %v1981_v5 = vadd.f32 %v1837_v51, %v1401_v60  ;;  %v1402_v6 = vadd.f32 %v1258_v62, %v822_v58  ;;  %v1839_v9 = vmul.f32 %v5683_v7, %v8012_v18  ;;  %v2418_v12 = vmul.f32 %v5684_v11, %v8019_v10  ;;  %v5697_v51 = vld [vmem:[#allocation8 + $0xec0] sm:$0xff]  ;;  %v5699_v58 = vld [vmem:[#allocation8 + $0x5c8] sm:$0xff] }
 0x176   :  { %v2884_v13 = vpack.c.bf16 %v2560_v25, %v2559_v0  ;;  %v1403_v15 = vadd.f32 %v1259_v2, %v823_v8  ;;  %v2419_v17 = vmul.f32 %v5685_v16, %v8019_v10  ;;  %v824_v20 = vmul.f32 %v5686_v19, %v8004_v56  ;;  %v5700_v8 = vld [vmem:[#allocation8 + $0xa48] sm:$0xff]  ;;  %v5702_v2 = vld [vmem:[#allocation8 + $0x150] sm:$0xff] }
 0x177   :  { %v2561_v21 = vadd.f32 %v2417_v55, %v1981_v5  ;;  %v1982_v22 = vadd.f32 %v1838_v4, %v1402_v6  ;;  %v1260_v24 = vmul.f32 %v5687_v23, %v8009_v63  ;;  %v1840_v27 = vmul.f32 %v5688_v26, %v8012_v18  ;;  %v5698_v55 = vld [vmem:[#allocation8 + $0x148] sm:$0xff]  ;;  %v5703_v4 = vld [vmem:[#allocation8 + $0x158] sm:$0xff] }
 0x178   :  { %2980 = vst [vmem:[#allocation10 + $0x84] sm:$0xff] %v2884_v13  ;;  %v1983_v28 = vadd.f32 %v1839_v9, %v1403_v15  ;;  %v2420_v30 = vmul.f32 %v5689_v29, %v8019_v10  ;;  %v825_v32 = vmul.f32 %v5690_v31, %v8004_v56  ;;  %v826_v34 = vmul.f32 %v5691_v33, %v8004_v56  ;;  %v5701_v62 = vld [vmem:[#allocation8 + $0xec8] sm:$0xff]  ;;  %v5704_v9 = vld [vmem:[#allocation8 + $0x5d0] sm:$0xff]  ;;  %v5710_v31 = vld [vmem:[#allocation8 + $0x160] sm:$0xff] }
 0x179   :  { %v2885_v35 = vpack.c.bf16 %v2561_v21, %v2561_v21  ;;  %v2562_v36 = vadd.f32 %v2418_v12, %v1982_v22  ;;  %v1404_v37 = vadd.f32 %v1260_v24, %v824_v20  ;;  %v1261_v39 = vmul.f32 %v5692_v38, %v8009_v63  ;;  %v5705_v12 = vld [vmem:[#allocation8 + $0x5d8] sm:$0xff]  ;;  %v5708_v24 = vld [vmem:[#allocation8 + $0xed0] sm:$0xff]  ;;  %v5711_v33 = vld [vmem:[#allocation8 + $0x5e0] sm:$0xff] }
 0x17a   :  { %v2563_v40 = vadd.f32 %v2419_v17, %v1983_v28  ;;  %v1262_v42 = vmul.f32 %v5693_v41, %v8009_v63  ;;  %v1841_v44 = vmul.f32 %v5694_v43, %v8012_v18  ;;  %v1842_v46 = vmul.f32 %v5695_v45, %v8012_v18  ;;  %v5706_v17 = vld [vmem:[#allocation8 + $0xa50] sm:$0xff]  ;;  %v5707_v20 = vld [vmem:[#allocation8 + $0xa58] sm:$0xff]  ;;  %v5714_v43 = vld [vmem:[#allocation8 + $0x168] sm:$0xff] }
 0x17b   :  { %2981 = vst [vmem:[#allocation10 + $0x8c] sm:$0xf] %v2885_v35  ;;  %v1984_v47 = vadd.f32 %v1840_v27, %v1404_v37  ;;  %v1405_v48 = vadd.f32 %v1261_v39, %v825_v32  ;;  %v2421_v50 = vmul.f32 %v5696_v49, %v8019_v10  ;;  %v2422_v52 = vmul.f32 %v5697_v51, %v8019_v10  ;;  %v5709_v27 = vld [vmem:[#allocation8 + $0xed8] sm:$0xff]  ;;  %v5712_v37 = vld [vmem:[#allocation8 + $0xa60] sm:$0xff]  ;;  %v5715_v45 = vld [vmem:[#allocation8 + $0x170] sm:$0xff] }
 0x17c   :  { %v2886_v53 = vpack.c.bf16 %v2563_v40, %v2562_v36  ;;  %v1406_v54 = vadd.f32 %v1262_v42, %v826_v34  ;;  %v827_v57 = vmul.f32 %v5698_v55, %v8004_v56  ;;  %v1263_v59 = vmul.f32 %v5699_v58, %v8009_v63  ;;  %v5713_v39 = vld [vmem:[#allocation8 + $0xee0] sm:$0xff]  ;;  %v5716_v49 = vld [vmem:[#allocation8 + $0x5e8] sm:$0xff]  ;;  %v5717_v51 = vld [vmem:[#allocation8 + $0x5f0] sm:$0xff] }
 0x17d   :  { %v2564_v60 = vadd.f32 %v2420_v30, %v1984_v47  ;;  %v1985_v61 = vadd.f32 %v1841_v44, %v1405_v48  ;;  %v1843_v14 = vmul.f32 %v5700_v8, %v8012_v18  ;;  %v2423_v0 = vmul.f32 %v5701_v62, %v8019_v10  ;;  %v5721_v62 = vld [vmem:[#allocation8 + $0xef0] sm:$0xff] }
 0x17e   :  { %2982 = vst [vmem:[#allocation10 + $0x90] sm:$0xff] %v2886_v53  ;;  %v1986_v25 = vadd.f32 %v1842_v46, %v1406_v54  ;;  %v1407_v1 = vadd.f32 %v1263_v59, %v827_v57  ;;  %v828_v3 = vmul.f32 %v5702_v2, %v8004_v56  ;;  %v829_v5 = vmul.f32 %v5703_v4, %v8004_v56  ;;  %v5718_v54 = vld [vmem:[#allocation8 + $0xa68] sm:$0xff]  ;;  %v5719_v57 = vld [vmem:[#allocation8 + $0xa70] sm:$0xff] }
 0x17f   :  { %v2887_v6 = vpack.c.bf16 %v2564_v60, %v2564_v60  ;;  %v2565_v7 = vadd.f32 %v2421_v50, %v1985_v61  ;;  %v1264_v11 = vmul.f32 %v5704_v9, %v8009_v63  ;;  %v1265_v13 = vmul.f32 %v5705_v12, %v8009_v63  ;;  %v5720_v59 = vld [vmem:[#allocation8 + $0xee8] sm:$0xff] }
 0x180   :  { %v2566_v15 = vadd.f32 %v2422_v52, %v1986_v25  ;;  %v1987_v16 = vadd.f32 %v1843_v14, %v1407_v1  ;;  %v1844_v19 = vmul.f32 %v5706_v17, %v8012_v18  ;;  %v1845_v21 = vmul.f32 %v5707_v20, %v8012_v18  ;;  %v5722_v1 = vld [vmem:[#allocation8 + $0x178] sm:$0xff] }
 0x181   :  { %2983 = vst [vmem:[#allocation10 + $0x98] sm:$0xf] %v2887_v6  ;;  %v1408_v22 = vadd.f32 %v1264_v11, %v828_v3  ;;  %v1409_v23 = vadd.f32 %v1265_v13, %v829_v5  ;;  %v2424_v26 = vmul.f32 %v5708_v24, %v8019_v10  ;;  %v2425_v28 = vmul.f32 %v5709_v27, %v8019_v10  ;;  %v5723_v3 = vld [vmem:[#allocation8 + $0x5f8] sm:$0xff]  ;;  %v5726_v13 = vld [vmem:[#allocation8 + $0x180] sm:$0xff] }
 0x182   :  { %v2888_v29 = vpack.c.bf16 %v2566_v15, %v2565_v7  ;;  %v2567_v30 = vadd.f32 %v2423_v0, %v1987_v16  ;;  %v830_v32 = vmul.f32 %v5710_v31, %v8004_v56  ;;  %v1266_v34 = vmul.f32 %v5711_v33, %v8009_v63  ;;  %v5724_v5 = vld [vmem:[#allocation8 + $0xa78] sm:$0xff] }
 0x183   :  { %v1988_v35 = vadd.f32 %v1844_v19, %v1408_v22  ;;  %v1989_v36 = vadd.f32 %v1845_v21, %v1409_v23  ;;  %v1846_v38 = vmul.f32 %v5712_v37, %v8012_v18  ;;  %v2426_v40 = vmul.f32 %v5713_v39, %v8019_v10  ;;  %v5725_v11 = vld [vmem:[#allocation8 + $0xef8] sm:$0xff]  ;;  %v5727_v19 = vld [vmem:[#allocation8 + $0x188] sm:$0xff]  ;;  %v5728_v21 = vld [vmem:[#allocation8 + $0x600] sm:$0xff] }
 0x184   :  { %2984 = vst [vmem:[#allocation10 + $0x9c] sm:$0xff] %v2888_v29  ;;  %v2889_v41 = vpack.c.bf16 %v2567_v30, %v2567_v30  ;;  %v1410_v42 = vadd.f32 %v1266_v34, %v830_v32  ;;  %v831_v44 = vmul.f32 %v5714_v43, %v8004_v56  ;;  %v832_v46 = vmul.f32 %v5715_v45, %v8004_v56  ;;  %v5731_v32 = vld [vmem:[#allocation8 + $0xa88] sm:$0xff]  ;;  %v5732_v34 = vld [vmem:[#allocation8 + $0xf00] sm:$0xff] }
 0x185   :  { %v2568_v47 = vadd.f32 %v2424_v26, %v1988_v35  ;;  %v2569_v48 = vadd.f32 %v2425_v28, %v1989_v36  ;;  %v1267_v50 = vmul.f32 %v5716_v49, %v8009_v63  ;;  %v1268_v52 = vmul.f32 %v5717_v51, %v8009_v63  ;;  %v5729_v26 = vld [vmem:[#allocation8 + $0x608] sm:$0xff]  ;;  %v5730_v28 = vld [vmem:[#allocation8 + $0xa80] sm:$0xff]  ;;  %v5737_v49 = vld [vmem:[#allocation8 + $0xf10] sm:$0xff] }
 0x186   :  { %2985 = vst [vmem:[#allocation10 + $0xa4] sm:$0xf] %v2889_v41  ;;  %v1990_v53 = vadd.f32 %v1846_v38, %v1410_v42  ;;  %v1847_v55 = vmul.f32 %v5718_v54, %v8012_v18  ;;  %v1848_v58 = vmul.f32 %v5719_v57, %v8012_v18  ;;  %v2427_v60 = vmul.f32 %v5720_v59, %v8019_v10  ;;  %v5733_v38 = vld [vmem:[#allocation8 + $0xf08] sm:$0xff]  ;;  %v5738_v51 = vld [vmem:[#allocation8 + $0x198] sm:$0xff] }
 0x187   :  { %v2890_v61 = vpack.c.bf16 %v2569_v48, %v2568_v47  ;;  %v1411_v8 = vadd.f32 %v1267_v50, %v831_v44  ;;  %v1412_v14 = vadd.f32 %v1268_v52, %v832_v46  ;;  %v2428_v0 = vmul.f32 %v5721_v62, %v8019_v10  ;;  %v5735_v44 = vld [vmem:[#allocation8 + $0x610] sm:$0xff]  ;;  %v5740_v59 = vld [vmem:[#allocation8 + $0x618] sm:$0xff] }
 0x188   :  { %v2570_v25 = vadd.f32 %v2426_v40, %v1990_v53  ;;  %v833_v2 = vmul.f32 %v5722_v1, %v8004_v56  ;;  %v1269_v4 = vmul.f32 %v5723_v3, %v8009_v63  ;;  %v1849_v6 = vmul.f32 %v5724_v5, %v8012_v18  ;;  %v5734_v40 = vld [vmem:[#allocation8 + $0x190] sm:$0xff]  ;;  %v5739_v53 = vld [vmem:[#allocation8 + $0x1a0] sm:$0xff]  ;;  %v5742_v62 = vld [vmem:[#allocation8 + $0xa98] sm:$0xff] }
 0x189   :  { %2986 = vst [vmem:[#allocation10 + $0xa8] sm:$0xff] %v2890_v61  ;;  %v1991_v7 = vadd.f32 %v1847_v55, %v1411_v8  ;;  %v1992_v9 = vadd.f32 %v1848_v58, %v1412_v14  ;;  %v2429_v12 = vmul.f32 %v5725_v11, %v8019_v10  ;;  %v834_v15 = vmul.f32 %v5726_v13, %v8004_v56  ;;  %v5736_v46 = vld [vmem:[#allocation8 + $0xa90] sm:$0xff]  ;;  %v5741_v8 = vld [vmem:[#allocation8 + $0x620] sm:$0xff] }
 0x18a   :  { %v2891_v16 = vpack.c.bf16 %v2570_v25, %v2570_v25  ;;  %v1413_v17 = vadd.f32 %v1269_v4, %v833_v2  ;;  %v835_v20 = vmul.f32 %v5727_v19, %v8004_v56  ;;  %v1270_v22 = vmul.f32 %v5728_v21, %v8009_v63  ;;  %v5743_v25 = vld [vmem:[#allocation8 + $0xaa0] sm:$0xff]  ;;  %v5744_v4 = vld [vmem:[#allocation8 + $0xf18] sm:$0xff] }
 0x18b   :  { %v2571_v23 = vadd.f32 %v2427_v60, %v1991_v7  ;;  %v2572_v24 = vadd.f32 %v2428_v0, %v1992_v9  ;;  %v1271_v27 = vmul.f32 %v5729_v26, %v8009_v63  ;;  %v1850_v29 = vmul.f32 %v5730_v28, %v8012_v18 }
 0x18c   :  { %2987 = vst [vmem:[#allocation10 + $0xb0] sm:$0xf] %v2891_v16  ;;  %v1993_v30 = vadd.f32 %v1849_v6, %v1413_v17  ;;  %v1414_v31 = vadd.f32 %v1270_v22, %v834_v15  ;;  %v1851_v33 = vmul.f32 %v5731_v32, %v8012_v18  ;;  %v2430_v35 = vmul.f32 %v5732_v34, %v8019_v10  ;;  %v5745_v6 = vld [vmem:[#allocation8 + $0xf20] sm:$0xff]  ;;  %v5747_v15 = vld [vmem:[#allocation8 + $0x628] sm:$0xff] }
 0x18d   :  { %v2892_v36 = vpack.c.bf16 %v2572_v24, %v2571_v23  ;;  %v1415_v37 = vadd.f32 %v1271_v27, %v835_v20  ;;  %v2431_v39 = vmul.f32 %v5733_v38, %v8019_v10  ;;  %v836_v41 = vmul.f32 %v5734_v40, %v8004_v56  ;;  %v5748_v20 = vld [vmem:[#allocation8 + $0xaa8] sm:$0xff]  ;;  %v5750_v27 = vld [vmem:[#allocation8 + $0x1b0] sm:$0xff] }
 0x18e   :  { %v2573_v42 = vadd.f32 %v2429_v12, %v1993_v30  ;;  %v1994_v43 = vadd.f32 %v1850_v29, %v1414_v31  ;;  %v1272_v45 = vmul.f32 %v5735_v44, %v8009_v63  ;;  %v1852_v47 = vmul.f32 %v5736_v46, %v8012_v18  ;;  %v5746_v12 = vld [vmem:[#allocation8 + $0x1a8] sm:$0xff]  ;;  %v5751_v29 = vld [vmem:[#allocation8 + $0x1b8] sm:$0xff] }
 0x18f   :  { %2988 = vst [vmem:[#allocation10 + $0xb4] sm:$0xff] %v2892_v36  ;;  %v1995_v48 = vadd.f32 %v1851_v33, %v1415_v37  ;;  %v2432_v50 = vmul.f32 %v5737_v49, %v8019_v10  ;;  %v837_v52 = vmul.f32 %v5738_v51, %v8004_v56  ;;  %v838_v54 = vmul.f32 %v5739_v53, %v8004_v56  ;;  %v5749_v22 = vld [vmem:[#allocation8 + $0xf28] sm:$0xff]  ;;  %v5752_v33 = vld [vmem:[#allocation8 + $0x630] sm:$0xff]  ;;  %v5758_v51 = vld [vmem:[#allocation8 + $0x1c0] sm:$0xff] }
 0x190   :  { %v2893_v55 = vpack.c.bf16 %v2573_v42, %v2573_v42  ;;  %v2574_v57 = vadd.f32 %v2430_v35, %v1994_v43  ;;  %v1416_v58 = vadd.f32 %v1272_v45, %v836_v41  ;;  %v1273_v60 = vmul.f32 %v5740_v59, %v8009_v63  ;;  %v5753_v35 = vld [vmem:[#allocation8 + $0x638] sm:$0xff]  ;;  %v5756_v45 = vld [vmem:[#allocation8 + $0xf30] sm:$0xff]  ;;  %v5759_v53 = vld [vmem:[#allocation8 + $0x640] sm:$0xff] }
 0x191   :  { %v2575_v61 = vadd.f32 %v2431_v39, %v1995_v48  ;;  %v1274_v14 = vmul.f32 %v5741_v8, %v8009_v63  ;;  %v1853_v0 = vmul.f32 %v5742_v62, %v8012_v18  ;;  %v1854_v1 = vmul.f32 %v5743_v25, %v8012_v18  ;;  %v5754_v39 = vld [vmem:[#allocation8 + $0xab0] sm:$0xff]  ;;  %v5755_v41 = vld [vmem:[#allocation8 + $0xab8] sm:$0xff]  ;;  %v5762_v62 = vld [vmem:[#allocation8 + $0x1c8] sm:$0xff] }
 0x192   :  { %2989 = vst [vmem:[#allocation10 + $0xbc] sm:$0xf] %v2893_v55  ;;  %v1996_v2 = vadd.f32 %v1852_v47, %v1416_v58  ;;  %v1417_v3 = vadd.f32 %v1273_v60, %v837_v52  ;;  %v2433_v5 = vmul.f32 %v5744_v4, %v8019_v10  ;;  %v2434_v7 = vmul.f32 %v5745_v6, %v8019_v10  ;;  %v5757_v47 = vld [vmem:[#allocation8 + $0xf38] sm:$0xff]  ;;  %v5760_v58 = vld [vmem:[#allocation8 + $0xac0] sm:$0xff]  ;;  %v5763_v25 = vld [vmem:[#allocation8 + $0x1d0] sm:$0xff] }
 0x193   :  { %v2894_v9 = vpack.c.bf16 %v2575_v61, %v2574_v57  ;;  %v1418_v11 = vadd.f32 %v1274_v14, %v838_v54  ;;  %v839_v13 = vmul.f32 %v5746_v12, %v8004_v56  ;;  %v1275_v16 = vmul.f32 %v5747_v15, %v8009_v63  ;;  %v5761_v60 = vld [vmem:[#allocation8 + $0xf40] sm:$0xff]  ;;  %v5764_v4 = vld [vmem:[#allocation8 + $0x648] sm:$0xff]  ;;  %v5765_v6 = vld [vmem:[#allocation8 + $0x650] sm:$0xff] }
 0x194   :  { %v2576_v17 = vadd.f32 %v2432_v50, %v1996_v2  ;;  %v1997_v19 = vadd.f32 %v1853_v0, %v1417_v3  ;;  %v1855_v21 = vmul.f32 %v5748_v20, %v8012_v18  ;;  %v2435_v23 = vmul.f32 %v5749_v22, %v8019_v10  ;;  %v5769_v22 = vld [vmem:[#allocation8 + $0xf50] sm:$0xff] }
 0x195   :  { %2990 = vst [vmem:[#allocation10 + $0xc0] sm:$0xff] %v2894_v9  ;;  %v1998_v24 = vadd.f32 %v1854_v1, %v1418_v11  ;;  %v1419_v26 = vadd.f32 %v1275_v16, %v839_v13  ;;  %v840_v28 = vmul.f32 %v5750_v27, %v8004_v56  ;;  %v841_v30 = vmul.f32 %v5751_v29, %v8004_v56  ;;  %v5766_v11 = vld [vmem:[#allocation8 + $0xac8] sm:$0xff]  ;;  %v5767_v13 = vld [vmem:[#allocation8 + $0xad0] sm:$0xff] }
 0x196   :  { %v2895_v31 = vpack.c.bf16 %v2576_v17, %v2576_v17  ;;  %v2577_v32 = vadd.f32 %v2433_v5, %v1997_v19  ;;  %v1276_v34 = vmul.f32 %v5752_v33, %v8009_v63  ;;  %v1277_v36 = vmul.f32 %v5753_v35, %v8009_v63  ;;  %v5768_v16 = vld [vmem:[#allocation8 + $0xf48] sm:$0xff] }
 0x197   :  { %v2578_v37 = vadd.f32 %v2434_v7, %v1998_v24  ;;  %v1999_v38 = vadd.f32 %v1855_v21, %v1419_v26  ;;  %v1856_v40 = vmul.f32 %v5754_v39, %v8012_v18  ;;  %v1857_v42 = vmul.f32 %v5755_v41, %v8012_v18  ;;  %v5770_v26 = vld [vmem:[#allocation8 + $0x1d8] sm:$0xff] }
 0x198   :  { %2991 = vst [vmem:[#allocation10 + $0xc8] sm:$0xf] %v2895_v31  ;;  %v1420_v43 = vadd.f32 %v1276_v34, %v840_v28  ;;  %v1421_v44 = vadd.f32 %v1277_v36, %v841_v30  ;;  %v2436_v46 = vmul.f32 %v5756_v45, %v8019_v10  ;;  %v2437_v48 = vmul.f32 %v5757_v47, %v8019_v10  ;;  %v5771_v28 = vld [vmem:[#allocation8 + $0x658] sm:$0xff]  ;;  %v5774_v36 = vld [vmem:[#allocation8 + $0x1e0] sm:$0xff] }
 0x199   :  { %v2896_v49 = vpack.c.bf16 %v2578_v37, %v2577_v32  ;;  %v2579_v50 = vadd.f32 %v2435_v23, %v1999_v38  ;;  %v842_v52 = vmul.f32 %v5758_v51, %v8004_v56  ;;  %v1278_v54 = vmul.f32 %v5759_v53, %v8009_v63  ;;  %v5772_v30 = vld [vmem:[#allocation8 + $0xad8] sm:$0xff] }
 0x19a   :  { %v2000_v55 = vadd.f32 %v1856_v40, %v1420_v43  ;;  %v2001_v57 = vadd.f32 %v1857_v42, %v1421_v44  ;;  %v1858_v59 = vmul.f32 %v5760_v58, %v8012_v18  ;;  %v2438_v61 = vmul.f32 %v5761_v60, %v8019_v10  ;;  %v5773_v34 = vld [vmem:[#allocation8 + $0xf58] sm:$0xff]  ;;  %v5775_v40 = vld [vmem:[#allocation8 + $0x1e8] sm:$0xff]  ;;  %v5776_v42 = vld [vmem:[#allocation8 + $0x660] sm:$0xff] }
 0x19b   :  { %2992 = vst [vmem:[#allocation10 + $0xcc] sm:$0xff] %v2896_v49  ;;  %v2897_v8 = vpack.c.bf16 %v2579_v50, %v2579_v50  ;;  %v1422_v14 = vadd.f32 %v1278_v54, %v842_v52  ;;  %v843_v0 = vmul.f32 %v5762_v62, %v8004_v56  ;;  %v844_v1 = vmul.f32 %v5763_v25, %v8004_v56  ;;  %v5779_v52 = vld [vmem:[#allocation8 + $0xae8] sm:$0xff]  ;;  %v5780_v54 = vld [vmem:[#allocation8 + $0xf60] sm:$0xff] }
 0x19c   :  { %v2580_v2 = vadd.f32 %v2436_v46, %v2000_v55  ;;  %v2581_v3 = vadd.f32 %v2437_v48, %v2001_v57  ;;  %v1279_v5 = vmul.f32 %v5764_v4, %v8009_v63  ;;  %v1280_v7 = vmul.f32 %v5765_v6, %v8009_v63  ;;  %v5777_v46 = vld [vmem:[#allocation8 + $0x668] sm:$0xff]  ;;  %v5778_v48 = vld [vmem:[#allocation8 + $0xae0] sm:$0xff]  ;;  %v5785_v4 = vld [vmem:[#allocation8 + $0xf70] sm:$0xff] }
 0x19d   :  { %2993 = vst [vmem:[#allocation10 + $0xd4] sm:$0xf] %v2897_v8  ;;  %v2002_v9 = vadd.f32 %v1858_v59, %v1422_v14  ;;  %v1859_v12 = vmul.f32 %v5766_v11, %v8012_v18  ;;  %v1860_v15 = vmul.f32 %v5767_v13, %v8012_v18  ;;  %v2439_v17 = vmul.f32 %v5768_v16, %v8019_v10  ;;  %v5781_v59 = vld [vmem:[#allocation8 + $0xf68] sm:$0xff]  ;;  %v5786_v6 = vld [vmem:[#allocation8 + $0x1f8] sm:$0xff] }
 0x19e   :  { %v2898_v19 = vpack.c.bf16 %v2581_v3, %v2580_v2  ;;  %v1423_v20 = vadd.f32 %v1279_v5, %v843_v0  ;;  %v1424_v21 = vadd.f32 %v1280_v7, %v844_v1  ;;  %v2440_v23 = vmul.f32 %v5769_v22, %v8019_v10  ;;  %v5783_v0 = vld [vmem:[#allocation8 + $0x670] sm:$0xff]  ;;  %v5788_v16 = vld [vmem:[#allocation8 + $0x678] sm:$0xff] }
 0x19f   :  { %v2582_v24 = vadd.f32 %v2438_v61, %v2002_v9  ;;  %v845_v27 = vmul.f32 %v5770_v26, %v8004_v56  ;;  %v1281_v29 = vmul.f32 %v5771_v28, %v8009_v63  ;;  %v1861_v31 = vmul.f32 %v5772_v30, %v8012_v18  ;;  %v5782_v61 = vld [vmem:[#allocation8 + $0x1f0] sm:$0xff]  ;;  %v5787_v9 = vld [vmem:[#allocation8 + $0x200] sm:$0xff]  ;;  %v5790_v22 = vld [vmem:[#allocation8 + $0xaf8] sm:$0xff] }
 0x1a0   :  { %2994 = vst [vmem:[#allocation10 + $0xd8] sm:$0xff] %v2898_v19  ;;  %v2003_v32 = vadd.f32 %v1859_v12, %v1423_v20  ;;  %v2004_v33 = vadd.f32 %v1860_v15, %v1424_v21  ;;  %v2441_v35 = vmul.f32 %v5773_v34, %v8019_v10  ;;  %v846_v37 = vmul.f32 %v5774_v36, %v8004_v56  ;;  %v5784_v1 = vld [vmem:[#allocation8 + $0xaf0] sm:$0xff]  ;;  %v5789_v20 = vld [vmem:[#allocation8 + $0x680] sm:$0xff] }
 0x1a1   :  { %v2899_v38 = vpack.c.bf16 %v2582_v24, %v2582_v24  ;;  %v1425_v39 = vadd.f32 %v1281_v29, %v845_v27  ;;  %v847_v41 = vmul.f32 %v5775_v40, %v8004_v56  ;;  %v1282_v43 = vmul.f32 %v5776_v42, %v8009_v63  ;;  %v5791_v24 = vld [vmem:[#allocation8 + $0xb00] sm:$0xff]  ;;  %v5792_v29 = vld [vmem:[#allocation8 + $0xf78] sm:$0xff] }
 0x1a2   :  { %v2583_v44 = vadd.f32 %v2439_v17, %v2003_v32  ;;  %v2584_v45 = vadd.f32 %v2440_v23, %v2004_v33  ;;  %v1283_v47 = vmul.f32 %v5777_v46, %v8009_v63  ;;  %v1862_v49 = vmul.f32 %v5778_v48, %v8012_v18 }
 0x1a3   :  { %2995 = vst [vmem:[#allocation10 + $0xe0] sm:$0xf] %v2899_v38  ;;  %v2005_v50 = vadd.f32 %v1861_v31, %v1425_v39  ;;  %v1426_v51 = vadd.f32 %v1282_v43, %v846_v37  ;;  %v1863_v53 = vmul.f32 %v5779_v52, %v8012_v18  ;;  %v2442_v55 = vmul.f32 %v5780_v54, %v8019_v10  ;;  %v5793_v31 = vld [vmem:[#allocation8 + $0xf80] sm:$0xff]  ;;  %v5795_v37 = vld [vmem:[#allocation8 + $0x688] sm:$0xff] }
 0x1a4   :  { %v2900_v57 = vpack.c.bf16 %v2584_v45, %v2583_v44  ;;  %v1427_v58 = vadd.f32 %v1283_v47, %v847_v41  ;;  %v2443_v60 = vmul.f32 %v5781_v59, %v8019_v10  ;;  %v848_v8 = vmul.f32 %v5782_v61, %v8004_v56  ;;  %v5796_v41 = vld [vmem:[#allocation8 + $0xb08] sm:$0xff]  ;;  %v5798_v47 = vld [vmem:[#allocation8 + $0x210] sm:$0xff] }
 0x1a5   :  { %v2585_v14 = vadd.f32 %v2441_v35, %v2005_v50  ;;  %v2006_v62 = vadd.f32 %v1862_v49, %v1426_v51  ;;  %v1284_v25 = vmul.f32 %v5783_v0, %v8009_v63  ;;  %v1864_v2 = vmul.f32 %v5784_v1, %v8012_v18  ;;  %v5794_v35 = vld [vmem:[#allocation8 + $0x208] sm:$0xff]  ;;  %v5799_v49 = vld [vmem:[#allocation8 + $0x218] sm:$0xff] }
 0x1a6   :  { %2996 = vst [vmem:[#allocation10 + $0xe4] sm:$0xff] %v2900_v57  ;;  %v2007_v3 = vadd.f32 %v1863_v53, %v1427_v58  ;;  %v2444_v5 = vmul.f32 %v5785_v4, %v8019_v10  ;;  %v849_v7 = vmul.f32 %v5786_v6, %v8004_v56  ;;  %v850_v11 = vmul.f32 %v5787_v9, %v8004_v56  ;;  %v5797_v43 = vld [vmem:[#allocation8 + $0xf88] sm:$0xff]  ;;  %v5800_v53 = vld [vmem:[#allocation8 + $0x690] sm:$0xff]  ;;  %v5806_v6 = vld [vmem:[#allocation8 + $0x220] sm:$0xff] }
 0x1a7   :  { %v2901_v12 = vpack.c.bf16 %v2585_v14, %v2585_v14  ;;  %v2586_v13 = vadd.f32 %v2442_v55, %v2006_v62  ;;  %v1428_v15 = vadd.f32 %v1284_v25, %v848_v8  ;;  %v1285_v17 = vmul.f32 %v5788_v16, %v8009_v63  ;;  %v5801_v55 = vld [vmem:[#allocation8 + $0x698] sm:$0xff]  ;;  %v5804_v25 = vld [vmem:[#allocation8 + $0xf90] sm:$0xff]  ;;  %v5807_v9 = vld [vmem:[#allocation8 + $0x6a0] sm:$0xff] }
 0x1a8   :  { %v2587_v19 = vadd.f32 %v2443_v60, %v2007_v3  ;;  %v1286_v21 = vmul.f32 %v5789_v20, %v8009_v63  ;;  %v1865_v23 = vmul.f32 %v5790_v22, %v8012_v18  ;;  %v1866_v26 = vmul.f32 %v5791_v24, %v8012_v18  ;;  %v5802_v60 = vld [vmem:[#allocation8 + $0xb10] sm:$0xff]  ;;  %v5803_v8 = vld [vmem:[#allocation8 + $0xb18] sm:$0xff]  ;;  %v5810_v22 = vld [vmem:[#allocation8 + $0x228] sm:$0xff] }
 0x1a9   :  { %2997 = vst [vmem:[#allocation10 + $0xec] sm:$0xf] %v2901_v12  ;;  %v2008_v27 = vadd.f32 %v1864_v2, %v1428_v15  ;;  %v1429_v28 = vadd.f32 %v1285_v17, %v849_v7  ;;  %v2445_v30 = vmul.f32 %v5792_v29, %v8019_v10  ;;  %v2446_v32 = vmul.f32 %v5793_v31, %v8019_v10  ;;  %v5805_v2 = vld [vmem:[#allocation8 + $0xf98] sm:$0xff]  ;;  %v5808_v15 = vld [vmem:[#allocation8 + $0xb20] sm:$0xff]  ;;  %v5811_v24 = vld [vmem:[#allocation8 + $0x230] sm:$0xff] }
 0x1aa   :  { %v2902_v33 = vpack.c.bf16 %v2587_v19, %v2586_v13  ;;  %v1430_v34 = vadd.f32 %v1286_v21, %v850_v11  ;;  %v851_v36 = vmul.f32 %v5794_v35, %v8004_v56  ;;  %v1287_v38 = vmul.f32 %v5795_v37, %v8009_v63  ;;  %v5809_v17 = vld [vmem:[#allocation8 + $0xfa0] sm:$0xff]  ;;  %v5812_v29 = vld [vmem:[#allocation8 + $0x6a8] sm:$0xff]  ;;  %v5813_v31 = vld [vmem:[#allocation8 + $0x6b0] sm:$0xff] }
 0x1ab   :  { %v2588_v39 = vadd.f32 %v2444_v5, %v2008_v27  ;;  %v2009_v40 = vadd.f32 %v1865_v23, %v1429_v28  ;;  %v1867_v42 = vmul.f32 %v5796_v41, %v8012_v18  ;;  %v2447_v44 = vmul.f32 %v5797_v43, %v8019_v10  ;;  %v5817_v43 = vld [vmem:[#allocation8 + $0xfb0] sm:$0xff] }
 0x1ac   :  { %2998 = vst [vmem:[#allocation10 + $0xf0] sm:$0xff] %v2902_v33  ;;  %v2010_v45 = vadd.f32 %v1866_v26, %v1430_v34  ;;  %v1431_v46 = vadd.f32 %v1287_v38, %v851_v36  ;;  %v852_v48 = vmul.f32 %v5798_v47, %v8004_v56  ;;  %v853_v50 = vmul.f32 %v5799_v49, %v8004_v56  ;;  %v5814_v34 = vld [vmem:[#allocation8 + $0xb28] sm:$0xff]  ;;  %v5815_v36 = vld [vmem:[#allocation8 + $0xb30] sm:$0xff] }
 0x1ad   :  { %v2903_v51 = vpack.c.bf16 %v2588_v39, %v2588_v39  ;;  %v2589_v52 = vadd.f32 %v2445_v30, %v2009_v40  ;;  %v1288_v54 = vmul.f32 %v5800_v53, %v8009_v63  ;;  %v1289_v57 = vmul.f32 %v5801_v55, %v8009_v63  ;;  %v5816_v38 = vld [vmem:[#allocation8 + $0xfa8] sm:$0xff] }
 0x1ae   :  { %v2590_v58 = vadd.f32 %v2446_v32, %v2010_v45  ;;  %v2011_v59 = vadd.f32 %v1867_v42, %v1431_v46  ;;  %v1868_v61 = vmul.f32 %v5802_v60, %v8012_v18  ;;  %v1869_v14 = vmul.f32 %v5803_v8, %v8012_v18  ;;  %v5818_v46 = vld [vmem:[#allocation8 + $0x238] sm:$0xff] }
 0x1af   :  { %2999 = vst [vmem:[#allocation10 + $0xf8] sm:$0xf] %v2903_v51  ;;  %v1432_v62 = vadd.f32 %v1288_v54, %v852_v48  ;;  %v1433_v0 = vadd.f32 %v1289_v57, %v853_v50  ;;  %v2448_v1 = vmul.f32 %v5804_v25, %v8019_v10  ;;  %v2449_v3 = vmul.f32 %v5805_v2, %v8019_v10  ;;  %v5819_v48 = vld [vmem:[#allocation8 + $0x6b8] sm:$0xff]  ;;  %v5822_v57 = vld [vmem:[#allocation8 + $0x240] sm:$0xff] }
 0x1b0   :  { %v2904_v4 = vpack.c.bf16 %v2590_v58, %v2589_v52  ;;  %v2591_v5 = vadd.f32 %v2447_v44, %v2011_v59  ;;  %v854_v7 = vmul.f32 %v5806_v6, %v8004_v56  ;;  %v1290_v11 = vmul.f32 %v5807_v9, %v8009_v63  ;;  %v5820_v50 = vld [vmem:[#allocation8 + $0xb38] sm:$0xff] }
 0x1b1   :  { %v2012_v12 = vadd.f32 %v1868_v61, %v1432_v62  ;;  %v2013_v13 = vadd.f32 %v1869_v14, %v1433_v0  ;;  %v1870_v16 = vmul.f32 %v5808_v15, %v8012_v18  ;;  %v2450_v19 = vmul.f32 %v5809_v17, %v8019_v10  ;;  %v5821_v54 = vld [vmem:[#allocation8 + $0xfb8] sm:$0xff]  ;;  %v5823_v61 = vld [vmem:[#allocation8 + $0x248] sm:$0xff]  ;;  %v5824_v14 = vld [vmem:[#allocation8 + $0x6c0] sm:$0xff] }
 0x1b2   :  { %3000 = vst [vmem:[#allocation10 + $0xfc] sm:$0xff] %v2904_v4  ;;  %v2905_v20 = vpack.c.bf16 %v2591_v5, %v2591_v5  ;;  %v1434_v21 = vadd.f32 %v1290_v11, %v854_v7  ;;  %v855_v23 = vmul.f32 %v5810_v22, %v8004_v56  ;;  %v856_v26 = vmul.f32 %v5811_v24, %v8004_v56  ;;  %v5827_v7 = vld [vmem:[#allocation8 + $0xb48] sm:$0xff]  ;;  %v5828_v11 = vld [vmem:[#allocation8 + $0xfc0] sm:$0xff] }
 0x1b3   :  { %v2592_v27 = vadd.f32 %v2448_v1, %v2012_v12  ;;  %v2593_v28 = vadd.f32 %v2449_v3, %v2013_v13  ;;  %v1291_v30 = vmul.f32 %v5812_v29, %v8009_v63  ;;  %v1292_v32 = vmul.f32 %v5813_v31, %v8009_v63  ;;  %v5825_v1 = vld [vmem:[#allocation8 + $0x6c8] sm:$0xff]  ;;  %v5826_v3 = vld [vmem:[#allocation8 + $0xb40] sm:$0xff]  ;;  %v5833_v29 = vld [vmem:[#allocation8 + $0xfd0] sm:$0xff] }
 0x1b4   :  { %3001 = vst [vmem:[#allocation10 + $0x104] sm:$0xf] %v2905_v20  ;;  %v2014_v33 = vadd.f32 %v1870_v16, %v1434_v21  ;;  %v1871_v35 = vmul.f32 %v5814_v34, %v8012_v18  ;;  %v1872_v37 = vmul.f32 %v5815_v36, %v8012_v18  ;;  %v2451_v39 = vmul.f32 %v5816_v38, %v8019_v10  ;;  %v5829_v16 = vld [vmem:[#allocation8 + $0xfc8] sm:$0xff]  ;;  %v5834_v31 = vld [vmem:[#allocation8 + $0x258] sm:$0xff] }
 0x1b5   :  { %v2906_v40 = vpack.c.bf16 %v2593_v28, %v2592_v27  ;;  %v1435_v41 = vadd.f32 %v1291_v30, %v855_v23  ;;  %v1436_v42 = vadd.f32 %v1292_v32, %v856_v26  ;;  %v2452_v44 = vmul.f32 %v5817_v43, %v8019_v10  ;;  %v5831_v23 = vld [vmem:[#allocation8 + $0x6d0] sm:$0xff]  ;;  %v5836_v38 = vld [vmem:[#allocation8 + $0x6d8] sm:$0xff] }
 0x1b6   :  { %v2594_v45 = vadd.f32 %v2450_v19, %v2014_v33  ;;  %v857_v47 = vmul.f32 %v5818_v46, %v8004_v56  ;;  %v1293_v49 = vmul.f32 %v5819_v48, %v8009_v63  ;;  %v1873_v51 = vmul.f32 %v5820_v50, %v8012_v18  ;;  %v5830_v19 = vld [vmem:[#allocation8 + $0x250] sm:$0xff]  ;;  %v5835_v33 = vld [vmem:[#allocation8 + $0x260] sm:$0xff]  ;;  %v5838_v43 = vld [vmem:[#allocation8 + $0xb58] sm:$0xff] }
 0x1b7   :  { %3002 = vst [vmem:[#allocation10 + $0x108] sm:$0xff] %v2906_v40  ;;  %v2015_v52 = vadd.f32 %v1871_v35, %v1435_v41  ;;  %v2016_v53 = vadd.f32 %v1872_v37, %v1436_v42  ;;  %v2453_v55 = vmul.f32 %v5821_v54, %v8019_v10  ;;  %v858_v58 = vmul.f32 %v5822_v57, %v8004_v56  ;;  %v5832_v26 = vld [vmem:[#allocation8 + $0xb50] sm:$0xff]  ;;  %v5837_v41 = vld [vmem:[#allocation8 + $0x6e0] sm:$0xff] }
 0x1b8   :  { %v2907_v59 = vpack.c.bf16 %v2594_v45, %v2594_v45  ;;  %v1437_v60 = vadd.f32 %v1293_v49, %v857_v47  ;;  %v859_v8 = vmul.f32 %v5823_v61, %v8004_v56  ;;  %v1294_v62 = vmul.f32 %v5824_v14, %v8009_v63  ;;  %v5839_v45 = vld [vmem:[#allocation8 + $0xb60] sm:$0xff]  ;;  %v5840_v49 = vld [vmem:[#allocation8 + $0xfd8] sm:$0xff] }
 0x1b9   :  { %v2595_v0 = vadd.f32 %v2451_v39, %v2015_v52  ;;  %v2596_v25 = vadd.f32 %v2452_v44, %v2016_v53  ;;  %v1295_v2 = vmul.f32 %v5825_v1, %v8009_v63  ;;  %v1874_v4 = vmul.f32 %v5826_v3, %v8012_v18 }
 0x1ba   :  { %3003 = vst [vmem:[#allocation10 + $0x110] sm:$0xf] %v2907_v59  ;;  %v2017_v5 = vadd.f32 %v1873_v51, %v1437_v60  ;;  %v1438_v6 = vadd.f32 %v1294_v62, %v858_v58  ;;  %v1875_v9 = vmul.f32 %v5827_v7, %v8012_v18  ;;  %v2454_v12 = vmul.f32 %v5828_v11, %v8019_v10  ;;  %v5841_v51 = vld [vmem:[#allocation8 + $0xfe0] sm:$0xff]  ;;  %v5843_v58 = vld [vmem:[#allocation8 + $0x6e8] sm:$0xff] }
 0x1bb   :  { %v2908_v13 = vpack.c.bf16 %v2596_v25, %v2595_v0  ;;  %v1439_v15 = vadd.f32 %v1295_v2, %v859_v8  ;;  %v2455_v17 = vmul.f32 %v5829_v16, %v8019_v10  ;;  %v860_v20 = vmul.f32 %v5830_v19, %v8004_v56  ;;  %v5844_v8 = vld [vmem:[#allocation8 + $0xb68] sm:$0xff]  ;;  %v5846_v2 = vld [vmem:[#allocation8 + $0x270] sm:$0xff] }
 0x1bc   :  { %v2597_v21 = vadd.f32 %v2453_v55, %v2017_v5  ;;  %v2018_v22 = vadd.f32 %v1874_v4, %v1438_v6  ;;  %v1296_v24 = vmul.f32 %v5831_v23, %v8009_v63  ;;  %v1876_v27 = vmul.f32 %v5832_v26, %v8012_v18  ;;  %v5842_v55 = vld [vmem:[#allocation8 + $0x268] sm:$0xff]  ;;  %v5847_v4 = vld [vmem:[#allocation8 + $0x278] sm:$0xff] }
 0x1bd   :  { %3004 = vst [vmem:[#allocation10 + $0x114] sm:$0xff] %v2908_v13  ;;  %v2019_v28 = vadd.f32 %v1875_v9, %v1439_v15  ;;  %v2456_v30 = vmul.f32 %v5833_v29, %v8019_v10  ;;  %v861_v32 = vmul.f32 %v5834_v31, %v8004_v56  ;;  %v862_v34 = vmul.f32 %v5835_v33, %v8004_v56  ;;  %v5845_v62 = vld [vmem:[#allocation8 + $0xfe8] sm:$0xff]  ;;  %v5848_v9 = vld [vmem:[#allocation8 + $0x6f0] sm:$0xff]  ;;  %v5854_v31 = vld [vmem:[#allocation8 + $0x280] sm:$0xff] }
 0x1be   :  { %v2909_v35 = vpack.c.bf16 %v2597_v21, %v2597_v21  ;;  %v2598_v36 = vadd.f32 %v2454_v12, %v2018_v22  ;;  %v1440_v37 = vadd.f32 %v1296_v24, %v860_v20  ;;  %v1297_v39 = vmul.f32 %v5836_v38, %v8009_v63  ;;  %v5849_v12 = vld [vmem:[#allocation8 + $0x6f8] sm:$0xff]  ;;  %v5852_v24 = vld [vmem:[#allocation8 + $0xff0] sm:$0xff]  ;;  %v5855_v33 = vld [vmem:[#allocation8 + $0x700] sm:$0xff] }
 0x1bf   :  { %v2599_v40 = vadd.f32 %v2455_v17, %v2019_v28  ;;  %v1298_v42 = vmul.f32 %v5837_v41, %v8009_v63  ;;  %v1877_v44 = vmul.f32 %v5838_v43, %v8012_v18  ;;  %v1878_v46 = vmul.f32 %v5839_v45, %v8012_v18  ;;  %v5850_v17 = vld [vmem:[#allocation8 + $0xb70] sm:$0xff]  ;;  %v5851_v20 = vld [vmem:[#allocation8 + $0xb78] sm:$0xff]  ;;  %v5858_v43 = vld [vmem:[#allocation8 + $0x288] sm:$0xff] }
 0x1c0   :  { %3005 = vst [vmem:[#allocation10 + $0x11c] sm:$0xf] %v2909_v35  ;;  %v2020_v47 = vadd.f32 %v1876_v27, %v1440_v37  ;;  %v1441_v48 = vadd.f32 %v1297_v39, %v861_v32  ;;  %v2457_v50 = vmul.f32 %v5840_v49, %v8019_v10  ;;  %v2458_v52 = vmul.f32 %v5841_v51, %v8019_v10  ;;  %v5853_v27 = vld [vmem:[#allocation8 + $0xff8] sm:$0xff]  ;;  %v5856_v37 = vld [vmem:[#allocation8 + $0xb80] sm:$0xff]  ;;  %v5859_v45 = vld [vmem:[#allocation8 + $0x290] sm:$0xff] }
 0x1c1   :  { %v2910_v53 = vpack.c.bf16 %v2599_v40, %v2598_v36  ;;  %v1442_v54 = vadd.f32 %v1298_v42, %v862_v34  ;;  %v863_v57 = vmul.f32 %v5842_v55, %v8004_v56  ;;  %v1299_v59 = vmul.f32 %v5843_v58, %v8009_v63  ;;  %v5857_v39 = vld [vmem:[#allocation8 + $0x1000] sm:$0xff]  ;;  %v5860_v49 = vld [vmem:[#allocation8 + $0x708] sm:$0xff]  ;;  %v5861_v51 = vld [vmem:[#allocation8 + $0x710] sm:$0xff] }
 0x1c2   :  { %v2600_v60 = vadd.f32 %v2456_v30, %v2020_v47  ;;  %v2021_v61 = vadd.f32 %v1877_v44, %v1441_v48  ;;  %v1879_v14 = vmul.f32 %v5844_v8, %v8012_v18  ;;  %v2459_v0 = vmul.f32 %v5845_v62, %v8019_v10  ;;  %v5865_v62 = vld [vmem:[#allocation8 + $0x1010] sm:$0xff] }
 0x1c3   :  { %3006 = vst [vmem:[#allocation10 + $0x120] sm:$0xff] %v2910_v53  ;;  %v2022_v25 = vadd.f32 %v1878_v46, %v1442_v54  ;;  %v1443_v1 = vadd.f32 %v1299_v59, %v863_v57  ;;  %v864_v3 = vmul.f32 %v5846_v2, %v8004_v56  ;;  %v865_v5 = vmul.f32 %v5847_v4, %v8004_v56  ;;  %v5862_v54 = vld [vmem:[#allocation8 + $0xb88] sm:$0xff]  ;;  %v5863_v57 = vld [vmem:[#allocation8 + $0xb90] sm:$0xff] }
 0x1c4   :  { %v2911_v6 = vpack.c.bf16 %v2600_v60, %v2600_v60  ;;  %v2601_v7 = vadd.f32 %v2457_v50, %v2021_v61  ;;  %v1300_v11 = vmul.f32 %v5848_v9, %v8009_v63  ;;  %v1301_v13 = vmul.f32 %v5849_v12, %v8009_v63  ;;  %v5864_v59 = vld [vmem:[#allocation8 + $0x1008] sm:$0xff] }
 0x1c5   :  { %v2602_v15 = vadd.f32 %v2458_v52, %v2022_v25  ;;  %v2023_v16 = vadd.f32 %v1879_v14, %v1443_v1  ;;  %v1880_v19 = vmul.f32 %v5850_v17, %v8012_v18  ;;  %v1881_v21 = vmul.f32 %v5851_v20, %v8012_v18  ;;  %v5866_v1 = vld [vmem:[#allocation8 + $0x298] sm:$0xff] }
 0x1c6   :  { %3007 = vst [vmem:[#allocation10 + $0x128] sm:$0xf] %v2911_v6  ;;  %v1444_v22 = vadd.f32 %v1300_v11, %v864_v3  ;;  %v1445_v23 = vadd.f32 %v1301_v13, %v865_v5  ;;  %v2460_v26 = vmul.f32 %v5852_v24, %v8019_v10  ;;  %v2461_v28 = vmul.f32 %v5853_v27, %v8019_v10  ;;  %v5867_v3 = vld [vmem:[#allocation8 + $0x718] sm:$0xff]  ;;  %v5870_v13 = vld [vmem:[#allocation8 + $0x2a0] sm:$0xff] }
 0x1c7   :  { %v2912_v29 = vpack.c.bf16 %v2602_v15, %v2601_v7  ;;  %v2603_v30 = vadd.f32 %v2459_v0, %v2023_v16  ;;  %v866_v32 = vmul.f32 %v5854_v31, %v8004_v56  ;;  %v1302_v34 = vmul.f32 %v5855_v33, %v8009_v63  ;;  %v5868_v5 = vld [vmem:[#allocation8 + $0xb98] sm:$0xff] }
 0x1c8   :  { %v2024_v35 = vadd.f32 %v1880_v19, %v1444_v22  ;;  %v2025_v36 = vadd.f32 %v1881_v21, %v1445_v23  ;;  %v1882_v38 = vmul.f32 %v5856_v37, %v8012_v18  ;;  %v2462_v40 = vmul.f32 %v5857_v39, %v8019_v10  ;;  %v5869_v11 = vld [vmem:[#allocation8 + $0x1018] sm:$0xff]  ;;  %v5871_v19 = vld [vmem:[#allocation8 + $0x2a8] sm:$0xff]  ;;  %v5872_v21 = vld [vmem:[#allocation8 + $0x720] sm:$0xff] }
 0x1c9   :  { %3008 = vst [vmem:[#allocation10 + $0x12c] sm:$0xff] %v2912_v29  ;;  %v2913_v41 = vpack.c.bf16 %v2603_v30, %v2603_v30  ;;  %v1446_v42 = vadd.f32 %v1302_v34, %v866_v32  ;;  %v867_v44 = vmul.f32 %v5858_v43, %v8004_v56  ;;  %v868_v46 = vmul.f32 %v5859_v45, %v8004_v56  ;;  %v5875_v32 = vld [vmem:[#allocation8 + $0xba8] sm:$0xff]  ;;  %v5876_v34 = vld [vmem:[#allocation8 + $0x1020] sm:$0xff] }
 0x1ca   :  { %v2604_v47 = vadd.f32 %v2460_v26, %v2024_v35  ;;  %v2605_v48 = vadd.f32 %v2461_v28, %v2025_v36  ;;  %v1303_v50 = vmul.f32 %v5860_v49, %v8009_v63  ;;  %v1304_v52 = vmul.f32 %v5861_v51, %v8009_v63  ;;  %v5873_v26 = vld [vmem:[#allocation8 + $0x728] sm:$0xff]  ;;  %v5874_v28 = vld [vmem:[#allocation8 + $0xba0] sm:$0xff]  ;;  %v5881_v49 = vld [vmem:[#allocation8 + $0x1030] sm:$0xff] }
 0x1cb   :  { %3009 = vst [vmem:[#allocation10 + $0x134] sm:$0xf] %v2913_v41  ;;  %v2026_v53 = vadd.f32 %v1882_v38, %v1446_v42  ;;  %v1883_v55 = vmul.f32 %v5862_v54, %v8012_v18  ;;  %v1884_v58 = vmul.f32 %v5863_v57, %v8012_v18  ;;  %v2463_v60 = vmul.f32 %v5864_v59, %v8019_v10  ;;  %v5877_v38 = vld [vmem:[#allocation8 + $0x1028] sm:$0xff]  ;;  %v5882_v51 = vld [vmem:[#allocation8 + $0x2b8] sm:$0xff] }
 0x1cc   :  { %v2914_v61 = vpack.c.bf16 %v2605_v48, %v2604_v47  ;;  %v1447_v8 = vadd.f32 %v1303_v50, %v867_v44  ;;  %v1448_v14 = vadd.f32 %v1304_v52, %v868_v46  ;;  %v2464_v0 = vmul.f32 %v5865_v62, %v8019_v10  ;;  %v5879_v44 = vld [vmem:[#allocation8 + $0x730] sm:$0xff]  ;;  %v5884_v59 = vld [vmem:[#allocation8 + $0x738] sm:$0xff] }
 0x1cd   :  { %v2606_v25 = vadd.f32 %v2462_v40, %v2026_v53  ;;  %v869_v2 = vmul.f32 %v5866_v1, %v8004_v56  ;;  %v1305_v4 = vmul.f32 %v5867_v3, %v8009_v63  ;;  %v1885_v6 = vmul.f32 %v5868_v5, %v8012_v18  ;;  %v5878_v40 = vld [vmem:[#allocation8 + $0x2b0] sm:$0xff]  ;;  %v5883_v53 = vld [vmem:[#allocation8 + $0x2c0] sm:$0xff]  ;;  %v5886_v62 = vld [vmem:[#allocation8 + $0xbb8] sm:$0xff] }
 0x1ce   :  { %3010 = vst [vmem:[#allocation10 + $0x138] sm:$0xff] %v2914_v61  ;;  %v2027_v7 = vadd.f32 %v1883_v55, %v1447_v8  ;;  %v2028_v9 = vadd.f32 %v1884_v58, %v1448_v14  ;;  %v2465_v12 = vmul.f32 %v5869_v11, %v8019_v10  ;;  %v870_v15 = vmul.f32 %v5870_v13, %v8004_v56  ;;  %v5880_v46 = vld [vmem:[#allocation8 + $0xbb0] sm:$0xff]  ;;  %v5885_v8 = vld [vmem:[#allocation8 + $0x740] sm:$0xff] }
 0x1cf   :  { %v2915_v16 = vpack.c.bf16 %v2606_v25, %v2606_v25  ;;  %v1449_v17 = vadd.f32 %v1305_v4, %v869_v2  ;;  %v871_v20 = vmul.f32 %v5871_v19, %v8004_v56  ;;  %v1306_v22 = vmul.f32 %v5872_v21, %v8009_v63  ;;  %v5887_v25 = vld [vmem:[#allocation8 + $0xbc0] sm:$0xff]  ;;  %v5888_v4 = vld [vmem:[#allocation8 + $0x1038] sm:$0xff] }
 0x1d0   :  { %v2607_v23 = vadd.f32 %v2463_v60, %v2027_v7  ;;  %v2608_v24 = vadd.f32 %v2464_v0, %v2028_v9  ;;  %v1307_v27 = vmul.f32 %v5873_v26, %v8009_v63  ;;  %v1886_v29 = vmul.f32 %v5874_v28, %v8012_v18 }
 0x1d1   :  { %3011 = vst [vmem:[#allocation10 + $0x140] sm:$0xf] %v2915_v16  ;;  %v2029_v30 = vadd.f32 %v1885_v6, %v1449_v17  ;;  %v1450_v31 = vadd.f32 %v1306_v22, %v870_v15  ;;  %v1887_v33 = vmul.f32 %v5875_v32, %v8012_v18  ;;  %v2466_v35 = vmul.f32 %v5876_v34, %v8019_v10  ;;  %v5889_v6 = vld [vmem:[#allocation8 + $0x1040] sm:$0xff]  ;;  %v5891_v15 = vld [vmem:[#allocation8 + $0x748] sm:$0xff] }
 0x1d2   :  { %v2916_v36 = vpack.c.bf16 %v2608_v24, %v2607_v23  ;;  %v1451_v37 = vadd.f32 %v1307_v27, %v871_v20  ;;  %v2467_v39 = vmul.f32 %v5877_v38, %v8019_v10  ;;  %v872_v41 = vmul.f32 %v5878_v40, %v8004_v56  ;;  %v5892_v20 = vld [vmem:[#allocation8 + $0xbc8] sm:$0xff]  ;;  %v5894_v27 = vld [vmem:[#allocation8 + $0x2d0] sm:$0xff] }
 0x1d3   :  { %v2609_v42 = vadd.f32 %v2465_v12, %v2029_v30  ;;  %v2030_v43 = vadd.f32 %v1886_v29, %v1450_v31  ;;  %v1308_v45 = vmul.f32 %v5879_v44, %v8009_v63  ;;  %v1888_v47 = vmul.f32 %v5880_v46, %v8012_v18  ;;  %v5890_v12 = vld [vmem:[#allocation8 + $0x2c8] sm:$0xff]  ;;  %v5895_v29 = vld [vmem:[#allocation8 + $0x2d8] sm:$0xff] }
 0x1d4   :  { %3012 = vst [vmem:[#allocation10 + $0x144] sm:$0xff] %v2916_v36  ;;  %v2031_v48 = vadd.f32 %v1887_v33, %v1451_v37  ;;  %v2468_v50 = vmul.f32 %v5881_v49, %v8019_v10  ;;  %v873_v52 = vmul.f32 %v5882_v51, %v8004_v56  ;;  %v874_v54 = vmul.f32 %v5883_v53, %v8004_v56  ;;  %v5893_v22 = vld [vmem:[#allocation8 + $0x1048] sm:$0xff]  ;;  %v5896_v33 = vld [vmem:[#allocation8 + $0x750] sm:$0xff]  ;;  %v5902_v51 = vld [vmem:[#allocation8 + $0x2e0] sm:$0xff] }
 0x1d5   :  { %v2917_v55 = vpack.c.bf16 %v2609_v42, %v2609_v42  ;;  %v2610_v57 = vadd.f32 %v2466_v35, %v2030_v43  ;;  %v1452_v58 = vadd.f32 %v1308_v45, %v872_v41  ;;  %v1309_v60 = vmul.f32 %v5884_v59, %v8009_v63  ;;  %v5897_v35 = vld [vmem:[#allocation8 + $0x758] sm:$0xff]  ;;  %v5900_v45 = vld [vmem:[#allocation8 + $0x1050] sm:$0xff]  ;;  %v5903_v53 = vld [vmem:[#allocation8 + $0x760] sm:$0xff] }
 0x1d6   :  { %v2611_v61 = vadd.f32 %v2467_v39, %v2031_v48  ;;  %v1310_v14 = vmul.f32 %v5885_v8, %v8009_v63  ;;  %v1889_v0 = vmul.f32 %v5886_v62, %v8012_v18  ;;  %v1890_v1 = vmul.f32 %v5887_v25, %v8012_v18  ;;  %v5898_v39 = vld [vmem:[#allocation8 + $0xbd0] sm:$0xff]  ;;  %v5899_v41 = vld [vmem:[#allocation8 + $0xbd8] sm:$0xff]  ;;  %v5906_v62 = vld [vmem:[#allocation8 + $0x2e8] sm:$0xff] }
 0x1d7   :  { %3013 = vst [vmem:[#allocation10 + $0x14c] sm:$0xf] %v2917_v55  ;;  %v2032_v2 = vadd.f32 %v1888_v47, %v1452_v58  ;;  %v1453_v3 = vadd.f32 %v1309_v60, %v873_v52  ;;  %v2469_v5 = vmul.f32 %v5888_v4, %v8019_v10  ;;  %v2470_v7 = vmul.f32 %v5889_v6, %v8019_v10  ;;  %v5901_v47 = vld [vmem:[#allocation8 + $0x1058] sm:$0xff]  ;;  %v5904_v58 = vld [vmem:[#allocation8 + $0xbe0] sm:$0xff]  ;;  %v5907_v25 = vld [vmem:[#allocation8 + $0x2f0] sm:$0xff] }
 0x1d8   :  { %v2918_v9 = vpack.c.bf16 %v2611_v61, %v2610_v57  ;;  %v1454_v11 = vadd.f32 %v1310_v14, %v874_v54  ;;  %v875_v13 = vmul.f32 %v5890_v12, %v8004_v56  ;;  %v1311_v16 = vmul.f32 %v5891_v15, %v8009_v63  ;;  %v5905_v60 = vld [vmem:[#allocation8 + $0x1060] sm:$0xff]  ;;  %v5908_v4 = vld [vmem:[#allocation8 + $0x768] sm:$0xff]  ;;  %v5909_v6 = vld [vmem:[#allocation8 + $0x770] sm:$0xff] }
 0x1d9   :  { %v2612_v17 = vadd.f32 %v2468_v50, %v2032_v2  ;;  %v2033_v19 = vadd.f32 %v1889_v0, %v1453_v3  ;;  %v1891_v21 = vmul.f32 %v5892_v20, %v8012_v18  ;;  %v2471_v23 = vmul.f32 %v5893_v22, %v8019_v10  ;;  %v5913_v22 = vld [vmem:[#allocation8 + $0x1070] sm:$0xff] }
 0x1da   :  { %3014 = vst [vmem:[#allocation10 + $0x150] sm:$0xff] %v2918_v9  ;;  %v2034_v24 = vadd.f32 %v1890_v1, %v1454_v11  ;;  %v1455_v26 = vadd.f32 %v1311_v16, %v875_v13  ;;  %v876_v28 = vmul.f32 %v5894_v27, %v8004_v56  ;;  %v877_v30 = vmul.f32 %v5895_v29, %v8004_v56  ;;  %v5910_v11 = vld [vmem:[#allocation8 + $0xbe8] sm:$0xff]  ;;  %v5911_v13 = vld [vmem:[#allocation8 + $0xbf0] sm:$0xff] }
 0x1db   :  { %v2919_v31 = vpack.c.bf16 %v2612_v17, %v2612_v17  ;;  %v2613_v32 = vadd.f32 %v2469_v5, %v2033_v19  ;;  %v1312_v34 = vmul.f32 %v5896_v33, %v8009_v63  ;;  %v1313_v36 = vmul.f32 %v5897_v35, %v8009_v63  ;;  %v5912_v16 = vld [vmem:[#allocation8 + $0x1068] sm:$0xff] }
 0x1dc   :  { %v2614_v37 = vadd.f32 %v2470_v7, %v2034_v24  ;;  %v2035_v38 = vadd.f32 %v1891_v21, %v1455_v26  ;;  %v1892_v40 = vmul.f32 %v5898_v39, %v8012_v18  ;;  %v1893_v42 = vmul.f32 %v5899_v41, %v8012_v18  ;;  %v5914_v26 = vld [vmem:[#allocation8 + $0x2f8] sm:$0xff] }
 0x1dd   :  { %3015 = vst [vmem:[#allocation10 + $0x158] sm:$0xf] %v2919_v31  ;;  %v1456_v43 = vadd.f32 %v1312_v34, %v876_v28  ;;  %v1457_v44 = vadd.f32 %v1313_v36, %v877_v30  ;;  %v2472_v46 = vmul.f32 %v5900_v45, %v8019_v10  ;;  %v2473_v48 = vmul.f32 %v5901_v47, %v8019_v10  ;;  %v5915_v28 = vld [vmem:[#allocation8 + $0x778] sm:$0xff]  ;;  %v5918_v36 = vld [vmem:[#allocation8 + $0x300] sm:$0xff] }
 0x1de   :  { %v2920_v49 = vpack.c.bf16 %v2614_v37, %v2613_v32  ;;  %v2615_v50 = vadd.f32 %v2471_v23, %v2035_v38  ;;  %v878_v52 = vmul.f32 %v5902_v51, %v8004_v56  ;;  %v1314_v54 = vmul.f32 %v5903_v53, %v8009_v63  ;;  %v5916_v30 = vld [vmem:[#allocation8 + $0xbf8] sm:$0xff] }
 0x1df   :  { %v2036_v55 = vadd.f32 %v1892_v40, %v1456_v43  ;;  %v2037_v57 = vadd.f32 %v1893_v42, %v1457_v44  ;;  %v1894_v59 = vmul.f32 %v5904_v58, %v8012_v18  ;;  %v2474_v61 = vmul.f32 %v5905_v60, %v8019_v10  ;;  %v5917_v34 = vld [vmem:[#allocation8 + $0x1078] sm:$0xff]  ;;  %v5919_v40 = vld [vmem:[#allocation8 + $0x308] sm:$0xff]  ;;  %v5920_v42 = vld [vmem:[#allocation8 + $0x780] sm:$0xff] }
 0x1e0   :  { %3016 = vst [vmem:[#allocation10 + $0x15c] sm:$0xff] %v2920_v49  ;;  %v2921_v8 = vpack.c.bf16 %v2615_v50, %v2615_v50  ;;  %v1458_v14 = vadd.f32 %v1314_v54, %v878_v52  ;;  %v879_v0 = vmul.f32 %v5906_v62, %v8004_v56  ;;  %v880_v1 = vmul.f32 %v5907_v25, %v8004_v56  ;;  %v5923_v52 = vld [vmem:[#allocation8 + $0xc08] sm:$0xff]  ;;  %v5924_v54 = vld [vmem:[#allocation8 + $0x1080] sm:$0xff] }
 0x1e1   :  { %v2616_v2 = vadd.f32 %v2472_v46, %v2036_v55  ;;  %v2617_v3 = vadd.f32 %v2473_v48, %v2037_v57  ;;  %v1315_v5 = vmul.f32 %v5908_v4, %v8009_v63  ;;  %v1316_v7 = vmul.f32 %v5909_v6, %v8009_v63  ;;  %v5921_v46 = vld [vmem:[#allocation8 + $0x788] sm:$0xff]  ;;  %v5922_v48 = vld [vmem:[#allocation8 + $0xc00] sm:$0xff]  ;;  %v5929_v4 = vld [vmem:[#allocation8 + $0x1090] sm:$0xff] }
 0x1e2   :  { %3017 = vst [vmem:[#allocation10 + $0x164] sm:$0xf] %v2921_v8  ;;  %v2038_v9 = vadd.f32 %v1894_v59, %v1458_v14  ;;  %v1895_v12 = vmul.f32 %v5910_v11, %v8012_v18  ;;  %v1896_v15 = vmul.f32 %v5911_v13, %v8012_v18  ;;  %v2475_v17 = vmul.f32 %v5912_v16, %v8019_v10  ;;  %v5925_v59 = vld [vmem:[#allocation8 + $0x1088] sm:$0xff]  ;;  %v5930_v6 = vld [vmem:[#allocation8 + $0x318] sm:$0xff] }
 0x1e3   :  { %v2922_v19 = vpack.c.bf16 %v2617_v3, %v2616_v2  ;;  %v1459_v20 = vadd.f32 %v1315_v5, %v879_v0  ;;  %v1460_v21 = vadd.f32 %v1316_v7, %v880_v1  ;;  %v2476_v23 = vmul.f32 %v5913_v22, %v8019_v10  ;;  %v5927_v0 = vld [vmem:[#allocation8 + $0x790] sm:$0xff]  ;;  %v5932_v16 = vld [vmem:[#allocation8 + $0x798] sm:$0xff] }
 0x1e4   :  { %v2618_v24 = vadd.f32 %v2474_v61, %v2038_v9  ;;  %v881_v27 = vmul.f32 %v5914_v26, %v8004_v56  ;;  %v1317_v29 = vmul.f32 %v5915_v28, %v8009_v63  ;;  %v1897_v31 = vmul.f32 %v5916_v30, %v8012_v18  ;;  %v5926_v61 = vld [vmem:[#allocation8 + $0x310] sm:$0xff]  ;;  %v5931_v9 = vld [vmem:[#allocation8 + $0x320] sm:$0xff]  ;;  %v5934_v22 = vld [vmem:[#allocation8 + $0xc18] sm:$0xff] }
 0x1e5   :  { %3018 = vst [vmem:[#allocation10 + $0x168] sm:$0xff] %v2922_v19  ;;  %v2039_v32 = vadd.f32 %v1895_v12, %v1459_v20  ;;  %v2040_v33 = vadd.f32 %v1896_v15, %v1460_v21  ;;  %v2477_v35 = vmul.f32 %v5917_v34, %v8019_v10  ;;  %v882_v37 = vmul.f32 %v5918_v36, %v8004_v56  ;;  %v5928_v1 = vld [vmem:[#allocation8 + $0xc10] sm:$0xff]  ;;  %v5933_v20 = vld [vmem:[#allocation8 + $0x7a0] sm:$0xff] }
 0x1e6   :  { %v2923_v38 = vpack.c.bf16 %v2618_v24, %v2618_v24  ;;  %v1461_v39 = vadd.f32 %v1317_v29, %v881_v27  ;;  %v883_v41 = vmul.f32 %v5919_v40, %v8004_v56  ;;  %v1318_v43 = vmul.f32 %v5920_v42, %v8009_v63  ;;  %v5935_v24 = vld [vmem:[#allocation8 + $0xc20] sm:$0xff]  ;;  %v5936_v29 = vld [vmem:[#allocation8 + $0x1098] sm:$0xff] }
 0x1e7   :  { %v2619_v44 = vadd.f32 %v2475_v17, %v2039_v32  ;;  %v2620_v45 = vadd.f32 %v2476_v23, %v2040_v33  ;;  %v1319_v47 = vmul.f32 %v5921_v46, %v8009_v63  ;;  %v1898_v49 = vmul.f32 %v5922_v48, %v8012_v18 }
 0x1e8   :  { %3019 = vst [vmem:[#allocation10 + $0x170] sm:$0xf] %v2923_v38  ;;  %v2041_v50 = vadd.f32 %v1897_v31, %v1461_v39  ;;  %v1462_v51 = vadd.f32 %v1318_v43, %v882_v37  ;;  %v1899_v53 = vmul.f32 %v5923_v52, %v8012_v18  ;;  %v2478_v55 = vmul.f32 %v5924_v54, %v8019_v10  ;;  %v5937_v31 = vld [vmem:[#allocation8 + $0x10a0] sm:$0xff]  ;;  %v5939_v37 = vld [vmem:[#allocation8 + $0x7a8] sm:$0xff] }
 0x1e9   :  { %v2924_v57 = vpack.c.bf16 %v2620_v45, %v2619_v44  ;;  %v1463_v58 = vadd.f32 %v1319_v47, %v883_v41  ;;  %v2479_v60 = vmul.f32 %v5925_v59, %v8019_v10  ;;  %v884_v8 = vmul.f32 %v5926_v61, %v8004_v56  ;;  %v5940_v41 = vld [vmem:[#allocation8 + $0xc28] sm:$0xff]  ;;  %v5942_v47 = vld [vmem:[#allocation8 + $0x330] sm:$0xff] }
 0x1ea   :  { %v2621_v14 = vadd.f32 %v2477_v35, %v2041_v50  ;;  %v2042_v62 = vadd.f32 %v1898_v49, %v1462_v51  ;;  %v1320_v25 = vmul.f32 %v5927_v0, %v8009_v63  ;;  %v1900_v2 = vmul.f32 %v5928_v1, %v8012_v18  ;;  %v5938_v35 = vld [vmem:[#allocation8 + $0x328] sm:$0xff]  ;;  %v5943_v49 = vld [vmem:[#allocation8 + $0x338] sm:$0xff] }
 0x1eb   :  { %3020 = vst [vmem:[#allocation10 + $0x174] sm:$0xff] %v2924_v57  ;;  %v2043_v3 = vadd.f32 %v1899_v53, %v1463_v58  ;;  %v2480_v5 = vmul.f32 %v5929_v4, %v8019_v10  ;;  %v885_v7 = vmul.f32 %v5930_v6, %v8004_v56  ;;  %v886_v11 = vmul.f32 %v5931_v9, %v8004_v56  ;;  %v5941_v43 = vld [vmem:[#allocation8 + $0x10a8] sm:$0xff]  ;;  %v5944_v53 = vld [vmem:[#allocation8 + $0x7b0] sm:$0xff]  ;;  %v5950_v6 = vld [vmem:[#allocation8 + $0x340] sm:$0xff] }
 0x1ec   :  { %v2925_v12 = vpack.c.bf16 %v2621_v14, %v2621_v14  ;;  %v2622_v13 = vadd.f32 %v2478_v55, %v2042_v62  ;;  %v1464_v15 = vadd.f32 %v1320_v25, %v884_v8  ;;  %v1321_v17 = vmul.f32 %v5932_v16, %v8009_v63  ;;  %v5945_v55 = vld [vmem:[#allocation8 + $0x7b8] sm:$0xff]  ;;  %v5948_v25 = vld [vmem:[#allocation8 + $0x10b0] sm:$0xff]  ;;  %v5951_v9 = vld [vmem:[#allocation8 + $0x7c0] sm:$0xff] }
 0x1ed   :  { %v2623_v19 = vadd.f32 %v2479_v60, %v2043_v3  ;;  %v1322_v21 = vmul.f32 %v5933_v20, %v8009_v63  ;;  %v1901_v23 = vmul.f32 %v5934_v22, %v8012_v18  ;;  %v1902_v26 = vmul.f32 %v5935_v24, %v8012_v18  ;;  %v5946_v60 = vld [vmem:[#allocation8 + $0xc30] sm:$0xff]  ;;  %v5947_v8 = vld [vmem:[#allocation8 + $0xc38] sm:$0xff]  ;;  %v5954_v22 = vld [vmem:[#allocation8 + $0x348] sm:$0xff] }
 0x1ee   :  { %3021 = vst [vmem:[#allocation10 + $0x17c] sm:$0xf] %v2925_v12  ;;  %v2044_v27 = vadd.f32 %v1900_v2, %v1464_v15  ;;  %v1465_v28 = vadd.f32 %v1321_v17, %v885_v7  ;;  %v2481_v30 = vmul.f32 %v5936_v29, %v8019_v10  ;;  %v2482_v32 = vmul.f32 %v5937_v31, %v8019_v10  ;;  %v5949_v2 = vld [vmem:[#allocation8 + $0x10b8] sm:$0xff]  ;;  %v5952_v15 = vld [vmem:[#allocation8 + $0xc40] sm:$0xff]  ;;  %v5955_v24 = vld [vmem:[#allocation8 + $0x350] sm:$0xff] }
 0x1ef   :  { %v2926_v33 = vpack.c.bf16 %v2623_v19, %v2622_v13  ;;  %v1466_v34 = vadd.f32 %v1322_v21, %v886_v11  ;;  %v887_v36 = vmul.f32 %v5938_v35, %v8004_v56  ;;  %v1323_v38 = vmul.f32 %v5939_v37, %v8009_v63  ;;  %v5953_v17 = vld [vmem:[#allocation8 + $0x10c0] sm:$0xff]  ;;  %v5956_v29 = vld [vmem:[#allocation8 + $0x7c8] sm:$0xff]  ;;  %v5957_v31 = vld [vmem:[#allocation8 + $0x7d0] sm:$0xff] }
 0x1f0   :  { %v2624_v39 = vadd.f32 %v2480_v5, %v2044_v27  ;;  %v2045_v40 = vadd.f32 %v1901_v23, %v1465_v28  ;;  %v1903_v42 = vmul.f32 %v5940_v41, %v8012_v18  ;;  %v2483_v44 = vmul.f32 %v5941_v43, %v8019_v10  ;;  %v5961_v43 = vld [vmem:[#allocation8 + $0x10d0] sm:$0xff] }
 0x1f1   :  { %3022 = vst [vmem:[#allocation10 + $0x180] sm:$0xff] %v2926_v33  ;;  %v2046_v45 = vadd.f32 %v1902_v26, %v1466_v34  ;;  %v1467_v46 = vadd.f32 %v1323_v38, %v887_v36  ;;  %v888_v48 = vmul.f32 %v5942_v47, %v8004_v56  ;;  %v889_v50 = vmul.f32 %v5943_v49, %v8004_v56  ;;  %v5958_v34 = vld [vmem:[#allocation8 + $0xc48] sm:$0xff]  ;;  %v5959_v36 = vld [vmem:[#allocation8 + $0xc50] sm:$0xff] }
 0x1f2   :  { %v2927_v51 = vpack.c.bf16 %v2624_v39, %v2624_v39  ;;  %v2625_v52 = vadd.f32 %v2481_v30, %v2045_v40  ;;  %v1324_v54 = vmul.f32 %v5944_v53, %v8009_v63  ;;  %v1325_v57 = vmul.f32 %v5945_v55, %v8009_v63  ;;  %v5960_v38 = vld [vmem:[#allocation8 + $0x10c8] sm:$0xff] }
 0x1f3   :  { %v2626_v58 = vadd.f32 %v2482_v32, %v2046_v45  ;;  %v2047_v59 = vadd.f32 %v1903_v42, %v1467_v46  ;;  %v1904_v61 = vmul.f32 %v5946_v60, %v8012_v18  ;;  %v1905_v14 = vmul.f32 %v5947_v8, %v8012_v18  ;;  %v5962_v46 = vld [vmem:[#allocation8 + $0x358] sm:$0xff] }
 0x1f4   :  { %3023 = vst [vmem:[#allocation10 + $0x188] sm:$0xf] %v2927_v51  ;;  %v1468_v62 = vadd.f32 %v1324_v54, %v888_v48  ;;  %v1469_v0 = vadd.f32 %v1325_v57, %v889_v50  ;;  %v2484_v1 = vmul.f32 %v5948_v25, %v8019_v10  ;;  %v2485_v3 = vmul.f32 %v5949_v2, %v8019_v10  ;;  %v5963_v48 = vld [vmem:[#allocation8 + $0x7d8] sm:$0xff]  ;;  %v5966_v57 = vld [vmem:[#allocation8 + $0x360] sm:$0xff] }
 0x1f5   :  { %v2928_v4 = vpack.c.bf16 %v2626_v58, %v2625_v52  ;;  %v2627_v5 = vadd.f32 %v2483_v44, %v2047_v59  ;;  %v890_v7 = vmul.f32 %v5950_v6, %v8004_v56  ;;  %v1326_v11 = vmul.f32 %v5951_v9, %v8009_v63  ;;  %v5964_v50 = vld [vmem:[#allocation8 + $0xc58] sm:$0xff] }
 0x1f6   :  { %v2048_v12 = vadd.f32 %v1904_v61, %v1468_v62  ;;  %v2049_v13 = vadd.f32 %v1905_v14, %v1469_v0  ;;  %v1906_v16 = vmul.f32 %v5952_v15, %v8012_v18  ;;  %v2486_v19 = vmul.f32 %v5953_v17, %v8019_v10  ;;  %v5965_v54 = vld [vmem:[#allocation8 + $0x10d8] sm:$0xff]  ;;  %v5967_v61 = vld [vmem:[#allocation8 + $0x368] sm:$0xff]  ;;  %v5968_v14 = vld [vmem:[#allocation8 + $0x7e0] sm:$0xff] }
 0x1f7   :  { %3024 = vst [vmem:[#allocation10 + $0x18c] sm:$0xff] %v2928_v4  ;;  %v2929_v20 = vpack.c.bf16 %v2627_v5, %v2627_v5  ;;  %v1470_v21 = vadd.f32 %v1326_v11, %v890_v7  ;;  %v891_v23 = vmul.f32 %v5954_v22, %v8004_v56  ;;  %v892_v26 = vmul.f32 %v5955_v24, %v8004_v56  ;;  %v5971_v7 = vld [vmem:[#allocation8 + $0xc68] sm:$0xff]  ;;  %v5972_v11 = vld [vmem:[#allocation8 + $0x10e0] sm:$0xff] }
 0x1f8   :  { %v2628_v27 = vadd.f32 %v2484_v1, %v2048_v12  ;;  %v2629_v28 = vadd.f32 %v2485_v3, %v2049_v13  ;;  %v1327_v30 = vmul.f32 %v5956_v29, %v8009_v63  ;;  %v1328_v32 = vmul.f32 %v5957_v31, %v8009_v63  ;;  %v5969_v1 = vld [vmem:[#allocation8 + $0x7e8] sm:$0xff]  ;;  %v5970_v3 = vld [vmem:[#allocation8 + $0xc60] sm:$0xff]  ;;  %v5977_v29 = vld [vmem:[#allocation8 + $0x10f0] sm:$0xff] }
 0x1f9   :  { %3025 = vst [vmem:[#allocation10 + $0x194] sm:$0xf] %v2929_v20  ;;  %v2050_v33 = vadd.f32 %v1906_v16, %v1470_v21  ;;  %v1907_v35 = vmul.f32 %v5958_v34, %v8012_v18  ;;  %v1908_v37 = vmul.f32 %v5959_v36, %v8012_v18  ;;  %v2487_v39 = vmul.f32 %v5960_v38, %v8019_v10  ;;  %v5973_v16 = vld [vmem:[#allocation8 + $0x10e8] sm:$0xff]  ;;  %v5978_v31 = vld [vmem:[#allocation8 + $0x378] sm:$0xff] }
 0x1fa   :  { %v2930_v40 = vpack.c.bf16 %v2629_v28, %v2628_v27  ;;  %v1471_v41 = vadd.f32 %v1327_v30, %v891_v23  ;;  %v1472_v42 = vadd.f32 %v1328_v32, %v892_v26  ;;  %v2488_v44 = vmul.f32 %v5961_v43, %v8019_v10  ;;  %v5975_v23 = vld [vmem:[#allocation8 + $0x7f0] sm:$0xff]  ;;  %v5980_v38 = vld [vmem:[#allocation8 + $0x7f8] sm:$0xff] }
 0x1fb   :  { %v2630_v45 = vadd.f32 %v2486_v19, %v2050_v33  ;;  %v893_v47 = vmul.f32 %v5962_v46, %v8004_v56  ;;  %v1329_v49 = vmul.f32 %v5963_v48, %v8009_v63  ;;  %v1909_v51 = vmul.f32 %v5964_v50, %v8012_v18  ;;  %v5974_v19 = vld [vmem:[#allocation8 + $0x370] sm:$0xff]  ;;  %v5979_v33 = vld [vmem:[#allocation8 + $0x380] sm:$0xff]  ;;  %v5982_v43 = vld [vmem:[#allocation8 + $0xc78] sm:$0xff] }
 0x1fc   :  { %3026 = vst [vmem:[#allocation10 + $0x198] sm:$0xff] %v2930_v40  ;;  %v2051_v52 = vadd.f32 %v1907_v35, %v1471_v41  ;;  %v2052_v53 = vadd.f32 %v1908_v37, %v1472_v42  ;;  %v2489_v55 = vmul.f32 %v5965_v54, %v8019_v10  ;;  %v894_v58 = vmul.f32 %v5966_v57, %v8004_v56  ;;  %v5976_v26 = vld [vmem:[#allocation8 + $0xc70] sm:$0xff]  ;;  %v5981_v41 = vld [vmem:[#allocation8 + $0x800] sm:$0xff] }
 0x1fd   :  { %v2931_v59 = vpack.c.bf16 %v2630_v45, %v2630_v45  ;;  %v1473_v60 = vadd.f32 %v1329_v49, %v893_v47  ;;  %v895_v8 = vmul.f32 %v5967_v61, %v8004_v56  ;;  %v1330_v62 = vmul.f32 %v5968_v14, %v8009_v63  ;;  %v5983_v45 = vld [vmem:[#allocation8 + $0xc80] sm:$0xff]  ;;  %v5984_v49 = vld [vmem:[#allocation8 + $0x10f8] sm:$0xff] }
 0x1fe   :  { %v2631_v0 = vadd.f32 %v2487_v39, %v2051_v52  ;;  %v2632_v25 = vadd.f32 %v2488_v44, %v2052_v53  ;;  %v1331_v2 = vmul.f32 %v5969_v1, %v8009_v63  ;;  %v1910_v4 = vmul.f32 %v5970_v3, %v8012_v18 }
 0x1ff   :  { %3027 = vst [vmem:[#allocation10 + $0x1a0] sm:$0xf] %v2931_v59  ;;  %v2053_v5 = vadd.f32 %v1909_v51, %v1473_v60  ;;  %v1474_v6 = vadd.f32 %v1330_v62, %v894_v58  ;;  %v1911_v9 = vmul.f32 %v5971_v7, %v8012_v18  ;;  %v2490_v12 = vmul.f32 %v5972_v11, %v8019_v10  ;;  %v5985_v51 = vld [vmem:[#allocation8 + $0x1100] sm:$0xff]  ;;  %v5987_v58 = vld [vmem:[#allocation8 + $0x808] sm:$0xff] }
 0x200   :  { %v2932_v13 = vpack.c.bf16 %v2632_v25, %v2631_v0  ;;  %v1475_v15 = vadd.f32 %v1331_v2, %v895_v8  ;;  %v2491_v17 = vmul.f32 %v5973_v16, %v8019_v10  ;;  %v896_v20 = vmul.f32 %v5974_v19, %v8004_v56  ;;  %v5988_v8 = vld [vmem:[#allocation8 + $0xc88] sm:$0xff]  ;;  %v5990_v2 = vld [vmem:[#allocation8 + $0x390] sm:$0xff] }
 0x201   :  { %v2633_v21 = vadd.f32 %v2489_v55, %v2053_v5  ;;  %v2054_v22 = vadd.f32 %v1910_v4, %v1474_v6  ;;  %v1332_v24 = vmul.f32 %v5975_v23, %v8009_v63  ;;  %v1912_v27 = vmul.f32 %v5976_v26, %v8012_v18  ;;  %v5986_v55 = vld [vmem:[#allocation8 + $0x388] sm:$0xff]  ;;  %v5991_v4 = vld [vmem:[#allocation8 + $0x398] sm:$0xff] }
 0x202   :  { %3028 = vst [vmem:[#allocation10 + $0x1a4] sm:$0xff] %v2932_v13  ;;  %v2055_v28 = vadd.f32 %v1911_v9, %v1475_v15  ;;  %v2492_v30 = vmul.f32 %v5977_v29, %v8019_v10  ;;  %v897_v32 = vmul.f32 %v5978_v31, %v8004_v56  ;;  %v898_v34 = vmul.f32 %v5979_v33, %v8004_v56  ;;  %v5989_v62 = vld [vmem:[#allocation8 + $0x1108] sm:$0xff]  ;;  %v5992_v9 = vld [vmem:[#allocation8 + $0x810] sm:$0xff]  ;;  %v5998_v31 = vld [vmem:[#allocation8 + $0x3a0] sm:$0xff] }
 0x203   :  { %v2933_v35 = vpack.c.bf16 %v2633_v21, %v2633_v21  ;;  %v2634_v36 = vadd.f32 %v2490_v12, %v2054_v22  ;;  %v1476_v37 = vadd.f32 %v1332_v24, %v896_v20  ;;  %v1333_v39 = vmul.f32 %v5980_v38, %v8009_v63  ;;  %v5993_v12 = vld [vmem:[#allocation8 + $0x818] sm:$0xff]  ;;  %v5996_v24 = vld [vmem:[#allocation8 + $0x1110] sm:$0xff]  ;;  %v5999_v33 = vld [vmem:[#allocation8 + $0x820] sm:$0xff] }
 0x204   :  { %v2635_v40 = vadd.f32 %v2491_v17, %v2055_v28  ;;  %v1334_v42 = vmul.f32 %v5981_v41, %v8009_v63  ;;  %v1913_v44 = vmul.f32 %v5982_v43, %v8012_v18  ;;  %v1914_v46 = vmul.f32 %v5983_v45, %v8012_v18  ;;  %v5994_v17 = vld [vmem:[#allocation8 + $0xc90] sm:$0xff]  ;;  %v5995_v20 = vld [vmem:[#allocation8 + $0xc98] sm:$0xff]  ;;  %v6002_v43 = vld [vmem:[#allocation8 + $0x3a8] sm:$0xff] }
 0x205   :  { %3029 = vst [vmem:[#allocation10 + $0x1ac] sm:$0xf] %v2933_v35  ;;  %v2056_v47 = vadd.f32 %v1912_v27, %v1476_v37  ;;  %v1477_v48 = vadd.f32 %v1333_v39, %v897_v32  ;;  %v2493_v50 = vmul.f32 %v5984_v49, %v8019_v10  ;;  %v2494_v52 = vmul.f32 %v5985_v51, %v8019_v10  ;;  %v5997_v27 = vld [vmem:[#allocation8 + $0x1118] sm:$0xff]  ;;  %v6000_v37 = vld [vmem:[#allocation8 + $0xca0] sm:$0xff]  ;;  %v6003_v45 = vld [vmem:[#allocation8 + $0x3b0] sm:$0xff] }
 0x206   :  { %v2934_v53 = vpack.c.bf16 %v2635_v40, %v2634_v36  ;;  %v1478_v54 = vadd.f32 %v1334_v42, %v898_v34  ;;  %v899_v57 = vmul.f32 %v5986_v55, %v8004_v56  ;;  %v1335_v59 = vmul.f32 %v5987_v58, %v8009_v63  ;;  %v6001_v39 = vld [vmem:[#allocation8 + $0x1120] sm:$0xff]  ;;  %v6004_v49 = vld [vmem:[#allocation8 + $0x828] sm:$0xff]  ;;  %v6005_v51 = vld [vmem:[#allocation8 + $0x830] sm:$0xff] }
 0x207   :  { %v2636_v60 = vadd.f32 %v2492_v30, %v2056_v47  ;;  %v2057_v61 = vadd.f32 %v1913_v44, %v1477_v48  ;;  %v1915_v14 = vmul.f32 %v5988_v8, %v8012_v18  ;;  %v2495_v0 = vmul.f32 %v5989_v62, %v8019_v10  ;;  %v6009_v62 = vld [vmem:[#allocation8 + $0x1130] sm:$0xff] }
 0x208   :  { %3030 = vst [vmem:[#allocation10 + $0x1b0] sm:$0xff] %v2934_v53  ;;  %v2058_v25 = vadd.f32 %v1914_v46, %v1478_v54  ;;  %v1479_v1 = vadd.f32 %v1335_v59, %v899_v57  ;;  %v900_v3 = vmul.f32 %v5990_v2, %v8004_v56  ;;  %v901_v5 = vmul.f32 %v5991_v4, %v8004_v56  ;;  %v6006_v54 = vld [vmem:[#allocation8 + $0xca8] sm:$0xff]  ;;  %v6007_v57 = vld [vmem:[#allocation8 + $0xcb0] sm:$0xff] }
 0x209   :  { %v2935_v6 = vpack.c.bf16 %v2636_v60, %v2636_v60  ;;  %v2637_v7 = vadd.f32 %v2493_v50, %v2057_v61  ;;  %v1336_v11 = vmul.f32 %v5992_v9, %v8009_v63  ;;  %v1337_v13 = vmul.f32 %v5993_v12, %v8009_v63  ;;  %v6008_v59 = vld [vmem:[#allocation8 + $0x1128] sm:$0xff] }
 0x20a   :  { %v2638_v15 = vadd.f32 %v2494_v52, %v2058_v25  ;;  %v2059_v16 = vadd.f32 %v1915_v14, %v1479_v1  ;;  %v1916_v19 = vmul.f32 %v5994_v17, %v8012_v18  ;;  %v1917_v21 = vmul.f32 %v5995_v20, %v8012_v18  ;;  %v6010_v1 = vld [vmem:[#allocation8 + $0x3b8] sm:$0xff] }
 0x20b   :  { %3031 = vst [vmem:[#allocation10 + $0x1b8] sm:$0xf] %v2935_v6  ;;  %v1480_v22 = vadd.f32 %v1336_v11, %v900_v3  ;;  %v1481_v23 = vadd.f32 %v1337_v13, %v901_v5  ;;  %v2496_v26 = vmul.f32 %v5996_v24, %v8019_v10  ;;  %v2497_v28 = vmul.f32 %v5997_v27, %v8019_v10  ;;  %v6011_v3 = vld [vmem:[#allocation8 + $0x838] sm:$0xff]  ;;  %v6014_v13 = vld [vmem:[#allocation8 + $0x3c0] sm:$0xff] }
 0x20c   :  { %v2936_v29 = vpack.c.bf16 %v2638_v15, %v2637_v7  ;;  %v2639_v30 = vadd.f32 %v2495_v0, %v2059_v16  ;;  %v902_v32 = vmul.f32 %v5998_v31, %v8004_v56  ;;  %v1338_v34 = vmul.f32 %v5999_v33, %v8009_v63  ;;  %v6012_v5 = vld [vmem:[#allocation8 + $0xcb8] sm:$0xff] }
 0x20d   :  { %v2060_v35 = vadd.f32 %v1916_v19, %v1480_v22  ;;  %v2061_v36 = vadd.f32 %v1917_v21, %v1481_v23  ;;  %v1918_v38 = vmul.f32 %v6000_v37, %v8012_v18  ;;  %v2498_v40 = vmul.f32 %v6001_v39, %v8019_v10  ;;  %v6013_v11 = vld [vmem:[#allocation8 + $0x1138] sm:$0xff]  ;;  %v6015_v19 = vld [vmem:[#allocation8 + $0x3c8] sm:$0xff]  ;;  %v6016_v21 = vld [vmem:[#allocation8 + $0x840] sm:$0xff] }
 0x20e   :  { %3032 = vst [vmem:[#allocation10 + $0x1bc] sm:$0xff] %v2936_v29  ;;  %v2937_v41 = vpack.c.bf16 %v2639_v30, %v2639_v30  ;;  %v1482_v42 = vadd.f32 %v1338_v34, %v902_v32  ;;  %v903_v44 = vmul.f32 %v6002_v43, %v8004_v56  ;;  %v904_v46 = vmul.f32 %v6003_v45, %v8004_v56  ;;  %v6019_v32 = vld [vmem:[#allocation8 + $0xcc8] sm:$0xff]  ;;  %v6020_v34 = vld [vmem:[#allocation8 + $0x1140] sm:$0xff] }
 0x20f   :  { %v2640_v47 = vadd.f32 %v2496_v26, %v2060_v35  ;;  %v2641_v48 = vadd.f32 %v2497_v28, %v2061_v36  ;;  %v1339_v50 = vmul.f32 %v6004_v49, %v8009_v63  ;;  %v1340_v52 = vmul.f32 %v6005_v51, %v8009_v63  ;;  %v6017_v26 = vld [vmem:[#allocation8 + $0x848] sm:$0xff]  ;;  %v6018_v28 = vld [vmem:[#allocation8 + $0xcc0] sm:$0xff]  ;;  %v6025_v49 = vld [vmem:[#allocation8 + $0x1150] sm:$0xff] }
 0x210   :  { %3033 = vst [vmem:[#allocation10 + $0x1c4] sm:$0xf] %v2937_v41  ;;  %v2062_v53 = vadd.f32 %v1918_v38, %v1482_v42  ;;  %v1919_v55 = vmul.f32 %v6006_v54, %v8012_v18  ;;  %v1920_v58 = vmul.f32 %v6007_v57, %v8012_v18  ;;  %v2499_v60 = vmul.f32 %v6008_v59, %v8019_v10  ;;  %v6021_v38 = vld [vmem:[#allocation8 + $0x1148] sm:$0xff]  ;;  %v6026_v51 = vld [vmem:[#allocation8 + $0x3d8] sm:$0xff] }
 0x211   :  { %v2938_v61 = vpack.c.bf16 %v2641_v48, %v2640_v47  ;;  %v1483_v8 = vadd.f32 %v1339_v50, %v903_v44  ;;  %v1484_v14 = vadd.f32 %v1340_v52, %v904_v46  ;;  %v2500_v0 = vmul.f32 %v6009_v62, %v8019_v10  ;;  %v6023_v44 = vld [vmem:[#allocation8 + $0x850] sm:$0xff]  ;;  %v6028_v59 = vld [vmem:[#allocation8 + $0x858] sm:$0xff] }
 0x212   :  { %v2642_v25 = vadd.f32 %v2498_v40, %v2062_v53  ;;  %v905_v2 = vmul.f32 %v6010_v1, %v8004_v56  ;;  %v1341_v4 = vmul.f32 %v6011_v3, %v8009_v63  ;;  %v1921_v6 = vmul.f32 %v6012_v5, %v8012_v18  ;;  %v6022_v40 = vld [vmem:[#allocation8 + $0x3d0] sm:$0xff]  ;;  %v6027_v53 = vld [vmem:[#allocation8 + $0x3e0] sm:$0xff]  ;;  %v6030_v62 = vld [vmem:[#allocation8 + $0xcd8] sm:$0xff] }
 0x213   :  { %3034 = vst [vmem:[#allocation10 + $0x1c8] sm:$0xff] %v2938_v61  ;;  %v2063_v7 = vadd.f32 %v1919_v55, %v1483_v8  ;;  %v2064_v9 = vadd.f32 %v1920_v58, %v1484_v14  ;;  %v2501_v12 = vmul.f32 %v6013_v11, %v8019_v10  ;;  %v906_v15 = vmul.f32 %v6014_v13, %v8004_v56  ;;  %v6024_v46 = vld [vmem:[#allocation8 + $0xcd0] sm:$0xff]  ;;  %v6029_v8 = vld [vmem:[#allocation8 + $0x860] sm:$0xff] }
 0x214   :  { %v2939_v16 = vpack.c.bf16 %v2642_v25, %v2642_v25  ;;  %v1485_v17 = vadd.f32 %v1341_v4, %v905_v2  ;;  %v907_v20 = vmul.f32 %v6015_v19, %v8004_v56  ;;  %v1342_v22 = vmul.f32 %v6016_v21, %v8009_v63  ;;  %v6031_v25 = vld [vmem:[#allocation8 + $0xce0] sm:$0xff]  ;;  %v6032_v4 = vld [vmem:[#allocation8 + $0x1158] sm:$0xff] }
 0x215   :  { %v2643_v23 = vadd.f32 %v2499_v60, %v2063_v7  ;;  %v2644_v24 = vadd.f32 %v2500_v0, %v2064_v9  ;;  %v1343_v27 = vmul.f32 %v6017_v26, %v8009_v63  ;;  %v1922_v29 = vmul.f32 %v6018_v28, %v8012_v18 }
 0x216   :  { %3035 = vst [vmem:[#allocation10 + $0x1d0] sm:$0xf] %v2939_v16  ;;  %v2065_v30 = vadd.f32 %v1921_v6, %v1485_v17  ;;  %v1486_v31 = vadd.f32 %v1342_v22, %v906_v15  ;;  %v1923_v33 = vmul.f32 %v6019_v32, %v8012_v18  ;;  %v2502_v35 = vmul.f32 %v6020_v34, %v8019_v10  ;;  %v6033_v6 = vld [vmem:[#allocation8 + $0x1160] sm:$0xff]  ;;  %v6035_v15 = vld [vmem:[#allocation8 + $0x868] sm:$0xff] }
 0x217   :  { %v2940_v36 = vpack.c.bf16 %v2644_v24, %v2643_v23  ;;  %v1487_v37 = vadd.f32 %v1343_v27, %v907_v20  ;;  %v2503_v39 = vmul.f32 %v6021_v38, %v8019_v10  ;;  %v908_v41 = vmul.f32 %v6022_v40, %v8004_v56  ;;  %v6036_v20 = vld [vmem:[#allocation8 + $0xce8] sm:$0xff]  ;;  %v6038_v27 = vld [vmem:[#allocation8 + $0x3f0] sm:$0xff] }
 0x218   :  { %v2645_v42 = vadd.f32 %v2501_v12, %v2065_v30  ;;  %v2066_v43 = vadd.f32 %v1922_v29, %v1486_v31  ;;  %v1344_v45 = vmul.f32 %v6023_v44, %v8009_v63  ;;  %v1924_v47 = vmul.f32 %v6024_v46, %v8012_v18  ;;  %v6034_v12 = vld [vmem:[#allocation8 + $0x3e8] sm:$0xff]  ;;  %v6039_v29 = vld [vmem:[#allocation8 + $0x3f8] sm:$0xff] }
 0x219   :  { %3036 = vst [vmem:[#allocation10 + $0x1d4] sm:$0xff] %v2940_v36  ;;  %v2067_v48 = vadd.f32 %v1923_v33, %v1487_v37  ;;  %v2504_v50 = vmul.f32 %v6025_v49, %v8019_v10  ;;  %v909_v52 = vmul.f32 %v6026_v51, %v8004_v56  ;;  %v910_v54 = vmul.f32 %v6027_v53, %v8004_v56  ;;  %v6037_v22 = vld [vmem:[#allocation8 + $0x1168] sm:$0xff]  ;;  %v6040_v33 = vld [vmem:[#allocation8 + $0x870] sm:$0xff]  ;;  %v6046_v51 = vld [vmem:[#allocation8 + $0x400] sm:$0xff] }
 0x21a   :  { %v2941_v55 = vpack.c.bf16 %v2645_v42, %v2645_v42  ;;  %v2646_v57 = vadd.f32 %v2502_v35, %v2066_v43  ;;  %v1488_v58 = vadd.f32 %v1344_v45, %v908_v41  ;;  %v1345_v60 = vmul.f32 %v6028_v59, %v8009_v63  ;;  %v6041_v35 = vld [vmem:[#allocation8 + $0x878] sm:$0xff]  ;;  %v6044_v45 = vld [vmem:[#allocation8 + $0x1170] sm:$0xff]  ;;  %v6047_v53 = vld [vmem:[#allocation8 + $0x880] sm:$0xff] }
 0x21b   :  { %v2647_v61 = vadd.f32 %v2503_v39, %v2067_v48  ;;  %v1346_v14 = vmul.f32 %v6029_v8, %v8009_v63  ;;  %v1925_v0 = vmul.f32 %v6030_v62, %v8012_v18  ;;  %v1926_v1 = vmul.f32 %v6031_v25, %v8012_v18  ;;  %v6042_v39 = vld [vmem:[#allocation8 + $0xcf0] sm:$0xff]  ;;  %v6043_v41 = vld [vmem:[#allocation8 + $0xcf8] sm:$0xff]  ;;  %v6050_v62 = vld [vmem:[#allocation8 + $0x408] sm:$0xff] }
 0x21c   :  { %3037 = vst [vmem:[#allocation10 + $0x1dc] sm:$0xf] %v2941_v55  ;;  %v2068_v2 = vadd.f32 %v1924_v47, %v1488_v58  ;;  %v1489_v3 = vadd.f32 %v1345_v60, %v909_v52  ;;  %v2505_v5 = vmul.f32 %v6032_v4, %v8019_v10  ;;  %v2506_v7 = vmul.f32 %v6033_v6, %v8019_v10  ;;  %v6045_v47 = vld [vmem:[#allocation8 + $0x1178] sm:$0xff]  ;;  %v6048_v58 = vld [vmem:[#allocation8 + $0xd00] sm:$0xff]  ;;  %v6051_v25 = vld [vmem:[#allocation8 + $0x410] sm:$0xff] }
 0x21d   :  { %v2942_v9 = vpack.c.bf16 %v2647_v61, %v2646_v57  ;;  %v1490_v11 = vadd.f32 %v1346_v14, %v910_v54  ;;  %v911_v13 = vmul.f32 %v6034_v12, %v8004_v56  ;;  %v1347_v16 = vmul.f32 %v6035_v15, %v8009_v63  ;;  %v6049_v60 = vld [vmem:[#allocation8 + $0x1180] sm:$0xff]  ;;  %v6052_v4 = vld [vmem:[#allocation8 + $0x888] sm:$0xff]  ;;  %v6053_v6 = vld [vmem:[#allocation8 + $0x890] sm:$0xff] }
 0x21e   :  { %v2648_v17 = vadd.f32 %v2504_v50, %v2068_v2  ;;  %v2069_v19 = vadd.f32 %v1925_v0, %v1489_v3  ;;  %v1927_v21 = vmul.f32 %v6036_v20, %v8012_v18  ;;  %v2507_v23 = vmul.f32 %v6037_v22, %v8019_v10  ;;  %v6057_v22 = vld [vmem:[#allocation8 + $0x1190] sm:$0xff] }
 0x21f   :  { %3038 = vst [vmem:[#allocation10 + $0x1e0] sm:$0xff] %v2942_v9  ;;  %v2070_v24 = vadd.f32 %v1926_v1, %v1490_v11  ;;  %v1491_v26 = vadd.f32 %v1347_v16, %v911_v13  ;;  %v912_v28 = vmul.f32 %v6038_v27, %v8004_v56  ;;  %v913_v30 = vmul.f32 %v6039_v29, %v8004_v56  ;;  %v6054_v11 = vld [vmem:[#allocation8 + $0xd08] sm:$0xff]  ;;  %v6055_v13 = vld [vmem:[#allocation8 + $0xd10] sm:$0xff] }
 0x220   :  { %v2943_v31 = vpack.c.bf16 %v2648_v17, %v2648_v17  ;;  %v2649_v32 = vadd.f32 %v2505_v5, %v2069_v19  ;;  %v1348_v34 = vmul.f32 %v6040_v33, %v8009_v63  ;;  %v1349_v36 = vmul.f32 %v6041_v35, %v8009_v63  ;;  %v6056_v16 = vld [vmem:[#allocation8 + $0x1188] sm:$0xff] }
 0x221   :  { %v2650_v37 = vadd.f32 %v2506_v7, %v2070_v24  ;;  %v2071_v38 = vadd.f32 %v1927_v21, %v1491_v26  ;;  %v1928_v40 = vmul.f32 %v6042_v39, %v8012_v18  ;;  %v1929_v42 = vmul.f32 %v6043_v41, %v8012_v18  ;;  %v6058_v26 = vld [vmem:[#allocation8 + $0x418] sm:$0xff] }
 0x222   :  { %3039 = vst [vmem:[#allocation10 + $0x1e8] sm:$0xf] %v2943_v31  ;;  %v1492_v43 = vadd.f32 %v1348_v34, %v912_v28  ;;  %v1493_v44 = vadd.f32 %v1349_v36, %v913_v30  ;;  %v2508_v46 = vmul.f32 %v6044_v45, %v8019_v10  ;;  %v2509_v48 = vmul.f32 %v6045_v47, %v8019_v10  ;;  %v6059_v28 = vld [vmem:[#allocation8 + $0x898] sm:$0xff]  ;;  %v6062_v36 = vld [vmem:[#allocation8 + $0x420] sm:$0xff] }
 0x223   :  { %v2944_v49 = vpack.c.bf16 %v2650_v37, %v2649_v32  ;;  %v2651_v50 = vadd.f32 %v2507_v23, %v2071_v38  ;;  %v914_v52 = vmul.f32 %v6046_v51, %v8004_v56  ;;  %v1350_v54 = vmul.f32 %v6047_v53, %v8009_v63  ;;  %v6060_v30 = vld [vmem:[#allocation8 + $0xd18] sm:$0xff] }
 0x224   :  { %v2072_v55 = vadd.f32 %v1928_v40, %v1492_v43  ;;  %v2073_v57 = vadd.f32 %v1929_v42, %v1493_v44  ;;  %v1930_v59 = vmul.f32 %v6048_v58, %v8012_v18  ;;  %v2510_v61 = vmul.f32 %v6049_v60, %v8019_v10  ;;  %v6061_v34 = vld [vmem:[#allocation8 + $0x1198] sm:$0xff]  ;;  %v6063_v40 = vld [vmem:[#allocation8 + $0x428] sm:$0xff]  ;;  %v6064_v42 = vld [vmem:[#allocation8 + $0x8a0] sm:$0xff] }
 0x225   :  { %3040 = vst [vmem:[#allocation10 + $0x1ec] sm:$0xff] %v2944_v49  ;;  %v2945_v8 = vpack.c.bf16 %v2651_v50, %v2651_v50  ;;  %v1494_v14 = vadd.f32 %v1350_v54, %v914_v52  ;;  %v915_v0 = vmul.f32 %v6050_v62, %v8004_v56  ;;  %v916_v1 = vmul.f32 %v6051_v25, %v8004_v56  ;;  %v6067_v52 = vld [vmem:[#allocation8 + $0xd28] sm:$0xff]  ;;  %v6068_v54 = vld [vmem:[#allocation8 + $0x11a0] sm:$0xff] }
 0x226   :  { %v2652_v2 = vadd.f32 %v2508_v46, %v2072_v55  ;;  %v2653_v3 = vadd.f32 %v2509_v48, %v2073_v57  ;;  %v1351_v5 = vmul.f32 %v6052_v4, %v8009_v63  ;;  %v1352_v7 = vmul.f32 %v6053_v6, %v8009_v63  ;;  %v6065_v46 = vld [vmem:[#allocation8 + $0x8a8] sm:$0xff]  ;;  %v6066_v48 = vld [vmem:[#allocation8 + $0xd20] sm:$0xff]  ;;  %v6073_v4 = vld [vmem:[#allocation8 + $0x11b0] sm:$0xff] }
 0x227   :  { %3041 = vst [vmem:[#allocation10 + $0x1f4] sm:$0xf] %v2945_v8  ;;  %v2074_v9 = vadd.f32 %v1930_v59, %v1494_v14  ;;  %v1931_v12 = vmul.f32 %v6054_v11, %v8012_v18  ;;  %v1932_v15 = vmul.f32 %v6055_v13, %v8012_v18  ;;  %v2511_v17 = vmul.f32 %v6056_v16, %v8019_v10  ;;  %v6069_v59 = vld [vmem:[#allocation8 + $0x11a8] sm:$0xff]  ;;  %v6074_v6 = vld [vmem:[#allocation8 + $0x438] sm:$0xff] }
 0x228   :  { %v2946_v19 = vpack.c.bf16 %v2653_v3, %v2652_v2  ;;  %v1495_v20 = vadd.f32 %v1351_v5, %v915_v0  ;;  %v1496_v21 = vadd.f32 %v1352_v7, %v916_v1  ;;  %v2512_v23 = vmul.f32 %v6057_v22, %v8019_v10  ;;  %v6071_v0 = vld [vmem:[#allocation8 + $0x8b0] sm:$0xff]  ;;  %v6076_v16 = vld [vmem:[#allocation8 + $0x8b8] sm:$0xff] }
 0x229   :  { %v2654_v24 = vadd.f32 %v2510_v61, %v2074_v9  ;;  %v917_v27 = vmul.f32 %v6058_v26, %v8004_v56  ;;  %v1353_v29 = vmul.f32 %v6059_v28, %v8009_v63  ;;  %v1933_v31 = vmul.f32 %v6060_v30, %v8012_v18  ;;  %v6070_v61 = vld [vmem:[#allocation8 + $0x430] sm:$0xff]  ;;  %v6075_v9 = vld [vmem:[#allocation8 + $0x440] sm:$0xff]  ;;  %v6078_v22 = vld [vmem:[#allocation8 + $0xd38] sm:$0xff] }
 0x22a   :  { %3042 = vst [vmem:[#allocation10 + $0x1f8] sm:$0xff] %v2946_v19  ;;  %v2075_v32 = vadd.f32 %v1931_v12, %v1495_v20  ;;  %v2076_v33 = vadd.f32 %v1932_v15, %v1496_v21  ;;  %v2513_v35 = vmul.f32 %v6061_v34, %v8019_v10  ;;  %v918_v37 = vmul.f32 %v6062_v36, %v8004_v56  ;;  %v6072_v1 = vld [vmem:[#allocation8 + $0xd30] sm:$0xff]  ;;  %v6077_v20 = vld [vmem:[#allocation8 + $0x8c0] sm:$0xff] }
 0x22b   :  { %v2947_v38 = vpack.c.bf16 %v2654_v24, %v2654_v24  ;;  %v1497_v39 = vadd.f32 %v1353_v29, %v917_v27  ;;  %v919_v41 = vmul.f32 %v6063_v40, %v8004_v56  ;;  %v1354_v43 = vmul.f32 %v6064_v42, %v8009_v63  ;;  %v6079_v24 = vld [vmem:[#allocation8 + $0xd40] sm:$0xff]  ;;  %v6080_v29 = vld [vmem:[#allocation8 + $0x11b8] sm:$0xff] }
 0x22c   :  { %v2655_v44 = vadd.f32 %v2511_v17, %v2075_v32  ;;  %v2656_v45 = vadd.f32 %v2512_v23, %v2076_v33  ;;  %v1355_v47 = vmul.f32 %v6065_v46, %v8009_v63  ;;  %v1934_v49 = vmul.f32 %v6066_v48, %v8012_v18 }
 0x22d   :  { %3043 = vst [vmem:[#allocation10 + $0x200] sm:$0xf] %v2947_v38  ;;  %v2077_v50 = vadd.f32 %v1933_v31, %v1497_v39  ;;  %v1498_v51 = vadd.f32 %v1354_v43, %v918_v37  ;;  %v1935_v53 = vmul.f32 %v6067_v52, %v8012_v18  ;;  %v2514_v55 = vmul.f32 %v6068_v54, %v8019_v10  ;;  %v6081_v31 = vld [vmem:[#allocation8 + $0x11c0] sm:$0xff]  ;;  %v6083_v37 = vld [vmem:[#allocation8 + $0x8c8] sm:$0xff] }
 0x22e   :  { %v2948_v57 = vpack.c.bf16 %v2656_v45, %v2655_v44  ;;  %v1499_v58 = vadd.f32 %v1355_v47, %v919_v41  ;;  %v2515_v60 = vmul.f32 %v6069_v59, %v8019_v10  ;;  %v920_v8 = vmul.f32 %v6070_v61, %v8004_v56  ;;  %v6084_v41 = vld [vmem:[#allocation8 + $0xd48] sm:$0xff]  ;;  %v6086_v47 = vld [vmem:[#allocation8 + $0x450] sm:$0xff] }
 0x22f   :  { %v2657_v14 = vadd.f32 %v2513_v35, %v2077_v50  ;;  %v2078_v62 = vadd.f32 %v1934_v49, %v1498_v51  ;;  %v1356_v25 = vmul.f32 %v6071_v0, %v8009_v63  ;;  %v1936_v2 = vmul.f32 %v6072_v1, %v8012_v18  ;;  %v6082_v35 = vld [vmem:[#allocation8 + $0x448] sm:$0xff]  ;;  %v6087_v49 = vld [vmem:[#allocation8 + $0x458] sm:$0xff] }
 0x230   :  { %3044 = vst [vmem:[#allocation10 + $0x204] sm:$0xff] %v2948_v57  ;;  %v2079_v3 = vadd.f32 %v1935_v53, %v1499_v58  ;;  %v2516_v5 = vmul.f32 %v6073_v4, %v8019_v10  ;;  %v921_v7 = vmul.f32 %v6074_v6, %v8004_v56  ;;  %v922_v11 = vmul.f32 %v6075_v9, %v8004_v56  ;;  %v6085_v43 = vld [vmem:[#allocation8 + $0x11c8] sm:$0xff]  ;;  %v6088_v53 = vld [vmem:[#allocation8 + $0x8d0] sm:$0xff]  ;;  %v6094_v6 = vld [vmem:[#allocation8 + $0x460] sm:$0xff] }
 0x231   :  { %v2949_v12 = vpack.c.bf16 %v2657_v14, %v2657_v14  ;;  %v2658_v13 = vadd.f32 %v2514_v55, %v2078_v62  ;;  %v1500_v15 = vadd.f32 %v1356_v25, %v920_v8  ;;  %v1357_v17 = vmul.f32 %v6076_v16, %v8009_v63  ;;  %v6089_v55 = vld [vmem:[#allocation8 + $0x8d8] sm:$0xff]  ;;  %v6092_v25 = vld [vmem:[#allocation8 + $0x11d0] sm:$0xff]  ;;  %v6095_v9 = vld [vmem:[#allocation8 + $0x8e0] sm:$0xff] }
 0x232   :  { %v2659_v19 = vadd.f32 %v2515_v60, %v2079_v3  ;;  %v1358_v21 = vmul.f32 %v6077_v20, %v8009_v63  ;;  %v1937_v23 = vmul.f32 %v6078_v22, %v8012_v18  ;;  %v1938_v26 = vmul.f32 %v6079_v24, %v8012_v18  ;;  %v6090_v60 = vld [vmem:[#allocation8 + $0xd50] sm:$0xff]  ;;  %v6091_v8 = vld [vmem:[#allocation8 + $0xd58] sm:$0xff]  ;;  %v6098_v22 = vld [vmem:[#allocation8 + $0x468] sm:$0xff] }
 0x233   :  { %3045 = vst [vmem:[#allocation10 + $0x20c] sm:$0xf] %v2949_v12  ;;  %v2080_v27 = vadd.f32 %v1936_v2, %v1500_v15  ;;  %v1501_v28 = vadd.f32 %v1357_v17, %v921_v7  ;;  %v2517_v30 = vmul.f32 %v6080_v29, %v8019_v10  ;;  %v2518_v32 = vmul.f32 %v6081_v31, %v8019_v10  ;;  %v6093_v2 = vld [vmem:[#allocation8 + $0x11d8] sm:$0xff]  ;;  %v6096_v15 = vld [vmem:[#allocation8 + $0xd60] sm:$0xff]  ;;  %v6099_v24 = vld [vmem:[#allocation8 + $0x470] sm:$0xff] }
 0x234   :  { %v2950_v33 = vpack.c.bf16 %v2659_v19, %v2658_v13  ;;  %v1502_v34 = vadd.f32 %v1358_v21, %v922_v11  ;;  %v923_v36 = vmul.f32 %v6082_v35, %v8004_v56  ;;  %v1359_v38 = vmul.f32 %v6083_v37, %v8009_v63  ;;  %v6097_v17 = vld [vmem:[#allocation8 + $0x11e0] sm:$0xff]  ;;  %v6100_v29 = vld [vmem:[#allocation8 + $0x8e8] sm:$0xff]  ;;  %v6101_v31 = vld [vmem:[#allocation8 + $0x8f0] sm:$0xff] }
 0x235   :  { %v2660_v39 = vadd.f32 %v2516_v5, %v2080_v27  ;;  %v2081_v40 = vadd.f32 %v1937_v23, %v1501_v28  ;;  %v1939_v42 = vmul.f32 %v6084_v41, %v8012_v18  ;;  %v2519_v44 = vmul.f32 %v6085_v43, %v8019_v10  ;;  %v6105_v43 = vld [vmem:[#allocation8 + $0x11f0] sm:$0xff] }
 0x236   :  { %3046 = vst [vmem:[#allocation10 + $0x210] sm:$0xff] %v2950_v33  ;;  %v2082_v45 = vadd.f32 %v1938_v26, %v1502_v34  ;;  %v1503_v46 = vadd.f32 %v1359_v38, %v923_v36  ;;  %v924_v48 = vmul.f32 %v6086_v47, %v8004_v56  ;;  %v925_v50 = vmul.f32 %v6087_v49, %v8004_v56  ;;  %v6102_v34 = vld [vmem:[#allocation8 + $0xd68] sm:$0xff]  ;;  %v6103_v36 = vld [vmem:[#allocation8 + $0xd70] sm:$0xff] }
 0x237   :  { %v2951_v51 = vpack.c.bf16 %v2660_v39, %v2660_v39  ;;  %v2661_v52 = vadd.f32 %v2517_v30, %v2081_v40  ;;  %v1360_v54 = vmul.f32 %v6088_v53, %v8009_v63  ;;  %v1361_v57 = vmul.f32 %v6089_v55, %v8009_v63  ;;  %v6104_v38 = vld [vmem:[#allocation8 + $0x11e8] sm:$0xff] }
 0x238   :  { %v2662_v58 = vadd.f32 %v2518_v32, %v2082_v45  ;;  %v2083_v59 = vadd.f32 %v1939_v42, %v1503_v46  ;;  %v1940_v61 = vmul.f32 %v6090_v60, %v8012_v18  ;;  %v1941_v14 = vmul.f32 %v6091_v8, %v8012_v18  ;;  %v6106_v46 = vld [vmem:[#allocation8 + $0x478] sm:$0xff]  ;;  %v6110_v60 = vld [vmem:[#allocation8] sm:$0xff] }
 0x239   :  { %3047 = vst [vmem:[#allocation10 + $0x218] sm:$0xf] %v2951_v51  ;;  %v1504_v62 = vadd.f32 %v1360_v54, %v924_v48  ;;  %v1505_v0 = vadd.f32 %v1361_v57, %v925_v50  ;;  %v2520_v1 = vmul.f32 %v6092_v25, %v8019_v10  ;;  %v2521_v3 = vmul.f32 %v6093_v2, %v8019_v10  ;;  %v6107_v48 = vld [vmem:[#allocation8 + $0x8f8] sm:$0xff] }
 0x23a   :  { %v2952_v4 = vpack.c.bf16 %v2662_v58, %v2661_v52  ;;  %v2663_v5 = vadd.f32 %v2519_v44, %v2083_v59  ;;  %v926_v7 = vmul.f32 %v6094_v6, %v8004_v56  ;;  %v1362_v11 = vmul.f32 %v6095_v9, %v8009_v63  ;;  %v6108_v50 = vld [vmem:[#allocation8 + $0xd78] sm:$0xff]  ;;  %v6115_v6 = vld [vmem:[#allocation8 + $0x908] sm:$0xff] }
 0x23b   :  { %v2084_v12 = vadd.f32 %v1940_v61, %v1504_v62  ;;  %v2085_v13 = vadd.f32 %v1941_v14, %v1505_v0  ;;  %v1942_v16 = vmul.f32 %v6096_v15, %v8012_v18  ;;  %v2522_v19 = vmul.f32 %v6097_v17, %v8019_v10  ;;  %v6109_v54 = vld [vmem:[#allocation8 + $0x11f8] sm:$0xff]  ;;  %v6111_v61 = vld [vmem:[#allocation8 + $0x8] sm:$0xff]  ;;  %v6117_v17 = vld [vmem:[#allocation8 + $0xd80] sm:$0xff] }
 0x23c   :  { %3048 = vst [vmem:[#allocation10 + $0x21c] sm:$0xff] %v2952_v4  ;;  %v2953_v20 = vpack.c.bf16 %v2663_v5, %v2663_v5  ;;  %v1506_v21 = vadd.f32 %v1362_v11, %v926_v7  ;;  %v927_v23 = vmul.f32 %v6098_v22, %v8004_v56  ;;  %v928_v26 = vmul.f32 %v6099_v24, %v8004_v56  ;;  %v6116_v11 = vld [vmem:[#allocation8 + $0x10] sm:$0xff] }
 0x23d   :  { %v2664_v27 = vadd.f32 %v2520_v1, %v2084_v12  ;;  %v2665_v28 = vadd.f32 %v2521_v3, %v2085_v13  ;;  %v1363_v30 = vmul.f32 %v6100_v29, %v8009_v63  ;;  %v1364_v32 = vmul.f32 %v6101_v31, %v8009_v63  ;;  %v6113_v1 = vld [vmem:[#allocation8 + $0x488] sm:$0xff]  ;;  %v6114_v3 = vld [vmem:[#allocation8 + $0x900] sm:$0xff]  ;;  %v6119_v22 = vld [vmem:[#allocation8 + $0x490] sm:$0xff] }
 0x23e   :  { %3049 = vst [vmem:[#allocation10 + $0x224] sm:$0xf] %v2953_v20  ;;  %v2086_v33 = vadd.f32 %v1942_v16, %v1506_v21  ;;  %v1943_v35 = vmul.f32 %v6102_v34, %v8012_v18  ;;  %v1944_v37 = vmul.f32 %v6103_v36, %v8012_v18  ;;  %v2523_v39 = vmul.f32 %v6104_v38, %v8019_v10  ;;  %v6118_v20 = vld [vmem:[#allocation8 + $0xd88] sm:$0xff]  ;;  %v6120_v24 = vld [vmem:[#allocation8 + $0x910] sm:$0xff] }
 0x23f   :  { %v2954_v40 = vpack.c.bf16 %v2665_v28, %v2664_v27  ;;  %v1507_v41 = vadd.f32 %v1363_v30, %v927_v23  ;;  %v1508_v42 = vadd.f32 %v1364_v32, %v928_v26  ;;  %v2524_v44 = vmul.f32 %v6105_v43, %v8019_v10  ;;  %v6121_v27 = vld [vmem:[#allocation8 + $0xd90] sm:$0xff]  ;;  %v6122_v32 = vld [vmem:[#allocation8 + $0x18] sm:$0xff] }
 0x240   :  { %v2666_v45 = vadd.f32 %v2522_v19, %v2086_v33  ;;  %v929_v47 = vmul.f32 %v6106_v46, %v8004_v56  ;;  %v1365_v49 = vmul.f32 %v6107_v48, %v8009_v63  ;;  %v1945_v51 = vmul.f32 %v6108_v50, %v8012_v18  ;;  %v6126_v43 = vld [vmem:[#allocation8 + $0x918] sm:$0xff] }
 0x241   :  { %3050 = vst [vmem:[#allocation10 + $0x228] sm:$0xff] %v2954_v40  ;;  %v2087_v52 = vadd.f32 %v1943_v35, %v1507_v41  ;;  %v2088_v53 = vadd.f32 %v1944_v37, %v1508_v42  ;;  %v2525_v55 = vmul.f32 %v6109_v54, %v8019_v10  ;;  %v8600_v57 = vstv %s8575_s9  ;;  %v6112_v10 = vld [vmem:[#allocation8 + $0x480] sm:$0xff]  ;;  %v6124_v37 = vld [vmem:[#allocation8 + $0x498] sm:$0xff] }
 0x242   :  { %v2955_v58 = vpack.c.bf16 %v2666_v45, %v2666_v45  ;;  %v1509_v59 = vadd.f32 %v1365_v49, %v929_v47  ;;  %v3056_v56 = vmul.f32 %v6110_v60, %v8600_v57  ;;  %v3057_v63 = vmul.f32 %v6111_v61, %v8600_v57  ;;  %v6123_v35 = vld [vmem:[#allocation8 + $0x20] sm:$0xff]  ;;  %v6128_v50 = vld [vmem:[#allocation8 + $0xd98] sm:$0xff] }
 0x243   :  { %v2667_v8 = vadd.f32 %v2523_v39, %v2087_v52  ;;  %v2668_v18 = vadd.f32 %v2524_v44, %v2088_v53  ;;  %v8605_v14 = vstv %s8579_s10  ;;  %v8608_v62 = vstv %s8583_s11  ;;  %v6125_v39 = vld [vmem:[#allocation8 + $0x4a0] sm:$0xff] }
 0x244   :  { %3051 = vst [vmem:[#allocation10 + $0x230] sm:$0xf] %v2955_v58  ;;  %v2089_v0 = vadd.f32 %v1945_v51, %v1509_v59  ;;  %v3348_v25 = vmul.f32 %v6112_v10, %v8605_v14  ;;  %v3349_v2 = vmul.f32 %v6113_v1, %v8605_v14  ;;  %v3928_v4 = vmul.f32 %v6114_v3, %v8608_v62  ;;  %v6127_v45 = vld [vmem:[#allocation8 + $0x920] sm:$0xff]  ;;  %v6131_v59 = vld [vmem:[#allocation8 + $0x4a8] sm:$0xff]  ;;  %v6134_v1 = vld [vmem:[#allocation8 + $0x30] sm:$0xff] }
 0x245   :  { %v2956_v5 = vpack.c.bf16 %v2668_v18, %v2667_v8  ;;  %v3929_v7 = vmul.f32 %v6115_v6, %v8608_v62  ;;  %v8615_v9 = vstv %s8589_s12  ;;  %v3058_v12 = vmul.f32 %v6116_v11, %v8600_v57  ;;  %v6129_v53 = vld [vmem:[#allocation8 + $0xda0] sm:$0xff]  ;;  %v6132_v8 = vld [vmem:[#allocation8 + $0x928] sm:$0xff]  ;;  %v6135_v3 = vld [vmem:[#allocation8 + $0x38] sm:$0xff] }
 0x246   :  { %v2669_v13 = vadd.f32 %v2525_v55, %v2089_v0  ;;  %v3492_v15 = vadd.f32 %v3348_v25, %v3056_v56  ;;  %v3493_v16 = vadd.f32 %v3349_v2, %v3057_v63  ;;  %v4508_v19 = vmul.f32 %v6117_v17, %v8615_v9  ;;  %v6130_v55 = vld [vmem:[#allocation8 + $0x28] sm:$0xff]  ;;  %v6136_v11 = vld [vmem:[#allocation8 + $0x4b0] sm:$0xff] }
 0x247   :  { %3052 = vst [vmem:[#allocation10 + $0x234] sm:$0xff] %v2956_v5  ;;  %v4509_v21 = vmul.f32 %v6118_v20, %v8615_v9  ;;  %v3350_v23 = vmul.f32 %v6119_v22, %v8605_v14  ;;  %v3930_v26 = vmul.f32 %v6120_v24, %v8608_v62  ;;  %v4510_v28 = vmul.f32 %v6121_v27, %v8615_v9  ;;  %v6133_v10 = vld [vmem:[#allocation8 + $0xda8] sm:$0xff]  ;;  %v6138_v17 = vld [vmem:[#allocation8 + $0x930] sm:$0xff]  ;;  %v6139_v20 = vld [vmem:[#allocation8 + $0x938] sm:$0xff] }
 0x248   :  { %v2957_v29 = vpack.c.bf16 %v2669_v13, %v2669_v13  ;;  %v4072_v30 = vadd.f32 %v3928_v4, %v3492_v15  ;;  %v4073_v31 = vadd.f32 %v3929_v7, %v3493_v16  ;;  %v3059_v33 = vmul.f32 %v6122_v32, %v8600_v57  ;;  %v6137_v15 = vld [vmem:[#allocation8 + $0x4b8] sm:$0xff]  ;;  %v6140_v24 = vld [vmem:[#allocation8 + $0xdb0] sm:$0xff] }
 0x249   :  { %v3494_v34 = vadd.f32 %v3350_v23, %v3058_v12  ;;  %v3060_v36 = vmul.f32 %v6123_v35, %v8600_v57  ;;  %v3351_v38 = vmul.f32 %v6124_v37, %v8605_v14  ;;  %v3352_v40 = vmul.f32 %v6125_v39, %v8605_v14  ;;  %v6141_v27 = vld [vmem:[#allocation8 + $0xdb8] sm:$0xff] }
 0x24a   :  { %3053 = vst [vmem:[#allocation10 + $0x23c] sm:$0xf] %v2957_v29  ;;  %v4652_v41 = vadd.f32 %v4508_v19, %v4072_v30  ;;  %v4653_v42 = vadd.f32 %v4509_v21, %v4073_v31  ;;  %v3931_v44 = vmul.f32 %v6126_v43, %v8608_v62  ;;  %v3932_v46 = vmul.f32 %v6127_v45, %v8608_v62  ;;  %v6142_v31 = vld [vmem:[#allocation8 + $0x40] sm:$0xff]  ;;  %v6147_v45 = vld [vmem:[#allocation8 + $0x50] sm:$0xff] }
 0x24b   :  { %v4074_v47 = vadd.f32 %v3930_v26, %v3494_v34  ;;  %v3495_v48 = vadd.f32 %v3351_v38, %v3059_v33  ;;  %v3496_v49 = vadd.f32 %v3352_v40, %v3060_v36  ;;  %v4511_v51 = vmul.f32 %v6128_v50, %v8615_v9  ;;  %v6143_v33 = vld [vmem:[#allocation8 + $0x4c0] sm:$0xff]  ;;  %v6146_v40 = vld [vmem:[#allocation8 + $0x48] sm:$0xff]  ;;  %v6149_v50 = vld [vmem:[#allocation8 + $0x4d0] sm:$0xff] }
 0x24c   :  { %v5086_v52 = vpack.c.bf16 %v4653_v42, %v4652_v41  ;;  %v4512_v54 = vmul.f32 %v6129_v53, %v8615_v9  ;;  %v3061_v58 = vmul.f32 %v6130_v55, %v8600_v57  ;;  %v3353_v60 = vmul.f32 %v6131_v59, %v8605_v14  ;;  %v6144_v36 = vld [vmem:[#allocation8 + $0x940] sm:$0xff] }
 0x24d   :  { %v4654_v56 = vadd.f32 %v4510_v28, %v4074_v47  ;;  %v4075_v61 = vadd.f32 %v3931_v44, %v3495_v48  ;;  %v4076_v63 = vadd.f32 %v3932_v46, %v3496_v49  ;;  %v3933_v18 = vmul.f32 %v6132_v8, %v8608_v62  ;;  %v6145_v38 = vld [vmem:[#allocation8 + $0xdc0] sm:$0xff]  ;;  %v6148_v48 = vld [vmem:[#allocation8 + $0x4c8] sm:$0xff]  ;;  %v6153_v8 = vld [vmem:[#allocation8 + $0xdd0] sm:$0xff] }
 0x24e   :  { %5183 = vst [vmem:[#allocation9 + $0x240] sm:$0xff] %v5086_v52  ;;  %v3497_v0 = vadd.f32 %v3353_v60, %v3061_v58  ;;  %v4513_v25 = vmul.f32 %v6133_v10, %v8615_v9  ;;  %v3062_v2 = vmul.f32 %v6134_v1, %v8600_v57  ;;  %v3063_v4 = vmul.f32 %v6135_v3, %v8600_v57  ;;  %v6150_v52 = vld [vmem:[#allocation8 + $0x948] sm:$0xff]  ;;  %v6151_v58 = vld [vmem:[#allocation8 + $0x950] sm:$0xff] }
 0x24f   :  { %v5087_v5 = vpack.c.bf16 %v4654_v56, %v4654_v56  ;;  %v4655_v6 = vadd.f32 %v4511_v51, %v4075_v61  ;;  %v4656_v7 = vadd.f32 %v4512_v54, %v4076_v63  ;;  %v3354_v12 = vmul.f32 %v6136_v11, %v8605_v14  ;;  %v6152_v60 = vld [vmem:[#allocation8 + $0xdc8] sm:$0xff]  ;;  %v6157_v11 = vld [vmem:[#allocation8 + $0xdd8] sm:$0xff] }
 0x250   :  { %v4077_v13 = vadd.f32 %v3933_v18, %v3497_v0  ;;  %v3355_v16 = vmul.f32 %v6137_v15, %v8605_v14  ;;  %v3934_v19 = vmul.f32 %v6138_v17, %v8608_v62  ;;  %v3935_v21 = vmul.f32 %v6139_v20, %v8608_v62  ;;  %v6154_v0 = vld [vmem:[#allocation8 + $0x58] sm:$0xff] }
 0x251   :  { %5184 = vst [vmem:[#allocation9 + $0x248] sm:$0xf] %v5087_v5  ;;  %v5088_v22 = vpack.c.bf16 %v4656_v7, %v4655_v6  ;;  %v3498_v23 = vadd.f32 %v3354_v12, %v3062_v2  ;;  %v4514_v26 = vmul.f32 %v6140_v24, %v8615_v9  ;;  %v4515_v28 = vmul.f32 %v6141_v27, %v8615_v9  ;;  %v6155_v2 = vld [vmem:[#allocation8 + $0x4d8] sm:$0xff] }
 0x252   :  { %v4657_v29 = vadd.f32 %v4513_v25, %v4077_v13  ;;  %v3499_v30 = vadd.f32 %v3355_v16, %v3063_v4  ;;  %v3064_v32 = vmul.f32 %v6142_v31, %v8600_v57  ;;  %v3356_v34 = vmul.f32 %v6143_v33, %v8605_v14  ;;  %v6156_v4 = vld [vmem:[#allocation8 + $0x958] sm:$0xff]  ;;  %v6158_v13 = vld [vmem:[#allocation8 + $0x60] sm:$0xff] }
 0x253   :  { %5185 = vst [vmem:[#allocation9 + $0x24c] sm:$0xff] %v5088_v22  ;;  %v4078_v35 = vadd.f32 %v3934_v19, %v3498_v23  ;;  %v3936_v37 = vmul.f32 %v6144_v36, %v8608_v62  ;;  %v4516_v39 = vmul.f32 %v6145_v38, %v8615_v9  ;;  %v3065_v41 = vmul.f32 %v6146_v40, %v8600_v57  ;;  %v6159_v19 = vld [vmem:[#allocation8 + $0x68] sm:$0xff]  ;;  %v6166_v40 = vld [vmem:[#allocation8 + $0x70] sm:$0xff] }
 0x254   :  { %v5089_v42 = vpack.c.bf16 %v4657_v29, %v4657_v29  ;;  %v4079_v43 = vadd.f32 %v3935_v21, %v3499_v30  ;;  %v3500_v44 = vadd.f32 %v3356_v34, %v3064_v32  ;;  %v3066_v46 = vmul.f32 %v6147_v45, %v8600_v57  ;;  %v6160_v21 = vld [vmem:[#allocation8 + $0x4e0] sm:$0xff]  ;;  %v6163_v32 = vld [vmem:[#allocation8 + $0x968] sm:$0xff] }
 0x255   :  { %v4658_v47 = vadd.f32 %v4514_v26, %v4078_v35  ;;  %v3357_v49 = vmul.f32 %v6148_v48, %v8605_v14  ;;  %v3358_v51 = vmul.f32 %v6149_v50, %v8605_v14  ;;  %v3937_v53 = vmul.f32 %v6150_v52, %v8608_v62  ;;  %v6161_v26 = vld [vmem:[#allocation8 + $0x4e8] sm:$0xff]  ;;  %v6164_v34 = vld [vmem:[#allocation8 + $0xde0] sm:$0xff] }
 0x256   :  { %5186 = vst [vmem:[#allocation9 + $0x254] sm:$0xf] %v5089_v42  ;;  %v4659_v54 = vadd.f32 %v4515_v28, %v4079_v43  ;;  %v4080_v55 = vadd.f32 %v3936_v37, %v3500_v44  ;;  %v3938_v59 = vmul.f32 %v6151_v58, %v8608_v62  ;;  %v4517_v56 = vmul.f32 %v6152_v60, %v8615_v9  ;;  %v6162_v28 = vld [vmem:[#allocation8 + $0x960] sm:$0xff]  ;;  %v6165_v38 = vld [vmem:[#allocation8 + $0xde8] sm:$0xff]  ;;  %v6167_v44 = vld [vmem:[#allocation8 + $0x4f0] sm:$0xff] }
 0x257   :  { %v3501_v61 = vadd.f32 %v3357_v49, %v3065_v41  ;;  %v3502_v63 = vadd.f32 %v3358_v51, %v3066_v46  ;;  %v4518_v18 = vmul.f32 %v6153_v8, %v8615_v9  ;;  %v3067_v10 = vmul.f32 %v6154_v0, %v8600_v57  ;;  %v6168_v46 = vld [vmem:[#allocation8 + $0x970] sm:$0xff]  ;;  %v6170_v51 = vld [vmem:[#allocation8 + $0x78] sm:$0xff] }
 0x258   :  { %v5090_v25 = vpack.c.bf16 %v4659_v54, %v4658_v47  ;;  %v4660_v1 = vadd.f32 %v4516_v39, %v4080_v55  ;;  %v3359_v3 = vmul.f32 %v6155_v2, %v8605_v14  ;;  %v3939_v5 = vmul.f32 %v6156_v4, %v8608_v62  ;;  %v6169_v49 = vld [vmem:[#allocation8 + $0xdf0] sm:$0xff]  ;;  %v6172_v60 = vld [vmem:[#allocation8 + $0x4f8] sm:$0xff] }
 0x259   :  { %v4081_v6 = vadd.f32 %v3937_v53, %v3501_v61  ;;  %v4082_v7 = vadd.f32 %v3938_v59, %v3502_v63  ;;  %v4519_v12 = vmul.f32 %v6157_v11, %v8615_v9  ;;  %v3068_v15 = vmul.f32 %v6158_v13, %v8600_v57  ;;  %v6171_v53 = vld [vmem:[#allocation8 + $0x80] sm:$0xff] }
 0x25a   :  { %5187 = vst [vmem:[#allocation9 + $0x258] sm:$0xff] %v5090_v25  ;;  %v5091_v16 = vpack.c.bf16 %v4660_v1, %v4660_v1  ;;  %v3503_v17 = vadd.f32 %v3359_v3, %v3067_v10  ;;  %v3069_v20 = vmul.f32 %v6159_v19, %v8600_v57  ;;  %v3360_v22 = vmul.f32 %v6160_v21, %v8605_v14  ;;  %v6173_v63 = vld [vmem:[#allocation8 + $0x500] sm:$0xff]  ;;  %v6176_v3 = vld [vmem:[#allocation8 + $0xdf8] sm:$0xff] }
 0x25b   :  { %v4661_v23 = vadd.f32 %v4517_v56, %v4081_v6  ;;  %v4662_v24 = vadd.f32 %v4518_v18, %v4082_v7  ;;  %v3361_v27 = vmul.f32 %v6161_v26, %v8605_v14  ;;  %v3940_v29 = vmul.f32 %v6162_v28, %v8608_v62  ;;  %v6174_v18 = vld [vmem:[#allocation8 + $0x978] sm:$0xff]  ;;  %v6175_v10 = vld [vmem:[#allocation8 + $0x980] sm:$0xff] }
 0x25c   :  { %5188 = vst [vmem:[#allocation9 + $0x260] sm:$0xf] %v5091_v16  ;;  %v4083_v30 = vadd.f32 %v3939_v5, %v3503_v17  ;;  %v3504_v31 = vadd.f32 %v3360_v22, %v3068_v15  ;;  %v3941_v33 = vmul.f32 %v6163_v32, %v8608_v62  ;;  %v4520_v35 = vmul.f32 %v6164_v34, %v8615_v9  ;;  %v6177_v5 = vld [vmem:[#allocation8 + $0xe00] sm:$0xff]  ;;  %v6179_v15 = vld [vmem:[#allocation8 + $0x508] sm:$0xff] }
 0x25d   :  { %v5092_v36 = vpack.c.bf16 %v4662_v24, %v4661_v23  ;;  %v3505_v37 = vadd.f32 %v3361_v27, %v3069_v20  ;;  %v4521_v39 = vmul.f32 %v6165_v38, %v8615_v9  ;;  %v3070_v41 = vmul.f32 %v6166_v40, %v8600_v57  ;;  %v6180_v20 = vld [vmem:[#allocation8 + $0x988] sm:$0xff]  ;;  %v6182_v27 = vld [vmem:[#allocation8 + $0x90] sm:$0xff] }
 0x25e   :  { %v4663_v42 = vadd.f32 %v4519_v12, %v4083_v30  ;;  %v4084_v43 = vadd.f32 %v3940_v29, %v3504_v31  ;;  %v3362_v45 = vmul.f32 %v6167_v44, %v8605_v14  ;;  %v3942_v47 = vmul.f32 %v6168_v46, %v8608_v62  ;;  %v6178_v12 = vld [vmem:[#allocation8 + $0x88] sm:$0xff]  ;;  %v6183_v29 = vld [vmem:[#allocation8 + $0x98] sm:$0xff] }
 0x25f   :  { %5189 = vst [vmem:[#allocation9 + $0x264] sm:$0xff] %v5092_v36  ;;  %v4085_v48 = vadd.f32 %v3941_v33, %v3505_v37  ;;  %v4522_v50 = vmul.f32 %v6169_v49, %v8615_v9  ;;  %v3071_v52 = vmul.f32 %v6170_v51, %v8600_v57  ;;  %v3072_v54 = vmul.f32 %v6171_v53, %v8600_v57  ;;  %v6181_v22 = vld [vmem:[#allocation8 + $0xe08] sm:$0xff]  ;;  %v6184_v33 = vld [vmem:[#allocation8 + $0x510] sm:$0xff]  ;;  %v6190_v51 = vld [vmem:[#allocation8 + $0xa0] sm:$0xff] }
 0x260   :  { %v5093_v55 = vpack.c.bf16 %v4663_v42, %v4663_v42  ;;  %v4664_v58 = vadd.f32 %v4520_v35, %v4084_v43  ;;  %v3506_v59 = vadd.f32 %v3362_v45, %v3070_v41  ;;  %v3363_v56 = vmul.f32 %v6172_v60, %v8605_v14  ;;  %v6185_v35 = vld [vmem:[#allocation8 + $0x518] sm:$0xff]  ;;  %v6188_v45 = vld [vmem:[#allocation8 + $0xe10] sm:$0xff]  ;;  %v6191_v53 = vld [vmem:[#allocation8 + $0x520] sm:$0xff] }
 0x261   :  { %v4665_v61 = vadd.f32 %v4521_v39, %v4085_v48  ;;  %v3364_v8 = vmul.f32 %v6173_v63, %v8605_v14  ;;  %v3943_v0 = vmul.f32 %v6174_v18, %v8608_v62  ;;  %v3944_v25 = vmul.f32 %v6175_v10, %v8608_v62  ;;  %v6186_v39 = vld [vmem:[#allocation8 + $0x990] sm:$0xff]  ;;  %v6187_v41 = vld [vmem:[#allocation8 + $0x998] sm:$0xff]  ;;  %v6194_v18 = vld [vmem:[#allocation8 + $0xa8] sm:$0xff] }
 0x262   :  { %5190 = vst [vmem:[#allocation9 + $0x26c] sm:$0xf] %v5093_v55  ;;  %v4086_v1 = vadd.f32 %v3942_v47, %v3506_v59  ;;  %v3507_v2 = vadd.f32 %v3363_v56, %v3071_v52  ;;  %v4523_v4 = vmul.f32 %v6176_v3, %v8615_v9  ;;  %v4524_v6 = vmul.f32 %v6177_v5, %v8615_v9  ;;  %v6189_v47 = vld [vmem:[#allocation8 + $0xe18] sm:$0xff]  ;;  %v6192_v59 = vld [vmem:[#allocation8 + $0x9a0] sm:$0xff]  ;;  %v6195_v10 = vld [vmem:[#allocation8 + $0xb0] sm:$0xff] }
 0x263   :  { %v5094_v7 = vpack.c.bf16 %v4665_v61, %v4664_v58  ;;  %v3508_v11 = vadd.f32 %v3364_v8, %v3072_v54  ;;  %v3073_v13 = vmul.f32 %v6178_v12, %v8600_v57  ;;  %v3365_v16 = vmul.f32 %v6179_v15, %v8605_v14  ;;  %v6193_v56 = vld [vmem:[#allocation8 + $0xe20] sm:$0xff]  ;;  %v6196_v3 = vld [vmem:[#allocation8 + $0x528] sm:$0xff]  ;;  %v6197_v5 = vld [vmem:[#allocation8 + $0x530] sm:$0xff] }
 0x264   :  { %v4666_v17 = vadd.f32 %v4522_v50, %v4086_v1  ;;  %v4087_v19 = vadd.f32 %v3943_v0, %v3507_v2  ;;  %v3945_v21 = vmul.f32 %v6180_v20, %v8608_v62  ;;  %v4525_v23 = vmul.f32 %v6181_v22, %v8615_v9  ;;  %v6201_v22 = vld [vmem:[#allocation8 + $0xe30] sm:$0xff] }
 0x265   :  { %5191 = vst [vmem:[#allocation9 + $0x270] sm:$0xff] %v5094_v7  ;;  %v4088_v24 = vadd.f32 %v3944_v25, %v3508_v11  ;;  %v3509_v26 = vadd.f32 %v3365_v16, %v3073_v13  ;;  %v3074_v28 = vmul.f32 %v6182_v27, %v8600_v57  ;;  %v3075_v30 = vmul.f32 %v6183_v29, %v8600_v57  ;;  %v6198_v11 = vld [vmem:[#allocation8 + $0x9a8] sm:$0xff]  ;;  %v6199_v13 = vld [vmem:[#allocation8 + $0x9b0] sm:$0xff] }
 0x266   :  { %v5095_v31 = vpack.c.bf16 %v4666_v17, %v4666_v17  ;;  %v4667_v32 = vadd.f32 %v4523_v4, %v4087_v19  ;;  %v3366_v34 = vmul.f32 %v6184_v33, %v8605_v14  ;;  %v3367_v36 = vmul.f32 %v6185_v35, %v8605_v14  ;;  %v6200_v16 = vld [vmem:[#allocation8 + $0xe28] sm:$0xff] }
 0x267   :  { %v4668_v37 = vadd.f32 %v4524_v6, %v4088_v24  ;;  %v4089_v38 = vadd.f32 %v3945_v21, %v3509_v26  ;;  %v3946_v40 = vmul.f32 %v6186_v39, %v8608_v62  ;;  %v3947_v42 = vmul.f32 %v6187_v41, %v8608_v62  ;;  %v6202_v26 = vld [vmem:[#allocation8 + $0xb8] sm:$0xff] }
 0x268   :  { %5192 = vst [vmem:[#allocation9 + $0x278] sm:$0xf] %v5095_v31  ;;  %v3510_v43 = vadd.f32 %v3366_v34, %v3074_v28  ;;  %v3511_v44 = vadd.f32 %v3367_v36, %v3075_v30  ;;  %v4526_v46 = vmul.f32 %v6188_v45, %v8615_v9  ;;  %v4527_v48 = vmul.f32 %v6189_v47, %v8615_v9  ;;  %v6203_v28 = vld [vmem:[#allocation8 + $0x538] sm:$0xff]  ;;  %v6206_v36 = vld [vmem:[#allocation8 + $0xc0] sm:$0xff] }
 0x269   :  { %v5096_v49 = vpack.c.bf16 %v4668_v37, %v4667_v32  ;;  %v4669_v50 = vadd.f32 %v4525_v23, %v4089_v38  ;;  %v3076_v52 = vmul.f32 %v6190_v51, %v8600_v57  ;;  %v3368_v54 = vmul.f32 %v6191_v53, %v8605_v14  ;;  %v6204_v30 = vld [vmem:[#allocation8 + $0x9b8] sm:$0xff] }
 0x26a   :  { %v4090_v55 = vadd.f32 %v3946_v40, %v3510_v43  ;;  %v4091_v58 = vadd.f32 %v3947_v42, %v3511_v44  ;;  %v3948_v60 = vmul.f32 %v6192_v59, %v8608_v62  ;;  %v4528_v61 = vmul.f32 %v6193_v56, %v8615_v9  ;;  %v6205_v34 = vld [vmem:[#allocation8 + $0xe38] sm:$0xff]  ;;  %v6207_v40 = vld [vmem:[#allocation8 + $0xc8] sm:$0xff]  ;;  %v6208_v42 = vld [vmem:[#allocation8 + $0x540] sm:$0xff] }
 0x26b   :  { %5193 = vst [vmem:[#allocation9 + $0x27c] sm:$0xff] %v5096_v49  ;;  %v5097_v63 = vpack.c.bf16 %v4669_v50, %v4669_v50  ;;  %v3512_v8 = vadd.f32 %v3368_v54, %v3076_v52  ;;  %v3077_v0 = vmul.f32 %v6194_v18, %v8600_v57  ;;  %v3078_v25 = vmul.f32 %v6195_v10, %v8600_v57  ;;  %v6211_v52 = vld [vmem:[#allocation8 + $0x9c8] sm:$0xff]  ;;  %v6212_v54 = vld [vmem:[#allocation8 + $0xe40] sm:$0xff] }
 0x26c   :  { %v4670_v1 = vadd.f32 %v4526_v46, %v4090_v55  ;;  %v4671_v2 = vadd.f32 %v4527_v48, %v4091_v58  ;;  %v3369_v4 = vmul.f32 %v6196_v3, %v8605_v14  ;;  %v3370_v6 = vmul.f32 %v6197_v5, %v8605_v14  ;;  %v6209_v46 = vld [vmem:[#allocation8 + $0x548] sm:$0xff]  ;;  %v6210_v48 = vld [vmem:[#allocation8 + $0x9c0] sm:$0xff]  ;;  %v6217_v3 = vld [vmem:[#allocation8 + $0xe50] sm:$0xff] }
 0x26d   :  { %5194 = vst [vmem:[#allocation9 + $0x284] sm:$0xf] %v5097_v63  ;;  %v4092_v7 = vadd.f32 %v3948_v60, %v3512_v8  ;;  %v3949_v12 = vmul.f32 %v6198_v11, %v8608_v62  ;;  %v3950_v15 = vmul.f32 %v6199_v13, %v8608_v62  ;;  %v4529_v17 = vmul.f32 %v6200_v16, %v8615_v9  ;;  %v6213_v60 = vld [vmem:[#allocation8 + $0xe48] sm:$0xff]  ;;  %v6218_v5 = vld [vmem:[#allocation8 + $0xd8] sm:$0xff] }
 0x26e   :  { %v5098_v19 = vpack.c.bf16 %v4671_v2, %v4670_v1  ;;  %v3513_v20 = vadd.f32 %v3369_v4, %v3077_v0  ;;  %v3514_v21 = vadd.f32 %v3370_v6, %v3078_v25  ;;  %v4530_v23 = vmul.f32 %v6201_v22, %v8615_v9  ;;  %v6215_v0 = vld [vmem:[#allocation8 + $0x550] sm:$0xff]  ;;  %v6220_v16 = vld [vmem:[#allocation8 + $0x558] sm:$0xff] }
 0x26f   :  { %v4672_v24 = vadd.f32 %v4528_v61, %v4092_v7  ;;  %v3079_v27 = vmul.f32 %v6202_v26, %v8600_v57  ;;  %v3371_v29 = vmul.f32 %v6203_v28, %v8605_v14  ;;  %v3951_v31 = vmul.f32 %v6204_v30, %v8608_v62  ;;  %v6214_v61 = vld [vmem:[#allocation8 + $0xd0] sm:$0xff]  ;;  %v6219_v7 = vld [vmem:[#allocation8 + $0xe0] sm:$0xff]  ;;  %v6222_v22 = vld [vmem:[#allocation8 + $0x9d8] sm:$0xff] }
 0x270   :  { %5195 = vst [vmem:[#allocation9 + $0x288] sm:$0xff] %v5098_v19  ;;  %v4093_v32 = vadd.f32 %v3949_v12, %v3513_v20  ;;  %v4094_v33 = vadd.f32 %v3950_v15, %v3514_v21  ;;  %v4531_v35 = vmul.f32 %v6205_v34, %v8615_v9  ;;  %v3080_v37 = vmul.f32 %v6206_v36, %v8600_v57  ;;  %v6216_v25 = vld [vmem:[#allocation8 + $0x9d0] sm:$0xff]  ;;  %v6221_v20 = vld [vmem:[#allocation8 + $0x560] sm:$0xff] }
 0x271   :  { %v5099_v38 = vpack.c.bf16 %v4672_v24, %v4672_v24  ;;  %v3515_v39 = vadd.f32 %v3371_v29, %v3079_v27  ;;  %v3081_v41 = vmul.f32 %v6207_v40, %v8600_v57  ;;  %v3372_v43 = vmul.f32 %v6208_v42, %v8605_v14  ;;  %v6223_v24 = vld [vmem:[#allocation8 + $0x9e0] sm:$0xff]  ;;  %v6224_v29 = vld [vmem:[#allocation8 + $0xe58] sm:$0xff] }
 0x272   :  { %v4673_v44 = vadd.f32 %v4529_v17, %v4093_v32  ;;  %v4674_v45 = vadd.f32 %v4530_v23, %v4094_v33  ;;  %v3373_v47 = vmul.f32 %v6209_v46, %v8605_v14  ;;  %v3952_v49 = vmul.f32 %v6210_v48, %v8608_v62 }
 0x273   :  { %5196 = vst [vmem:[#allocation9 + $0x290] sm:$0xf] %v5099_v38  ;;  %v4095_v50 = vadd.f32 %v3951_v31, %v3515_v39  ;;  %v3516_v51 = vadd.f32 %v3372_v43, %v3080_v37  ;;  %v3953_v53 = vmul.f32 %v6211_v52, %v8608_v62  ;;  %v4532_v55 = vmul.f32 %v6212_v54, %v8615_v9  ;;  %v6225_v31 = vld [vmem:[#allocation8 + $0xe60] sm:$0xff]  ;;  %v6227_v37 = vld [vmem:[#allocation8 + $0x568] sm:$0xff] }
 0x274   :  { %v5100_v58 = vpack.c.bf16 %v4674_v45, %v4673_v44  ;;  %v3517_v59 = vadd.f32 %v3373_v47, %v3081_v41  ;;  %v4533_v56 = vmul.f32 %v6213_v60, %v8615_v9  ;;  %v3082_v63 = vmul.f32 %v6214_v61, %v8600_v57  ;;  %v6228_v41 = vld [vmem:[#allocation8 + $0x9e8] sm:$0xff]  ;;  %v6230_v47 = vld [vmem:[#allocation8 + $0xf0] sm:$0xff] }
 0x275   :  { %v4675_v8 = vadd.f32 %v4531_v35, %v4095_v50  ;;  %v4096_v18 = vadd.f32 %v3952_v49, %v3516_v51  ;;  %v3374_v10 = vmul.f32 %v6215_v0, %v8605_v14  ;;  %v3954_v1 = vmul.f32 %v6216_v25, %v8608_v62  ;;  %v6226_v35 = vld [vmem:[#allocation8 + $0xe8] sm:$0xff]  ;;  %v6231_v49 = vld [vmem:[#allocation8 + $0xf8] sm:$0xff] }
 0x276   :  { %5197 = vst [vmem:[#allocation9 + $0x294] sm:$0xff] %v5100_v58  ;;  %v4097_v2 = vadd.f32 %v3953_v53, %v3517_v59  ;;  %v4534_v4 = vmul.f32 %v6217_v3, %v8615_v9  ;;  %v3083_v6 = vmul.f32 %v6218_v5, %v8600_v57  ;;  %v3084_v11 = vmul.f32 %v6219_v7, %v8600_v57  ;;  %v6229_v43 = vld [vmem:[#allocation8 + $0xe68] sm:$0xff]  ;;  %v6232_v53 = vld [vmem:[#allocation8 + $0x570] sm:$0xff]  ;;  %v6238_v5 = vld [vmem:[#allocation8 + $0x100] sm:$0xff] }
 0x277   :  { %v5101_v12 = vpack.c.bf16 %v4675_v8, %v4675_v8  ;;  %v4676_v13 = vadd.f32 %v4532_v55, %v4096_v18  ;;  %v3518_v15 = vadd.f32 %v3374_v10, %v3082_v63  ;;  %v3375_v17 = vmul.f32 %v6220_v16, %v8605_v14  ;;  %v6233_v55 = vld [vmem:[#allocation8 + $0x578] sm:$0xff]  ;;  %v6236_v10 = vld [vmem:[#allocation8 + $0xe70] sm:$0xff]  ;;  %v6239_v7 = vld [vmem:[#allocation8 + $0x580] sm:$0xff] }
 0x278   :  { %v4677_v19 = vadd.f32 %v4533_v56, %v4097_v2  ;;  %v3376_v21 = vmul.f32 %v6221_v20, %v8605_v14  ;;  %v3955_v23 = vmul.f32 %v6222_v22, %v8608_v62  ;;  %v3956_v26 = vmul.f32 %v6223_v24, %v8608_v62  ;;  %v6234_v56 = vld [vmem:[#allocation8 + $0x9f0] sm:$0xff]  ;;  %v6235_v63 = vld [vmem:[#allocation8 + $0x9f8] sm:$0xff]  ;;  %v6242_v22 = vld [vmem:[#allocation8 + $0x108] sm:$0xff] }
 0x279   :  { %5198 = vst [vmem:[#allocation9 + $0x29c] sm:$0xf] %v5101_v12  ;;  %v4098_v27 = vadd.f32 %v3954_v1, %v3518_v15  ;;  %v3519_v28 = vadd.f32 %v3375_v17, %v3083_v6  ;;  %v4535_v30 = vmul.f32 %v6224_v29, %v8615_v9  ;;  %v4536_v32 = vmul.f32 %v6225_v31, %v8615_v9  ;;  %v6237_v1 = vld [vmem:[#allocation8 + $0xe78] sm:$0xff]  ;;  %v6240_v15 = vld [vmem:[#allocation8 + $0xa00] sm:$0xff]  ;;  %v6243_v24 = vld [vmem:[#allocation8 + $0x110] sm:$0xff] }
 0x27a   :  { %v5102_v33 = vpack.c.bf16 %v4677_v19, %v4676_v13  ;;  %v3520_v34 = vadd.f32 %v3376_v21, %v3084_v11  ;;  %v3085_v36 = vmul.f32 %v6226_v35, %v8600_v57  ;;  %v3377_v38 = vmul.f32 %v6227_v37, %v8605_v14  ;;  %v6241_v17 = vld [vmem:[#allocation8 + $0xe80] sm:$0xff]  ;;  %v6244_v29 = vld [vmem:[#allocation8 + $0x588] sm:$0xff]  ;;  %v6245_v31 = vld [vmem:[#allocation8 + $0x590] sm:$0xff] }
 0x27b   :  { %v4678_v39 = vadd.f32 %v4534_v4, %v4098_v27  ;;  %v4099_v40 = vadd.f32 %v3955_v23, %v3519_v28  ;;  %v3957_v42 = vmul.f32 %v6228_v41, %v8608_v62  ;;  %v4537_v44 = vmul.f32 %v6229_v43, %v8615_v9  ;;  %v6249_v43 = vld [vmem:[#allocation8 + $0xe90] sm:$0xff] }
 0x27c   :  { %5199 = vst [vmem:[#allocation9 + $0x2a0] sm:$0xff] %v5102_v33  ;;  %v4100_v45 = vadd.f32 %v3956_v26, %v3520_v34  ;;  %v3521_v46 = vadd.f32 %v3377_v38, %v3085_v36  ;;  %v3086_v48 = vmul.f32 %v6230_v47, %v8600_v57  ;;  %v3087_v50 = vmul.f32 %v6231_v49, %v8600_v57  ;;  %v6246_v34 = vld [vmem:[#allocation8 + $0xa08] sm:$0xff]  ;;  %v6247_v36 = vld [vmem:[#allocation8 + $0xa10] sm:$0xff] }
 0x27d   :  { %v5103_v51 = vpack.c.bf16 %v4678_v39, %v4678_v39  ;;  %v4679_v52 = vadd.f32 %v4535_v30, %v4099_v40  ;;  %v3378_v54 = vmul.f32 %v6232_v53, %v8605_v14  ;;  %v3379_v58 = vmul.f32 %v6233_v55, %v8605_v14  ;;  %v6248_v38 = vld [vmem:[#allocation8 + $0xe88] sm:$0xff] }
 0x27e   :  { %v4680_v59 = vadd.f32 %v4536_v32, %v4100_v45  ;;  %v4101_v60 = vadd.f32 %v3957_v42, %v3521_v46  ;;  %v3958_v61 = vmul.f32 %v6234_v56, %v8608_v62  ;;  %v3959_v8 = vmul.f32 %v6235_v63, %v8608_v62  ;;  %v6250_v46 = vld [vmem:[#allocation8 + $0x118] sm:$0xff] }
 0x27f   :  { %5200 = vst [vmem:[#allocation9 + $0x2a8] sm:$0xf] %v5103_v51  ;;  %v3522_v18 = vadd.f32 %v3378_v54, %v3086_v48  ;;  %v3523_v0 = vadd.f32 %v3379_v58, %v3087_v50  ;;  %v4538_v25 = vmul.f32 %v6236_v10, %v8615_v9  ;;  %v4539_v2 = vmul.f32 %v6237_v1, %v8615_v9  ;;  %v6251_v48 = vld [vmem:[#allocation8 + $0x598] sm:$0xff]  ;;  %v6254_v58 = vld [vmem:[#allocation8 + $0x120] sm:$0xff] }
 0x280   :  { %v5104_v3 = vpack.c.bf16 %v4680_v59, %v4679_v52  ;;  %v4681_v4 = vadd.f32 %v4537_v44, %v4101_v60  ;;  %v3088_v6 = vmul.f32 %v6238_v5, %v8600_v57  ;;  %v3380_v11 = vmul.f32 %v6239_v7, %v8605_v14  ;;  %v6252_v50 = vld [vmem:[#allocation8 + $0xa18] sm:$0xff] }
 0x281   :  { %v4102_v12 = vadd.f32 %v3958_v61, %v3522_v18  ;;  %v4103_v13 = vadd.f32 %v3959_v8, %v3523_v0  ;;  %v3960_v16 = vmul.f32 %v6240_v15, %v8608_v62  ;;  %v4540_v19 = vmul.f32 %v6241_v17, %v8615_v9  ;;  %v6253_v54 = vld [vmem:[#allocation8 + $0xe98] sm:$0xff]  ;;  %v6255_v61 = vld [vmem:[#allocation8 + $0x128] sm:$0xff]  ;;  %v6256_v8 = vld [vmem:[#allocation8 + $0x5a0] sm:$0xff] }
 0x282   :  { %5201 = vst [vmem:[#allocation9 + $0x2ac] sm:$0xff] %v5104_v3  ;;  %v5105_v20 = vpack.c.bf16 %v4681_v4, %v4681_v4  ;;  %v3524_v21 = vadd.f32 %v3380_v11, %v3088_v6  ;;  %v3089_v23 = vmul.f32 %v6242_v22, %v8600_v57  ;;  %v3090_v26 = vmul.f32 %v6243_v24, %v8600_v57  ;;  %v6259_v6 = vld [vmem:[#allocation8 + $0xa28] sm:$0xff]  ;;  %v6260_v11 = vld [vmem:[#allocation8 + $0xea0] sm:$0xff] }
 0x283   :  { %v4682_v27 = vadd.f32 %v4538_v25, %v4102_v12  ;;  %v4683_v28 = vadd.f32 %v4539_v2, %v4103_v13  ;;  %v3381_v30 = vmul.f32 %v6244_v29, %v8605_v14  ;;  %v3382_v32 = vmul.f32 %v6245_v31, %v8605_v14  ;;  %v6257_v25 = vld [vmem:[#allocation8 + $0x5a8] sm:$0xff]  ;;  %v6258_v2 = vld [vmem:[#allocation8 + $0xa20] sm:$0xff]  ;;  %v6265_v29 = vld [vmem:[#allocation8 + $0xeb0] sm:$0xff] }
 0x284   :  { %5202 = vst [vmem:[#allocation9 + $0x2b4] sm:$0xf] %v5105_v20  ;;  %v4104_v33 = vadd.f32 %v3960_v16, %v3524_v21  ;;  %v3961_v35 = vmul.f32 %v6246_v34, %v8608_v62  ;;  %v3962_v37 = vmul.f32 %v6247_v36, %v8608_v62  ;;  %v4541_v39 = vmul.f32 %v6248_v38, %v8615_v9  ;;  %v6261_v16 = vld [vmem:[#allocation8 + $0xea8] sm:$0xff]  ;;  %v6266_v31 = vld [vmem:[#allocation8 + $0x138] sm:$0xff] }
 0x285   :  { %v5106_v40 = vpack.c.bf16 %v4683_v28, %v4682_v27  ;;  %v3525_v41 = vadd.f32 %v3381_v30, %v3089_v23  ;;  %v3526_v42 = vadd.f32 %v3382_v32, %v3090_v26  ;;  %v4542_v44 = vmul.f32 %v6249_v43, %v8615_v9  ;;  %v6263_v23 = vld [vmem:[#allocation8 + $0x5b0] sm:$0xff]  ;;  %v6268_v38 = vld [vmem:[#allocation8 + $0x5b8] sm:$0xff] }
 0x286   :  { %v4684_v45 = vadd.f32 %v4540_v19, %v4104_v33  ;;  %v3091_v47 = vmul.f32 %v6250_v46, %v8600_v57  ;;  %v3383_v49 = vmul.f32 %v6251_v48, %v8605_v14  ;;  %v3963_v51 = vmul.f32 %v6252_v50, %v8608_v62  ;;  %v6262_v19 = vld [vmem:[#allocation8 + $0x130] sm:$0xff]  ;;  %v6267_v33 = vld [vmem:[#allocation8 + $0x140] sm:$0xff]  ;;  %v6270_v43 = vld [vmem:[#allocation8 + $0xa38] sm:$0xff] }
 0x287   :  { %5203 = vst [vmem:[#allocation9 + $0x2b8] sm:$0xff] %v5106_v40  ;;  %v4105_v52 = vadd.f32 %v3961_v35, %v3525_v41  ;;  %v4106_v53 = vadd.f32 %v3962_v37, %v3526_v42  ;;  %v4543_v55 = vmul.f32 %v6253_v54, %v8615_v9  ;;  %v3092_v59 = vmul.f32 %v6254_v58, %v8600_v57  ;;  %v6264_v26 = vld [vmem:[#allocation8 + $0xa30] sm:$0xff]  ;;  %v6269_v41 = vld [vmem:[#allocation8 + $0x5c0] sm:$0xff] }
 0x288   :  { %v5107_v60 = vpack.c.bf16 %v4684_v45, %v4684_v45  ;;  %v3527_v56 = vadd.f32 %v3383_v49, %v3091_v47  ;;  %v3093_v63 = vmul.f32 %v6255_v61, %v8600_v57  ;;  %v3384_v18 = vmul.f32 %v6256_v8, %v8605_v14  ;;  %v6271_v45 = vld [vmem:[#allocation8 + $0xa40] sm:$0xff]  ;;  %v6272_v49 = vld [vmem:[#allocation8 + $0xeb8] sm:$0xff] }
 0x289   :  { %v4685_v0 = vadd.f32 %v4541_v39, %v4105_v52  ;;  %v4686_v10 = vadd.f32 %v4542_v44, %v4106_v53  ;;  %v3385_v1 = vmul.f32 %v6257_v25, %v8605_v14  ;;  %v3964_v3 = vmul.f32 %v6258_v2, %v8608_v62 }
 0x28a   :  { %5204 = vst [vmem:[#allocation9 + $0x2c0] sm:$0xf] %v5107_v60  ;;  %v4107_v4 = vadd.f32 %v3963_v51, %v3527_v56  ;;  %v3528_v5 = vadd.f32 %v3384_v18, %v3092_v59  ;;  %v3965_v7 = vmul.f32 %v6259_v6, %v8608_v62  ;;  %v4544_v12 = vmul.f32 %v6260_v11, %v8615_v9  ;;  %v6273_v51 = vld [vmem:[#allocation8 + $0xec0] sm:$0xff]  ;;  %v6275_v59 = vld [vmem:[#allocation8 + $0x5c8] sm:$0xff] }
 0x28b   :  { %v5108_v13 = vpack.c.bf16 %v4686_v10, %v4685_v0  ;;  %v3529_v15 = vadd.f32 %v3385_v1, %v3093_v63  ;;  %v4545_v17 = vmul.f32 %v6261_v16, %v8615_v9  ;;  %v3094_v20 = vmul.f32 %v6262_v19, %v8600_v57  ;;  %v6276_v63 = vld [vmem:[#allocation8 + $0xa48] sm:$0xff]  ;;  %v6278_v1 = vld [vmem:[#allocation8 + $0x150] sm:$0xff] }
 0x28c   :  { %v4687_v21 = vadd.f32 %v4543_v55, %v4107_v4  ;;  %v4108_v22 = vadd.f32 %v3964_v3, %v3528_v5  ;;  %v3386_v24 = vmul.f32 %v6263_v23, %v8605_v14  ;;  %v3966_v27 = vmul.f32 %v6264_v26, %v8608_v62  ;;  %v6274_v55 = vld [vmem:[#allocation8 + $0x148] sm:$0xff]  ;;  %v6279_v3 = vld [vmem:[#allocation8 + $0x158] sm:$0xff] }
 0x28d   :  { %5205 = vst [vmem:[#allocation9 + $0x2c4] sm:$0xff] %v5108_v13  ;;  %v4109_v28 = vadd.f32 %v3965_v7, %v3529_v15  ;;  %v4546_v30 = vmul.f32 %v6265_v29, %v8615_v9  ;;  %v3095_v32 = vmul.f32 %v6266_v31, %v8600_v57  ;;  %v3096_v34 = vmul.f32 %v6267_v33, %v8600_v57  ;;  %v6277_v18 = vld [vmem:[#allocation8 + $0xec8] sm:$0xff]  ;;  %v6280_v7 = vld [vmem:[#allocation8 + $0x5d0] sm:$0xff]  ;;  %v6286_v31 = vld [vmem:[#allocation8 + $0x160] sm:$0xff] }
 0x28e   :  { %v5109_v35 = vpack.c.bf16 %v4687_v21, %v4687_v21  ;;  %v4688_v36 = vadd.f32 %v4544_v12, %v4108_v22  ;;  %v3530_v37 = vadd.f32 %v3386_v24, %v3094_v20  ;;  %v3387_v39 = vmul.f32 %v6268_v38, %v8605_v14  ;;  %v6281_v12 = vld [vmem:[#allocation8 + $0x5d8] sm:$0xff]  ;;  %v6284_v24 = vld [vmem:[#allocation8 + $0xed0] sm:$0xff]  ;;  %v6287_v33 = vld [vmem:[#allocation8 + $0x5e0] sm:$0xff] }
 0x28f   :  { %v4689_v40 = vadd.f32 %v4545_v17, %v4109_v28  ;;  %v3388_v42 = vmul.f32 %v6269_v41, %v8605_v14  ;;  %v3967_v44 = vmul.f32 %v6270_v43, %v8608_v62  ;;  %v3968_v46 = vmul.f32 %v6271_v45, %v8608_v62  ;;  %v6282_v17 = vld [vmem:[#allocation8 + $0xa50] sm:$0xff]  ;;  %v6283_v20 = vld [vmem:[#allocation8 + $0xa58] sm:$0xff]  ;;  %v6290_v43 = vld [vmem:[#allocation8 + $0x168] sm:$0xff] }
 0x290   :  { %5206 = vst [vmem:[#allocation9 + $0x2cc] sm:$0xf] %v5109_v35  ;;  %v4110_v47 = vadd.f32 %v3966_v27, %v3530_v37  ;;  %v3531_v48 = vadd.f32 %v3387_v39, %v3095_v32  ;;  %v4547_v50 = vmul.f32 %v6272_v49, %v8615_v9  ;;  %v4548_v52 = vmul.f32 %v6273_v51, %v8615_v9  ;;  %v6285_v27 = vld [vmem:[#allocation8 + $0xed8] sm:$0xff]  ;;  %v6288_v37 = vld [vmem:[#allocation8 + $0xa60] sm:$0xff]  ;;  %v6291_v45 = vld [vmem:[#allocation8 + $0x170] sm:$0xff] }
 0x291   :  { %v5110_v53 = vpack.c.bf16 %v4689_v40, %v4688_v36  ;;  %v3532_v54 = vadd.f32 %v3388_v42, %v3096_v34  ;;  %v3097_v58 = vmul.f32 %v6274_v55, %v8600_v57  ;;  %v3389_v60 = vmul.f32 %v6275_v59, %v8605_v14  ;;  %v6289_v39 = vld [vmem:[#allocation8 + $0xee0] sm:$0xff]  ;;  %v6292_v49 = vld [vmem:[#allocation8 + $0x5e8] sm:$0xff]  ;;  %v6293_v51 = vld [vmem:[#allocation8 + $0x5f0] sm:$0xff] }
 0x292   :  { %v4690_v56 = vadd.f32 %v4546_v30, %v4110_v47  ;;  %v4111_v61 = vadd.f32 %v3967_v44, %v3531_v48  ;;  %v3969_v8 = vmul.f32 %v6276_v63, %v8608_v62  ;;  %v4549_v0 = vmul.f32 %v6277_v18, %v8615_v9  ;;  %v6297_v18 = vld [vmem:[#allocation8 + $0xef0] sm:$0xff] }
 0x293   :  { %5207 = vst [vmem:[#allocation9 + $0x2d0] sm:$0xff] %v5110_v53  ;;  %v4112_v10 = vadd.f32 %v3968_v46, %v3532_v54  ;;  %v3533_v25 = vadd.f32 %v3389_v60, %v3097_v58  ;;  %v3098_v2 = vmul.f32 %v6278_v1, %v8600_v57  ;;  %v3099_v4 = vmul.f32 %v6279_v3, %v8600_v57  ;;  %v6294_v54 = vld [vmem:[#allocation8 + $0xa68] sm:$0xff]  ;;  %v6295_v58 = vld [vmem:[#allocation8 + $0xa70] sm:$0xff] }
 0x294   :  { %v5111_v5 = vpack.c.bf16 %v4690_v56, %v4690_v56  ;;  %v4691_v6 = vadd.f32 %v4547_v50, %v4111_v61  ;;  %v3390_v11 = vmul.f32 %v6280_v7, %v8605_v14  ;;  %v3391_v13 = vmul.f32 %v6281_v12, %v8605_v14  ;;  %v6296_v60 = vld [vmem:[#allocation8 + $0xee8] sm:$0xff] }
 0x295   :  { %v4692_v15 = vadd.f32 %v4548_v52, %v4112_v10  ;;  %v4113_v16 = vadd.f32 %v3969_v8, %v3533_v25  ;;  %v3970_v19 = vmul.f32 %v6282_v17, %v8608_v62  ;;  %v3971_v21 = vmul.f32 %v6283_v20, %v8608_v62  ;;  %v6298_v25 = vld [vmem:[#allocation8 + $0x178] sm:$0xff] }
 0x296   :  { %5208 = vst [vmem:[#allocation9 + $0x2d8] sm:$0xf] %v5111_v5  ;;  %v3534_v22 = vadd.f32 %v3390_v11, %v3098_v2  ;;  %v3535_v23 = vadd.f32 %v3391_v13, %v3099_v4  ;;  %v4550_v26 = vmul.f32 %v6284_v24, %v8615_v9  ;;  %v4551_v28 = vmul.f32 %v6285_v27, %v8615_v9  ;;  %v6299_v2 = vld [vmem:[#allocation8 + $0x5f8] sm:$0xff]  ;;  %v6302_v13 = vld [vmem:[#allocation8 + $0x180] sm:$0xff] }
 0x297   :  { %v5112_v29 = vpack.c.bf16 %v4692_v15, %v4691_v6  ;;  %v4693_v30 = vadd.f32 %v4549_v0, %v4113_v16  ;;  %v3100_v32 = vmul.f32 %v6286_v31, %v8600_v57  ;;  %v3392_v34 = vmul.f32 %v6287_v33, %v8605_v14  ;;  %v6300_v4 = vld [vmem:[#allocation8 + $0xa78] sm:$0xff] }
 0x298   :  { %v4114_v35 = vadd.f32 %v3970_v19, %v3534_v22  ;;  %v4115_v36 = vadd.f32 %v3971_v21, %v3535_v23  ;;  %v3972_v38 = vmul.f32 %v6288_v37, %v8608_v62  ;;  %v4552_v40 = vmul.f32 %v6289_v39, %v8615_v9  ;;  %v6301_v11 = vld [vmem:[#allocation8 + $0xef8] sm:$0xff]  ;;  %v6303_v19 = vld [vmem:[#allocation8 + $0x188] sm:$0xff]  ;;  %v6304_v21 = vld [vmem:[#allocation8 + $0x600] sm:$0xff] }
 0x299   :  { %5209 = vst [vmem:[#allocation9 + $0x2dc] sm:$0xff] %v5112_v29  ;;  %v5113_v41 = vpack.c.bf16 %v4693_v30, %v4693_v30  ;;  %v3536_v42 = vadd.f32 %v3392_v34, %v3100_v32  ;;  %v3101_v44 = vmul.f32 %v6290_v43, %v8600_v57  ;;  %v3102_v46 = vmul.f32 %v6291_v45, %v8600_v57  ;;  %v6307_v32 = vld [vmem:[#allocation8 + $0xa88] sm:$0xff]  ;;  %v6308_v34 = vld [vmem:[#allocation8 + $0xf00] sm:$0xff] }
 0x29a   :  { %v4694_v47 = vadd.f32 %v4550_v26, %v4114_v35  ;;  %v4695_v48 = vadd.f32 %v4551_v28, %v4115_v36  ;;  %v3393_v50 = vmul.f32 %v6292_v49, %v8605_v14  ;;  %v3394_v52 = vmul.f32 %v6293_v51, %v8605_v14  ;;  %v6305_v26 = vld [vmem:[#allocation8 + $0x608] sm:$0xff]  ;;  %v6306_v28 = vld [vmem:[#allocation8 + $0xa80] sm:$0xff]  ;;  %v6313_v49 = vld [vmem:[#allocation8 + $0xf10] sm:$0xff] }
 0x29b   :  { %5210 = vst [vmem:[#allocation9 + $0x2e4] sm:$0xf] %v5113_v41  ;;  %v4116_v53 = vadd.f32 %v3972_v38, %v3536_v42  ;;  %v3973_v55 = vmul.f32 %v6294_v54, %v8608_v62  ;;  %v3974_v59 = vmul.f32 %v6295_v58, %v8608_v62  ;;  %v4553_v56 = vmul.f32 %v6296_v60, %v8615_v9  ;;  %v6309_v38 = vld [vmem:[#allocation8 + $0xf08] sm:$0xff]  ;;  %v6314_v51 = vld [vmem:[#allocation8 + $0x198] sm:$0xff] }
 0x29c   :  { %v5114_v61 = vpack.c.bf16 %v4695_v48, %v4694_v47  ;;  %v3537_v63 = vadd.f32 %v3393_v50, %v3101_v44  ;;  %v3538_v8 = vadd.f32 %v3394_v52, %v3102_v46  ;;  %v4554_v0 = vmul.f32 %v6297_v18, %v8615_v9  ;;  %v6311_v44 = vld [vmem:[#allocation8 + $0x610] sm:$0xff]  ;;  %v6316_v60 = vld [vmem:[#allocation8 + $0x618] sm:$0xff] }
 0x29d   :  { %v4696_v10 = vadd.f32 %v4552_v40, %v4116_v53  ;;  %v3103_v1 = vmul.f32 %v6298_v25, %v8600_v57  ;;  %v3395_v3 = vmul.f32 %v6299_v2, %v8605_v14  ;;  %v3975_v5 = vmul.f32 %v6300_v4, %v8608_v62  ;;  %v6310_v40 = vld [vmem:[#allocation8 + $0x190] sm:$0xff]  ;;  %v6315_v53 = vld [vmem:[#allocation8 + $0x1a0] sm:$0xff]  ;;  %v6318_v18 = vld [vmem:[#allocation8 + $0xa98] sm:$0xff] }
 0x29e   :  { %5211 = vst [vmem:[#allocation9 + $0x2e8] sm:$0xff] %v5114_v61  ;;  %v4117_v6 = vadd.f32 %v3973_v55, %v3537_v63  ;;  %v4118_v7 = vadd.f32 %v3974_v59, %v3538_v8  ;;  %v4555_v12 = vmul.f32 %v6301_v11, %v8615_v9  ;;  %v3104_v15 = vmul.f32 %v6302_v13, %v8600_v57  ;;  %v6312_v46 = vld [vmem:[#allocation8 + $0xa90] sm:$0xff]  ;;  %v6317_v63 = vld [vmem:[#allocation8 + $0x620] sm:$0xff] }
 0x29f   :  { %v5115_v16 = vpack.c.bf16 %v4696_v10, %v4696_v10  ;;  %v3539_v17 = vadd.f32 %v3395_v3, %v3103_v1  ;;  %v3105_v20 = vmul.f32 %v6303_v19, %v8600_v57  ;;  %v3396_v22 = vmul.f32 %v6304_v21, %v8605_v14  ;;  %v6319_v10 = vld [vmem:[#allocation8 + $0xaa0] sm:$0xff]  ;;  %v6320_v3 = vld [vmem:[#allocation8 + $0xf18] sm:$0xff] }
 0x2a0   :  { %v4697_v23 = vadd.f32 %v4553_v56, %v4117_v6  ;;  %v4698_v24 = vadd.f32 %v4554_v0, %v4118_v7  ;;  %v3397_v27 = vmul.f32 %v6305_v26, %v8605_v14  ;;  %v3976_v29 = vmul.f32 %v6306_v28, %v8608_v62 }
 0x2a1   :  { %5212 = vst [vmem:[#allocation9 + $0x2f0] sm:$0xf] %v5115_v16  ;;  %v4119_v30 = vadd.f32 %v3975_v5, %v3539_v17  ;;  %v3540_v31 = vadd.f32 %v3396_v22, %v3104_v15  ;;  %v3977_v33 = vmul.f32 %v6307_v32, %v8608_v62  ;;  %v4556_v35 = vmul.f32 %v6308_v34, %v8615_v9  ;;  %v6321_v5 = vld [vmem:[#allocation8 + $0xf20] sm:$0xff]  ;;  %v6323_v15 = vld [vmem:[#allocation8 + $0x628] sm:$0xff] }
 0x2a2   :  { %v5116_v36 = vpack.c.bf16 %v4698_v24, %v4697_v23  ;;  %v3541_v37 = vadd.f32 %v3397_v27, %v3105_v20  ;;  %v4557_v39 = vmul.f32 %v6309_v38, %v8615_v9  ;;  %v3106_v41 = vmul.f32 %v6310_v40, %v8600_v57  ;;  %v6324_v20 = vld [vmem:[#allocation8 + $0xaa8] sm:$0xff]  ;;  %v6326_v27 = vld [vmem:[#allocation8 + $0x1b0] sm:$0xff] }
 0x2a3   :  { %v4699_v42 = vadd.f32 %v4555_v12, %v4119_v30  ;;  %v4120_v43 = vadd.f32 %v3976_v29, %v3540_v31  ;;  %v3398_v45 = vmul.f32 %v6311_v44, %v8605_v14  ;;  %v3978_v47 = vmul.f32 %v6312_v46, %v8608_v62  ;;  %v6322_v12 = vld [vmem:[#allocation8 + $0x1a8] sm:$0xff]  ;;  %v6327_v29 = vld [vmem:[#allocation8 + $0x1b8] sm:$0xff] }
 0x2a4   :  { %5213 = vst [vmem:[#allocation9 + $0x2f4] sm:$0xff] %v5116_v36  ;;  %v4121_v48 = vadd.f32 %v3977_v33, %v3541_v37  ;;  %v4558_v50 = vmul.f32 %v6313_v49, %v8615_v9  ;;  %v3107_v52 = vmul.f32 %v6314_v51, %v8600_v57  ;;  %v3108_v54 = vmul.f32 %v6315_v53, %v8600_v57  ;;  %v6325_v22 = vld [vmem:[#allocation8 + $0xf28] sm:$0xff]  ;;  %v6328_v33 = vld [vmem:[#allocation8 + $0x630] sm:$0xff]  ;;  %v6334_v51 = vld [vmem:[#allocation8 + $0x1c0] sm:$0xff] }
 0x2a5   :  { %v5117_v55 = vpack.c.bf16 %v4699_v42, %v4699_v42  ;;  %v4700_v58 = vadd.f32 %v4556_v35, %v4120_v43  ;;  %v3542_v59 = vadd.f32 %v3398_v45, %v3106_v41  ;;  %v3399_v56 = vmul.f32 %v6316_v60, %v8605_v14  ;;  %v6329_v35 = vld [vmem:[#allocation8 + $0x638] sm:$0xff]  ;;  %v6332_v45 = vld [vmem:[#allocation8 + $0xf30] sm:$0xff]  ;;  %v6335_v53 = vld [vmem:[#allocation8 + $0x640] sm:$0xff] }
 0x2a6   :  { %v4701_v61 = vadd.f32 %v4557_v39, %v4121_v48  ;;  %v3400_v8 = vmul.f32 %v6317_v63, %v8605_v14  ;;  %v3979_v0 = vmul.f32 %v6318_v18, %v8608_v62  ;;  %v3980_v25 = vmul.f32 %v6319_v10, %v8608_v62  ;;  %v6330_v39 = vld [vmem:[#allocation8 + $0xab0] sm:$0xff]  ;;  %v6331_v41 = vld [vmem:[#allocation8 + $0xab8] sm:$0xff]  ;;  %v6338_v18 = vld [vmem:[#allocation8 + $0x1c8] sm:$0xff] }
 0x2a7   :  { %5214 = vst [vmem:[#allocation9 + $0x2fc] sm:$0xf] %v5117_v55  ;;  %v4122_v1 = vadd.f32 %v3978_v47, %v3542_v59  ;;  %v3543_v2 = vadd.f32 %v3399_v56, %v3107_v52  ;;  %v4559_v4 = vmul.f32 %v6320_v3, %v8615_v9  ;;  %v4560_v6 = vmul.f32 %v6321_v5, %v8615_v9  ;;  %v6333_v47 = vld [vmem:[#allocation8 + $0xf38] sm:$0xff]  ;;  %v6336_v59 = vld [vmem:[#allocation8 + $0xac0] sm:$0xff]  ;;  %v6339_v10 = vld [vmem:[#allocation8 + $0x1d0] sm:$0xff] }
 0x2a8   :  { %v5118_v7 = vpack.c.bf16 %v4701_v61, %v4700_v58  ;;  %v3544_v11 = vadd.f32 %v3400_v8, %v3108_v54  ;;  %v3109_v13 = vmul.f32 %v6322_v12, %v8600_v57  ;;  %v3401_v16 = vmul.f32 %v6323_v15, %v8605_v14  ;;  %v6337_v56 = vld [vmem:[#allocation8 + $0xf40] sm:$0xff]  ;;  %v6340_v3 = vld [vmem:[#allocation8 + $0x648] sm:$0xff]  ;;  %v6341_v5 = vld [vmem:[#allocation8 + $0x650] sm:$0xff] }
 0x2a9   :  { %v4702_v17 = vadd.f32 %v4558_v50, %v4122_v1  ;;  %v4123_v19 = vadd.f32 %v3979_v0, %v3543_v2  ;;  %v3981_v21 = vmul.f32 %v6324_v20, %v8608_v62  ;;  %v4561_v23 = vmul.f32 %v6325_v22, %v8615_v9  ;;  %v6345_v22 = vld [vmem:[#allocation8 + $0xf50] sm:$0xff] }
 0x2aa   :  { %5215 = vst [vmem:[#allocation9 + $0x300] sm:$0xff] %v5118_v7  ;;  %v4124_v24 = vadd.f32 %v3980_v25, %v3544_v11  ;;  %v3545_v26 = vadd.f32 %v3401_v16, %v3109_v13  ;;  %v3110_v28 = vmul.f32 %v6326_v27, %v8600_v57  ;;  %v3111_v30 = vmul.f32 %v6327_v29, %v8600_v57  ;;  %v6342_v11 = vld [vmem:[#allocation8 + $0xac8] sm:$0xff]  ;;  %v6343_v13 = vld [vmem:[#allocation8 + $0xad0] sm:$0xff] }
 0x2ab   :  { %v5119_v31 = vpack.c.bf16 %v4702_v17, %v4702_v17  ;;  %v4703_v32 = vadd.f32 %v4559_v4, %v4123_v19  ;;  %v3402_v34 = vmul.f32 %v6328_v33, %v8605_v14  ;;  %v3403_v36 = vmul.f32 %v6329_v35, %v8605_v14  ;;  %v6344_v16 = vld [vmem:[#allocation8 + $0xf48] sm:$0xff] }
 0x2ac   :  { %v4704_v37 = vadd.f32 %v4560_v6, %v4124_v24  ;;  %v4125_v38 = vadd.f32 %v3981_v21, %v3545_v26  ;;  %v3982_v40 = vmul.f32 %v6330_v39, %v8608_v62  ;;  %v3983_v42 = vmul.f32 %v6331_v41, %v8608_v62  ;;  %v6346_v26 = vld [vmem:[#allocation8 + $0x1d8] sm:$0xff] }
 0x2ad   :  { %5216 = vst [vmem:[#allocation9 + $0x308] sm:$0xf] %v5119_v31  ;;  %v3546_v43 = vadd.f32 %v3402_v34, %v3110_v28  ;;  %v3547_v44 = vadd.f32 %v3403_v36, %v3111_v30  ;;  %v4562_v46 = vmul.f32 %v6332_v45, %v8615_v9  ;;  %v4563_v48 = vmul.f32 %v6333_v47, %v8615_v9  ;;  %v6347_v28 = vld [vmem:[#allocation8 + $0x658] sm:$0xff]  ;;  %v6350_v36 = vld [vmem:[#allocation8 + $0x1e0] sm:$0xff] }
 0x2ae   :  { %v5120_v49 = vpack.c.bf16 %v4704_v37, %v4703_v32  ;;  %v4705_v50 = vadd.f32 %v4561_v23, %v4125_v38  ;;  %v3112_v52 = vmul.f32 %v6334_v51, %v8600_v57  ;;  %v3404_v54 = vmul.f32 %v6335_v53, %v8605_v14  ;;  %v6348_v30 = vld [vmem:[#allocation8 + $0xad8] sm:$0xff] }
 0x2af   :  { %v4126_v55 = vadd.f32 %v3982_v40, %v3546_v43  ;;  %v4127_v58 = vadd.f32 %v3983_v42, %v3547_v44  ;;  %v3984_v60 = vmul.f32 %v6336_v59, %v8608_v62  ;;  %v4564_v61 = vmul.f32 %v6337_v56, %v8615_v9  ;;  %v6349_v34 = vld [vmem:[#allocation8 + $0xf58] sm:$0xff]  ;;  %v6351_v40 = vld [vmem:[#allocation8 + $0x1e8] sm:$0xff]  ;;  %v6352_v42 = vld [vmem:[#allocation8 + $0x660] sm:$0xff] }
 0x2b0   :  { %5217 = vst [vmem:[#allocation9 + $0x30c] sm:$0xff] %v5120_v49  ;;  %v5121_v63 = vpack.c.bf16 %v4705_v50, %v4705_v50  ;;  %v3548_v8 = vadd.f32 %v3404_v54, %v3112_v52  ;;  %v3113_v0 = vmul.f32 %v6338_v18, %v8600_v57  ;;  %v3114_v25 = vmul.f32 %v6339_v10, %v8600_v57  ;;  %v6355_v52 = vld [vmem:[#allocation8 + $0xae8] sm:$0xff]  ;;  %v6356_v54 = vld [vmem:[#allocation8 + $0xf60] sm:$0xff] }
 0x2b1   :  { %v4706_v1 = vadd.f32 %v4562_v46, %v4126_v55  ;;  %v4707_v2 = vadd.f32 %v4563_v48, %v4127_v58  ;;  %v3405_v4 = vmul.f32 %v6340_v3, %v8605_v14  ;;  %v3406_v6 = vmul.f32 %v6341_v5, %v8605_v14  ;;  %v6353_v46 = vld [vmem:[#allocation8 + $0x668] sm:$0xff]  ;;  %v6354_v48 = vld [vmem:[#allocation8 + $0xae0] sm:$0xff]  ;;  %v6361_v3 = vld [vmem:[#allocation8 + $0xf70] sm:$0xff] }
 0x2b2   :  { %5218 = vst [vmem:[#allocation9 + $0x314] sm:$0xf] %v5121_v63  ;;  %v4128_v7 = vadd.f32 %v3984_v60, %v3548_v8  ;;  %v3985_v12 = vmul.f32 %v6342_v11, %v8608_v62  ;;  %v3986_v15 = vmul.f32 %v6343_v13, %v8608_v62  ;;  %v4565_v17 = vmul.f32 %v6344_v16, %v8615_v9  ;;  %v6357_v60 = vld [vmem:[#allocation8 + $0xf68] sm:$0xff]  ;;  %v6362_v5 = vld [vmem:[#allocation8 + $0x1f8] sm:$0xff] }
 0x2b3   :  { %v5122_v19 = vpack.c.bf16 %v4707_v2, %v4706_v1  ;;  %v3549_v20 = vadd.f32 %v3405_v4, %v3113_v0  ;;  %v3550_v21 = vadd.f32 %v3406_v6, %v3114_v25  ;;  %v4566_v23 = vmul.f32 %v6345_v22, %v8615_v9  ;;  %v6359_v0 = vld [vmem:[#allocation8 + $0x670] sm:$0xff]  ;;  %v6364_v16 = vld [vmem:[#allocation8 + $0x678] sm:$0xff] }
 0x2b4   :  { %v4708_v24 = vadd.f32 %v4564_v61, %v4128_v7  ;;  %v3115_v27 = vmul.f32 %v6346_v26, %v8600_v57  ;;  %v3407_v29 = vmul.f32 %v6347_v28, %v8605_v14  ;;  %v3987_v31 = vmul.f32 %v6348_v30, %v8608_v62  ;;  %v6358_v61 = vld [vmem:[#allocation8 + $0x1f0] sm:$0xff]  ;;  %v6363_v7 = vld [vmem:[#allocation8 + $0x200] sm:$0xff]  ;;  %v6366_v22 = vld [vmem:[#allocation8 + $0xaf8] sm:$0xff] }
 0x2b5   :  { %5219 = vst [vmem:[#allocation9 + $0x318] sm:$0xff] %v5122_v19  ;;  %v4129_v32 = vadd.f32 %v3985_v12, %v3549_v20  ;;  %v4130_v33 = vadd.f32 %v3986_v15, %v3550_v21  ;;  %v4567_v35 = vmul.f32 %v6349_v34, %v8615_v9  ;;  %v3116_v37 = vmul.f32 %v6350_v36, %v8600_v57  ;;  %v6360_v25 = vld [vmem:[#allocation8 + $0xaf0] sm:$0xff]  ;;  %v6365_v20 = vld [vmem:[#allocation8 + $0x680] sm:$0xff] }
 0x2b6   :  { %v5123_v38 = vpack.c.bf16 %v4708_v24, %v4708_v24  ;;  %v3551_v39 = vadd.f32 %v3407_v29, %v3115_v27  ;;  %v3117_v41 = vmul.f32 %v6351_v40, %v8600_v57  ;;  %v3408_v43 = vmul.f32 %v6352_v42, %v8605_v14  ;;  %v6367_v24 = vld [vmem:[#allocation8 + $0xb00] sm:$0xff]  ;;  %v6368_v29 = vld [vmem:[#allocation8 + $0xf78] sm:$0xff] }
 0x2b7   :  { %v4709_v44 = vadd.f32 %v4565_v17, %v4129_v32  ;;  %v4710_v45 = vadd.f32 %v4566_v23, %v4130_v33  ;;  %v3409_v47 = vmul.f32 %v6353_v46, %v8605_v14  ;;  %v3988_v49 = vmul.f32 %v6354_v48, %v8608_v62 }
 0x2b8   :  { %5220 = vst [vmem:[#allocation9 + $0x320] sm:$0xf] %v5123_v38  ;;  %v4131_v50 = vadd.f32 %v3987_v31, %v3551_v39  ;;  %v3552_v51 = vadd.f32 %v3408_v43, %v3116_v37  ;;  %v3989_v53 = vmul.f32 %v6355_v52, %v8608_v62  ;;  %v4568_v55 = vmul.f32 %v6356_v54, %v8615_v9  ;;  %v6369_v31 = vld [vmem:[#allocation8 + $0xf80] sm:$0xff]  ;;  %v6371_v37 = vld [vmem:[#allocation8 + $0x688] sm:$0xff] }
 0x2b9   :  { %v5124_v58 = vpack.c.bf16 %v4710_v45, %v4709_v44  ;;  %v3553_v59 = vadd.f32 %v3409_v47, %v3117_v41  ;;  %v4569_v56 = vmul.f32 %v6357_v60, %v8615_v9  ;;  %v3118_v63 = vmul.f32 %v6358_v61, %v8600_v57  ;;  %v6372_v41 = vld [vmem:[#allocation8 + $0xb08] sm:$0xff]  ;;  %v6374_v47 = vld [vmem:[#allocation8 + $0x210] sm:$0xff] }
 0x2ba   :  { %v4711_v8 = vadd.f32 %v4567_v35, %v4131_v50  ;;  %v4132_v18 = vadd.f32 %v3988_v49, %v3552_v51  ;;  %v3410_v10 = vmul.f32 %v6359_v0, %v8605_v14  ;;  %v3990_v1 = vmul.f32 %v6360_v25, %v8608_v62  ;;  %v6370_v35 = vld [vmem:[#allocation8 + $0x208] sm:$0xff]  ;;  %v6375_v49 = vld [vmem:[#allocation8 + $0x218] sm:$0xff] }
 0x2bb   :  { %5221 = vst [vmem:[#allocation9 + $0x324] sm:$0xff] %v5124_v58  ;;  %v4133_v2 = vadd.f32 %v3989_v53, %v3553_v59  ;;  %v4570_v4 = vmul.f32 %v6361_v3, %v8615_v9  ;;  %v3119_v6 = vmul.f32 %v6362_v5, %v8600_v57  ;;  %v3120_v11 = vmul.f32 %v6363_v7, %v8600_v57  ;;  %v6373_v43 = vld [vmem:[#allocation8 + $0xf88] sm:$0xff]  ;;  %v6376_v53 = vld [vmem:[#allocation8 + $0x690] sm:$0xff]  ;;  %v6382_v5 = vld [vmem:[#allocation8 + $0x220] sm:$0xff] }
 0x2bc   :  { %v5125_v12 = vpack.c.bf16 %v4711_v8, %v4711_v8  ;;  %v4712_v13 = vadd.f32 %v4568_v55, %v4132_v18  ;;  %v3554_v15 = vadd.f32 %v3410_v10, %v3118_v63  ;;  %v3411_v17 = vmul.f32 %v6364_v16, %v8605_v14  ;;  %v6377_v55 = vld [vmem:[#allocation8 + $0x698] sm:$0xff]  ;;  %v6380_v10 = vld [vmem:[#allocation8 + $0xf90] sm:$0xff]  ;;  %v6383_v7 = vld [vmem:[#allocation8 + $0x6a0] sm:$0xff] }
 0x2bd   :  { %v4713_v19 = vadd.f32 %v4569_v56, %v4133_v2  ;;  %v3412_v21 = vmul.f32 %v6365_v20, %v8605_v14  ;;  %v3991_v23 = vmul.f32 %v6366_v22, %v8608_v62  ;;  %v3992_v26 = vmul.f32 %v6367_v24, %v8608_v62  ;;  %v6378_v56 = vld [vmem:[#allocation8 + $0xb10] sm:$0xff]  ;;  %v6379_v63 = vld [vmem:[#allocation8 + $0xb18] sm:$0xff]  ;;  %v6386_v22 = vld [vmem:[#allocation8 + $0x228] sm:$0xff] }
 0x2be   :  { %5222 = vst [vmem:[#allocation9 + $0x32c] sm:$0xf] %v5125_v12  ;;  %v4134_v27 = vadd.f32 %v3990_v1, %v3554_v15  ;;  %v3555_v28 = vadd.f32 %v3411_v17, %v3119_v6  ;;  %v4571_v30 = vmul.f32 %v6368_v29, %v8615_v9  ;;  %v4572_v32 = vmul.f32 %v6369_v31, %v8615_v9  ;;  %v6381_v1 = vld [vmem:[#allocation8 + $0xf98] sm:$0xff]  ;;  %v6384_v15 = vld [vmem:[#allocation8 + $0xb20] sm:$0xff]  ;;  %v6387_v24 = vld [vmem:[#allocation8 + $0x230] sm:$0xff] }
 0x2bf   :  { %v5126_v33 = vpack.c.bf16 %v4713_v19, %v4712_v13  ;;  %v3556_v34 = vadd.f32 %v3412_v21, %v3120_v11  ;;  %v3121_v36 = vmul.f32 %v6370_v35, %v8600_v57  ;;  %v3413_v38 = vmul.f32 %v6371_v37, %v8605_v14  ;;  %v6385_v17 = vld [vmem:[#allocation8 + $0xfa0] sm:$0xff]  ;;  %v6388_v29 = vld [vmem:[#allocation8 + $0x6a8] sm:$0xff]  ;;  %v6389_v31 = vld [vmem:[#allocation8 + $0x6b0] sm:$0xff] }
 0x2c0   :  { %v4714_v39 = vadd.f32 %v4570_v4, %v4134_v27  ;;  %v4135_v40 = vadd.f32 %v3991_v23, %v3555_v28  ;;  %v3993_v42 = vmul.f32 %v6372_v41, %v8608_v62  ;;  %v4573_v44 = vmul.f32 %v6373_v43, %v8615_v9  ;;  %v6393_v43 = vld [vmem:[#allocation8 + $0xfb0] sm:$0xff] }
 0x2c1   :  { %5223 = vst [vmem:[#allocation9 + $0x330] sm:$0xff] %v5126_v33  ;;  %v4136_v45 = vadd.f32 %v3992_v26, %v3556_v34  ;;  %v3557_v46 = vadd.f32 %v3413_v38, %v3121_v36  ;;  %v3122_v48 = vmul.f32 %v6374_v47, %v8600_v57  ;;  %v3123_v50 = vmul.f32 %v6375_v49, %v8600_v57  ;;  %v6390_v34 = vld [vmem:[#allocation8 + $0xb28] sm:$0xff]  ;;  %v6391_v36 = vld [vmem:[#allocation8 + $0xb30] sm:$0xff] }
 0x2c2   :  { %v5127_v51 = vpack.c.bf16 %v4714_v39, %v4714_v39  ;;  %v4715_v52 = vadd.f32 %v4571_v30, %v4135_v40  ;;  %v3414_v54 = vmul.f32 %v6376_v53, %v8605_v14  ;;  %v3415_v58 = vmul.f32 %v6377_v55, %v8605_v14  ;;  %v6392_v38 = vld [vmem:[#allocation8 + $0xfa8] sm:$0xff] }
 0x2c3   :  { %v4716_v59 = vadd.f32 %v4572_v32, %v4136_v45  ;;  %v4137_v60 = vadd.f32 %v3993_v42, %v3557_v46  ;;  %v3994_v61 = vmul.f32 %v6378_v56, %v8608_v62  ;;  %v3995_v8 = vmul.f32 %v6379_v63, %v8608_v62  ;;  %v6394_v46 = vld [vmem:[#allocation8 + $0x238] sm:$0xff] }
 0x2c4   :  { %5224 = vst [vmem:[#allocation9 + $0x338] sm:$0xf] %v5127_v51  ;;  %v3558_v18 = vadd.f32 %v3414_v54, %v3122_v48  ;;  %v3559_v0 = vadd.f32 %v3415_v58, %v3123_v50  ;;  %v4574_v25 = vmul.f32 %v6380_v10, %v8615_v9  ;;  %v4575_v2 = vmul.f32 %v6381_v1, %v8615_v9  ;;  %v6395_v48 = vld [vmem:[#allocation8 + $0x6b8] sm:$0xff]  ;;  %v6398_v58 = vld [vmem:[#allocation8 + $0x240] sm:$0xff] }
 0x2c5   :  { %v5128_v3 = vpack.c.bf16 %v4716_v59, %v4715_v52  ;;  %v4717_v4 = vadd.f32 %v4573_v44, %v4137_v60  ;;  %v3124_v6 = vmul.f32 %v6382_v5, %v8600_v57  ;;  %v3416_v11 = vmul.f32 %v6383_v7, %v8605_v14  ;;  %v6396_v50 = vld [vmem:[#allocation8 + $0xb38] sm:$0xff] }
 0x2c6   :  { %v4138_v12 = vadd.f32 %v3994_v61, %v3558_v18  ;;  %v4139_v13 = vadd.f32 %v3995_v8, %v3559_v0  ;;  %v3996_v16 = vmul.f32 %v6384_v15, %v8608_v62  ;;  %v4576_v19 = vmul.f32 %v6385_v17, %v8615_v9  ;;  %v6397_v54 = vld [vmem:[#allocation8 + $0xfb8] sm:$0xff]  ;;  %v6399_v61 = vld [vmem:[#allocation8 + $0x248] sm:$0xff]  ;;  %v6400_v8 = vld [vmem:[#allocation8 + $0x6c0] sm:$0xff] }
 0x2c7   :  { %5225 = vst [vmem:[#allocation9 + $0x33c] sm:$0xff] %v5128_v3  ;;  %v5129_v20 = vpack.c.bf16 %v4717_v4, %v4717_v4  ;;  %v3560_v21 = vadd.f32 %v3416_v11, %v3124_v6  ;;  %v3125_v23 = vmul.f32 %v6386_v22, %v8600_v57  ;;  %v3126_v26 = vmul.f32 %v6387_v24, %v8600_v57  ;;  %v6403_v6 = vld [vmem:[#allocation8 + $0xb48] sm:$0xff]  ;;  %v6404_v11 = vld [vmem:[#allocation8 + $0xfc0] sm:$0xff] }
 0x2c8   :  { %v4718_v27 = vadd.f32 %v4574_v25, %v4138_v12  ;;  %v4719_v28 = vadd.f32 %v4575_v2, %v4139_v13  ;;  %v3417_v30 = vmul.f32 %v6388_v29, %v8605_v14  ;;  %v3418_v32 = vmul.f32 %v6389_v31, %v8605_v14  ;;  %v6401_v25 = vld [vmem:[#allocation8 + $0x6c8] sm:$0xff]  ;;  %v6402_v2 = vld [vmem:[#allocation8 + $0xb40] sm:$0xff]  ;;  %v6409_v29 = vld [vmem:[#allocation8 + $0xfd0] sm:$0xff] }
 0x2c9   :  { %5226 = vst [vmem:[#allocation9 + $0x344] sm:$0xf] %v5129_v20  ;;  %v4140_v33 = vadd.f32 %v3996_v16, %v3560_v21  ;;  %v3997_v35 = vmul.f32 %v6390_v34, %v8608_v62  ;;  %v3998_v37 = vmul.f32 %v6391_v36, %v8608_v62  ;;  %v4577_v39 = vmul.f32 %v6392_v38, %v8615_v9  ;;  %v6405_v16 = vld [vmem:[#allocation8 + $0xfc8] sm:$0xff]  ;;  %v6410_v31 = vld [vmem:[#allocation8 + $0x258] sm:$0xff] }
 0x2ca   :  { %v5130_v40 = vpack.c.bf16 %v4719_v28, %v4718_v27  ;;  %v3561_v41 = vadd.f32 %v3417_v30, %v3125_v23  ;;  %v3562_v42 = vadd.f32 %v3418_v32, %v3126_v26  ;;  %v4578_v44 = vmul.f32 %v6393_v43, %v8615_v9  ;;  %v6407_v23 = vld [vmem:[#allocation8 + $0x6d0] sm:$0xff]  ;;  %v6412_v38 = vld [vmem:[#allocation8 + $0x6d8] sm:$0xff] }
 0x2cb   :  { %v4720_v45 = vadd.f32 %v4576_v19, %v4140_v33  ;;  %v3127_v47 = vmul.f32 %v6394_v46, %v8600_v57  ;;  %v3419_v49 = vmul.f32 %v6395_v48, %v8605_v14  ;;  %v3999_v51 = vmul.f32 %v6396_v50, %v8608_v62  ;;  %v6406_v19 = vld [vmem:[#allocation8 + $0x250] sm:$0xff]  ;;  %v6411_v33 = vld [vmem:[#allocation8 + $0x260] sm:$0xff]  ;;  %v6414_v43 = vld [vmem:[#allocation8 + $0xb58] sm:$0xff] }
 0x2cc   :  { %5227 = vst [vmem:[#allocation9 + $0x348] sm:$0xff] %v5130_v40  ;;  %v4141_v52 = vadd.f32 %v3997_v35, %v3561_v41  ;;  %v4142_v53 = vadd.f32 %v3998_v37, %v3562_v42  ;;  %v4579_v55 = vmul.f32 %v6397_v54, %v8615_v9  ;;  %v3128_v59 = vmul.f32 %v6398_v58, %v8600_v57  ;;  %v6408_v26 = vld [vmem:[#allocation8 + $0xb50] sm:$0xff]  ;;  %v6413_v41 = vld [vmem:[#allocation8 + $0x6e0] sm:$0xff] }
 0x2cd   :  { %v5131_v60 = vpack.c.bf16 %v4720_v45, %v4720_v45  ;;  %v3563_v56 = vadd.f32 %v3419_v49, %v3127_v47  ;;  %v3129_v63 = vmul.f32 %v6399_v61, %v8600_v57  ;;  %v3420_v18 = vmul.f32 %v6400_v8, %v8605_v14  ;;  %v6415_v45 = vld [vmem:[#allocation8 + $0xb60] sm:$0xff]  ;;  %v6416_v49 = vld [vmem:[#allocation8 + $0xfd8] sm:$0xff] }
 0x2ce   :  { %v4721_v0 = vadd.f32 %v4577_v39, %v4141_v52  ;;  %v4722_v10 = vadd.f32 %v4578_v44, %v4142_v53  ;;  %v3421_v1 = vmul.f32 %v6401_v25, %v8605_v14  ;;  %v4000_v3 = vmul.f32 %v6402_v2, %v8608_v62 }
 0x2cf   :  { %5228 = vst [vmem:[#allocation9 + $0x350] sm:$0xf] %v5131_v60  ;;  %v4143_v4 = vadd.f32 %v3999_v51, %v3563_v56  ;;  %v3564_v5 = vadd.f32 %v3420_v18, %v3128_v59  ;;  %v4001_v7 = vmul.f32 %v6403_v6, %v8608_v62  ;;  %v4580_v12 = vmul.f32 %v6404_v11, %v8615_v9  ;;  %v6417_v51 = vld [vmem:[#allocation8 + $0xfe0] sm:$0xff]  ;;  %v6419_v59 = vld [vmem:[#allocation8 + $0x6e8] sm:$0xff] }
 0x2d0   :  { %v5132_v13 = vpack.c.bf16 %v4722_v10, %v4721_v0  ;;  %v3565_v15 = vadd.f32 %v3421_v1, %v3129_v63  ;;  %v4581_v17 = vmul.f32 %v6405_v16, %v8615_v9  ;;  %v3130_v20 = vmul.f32 %v6406_v19, %v8600_v57  ;;  %v6420_v63 = vld [vmem:[#allocation8 + $0xb68] sm:$0xff]  ;;  %v6422_v1 = vld [vmem:[#allocation8 + $0x270] sm:$0xff] }
 0x2d1   :  { %v4723_v21 = vadd.f32 %v4579_v55, %v4143_v4  ;;  %v4144_v22 = vadd.f32 %v4000_v3, %v3564_v5  ;;  %v3422_v24 = vmul.f32 %v6407_v23, %v8605_v14  ;;  %v4002_v27 = vmul.f32 %v6408_v26, %v8608_v62  ;;  %v6418_v55 = vld [vmem:[#allocation8 + $0x268] sm:$0xff]  ;;  %v6423_v3 = vld [vmem:[#allocation8 + $0x278] sm:$0xff] }
 0x2d2   :  { %5229 = vst [vmem:[#allocation9 + $0x354] sm:$0xff] %v5132_v13  ;;  %v4145_v28 = vadd.f32 %v4001_v7, %v3565_v15  ;;  %v4582_v30 = vmul.f32 %v6409_v29, %v8615_v9  ;;  %v3131_v32 = vmul.f32 %v6410_v31, %v8600_v57  ;;  %v3132_v34 = vmul.f32 %v6411_v33, %v8600_v57  ;;  %v6421_v18 = vld [vmem:[#allocation8 + $0xfe8] sm:$0xff]  ;;  %v6424_v7 = vld [vmem:[#allocation8 + $0x6f0] sm:$0xff]  ;;  %v6430_v31 = vld [vmem:[#allocation8 + $0x280] sm:$0xff] }
 0x2d3   :  { %v5133_v35 = vpack.c.bf16 %v4723_v21, %v4723_v21  ;;  %v4724_v36 = vadd.f32 %v4580_v12, %v4144_v22  ;;  %v3566_v37 = vadd.f32 %v3422_v24, %v3130_v20  ;;  %v3423_v39 = vmul.f32 %v6412_v38, %v8605_v14  ;;  %v6425_v12 = vld [vmem:[#allocation8 + $0x6f8] sm:$0xff]  ;;  %v6428_v24 = vld [vmem:[#allocation8 + $0xff0] sm:$0xff]  ;;  %v6431_v33 = vld [vmem:[#allocation8 + $0x700] sm:$0xff] }
 0x2d4   :  { %v4725_v40 = vadd.f32 %v4581_v17, %v4145_v28  ;;  %v3424_v42 = vmul.f32 %v6413_v41, %v8605_v14  ;;  %v4003_v44 = vmul.f32 %v6414_v43, %v8608_v62  ;;  %v4004_v46 = vmul.f32 %v6415_v45, %v8608_v62  ;;  %v6426_v17 = vld [vmem:[#allocation8 + $0xb70] sm:$0xff]  ;;  %v6427_v20 = vld [vmem:[#allocation8 + $0xb78] sm:$0xff]  ;;  %v6434_v43 = vld [vmem:[#allocation8 + $0x288] sm:$0xff] }
 0x2d5   :  { %5230 = vst [vmem:[#allocation9 + $0x35c] sm:$0xf] %v5133_v35  ;;  %v4146_v47 = vadd.f32 %v4002_v27, %v3566_v37  ;;  %v3567_v48 = vadd.f32 %v3423_v39, %v3131_v32  ;;  %v4583_v50 = vmul.f32 %v6416_v49, %v8615_v9  ;;  %v4584_v52 = vmul.f32 %v6417_v51, %v8615_v9  ;;  %v6429_v27 = vld [vmem:[#allocation8 + $0xff8] sm:$0xff]  ;;  %v6432_v37 = vld [vmem:[#allocation8 + $0xb80] sm:$0xff]  ;;  %v6435_v45 = vld [vmem:[#allocation8 + $0x290] sm:$0xff] }
 0x2d6   :  { %v5134_v53 = vpack.c.bf16 %v4725_v40, %v4724_v36  ;;  %v3568_v54 = vadd.f32 %v3424_v42, %v3132_v34  ;;  %v3133_v58 = vmul.f32 %v6418_v55, %v8600_v57  ;;  %v3425_v60 = vmul.f32 %v6419_v59, %v8605_v14  ;;  %v6433_v39 = vld [vmem:[#allocation8 + $0x1000] sm:$0xff]  ;;  %v6436_v49 = vld [vmem:[#allocation8 + $0x708] sm:$0xff]  ;;  %v6437_v51 = vld [vmem:[#allocation8 + $0x710] sm:$0xff] }
 0x2d7   :  { %v4726_v56 = vadd.f32 %v4582_v30, %v4146_v47  ;;  %v4147_v61 = vadd.f32 %v4003_v44, %v3567_v48  ;;  %v4005_v8 = vmul.f32 %v6420_v63, %v8608_v62  ;;  %v4585_v0 = vmul.f32 %v6421_v18, %v8615_v9  ;;  %v6441_v18 = vld [vmem:[#allocation8 + $0x1010] sm:$0xff] }
 0x2d8   :  { %5231 = vst [vmem:[#allocation9 + $0x360] sm:$0xff] %v5134_v53  ;;  %v4148_v10 = vadd.f32 %v4004_v46, %v3568_v54  ;;  %v3569_v25 = vadd.f32 %v3425_v60, %v3133_v58  ;;  %v3134_v2 = vmul.f32 %v6422_v1, %v8600_v57  ;;  %v3135_v4 = vmul.f32 %v6423_v3, %v8600_v57  ;;  %v6438_v54 = vld [vmem:[#allocation8 + $0xb88] sm:$0xff]  ;;  %v6439_v58 = vld [vmem:[#allocation8 + $0xb90] sm:$0xff] }
 0x2d9   :  { %v5135_v5 = vpack.c.bf16 %v4726_v56, %v4726_v56  ;;  %v4727_v6 = vadd.f32 %v4583_v50, %v4147_v61  ;;  %v3426_v11 = vmul.f32 %v6424_v7, %v8605_v14  ;;  %v3427_v13 = vmul.f32 %v6425_v12, %v8605_v14  ;;  %v6440_v60 = vld [vmem:[#allocation8 + $0x1008] sm:$0xff] }
 0x2da   :  { %v4728_v15 = vadd.f32 %v4584_v52, %v4148_v10  ;;  %v4149_v16 = vadd.f32 %v4005_v8, %v3569_v25  ;;  %v4006_v19 = vmul.f32 %v6426_v17, %v8608_v62  ;;  %v4007_v21 = vmul.f32 %v6427_v20, %v8608_v62  ;;  %v6442_v25 = vld [vmem:[#allocation8 + $0x298] sm:$0xff] }
 0x2db   :  { %5232 = vst [vmem:[#allocation9 + $0x368] sm:$0xf] %v5135_v5  ;;  %v3570_v22 = vadd.f32 %v3426_v11, %v3134_v2  ;;  %v3571_v23 = vadd.f32 %v3427_v13, %v3135_v4  ;;  %v4586_v26 = vmul.f32 %v6428_v24, %v8615_v9  ;;  %v4587_v28 = vmul.f32 %v6429_v27, %v8615_v9  ;;  %v6443_v2 = vld [vmem:[#allocation8 + $0x718] sm:$0xff]  ;;  %v6446_v13 = vld [vmem:[#allocation8 + $0x2a0] sm:$0xff] }
 0x2dc   :  { %v5136_v29 = vpack.c.bf16 %v4728_v15, %v4727_v6  ;;  %v4729_v30 = vadd.f32 %v4585_v0, %v4149_v16  ;;  %v3136_v32 = vmul.f32 %v6430_v31, %v8600_v57  ;;  %v3428_v34 = vmul.f32 %v6431_v33, %v8605_v14  ;;  %v6444_v4 = vld [vmem:[#allocation8 + $0xb98] sm:$0xff] }
 0x2dd   :  { %v4150_v35 = vadd.f32 %v4006_v19, %v3570_v22  ;;  %v4151_v36 = vadd.f32 %v4007_v21, %v3571_v23  ;;  %v4008_v38 = vmul.f32 %v6432_v37, %v8608_v62  ;;  %v4588_v40 = vmul.f32 %v6433_v39, %v8615_v9  ;;  %v6445_v11 = vld [vmem:[#allocation8 + $0x1018] sm:$0xff]  ;;  %v6447_v19 = vld [vmem:[#allocation8 + $0x2a8] sm:$0xff]  ;;  %v6448_v21 = vld [vmem:[#allocation8 + $0x720] sm:$0xff] }
 0x2de   :  { %5233 = vst [vmem:[#allocation9 + $0x36c] sm:$0xff] %v5136_v29  ;;  %v5137_v41 = vpack.c.bf16 %v4729_v30, %v4729_v30  ;;  %v3572_v42 = vadd.f32 %v3428_v34, %v3136_v32  ;;  %v3137_v44 = vmul.f32 %v6434_v43, %v8600_v57  ;;  %v3138_v46 = vmul.f32 %v6435_v45, %v8600_v57  ;;  %v6451_v32 = vld [vmem:[#allocation8 + $0xba8] sm:$0xff]  ;;  %v6452_v34 = vld [vmem:[#allocation8 + $0x1020] sm:$0xff] }
 0x2df   :  { %v4730_v47 = vadd.f32 %v4586_v26, %v4150_v35  ;;  %v4731_v48 = vadd.f32 %v4587_v28, %v4151_v36  ;;  %v3429_v50 = vmul.f32 %v6436_v49, %v8605_v14  ;;  %v3430_v52 = vmul.f32 %v6437_v51, %v8605_v14  ;;  %v6449_v26 = vld [vmem:[#allocation8 + $0x728] sm:$0xff]  ;;  %v6450_v28 = vld [vmem:[#allocation8 + $0xba0] sm:$0xff]  ;;  %v6457_v49 = vld [vmem:[#allocation8 + $0x1030] sm:$0xff] }
 0x2e0   :  { %5234 = vst [vmem:[#allocation9 + $0x374] sm:$0xf] %v5137_v41  ;;  %v4152_v53 = vadd.f32 %v4008_v38, %v3572_v42  ;;  %v4009_v55 = vmul.f32 %v6438_v54, %v8608_v62  ;;  %v4010_v59 = vmul.f32 %v6439_v58, %v8608_v62  ;;  %v4589_v56 = vmul.f32 %v6440_v60, %v8615_v9  ;;  %v6453_v38 = vld [vmem:[#allocation8 + $0x1028] sm:$0xff]  ;;  %v6458_v51 = vld [vmem:[#allocation8 + $0x2b8] sm:$0xff] }
 0x2e1   :  { %v5138_v61 = vpack.c.bf16 %v4731_v48, %v4730_v47  ;;  %v3573_v63 = vadd.f32 %v3429_v50, %v3137_v44  ;;  %v3574_v8 = vadd.f32 %v3430_v52, %v3138_v46  ;;  %v4590_v0 = vmul.f32 %v6441_v18, %v8615_v9  ;;  %v6455_v44 = vld [vmem:[#allocation8 + $0x730] sm:$0xff]  ;;  %v6460_v60 = vld [vmem:[#allocation8 + $0x738] sm:$0xff] }
 0x2e2   :  { %v4732_v10 = vadd.f32 %v4588_v40, %v4152_v53  ;;  %v3139_v1 = vmul.f32 %v6442_v25, %v8600_v57  ;;  %v3431_v3 = vmul.f32 %v6443_v2, %v8605_v14  ;;  %v4011_v5 = vmul.f32 %v6444_v4, %v8608_v62  ;;  %v6454_v40 = vld [vmem:[#allocation8 + $0x2b0] sm:$0xff]  ;;  %v6459_v53 = vld [vmem:[#allocation8 + $0x2c0] sm:$0xff]  ;;  %v6462_v18 = vld [vmem:[#allocation8 + $0xbb8] sm:$0xff] }
 0x2e3   :  { %5235 = vst [vmem:[#allocation9 + $0x378] sm:$0xff] %v5138_v61  ;;  %v4153_v6 = vadd.f32 %v4009_v55, %v3573_v63  ;;  %v4154_v7 = vadd.f32 %v4010_v59, %v3574_v8  ;;  %v4591_v12 = vmul.f32 %v6445_v11, %v8615_v9  ;;  %v3140_v15 = vmul.f32 %v6446_v13, %v8600_v57  ;;  %v6456_v46 = vld [vmem:[#allocation8 + $0xbb0] sm:$0xff]  ;;  %v6461_v63 = vld [vmem:[#allocation8 + $0x740] sm:$0xff] }
 0x2e4   :  { %v5139_v16 = vpack.c.bf16 %v4732_v10, %v4732_v10  ;;  %v3575_v17 = vadd.f32 %v3431_v3, %v3139_v1  ;;  %v3141_v20 = vmul.f32 %v6447_v19, %v8600_v57  ;;  %v3432_v22 = vmul.f32 %v6448_v21, %v8605_v14  ;;  %v6463_v10 = vld [vmem:[#allocation8 + $0xbc0] sm:$0xff]  ;;  %v6464_v3 = vld [vmem:[#allocation8 + $0x1038] sm:$0xff] }
 0x2e5   :  { %v4733_v23 = vadd.f32 %v4589_v56, %v4153_v6  ;;  %v4734_v24 = vadd.f32 %v4590_v0, %v4154_v7  ;;  %v3433_v27 = vmul.f32 %v6449_v26, %v8605_v14  ;;  %v4012_v29 = vmul.f32 %v6450_v28, %v8608_v62 }
 0x2e6   :  { %5236 = vst [vmem:[#allocation9 + $0x380] sm:$0xf] %v5139_v16  ;;  %v4155_v30 = vadd.f32 %v4011_v5, %v3575_v17  ;;  %v3576_v31 = vadd.f32 %v3432_v22, %v3140_v15  ;;  %v4013_v33 = vmul.f32 %v6451_v32, %v8608_v62  ;;  %v4592_v35 = vmul.f32 %v6452_v34, %v8615_v9  ;;  %v6465_v5 = vld [vmem:[#allocation8 + $0x1040] sm:$0xff]  ;;  %v6467_v15 = vld [vmem:[#allocation8 + $0x748] sm:$0xff] }
 0x2e7   :  { %v5140_v36 = vpack.c.bf16 %v4734_v24, %v4733_v23  ;;  %v3577_v37 = vadd.f32 %v3433_v27, %v3141_v20  ;;  %v4593_v39 = vmul.f32 %v6453_v38, %v8615_v9  ;;  %v3142_v41 = vmul.f32 %v6454_v40, %v8600_v57  ;;  %v6468_v20 = vld [vmem:[#allocation8 + $0xbc8] sm:$0xff]  ;;  %v6470_v27 = vld [vmem:[#allocation8 + $0x2d0] sm:$0xff] }
 0x2e8   :  { %v4735_v42 = vadd.f32 %v4591_v12, %v4155_v30  ;;  %v4156_v43 = vadd.f32 %v4012_v29, %v3576_v31  ;;  %v3434_v45 = vmul.f32 %v6455_v44, %v8605_v14  ;;  %v4014_v47 = vmul.f32 %v6456_v46, %v8608_v62  ;;  %v6466_v12 = vld [vmem:[#allocation8 + $0x2c8] sm:$0xff]  ;;  %v6471_v29 = vld [vmem:[#allocation8 + $0x2d8] sm:$0xff] }
 0x2e9   :  { %5237 = vst [vmem:[#allocation9 + $0x384] sm:$0xff] %v5140_v36  ;;  %v4157_v48 = vadd.f32 %v4013_v33, %v3577_v37  ;;  %v4594_v50 = vmul.f32 %v6457_v49, %v8615_v9  ;;  %v3143_v52 = vmul.f32 %v6458_v51, %v8600_v57  ;;  %v3144_v54 = vmul.f32 %v6459_v53, %v8600_v57  ;;  %v6469_v22 = vld [vmem:[#allocation8 + $0x1048] sm:$0xff]  ;;  %v6472_v33 = vld [vmem:[#allocation8 + $0x750] sm:$0xff]  ;;  %v6478_v51 = vld [vmem:[#allocation8 + $0x2e0] sm:$0xff] }
 0x2ea   :  { %v5141_v55 = vpack.c.bf16 %v4735_v42, %v4735_v42  ;;  %v4736_v58 = vadd.f32 %v4592_v35, %v4156_v43  ;;  %v3578_v59 = vadd.f32 %v3434_v45, %v3142_v41  ;;  %v3435_v56 = vmul.f32 %v6460_v60, %v8605_v14  ;;  %v6473_v35 = vld [vmem:[#allocation8 + $0x758] sm:$0xff]  ;;  %v6476_v45 = vld [vmem:[#allocation8 + $0x1050] sm:$0xff]  ;;  %v6479_v53 = vld [vmem:[#allocation8 + $0x760] sm:$0xff] }
 0x2eb   :  { %v4737_v61 = vadd.f32 %v4593_v39, %v4157_v48  ;;  %v3436_v8 = vmul.f32 %v6461_v63, %v8605_v14  ;;  %v4015_v0 = vmul.f32 %v6462_v18, %v8608_v62  ;;  %v4016_v25 = vmul.f32 %v6463_v10, %v8608_v62  ;;  %v6474_v39 = vld [vmem:[#allocation8 + $0xbd0] sm:$0xff]  ;;  %v6475_v41 = vld [vmem:[#allocation8 + $0xbd8] sm:$0xff]  ;;  %v6482_v18 = vld [vmem:[#allocation8 + $0x2e8] sm:$0xff] }
 0x2ec   :  { %5238 = vst [vmem:[#allocation9 + $0x38c] sm:$0xf] %v5141_v55  ;;  %v4158_v1 = vadd.f32 %v4014_v47, %v3578_v59  ;;  %v3579_v2 = vadd.f32 %v3435_v56, %v3143_v52  ;;  %v4595_v4 = vmul.f32 %v6464_v3, %v8615_v9  ;;  %v4596_v6 = vmul.f32 %v6465_v5, %v8615_v9  ;;  %v6477_v47 = vld [vmem:[#allocation8 + $0x1058] sm:$0xff]  ;;  %v6480_v59 = vld [vmem:[#allocation8 + $0xbe0] sm:$0xff]  ;;  %v6483_v10 = vld [vmem:[#allocation8 + $0x2f0] sm:$0xff] }
 0x2ed   :  { %v5142_v7 = vpack.c.bf16 %v4737_v61, %v4736_v58  ;;  %v3580_v11 = vadd.f32 %v3436_v8, %v3144_v54  ;;  %v3145_v13 = vmul.f32 %v6466_v12, %v8600_v57  ;;  %v3437_v16 = vmul.f32 %v6467_v15, %v8605_v14  ;;  %v6481_v56 = vld [vmem:[#allocation8 + $0x1060] sm:$0xff]  ;;  %v6484_v3 = vld [vmem:[#allocation8 + $0x768] sm:$0xff]  ;;  %v6485_v5 = vld [vmem:[#allocation8 + $0x770] sm:$0xff] }
 0x2ee   :  { %v4738_v17 = vadd.f32 %v4594_v50, %v4158_v1  ;;  %v4159_v19 = vadd.f32 %v4015_v0, %v3579_v2  ;;  %v4017_v21 = vmul.f32 %v6468_v20, %v8608_v62  ;;  %v4597_v23 = vmul.f32 %v6469_v22, %v8615_v9  ;;  %v6489_v22 = vld [vmem:[#allocation8 + $0x1070] sm:$0xff] }
 0x2ef   :  { %5239 = vst [vmem:[#allocation9 + $0x390] sm:$0xff] %v5142_v7  ;;  %v4160_v24 = vadd.f32 %v4016_v25, %v3580_v11  ;;  %v3581_v26 = vadd.f32 %v3437_v16, %v3145_v13  ;;  %v3146_v28 = vmul.f32 %v6470_v27, %v8600_v57  ;;  %v3147_v30 = vmul.f32 %v6471_v29, %v8600_v57  ;;  %v6486_v11 = vld [vmem:[#allocation8 + $0xbe8] sm:$0xff]  ;;  %v6487_v13 = vld [vmem:[#allocation8 + $0xbf0] sm:$0xff] }
 0x2f0   :  { %v5143_v31 = vpack.c.bf16 %v4738_v17, %v4738_v17  ;;  %v4739_v32 = vadd.f32 %v4595_v4, %v4159_v19  ;;  %v3438_v34 = vmul.f32 %v6472_v33, %v8605_v14  ;;  %v3439_v36 = vmul.f32 %v6473_v35, %v8605_v14  ;;  %v6488_v16 = vld [vmem:[#allocation8 + $0x1068] sm:$0xff] }
 0x2f1   :  { %v4740_v37 = vadd.f32 %v4596_v6, %v4160_v24  ;;  %v4161_v38 = vadd.f32 %v4017_v21, %v3581_v26  ;;  %v4018_v40 = vmul.f32 %v6474_v39, %v8608_v62  ;;  %v4019_v42 = vmul.f32 %v6475_v41, %v8608_v62  ;;  %v6490_v26 = vld [vmem:[#allocation8 + $0x2f8] sm:$0xff] }
 0x2f2   :  { %5240 = vst [vmem:[#allocation9 + $0x398] sm:$0xf] %v5143_v31  ;;  %v3582_v43 = vadd.f32 %v3438_v34, %v3146_v28  ;;  %v3583_v44 = vadd.f32 %v3439_v36, %v3147_v30  ;;  %v4598_v46 = vmul.f32 %v6476_v45, %v8615_v9  ;;  %v4599_v48 = vmul.f32 %v6477_v47, %v8615_v9  ;;  %v6491_v28 = vld [vmem:[#allocation8 + $0x778] sm:$0xff]  ;;  %v6494_v36 = vld [vmem:[#allocation8 + $0x300] sm:$0xff] }
 0x2f3   :  { %v5144_v49 = vpack.c.bf16 %v4740_v37, %v4739_v32  ;;  %v4741_v50 = vadd.f32 %v4597_v23, %v4161_v38  ;;  %v3148_v52 = vmul.f32 %v6478_v51, %v8600_v57  ;;  %v3440_v54 = vmul.f32 %v6479_v53, %v8605_v14  ;;  %v6492_v30 = vld [vmem:[#allocation8 + $0xbf8] sm:$0xff] }
 0x2f4   :  { %v4162_v55 = vadd.f32 %v4018_v40, %v3582_v43  ;;  %v4163_v58 = vadd.f32 %v4019_v42, %v3583_v44  ;;  %v4020_v60 = vmul.f32 %v6480_v59, %v8608_v62  ;;  %v4600_v61 = vmul.f32 %v6481_v56, %v8615_v9  ;;  %v6493_v34 = vld [vmem:[#allocation8 + $0x1078] sm:$0xff]  ;;  %v6495_v40 = vld [vmem:[#allocation8 + $0x308] sm:$0xff]  ;;  %v6496_v42 = vld [vmem:[#allocation8 + $0x780] sm:$0xff] }
 0x2f5   :  { %5241 = vst [vmem:[#allocation9 + $0x39c] sm:$0xff] %v5144_v49  ;;  %v5145_v63 = vpack.c.bf16 %v4741_v50, %v4741_v50  ;;  %v3584_v8 = vadd.f32 %v3440_v54, %v3148_v52  ;;  %v3149_v0 = vmul.f32 %v6482_v18, %v8600_v57  ;;  %v3150_v25 = vmul.f32 %v6483_v10, %v8600_v57  ;;  %v6499_v52 = vld [vmem:[#allocation8 + $0xc08] sm:$0xff]  ;;  %v6500_v54 = vld [vmem:[#allocation8 + $0x1080] sm:$0xff] }
 0x2f6   :  { %v4742_v1 = vadd.f32 %v4598_v46, %v4162_v55  ;;  %v4743_v2 = vadd.f32 %v4599_v48, %v4163_v58  ;;  %v3441_v4 = vmul.f32 %v6484_v3, %v8605_v14  ;;  %v3442_v6 = vmul.f32 %v6485_v5, %v8605_v14  ;;  %v6497_v46 = vld [vmem:[#allocation8 + $0x788] sm:$0xff]  ;;  %v6498_v48 = vld [vmem:[#allocation8 + $0xc00] sm:$0xff]  ;;  %v6505_v3 = vld [vmem:[#allocation8 + $0x1090] sm:$0xff] }
 0x2f7   :  { %5242 = vst [vmem:[#allocation9 + $0x3a4] sm:$0xf] %v5145_v63  ;;  %v4164_v7 = vadd.f32 %v4020_v60, %v3584_v8  ;;  %v4021_v12 = vmul.f32 %v6486_v11, %v8608_v62  ;;  %v4022_v15 = vmul.f32 %v6487_v13, %v8608_v62  ;;  %v4601_v17 = vmul.f32 %v6488_v16, %v8615_v9  ;;  %v6501_v60 = vld [vmem:[#allocation8 + $0x1088] sm:$0xff]  ;;  %v6506_v5 = vld [vmem:[#allocation8 + $0x318] sm:$0xff] }
 0x2f8   :  { %v5146_v19 = vpack.c.bf16 %v4743_v2, %v4742_v1  ;;  %v3585_v20 = vadd.f32 %v3441_v4, %v3149_v0  ;;  %v3586_v21 = vadd.f32 %v3442_v6, %v3150_v25  ;;  %v4602_v23 = vmul.f32 %v6489_v22, %v8615_v9  ;;  %v6503_v0 = vld [vmem:[#allocation8 + $0x790] sm:$0xff]  ;;  %v6508_v16 = vld [vmem:[#allocation8 + $0x798] sm:$0xff] }
 0x2f9   :  { %v4744_v24 = vadd.f32 %v4600_v61, %v4164_v7  ;;  %v3151_v27 = vmul.f32 %v6490_v26, %v8600_v57  ;;  %v3443_v29 = vmul.f32 %v6491_v28, %v8605_v14  ;;  %v4023_v31 = vmul.f32 %v6492_v30, %v8608_v62  ;;  %v6502_v61 = vld [vmem:[#allocation8 + $0x310] sm:$0xff]  ;;  %v6507_v7 = vld [vmem:[#allocation8 + $0x320] sm:$0xff]  ;;  %v6510_v22 = vld [vmem:[#allocation8 + $0xc18] sm:$0xff] }
 0x2fa   :  { %5243 = vst [vmem:[#allocation9 + $0x3a8] sm:$0xff] %v5146_v19  ;;  %v4165_v32 = vadd.f32 %v4021_v12, %v3585_v20  ;;  %v4166_v33 = vadd.f32 %v4022_v15, %v3586_v21  ;;  %v4603_v35 = vmul.f32 %v6493_v34, %v8615_v9  ;;  %v3152_v37 = vmul.f32 %v6494_v36, %v8600_v57  ;;  %v6504_v25 = vld [vmem:[#allocation8 + $0xc10] sm:$0xff]  ;;  %v6509_v20 = vld [vmem:[#allocation8 + $0x7a0] sm:$0xff] }
 0x2fb   :  { %v5147_v38 = vpack.c.bf16 %v4744_v24, %v4744_v24  ;;  %v3587_v39 = vadd.f32 %v3443_v29, %v3151_v27  ;;  %v3153_v41 = vmul.f32 %v6495_v40, %v8600_v57  ;;  %v3444_v43 = vmul.f32 %v6496_v42, %v8605_v14  ;;  %v6511_v24 = vld [vmem:[#allocation8 + $0xc20] sm:$0xff]  ;;  %v6512_v29 = vld [vmem:[#allocation8 + $0x1098] sm:$0xff] }
 0x2fc   :  { %v4745_v44 = vadd.f32 %v4601_v17, %v4165_v32  ;;  %v4746_v45 = vadd.f32 %v4602_v23, %v4166_v33  ;;  %v3445_v47 = vmul.f32 %v6497_v46, %v8605_v14  ;;  %v4024_v49 = vmul.f32 %v6498_v48, %v8608_v62 }
 0x2fd   :  { %5244 = vst [vmem:[#allocation9 + $0x3b0] sm:$0xf] %v5147_v38  ;;  %v4167_v50 = vadd.f32 %v4023_v31, %v3587_v39  ;;  %v3588_v51 = vadd.f32 %v3444_v43, %v3152_v37  ;;  %v4025_v53 = vmul.f32 %v6499_v52, %v8608_v62  ;;  %v4604_v55 = vmul.f32 %v6500_v54, %v8615_v9  ;;  %v6513_v31 = vld [vmem:[#allocation8 + $0x10a0] sm:$0xff]  ;;  %v6515_v37 = vld [vmem:[#allocation8 + $0x7a8] sm:$0xff] }
 0x2fe   :  { %v5148_v58 = vpack.c.bf16 %v4746_v45, %v4745_v44  ;;  %v3589_v59 = vadd.f32 %v3445_v47, %v3153_v41  ;;  %v4605_v56 = vmul.f32 %v6501_v60, %v8615_v9  ;;  %v3154_v63 = vmul.f32 %v6502_v61, %v8600_v57  ;;  %v6516_v41 = vld [vmem:[#allocation8 + $0xc28] sm:$0xff]  ;;  %v6518_v47 = vld [vmem:[#allocation8 + $0x330] sm:$0xff] }
 0x2ff   :  { %v4747_v8 = vadd.f32 %v4603_v35, %v4167_v50  ;;  %v4168_v18 = vadd.f32 %v4024_v49, %v3588_v51  ;;  %v3446_v10 = vmul.f32 %v6503_v0, %v8605_v14  ;;  %v4026_v1 = vmul.f32 %v6504_v25, %v8608_v62  ;;  %v6514_v35 = vld [vmem:[#allocation8 + $0x328] sm:$0xff]  ;;  %v6519_v49 = vld [vmem:[#allocation8 + $0x338] sm:$0xff] }
 0x300   :  { %5245 = vst [vmem:[#allocation9 + $0x3b4] sm:$0xff] %v5148_v58  ;;  %v4169_v2 = vadd.f32 %v4025_v53, %v3589_v59  ;;  %v4606_v4 = vmul.f32 %v6505_v3, %v8615_v9  ;;  %v3155_v6 = vmul.f32 %v6506_v5, %v8600_v57  ;;  %v3156_v11 = vmul.f32 %v6507_v7, %v8600_v57  ;;  %v6517_v43 = vld [vmem:[#allocation8 + $0x10a8] sm:$0xff]  ;;  %v6520_v53 = vld [vmem:[#allocation8 + $0x7b0] sm:$0xff]  ;;  %v6526_v5 = vld [vmem:[#allocation8 + $0x340] sm:$0xff] }
 0x301   :  { %v5149_v12 = vpack.c.bf16 %v4747_v8, %v4747_v8  ;;  %v4748_v13 = vadd.f32 %v4604_v55, %v4168_v18  ;;  %v3590_v15 = vadd.f32 %v3446_v10, %v3154_v63  ;;  %v3447_v17 = vmul.f32 %v6508_v16, %v8605_v14  ;;  %v6521_v55 = vld [vmem:[#allocation8 + $0x7b8] sm:$0xff]  ;;  %v6524_v10 = vld [vmem:[#allocation8 + $0x10b0] sm:$0xff]  ;;  %v6527_v7 = vld [vmem:[#allocation8 + $0x7c0] sm:$0xff] }
 0x302   :  { %v4749_v19 = vadd.f32 %v4605_v56, %v4169_v2  ;;  %v3448_v21 = vmul.f32 %v6509_v20, %v8605_v14  ;;  %v4027_v23 = vmul.f32 %v6510_v22, %v8608_v62  ;;  %v4028_v26 = vmul.f32 %v6511_v24, %v8608_v62  ;;  %v6522_v56 = vld [vmem:[#allocation8 + $0xc30] sm:$0xff]  ;;  %v6523_v63 = vld [vmem:[#allocation8 + $0xc38] sm:$0xff]  ;;  %v6530_v22 = vld [vmem:[#allocation8 + $0x348] sm:$0xff] }
 0x303   :  { %5246 = vst [vmem:[#allocation9 + $0x3bc] sm:$0xf] %v5149_v12  ;;  %v4170_v27 = vadd.f32 %v4026_v1, %v3590_v15  ;;  %v3591_v28 = vadd.f32 %v3447_v17, %v3155_v6  ;;  %v4607_v30 = vmul.f32 %v6512_v29, %v8615_v9  ;;  %v4608_v32 = vmul.f32 %v6513_v31, %v8615_v9  ;;  %v6525_v1 = vld [vmem:[#allocation8 + $0x10b8] sm:$0xff]  ;;  %v6528_v15 = vld [vmem:[#allocation8 + $0xc40] sm:$0xff]  ;;  %v6531_v24 = vld [vmem:[#allocation8 + $0x350] sm:$0xff] }
 0x304   :  { %v5150_v33 = vpack.c.bf16 %v4749_v19, %v4748_v13  ;;  %v3592_v34 = vadd.f32 %v3448_v21, %v3156_v11  ;;  %v3157_v36 = vmul.f32 %v6514_v35, %v8600_v57  ;;  %v3449_v38 = vmul.f32 %v6515_v37, %v8605_v14  ;;  %v6529_v17 = vld [vmem:[#allocation8 + $0x10c0] sm:$0xff]  ;;  %v6532_v29 = vld [vmem:[#allocation8 + $0x7c8] sm:$0xff]  ;;  %v6533_v31 = vld [vmem:[#allocation8 + $0x7d0] sm:$0xff] }
 0x305   :  { %v4750_v39 = vadd.f32 %v4606_v4, %v4170_v27  ;;  %v4171_v40 = vadd.f32 %v4027_v23, %v3591_v28  ;;  %v4029_v42 = vmul.f32 %v6516_v41, %v8608_v62  ;;  %v4609_v44 = vmul.f32 %v6517_v43, %v8615_v9  ;;  %v6537_v43 = vld [vmem:[#allocation8 + $0x10d0] sm:$0xff] }
 0x306   :  { %5247 = vst [vmem:[#allocation9 + $0x3c0] sm:$0xff] %v5150_v33  ;;  %v4172_v45 = vadd.f32 %v4028_v26, %v3592_v34  ;;  %v3593_v46 = vadd.f32 %v3449_v38, %v3157_v36  ;;  %v3158_v48 = vmul.f32 %v6518_v47, %v8600_v57  ;;  %v3159_v50 = vmul.f32 %v6519_v49, %v8600_v57  ;;  %v6534_v34 = vld [vmem:[#allocation8 + $0xc48] sm:$0xff]  ;;  %v6535_v36 = vld [vmem:[#allocation8 + $0xc50] sm:$0xff] }
 0x307   :  { %v5151_v51 = vpack.c.bf16 %v4750_v39, %v4750_v39  ;;  %v4751_v52 = vadd.f32 %v4607_v30, %v4171_v40  ;;  %v3450_v54 = vmul.f32 %v6520_v53, %v8605_v14  ;;  %v3451_v58 = vmul.f32 %v6521_v55, %v8605_v14  ;;  %v6536_v38 = vld [vmem:[#allocation8 + $0x10c8] sm:$0xff] }
 0x308   :  { %v4752_v59 = vadd.f32 %v4608_v32, %v4172_v45  ;;  %v4173_v60 = vadd.f32 %v4029_v42, %v3593_v46  ;;  %v4030_v61 = vmul.f32 %v6522_v56, %v8608_v62  ;;  %v4031_v8 = vmul.f32 %v6523_v63, %v8608_v62  ;;  %v6538_v46 = vld [vmem:[#allocation8 + $0x358] sm:$0xff] }
 0x309   :  { %5248 = vst [vmem:[#allocation9 + $0x3c8] sm:$0xf] %v5151_v51  ;;  %v3594_v18 = vadd.f32 %v3450_v54, %v3158_v48  ;;  %v3595_v0 = vadd.f32 %v3451_v58, %v3159_v50  ;;  %v4610_v25 = vmul.f32 %v6524_v10, %v8615_v9  ;;  %v4611_v2 = vmul.f32 %v6525_v1, %v8615_v9  ;;  %v6539_v48 = vld [vmem:[#allocation8 + $0x7d8] sm:$0xff]  ;;  %v6542_v58 = vld [vmem:[#allocation8 + $0x360] sm:$0xff] }
 0x30a   :  { %v5152_v3 = vpack.c.bf16 %v4752_v59, %v4751_v52  ;;  %v4753_v4 = vadd.f32 %v4609_v44, %v4173_v60  ;;  %v3160_v6 = vmul.f32 %v6526_v5, %v8600_v57  ;;  %v3452_v11 = vmul.f32 %v6527_v7, %v8605_v14  ;;  %v6540_v50 = vld [vmem:[#allocation8 + $0xc58] sm:$0xff] }
 0x30b   :  { %v4174_v12 = vadd.f32 %v4030_v61, %v3594_v18  ;;  %v4175_v13 = vadd.f32 %v4031_v8, %v3595_v0  ;;  %v4032_v16 = vmul.f32 %v6528_v15, %v8608_v62  ;;  %v4612_v19 = vmul.f32 %v6529_v17, %v8615_v9  ;;  %v6541_v54 = vld [vmem:[#allocation8 + $0x10d8] sm:$0xff]  ;;  %v6543_v61 = vld [vmem:[#allocation8 + $0x368] sm:$0xff]  ;;  %v6544_v8 = vld [vmem:[#allocation8 + $0x7e0] sm:$0xff] }
 0x30c   :  { %5249 = vst [vmem:[#allocation9 + $0x3cc] sm:$0xff] %v5152_v3  ;;  %v5153_v20 = vpack.c.bf16 %v4753_v4, %v4753_v4  ;;  %v3596_v21 = vadd.f32 %v3452_v11, %v3160_v6  ;;  %v3161_v23 = vmul.f32 %v6530_v22, %v8600_v57  ;;  %v3162_v26 = vmul.f32 %v6531_v24, %v8600_v57  ;;  %v6547_v6 = vld [vmem:[#allocation8 + $0xc68] sm:$0xff]  ;;  %v6548_v11 = vld [vmem:[#allocation8 + $0x10e0] sm:$0xff] }
 0x30d   :  { %v4754_v27 = vadd.f32 %v4610_v25, %v4174_v12  ;;  %v4755_v28 = vadd.f32 %v4611_v2, %v4175_v13  ;;  %v3453_v30 = vmul.f32 %v6532_v29, %v8605_v14  ;;  %v3454_v32 = vmul.f32 %v6533_v31, %v8605_v14  ;;  %v6545_v25 = vld [vmem:[#allocation8 + $0x7e8] sm:$0xff]  ;;  %v6546_v2 = vld [vmem:[#allocation8 + $0xc60] sm:$0xff]  ;;  %v6553_v29 = vld [vmem:[#allocation8 + $0x10f0] sm:$0xff] }
 0x30e   :  { %5250 = vst [vmem:[#allocation9 + $0x3d4] sm:$0xf] %v5153_v20  ;;  %v4176_v33 = vadd.f32 %v4032_v16, %v3596_v21  ;;  %v4033_v35 = vmul.f32 %v6534_v34, %v8608_v62  ;;  %v4034_v37 = vmul.f32 %v6535_v36, %v8608_v62  ;;  %v4613_v39 = vmul.f32 %v6536_v38, %v8615_v9  ;;  %v6549_v16 = vld [vmem:[#allocation8 + $0x10e8] sm:$0xff]  ;;  %v6554_v31 = vld [vmem:[#allocation8 + $0x378] sm:$0xff] }
 0x30f   :  { %v5154_v40 = vpack.c.bf16 %v4755_v28, %v4754_v27  ;;  %v3597_v41 = vadd.f32 %v3453_v30, %v3161_v23  ;;  %v3598_v42 = vadd.f32 %v3454_v32, %v3162_v26  ;;  %v4614_v44 = vmul.f32 %v6537_v43, %v8615_v9  ;;  %v6551_v23 = vld [vmem:[#allocation8 + $0x7f0] sm:$0xff]  ;;  %v6556_v38 = vld [vmem:[#allocation8 + $0x7f8] sm:$0xff] }
 0x310   :  { %v4756_v45 = vadd.f32 %v4612_v19, %v4176_v33  ;;  %v3163_v47 = vmul.f32 %v6538_v46, %v8600_v57  ;;  %v3455_v49 = vmul.f32 %v6539_v48, %v8605_v14  ;;  %v4035_v51 = vmul.f32 %v6540_v50, %v8608_v62  ;;  %v6550_v19 = vld [vmem:[#allocation8 + $0x370] sm:$0xff]  ;;  %v6555_v33 = vld [vmem:[#allocation8 + $0x380] sm:$0xff]  ;;  %v6558_v43 = vld [vmem:[#allocation8 + $0xc78] sm:$0xff] }
 0x311   :  { %5251 = vst [vmem:[#allocation9 + $0x3d8] sm:$0xff] %v5154_v40  ;;  %v4177_v52 = vadd.f32 %v4033_v35, %v3597_v41  ;;  %v4178_v53 = vadd.f32 %v4034_v37, %v3598_v42  ;;  %v4615_v55 = vmul.f32 %v6541_v54, %v8615_v9  ;;  %v3164_v59 = vmul.f32 %v6542_v58, %v8600_v57  ;;  %v6552_v26 = vld [vmem:[#allocation8 + $0xc70] sm:$0xff]  ;;  %v6557_v41 = vld [vmem:[#allocation8 + $0x800] sm:$0xff] }
 0x312   :  { %v5155_v60 = vpack.c.bf16 %v4756_v45, %v4756_v45  ;;  %v3599_v56 = vadd.f32 %v3455_v49, %v3163_v47  ;;  %v3165_v63 = vmul.f32 %v6543_v61, %v8600_v57  ;;  %v3456_v18 = vmul.f32 %v6544_v8, %v8605_v14  ;;  %v6559_v45 = vld [vmem:[#allocation8 + $0xc80] sm:$0xff]  ;;  %v6560_v49 = vld [vmem:[#allocation8 + $0x10f8] sm:$0xff] }
 0x313   :  { %v4757_v0 = vadd.f32 %v4613_v39, %v4177_v52  ;;  %v4758_v10 = vadd.f32 %v4614_v44, %v4178_v53  ;;  %v3457_v1 = vmul.f32 %v6545_v25, %v8605_v14  ;;  %v4036_v3 = vmul.f32 %v6546_v2, %v8608_v62 }
 0x314   :  { %5252 = vst [vmem:[#allocation9 + $0x3e0] sm:$0xf] %v5155_v60  ;;  %v4179_v4 = vadd.f32 %v4035_v51, %v3599_v56  ;;  %v3600_v5 = vadd.f32 %v3456_v18, %v3164_v59  ;;  %v4037_v7 = vmul.f32 %v6547_v6, %v8608_v62  ;;  %v4616_v12 = vmul.f32 %v6548_v11, %v8615_v9  ;;  %v6561_v51 = vld [vmem:[#allocation8 + $0x1100] sm:$0xff]  ;;  %v6563_v59 = vld [vmem:[#allocation8 + $0x808] sm:$0xff] }
 0x315   :  { %v5156_v13 = vpack.c.bf16 %v4758_v10, %v4757_v0  ;;  %v3601_v15 = vadd.f32 %v3457_v1, %v3165_v63  ;;  %v4617_v17 = vmul.f32 %v6549_v16, %v8615_v9  ;;  %v3166_v20 = vmul.f32 %v6550_v19, %v8600_v57  ;;  %v6564_v63 = vld [vmem:[#allocation8 + $0xc88] sm:$0xff]  ;;  %v6566_v1 = vld [vmem:[#allocation8 + $0x390] sm:$0xff] }
 0x316   :  { %v4759_v21 = vadd.f32 %v4615_v55, %v4179_v4  ;;  %v4180_v22 = vadd.f32 %v4036_v3, %v3600_v5  ;;  %v3458_v24 = vmul.f32 %v6551_v23, %v8605_v14  ;;  %v4038_v27 = vmul.f32 %v6552_v26, %v8608_v62  ;;  %v6562_v55 = vld [vmem:[#allocation8 + $0x388] sm:$0xff]  ;;  %v6567_v3 = vld [vmem:[#allocation8 + $0x398] sm:$0xff] }
 0x317   :  { %5253 = vst [vmem:[#allocation9 + $0x3e4] sm:$0xff] %v5156_v13  ;;  %v4181_v28 = vadd.f32 %v4037_v7, %v3601_v15  ;;  %v4618_v30 = vmul.f32 %v6553_v29, %v8615_v9  ;;  %v3167_v32 = vmul.f32 %v6554_v31, %v8600_v57  ;;  %v3168_v34 = vmul.f32 %v6555_v33, %v8600_v57  ;;  %v6565_v18 = vld [vmem:[#allocation8 + $0x1108] sm:$0xff]  ;;  %v6568_v7 = vld [vmem:[#allocation8 + $0x810] sm:$0xff]  ;;  %v6574_v31 = vld [vmem:[#allocation8 + $0x3a0] sm:$0xff] }
 0x318   :  { %v5157_v35 = vpack.c.bf16 %v4759_v21, %v4759_v21  ;;  %v4760_v36 = vadd.f32 %v4616_v12, %v4180_v22  ;;  %v3602_v37 = vadd.f32 %v3458_v24, %v3166_v20  ;;  %v3459_v39 = vmul.f32 %v6556_v38, %v8605_v14  ;;  %v6569_v12 = vld [vmem:[#allocation8 + $0x818] sm:$0xff]  ;;  %v6572_v24 = vld [vmem:[#allocation8 + $0x1110] sm:$0xff]  ;;  %v6575_v33 = vld [vmem:[#allocation8 + $0x820] sm:$0xff] }
 0x319   :  { %v4761_v40 = vadd.f32 %v4617_v17, %v4181_v28  ;;  %v3460_v42 = vmul.f32 %v6557_v41, %v8605_v14  ;;  %v4039_v44 = vmul.f32 %v6558_v43, %v8608_v62  ;;  %v4040_v46 = vmul.f32 %v6559_v45, %v8608_v62  ;;  %v6570_v17 = vld [vmem:[#allocation8 + $0xc90] sm:$0xff]  ;;  %v6571_v20 = vld [vmem:[#allocation8 + $0xc98] sm:$0xff]  ;;  %v6578_v43 = vld [vmem:[#allocation8 + $0x3a8] sm:$0xff] }
 0x31a   :  { %5254 = vst [vmem:[#allocation9 + $0x3ec] sm:$0xf] %v5157_v35  ;;  %v4182_v47 = vadd.f32 %v4038_v27, %v3602_v37  ;;  %v3603_v48 = vadd.f32 %v3459_v39, %v3167_v32  ;;  %v4619_v50 = vmul.f32 %v6560_v49, %v8615_v9  ;;  %v4620_v52 = vmul.f32 %v6561_v51, %v8615_v9  ;;  %v6573_v27 = vld [vmem:[#allocation8 + $0x1118] sm:$0xff]  ;;  %v6576_v37 = vld [vmem:[#allocation8 + $0xca0] sm:$0xff]  ;;  %v6579_v45 = vld [vmem:[#allocation8 + $0x3b0] sm:$0xff] }
 0x31b   :  { %v5158_v53 = vpack.c.bf16 %v4761_v40, %v4760_v36  ;;  %v3604_v54 = vadd.f32 %v3460_v42, %v3168_v34  ;;  %v3169_v58 = vmul.f32 %v6562_v55, %v8600_v57  ;;  %v3461_v60 = vmul.f32 %v6563_v59, %v8605_v14  ;;  %v6577_v39 = vld [vmem:[#allocation8 + $0x1120] sm:$0xff]  ;;  %v6580_v49 = vld [vmem:[#allocation8 + $0x828] sm:$0xff]  ;;  %v6581_v51 = vld [vmem:[#allocation8 + $0x830] sm:$0xff] }
 0x31c   :  { %v4762_v56 = vadd.f32 %v4618_v30, %v4182_v47  ;;  %v4183_v61 = vadd.f32 %v4039_v44, %v3603_v48  ;;  %v4041_v8 = vmul.f32 %v6564_v63, %v8608_v62  ;;  %v4621_v0 = vmul.f32 %v6565_v18, %v8615_v9  ;;  %v6585_v18 = vld [vmem:[#allocation8 + $0x1130] sm:$0xff] }
 0x31d   :  { %5255 = vst [vmem:[#allocation9 + $0x3f0] sm:$0xff] %v5158_v53  ;;  %v4184_v10 = vadd.f32 %v4040_v46, %v3604_v54  ;;  %v3605_v25 = vadd.f32 %v3461_v60, %v3169_v58  ;;  %v3170_v2 = vmul.f32 %v6566_v1, %v8600_v57  ;;  %v3171_v4 = vmul.f32 %v6567_v3, %v8600_v57  ;;  %v6582_v54 = vld [vmem:[#allocation8 + $0xca8] sm:$0xff]  ;;  %v6583_v58 = vld [vmem:[#allocation8 + $0xcb0] sm:$0xff] }
 0x31e   :  { %v5159_v5 = vpack.c.bf16 %v4762_v56, %v4762_v56  ;;  %v4763_v6 = vadd.f32 %v4619_v50, %v4183_v61  ;;  %v3462_v11 = vmul.f32 %v6568_v7, %v8605_v14  ;;  %v3463_v13 = vmul.f32 %v6569_v12, %v8605_v14  ;;  %v6584_v60 = vld [vmem:[#allocation8 + $0x1128] sm:$0xff] }
 0x31f   :  { %v4764_v15 = vadd.f32 %v4620_v52, %v4184_v10  ;;  %v4185_v16 = vadd.f32 %v4041_v8, %v3605_v25  ;;  %v4042_v19 = vmul.f32 %v6570_v17, %v8608_v62  ;;  %v4043_v21 = vmul.f32 %v6571_v20, %v8608_v62  ;;  %v6586_v25 = vld [vmem:[#allocation8 + $0x3b8] sm:$0xff] }
 0x320   :  { %5256 = vst [vmem:[#allocation9 + $0x3f8] sm:$0xf] %v5159_v5  ;;  %v3606_v22 = vadd.f32 %v3462_v11, %v3170_v2  ;;  %v3607_v23 = vadd.f32 %v3463_v13, %v3171_v4  ;;  %v4622_v26 = vmul.f32 %v6572_v24, %v8615_v9  ;;  %v4623_v28 = vmul.f32 %v6573_v27, %v8615_v9  ;;  %v6587_v2 = vld [vmem:[#allocation8 + $0x838] sm:$0xff]  ;;  %v6590_v13 = vld [vmem:[#allocation8 + $0x3c0] sm:$0xff] }
 0x321   :  { %v5160_v29 = vpack.c.bf16 %v4764_v15, %v4763_v6  ;;  %v4765_v30 = vadd.f32 %v4621_v0, %v4185_v16  ;;  %v3172_v32 = vmul.f32 %v6574_v31, %v8600_v57  ;;  %v3464_v34 = vmul.f32 %v6575_v33, %v8605_v14  ;;  %v6588_v4 = vld [vmem:[#allocation8 + $0xcb8] sm:$0xff] }
 0x322   :  { %v4186_v35 = vadd.f32 %v4042_v19, %v3606_v22  ;;  %v4187_v36 = vadd.f32 %v4043_v21, %v3607_v23  ;;  %v4044_v38 = vmul.f32 %v6576_v37, %v8608_v62  ;;  %v4624_v40 = vmul.f32 %v6577_v39, %v8615_v9  ;;  %v6589_v11 = vld [vmem:[#allocation8 + $0x1138] sm:$0xff]  ;;  %v6591_v19 = vld [vmem:[#allocation8 + $0x3c8] sm:$0xff]  ;;  %v6592_v21 = vld [vmem:[#allocation8 + $0x840] sm:$0xff] }
 0x323   :  { %5257 = vst [vmem:[#allocation9 + $0x3fc] sm:$0xff] %v5160_v29  ;;  %v5161_v41 = vpack.c.bf16 %v4765_v30, %v4765_v30  ;;  %v3608_v42 = vadd.f32 %v3464_v34, %v3172_v32  ;;  %v3173_v44 = vmul.f32 %v6578_v43, %v8600_v57  ;;  %v3174_v46 = vmul.f32 %v6579_v45, %v8600_v57  ;;  %v6595_v32 = vld [vmem:[#allocation8 + $0xcc8] sm:$0xff]  ;;  %v6596_v34 = vld [vmem:[#allocation8 + $0x1140] sm:$0xff] }
 0x324   :  { %v4766_v47 = vadd.f32 %v4622_v26, %v4186_v35  ;;  %v4767_v48 = vadd.f32 %v4623_v28, %v4187_v36  ;;  %v3465_v50 = vmul.f32 %v6580_v49, %v8605_v14  ;;  %v3466_v52 = vmul.f32 %v6581_v51, %v8605_v14  ;;  %v6593_v26 = vld [vmem:[#allocation8 + $0x848] sm:$0xff]  ;;  %v6594_v28 = vld [vmem:[#allocation8 + $0xcc0] sm:$0xff]  ;;  %v6601_v49 = vld [vmem:[#allocation8 + $0x1150] sm:$0xff] }
 0x325   :  { %5258 = vst [vmem:[#allocation9 + $0x404] sm:$0xf] %v5161_v41  ;;  %v4188_v53 = vadd.f32 %v4044_v38, %v3608_v42  ;;  %v4045_v55 = vmul.f32 %v6582_v54, %v8608_v62  ;;  %v4046_v59 = vmul.f32 %v6583_v58, %v8608_v62  ;;  %v4625_v56 = vmul.f32 %v6584_v60, %v8615_v9  ;;  %v6597_v38 = vld [vmem:[#allocation8 + $0x1148] sm:$0xff]  ;;  %v6602_v51 = vld [vmem:[#allocation8 + $0x3d8] sm:$0xff] }
 0x326   :  { %v5162_v61 = vpack.c.bf16 %v4767_v48, %v4766_v47  ;;  %v3609_v63 = vadd.f32 %v3465_v50, %v3173_v44  ;;  %v3610_v8 = vadd.f32 %v3466_v52, %v3174_v46  ;;  %v4626_v0 = vmul.f32 %v6585_v18, %v8615_v9  ;;  %v6599_v44 = vld [vmem:[#allocation8 + $0x850] sm:$0xff]  ;;  %v6604_v60 = vld [vmem:[#allocation8 + $0x858] sm:$0xff] }
 0x327   :  { %v4768_v10 = vadd.f32 %v4624_v40, %v4188_v53  ;;  %v3175_v1 = vmul.f32 %v6586_v25, %v8600_v57  ;;  %v3467_v3 = vmul.f32 %v6587_v2, %v8605_v14  ;;  %v4047_v5 = vmul.f32 %v6588_v4, %v8608_v62  ;;  %v6598_v40 = vld [vmem:[#allocation8 + $0x3d0] sm:$0xff]  ;;  %v6603_v53 = vld [vmem:[#allocation8 + $0x3e0] sm:$0xff]  ;;  %v6606_v18 = vld [vmem:[#allocation8 + $0xcd8] sm:$0xff] }
 0x328   :  { %5259 = vst [vmem:[#allocation9 + $0x408] sm:$0xff] %v5162_v61  ;;  %v4189_v6 = vadd.f32 %v4045_v55, %v3609_v63  ;;  %v4190_v7 = vadd.f32 %v4046_v59, %v3610_v8  ;;  %v4627_v12 = vmul.f32 %v6589_v11, %v8615_v9  ;;  %v3176_v15 = vmul.f32 %v6590_v13, %v8600_v57  ;;  %v6600_v46 = vld [vmem:[#allocation8 + $0xcd0] sm:$0xff]  ;;  %v6605_v63 = vld [vmem:[#allocation8 + $0x860] sm:$0xff] }
 0x329   :  { %v5163_v16 = vpack.c.bf16 %v4768_v10, %v4768_v10  ;;  %v3611_v17 = vadd.f32 %v3467_v3, %v3175_v1  ;;  %v3177_v20 = vmul.f32 %v6591_v19, %v8600_v57  ;;  %v3468_v22 = vmul.f32 %v6592_v21, %v8605_v14  ;;  %v6607_v10 = vld [vmem:[#allocation8 + $0xce0] sm:$0xff]  ;;  %v6608_v3 = vld [vmem:[#allocation8 + $0x1158] sm:$0xff] }
 0x32a   :  { %v4769_v23 = vadd.f32 %v4625_v56, %v4189_v6  ;;  %v4770_v24 = vadd.f32 %v4626_v0, %v4190_v7  ;;  %v3469_v27 = vmul.f32 %v6593_v26, %v8605_v14  ;;  %v4048_v29 = vmul.f32 %v6594_v28, %v8608_v62 }
 0x32b   :  { %5260 = vst [vmem:[#allocation9 + $0x410] sm:$0xf] %v5163_v16  ;;  %v4191_v30 = vadd.f32 %v4047_v5, %v3611_v17  ;;  %v3612_v31 = vadd.f32 %v3468_v22, %v3176_v15  ;;  %v4049_v33 = vmul.f32 %v6595_v32, %v8608_v62  ;;  %v4628_v35 = vmul.f32 %v6596_v34, %v8615_v9  ;;  %v6609_v5 = vld [vmem:[#allocation8 + $0x1160] sm:$0xff]  ;;  %v6611_v15 = vld [vmem:[#allocation8 + $0x868] sm:$0xff] }
 0x32c   :  { %v5164_v36 = vpack.c.bf16 %v4770_v24, %v4769_v23  ;;  %v3613_v37 = vadd.f32 %v3469_v27, %v3177_v20  ;;  %v4629_v39 = vmul.f32 %v6597_v38, %v8615_v9  ;;  %v3178_v41 = vmul.f32 %v6598_v40, %v8600_v57  ;;  %v6612_v20 = vld [vmem:[#allocation8 + $0xce8] sm:$0xff]  ;;  %v6614_v27 = vld [vmem:[#allocation8 + $0x3f0] sm:$0xff] }
 0x32d   :  { %v4771_v42 = vadd.f32 %v4627_v12, %v4191_v30  ;;  %v4192_v43 = vadd.f32 %v4048_v29, %v3612_v31  ;;  %v3470_v45 = vmul.f32 %v6599_v44, %v8605_v14  ;;  %v4050_v47 = vmul.f32 %v6600_v46, %v8608_v62  ;;  %v6610_v12 = vld [vmem:[#allocation8 + $0x3e8] sm:$0xff]  ;;  %v6615_v29 = vld [vmem:[#allocation8 + $0x3f8] sm:$0xff] }
 0x32e   :  { %5261 = vst [vmem:[#allocation9 + $0x414] sm:$0xff] %v5164_v36  ;;  %v4193_v48 = vadd.f32 %v4049_v33, %v3613_v37  ;;  %v4630_v50 = vmul.f32 %v6601_v49, %v8615_v9  ;;  %v3179_v52 = vmul.f32 %v6602_v51, %v8600_v57  ;;  %v3180_v54 = vmul.f32 %v6603_v53, %v8600_v57  ;;  %v6613_v22 = vld [vmem:[#allocation8 + $0x1168] sm:$0xff]  ;;  %v6616_v33 = vld [vmem:[#allocation8 + $0x870] sm:$0xff]  ;;  %v6622_v51 = vld [vmem:[#allocation8 + $0x400] sm:$0xff] }
 0x32f   :  { %v5165_v55 = vpack.c.bf16 %v4771_v42, %v4771_v42  ;;  %v4772_v58 = vadd.f32 %v4628_v35, %v4192_v43  ;;  %v3614_v59 = vadd.f32 %v3470_v45, %v3178_v41  ;;  %v3471_v56 = vmul.f32 %v6604_v60, %v8605_v14  ;;  %v6617_v35 = vld [vmem:[#allocation8 + $0x878] sm:$0xff]  ;;  %v6620_v45 = vld [vmem:[#allocation8 + $0x1170] sm:$0xff]  ;;  %v6623_v53 = vld [vmem:[#allocation8 + $0x880] sm:$0xff] }
 0x330   :  { %v4773_v61 = vadd.f32 %v4629_v39, %v4193_v48  ;;  %v3472_v8 = vmul.f32 %v6605_v63, %v8605_v14  ;;  %v4051_v0 = vmul.f32 %v6606_v18, %v8608_v62  ;;  %v4052_v25 = vmul.f32 %v6607_v10, %v8608_v62  ;;  %v6618_v39 = vld [vmem:[#allocation8 + $0xcf0] sm:$0xff]  ;;  %v6619_v41 = vld [vmem:[#allocation8 + $0xcf8] sm:$0xff]  ;;  %v6626_v18 = vld [vmem:[#allocation8 + $0x408] sm:$0xff] }
 0x331   :  { %5262 = vst [vmem:[#allocation9 + $0x41c] sm:$0xf] %v5165_v55  ;;  %v4194_v1 = vadd.f32 %v4050_v47, %v3614_v59  ;;  %v3615_v2 = vadd.f32 %v3471_v56, %v3179_v52  ;;  %v4631_v4 = vmul.f32 %v6608_v3, %v8615_v9  ;;  %v4632_v6 = vmul.f32 %v6609_v5, %v8615_v9  ;;  %v6621_v47 = vld [vmem:[#allocation8 + $0x1178] sm:$0xff]  ;;  %v6624_v59 = vld [vmem:[#allocation8 + $0xd00] sm:$0xff]  ;;  %v6627_v10 = vld [vmem:[#allocation8 + $0x410] sm:$0xff] }
 0x332   :  { %v5166_v7 = vpack.c.bf16 %v4773_v61, %v4772_v58  ;;  %v3616_v11 = vadd.f32 %v3472_v8, %v3180_v54  ;;  %v3181_v13 = vmul.f32 %v6610_v12, %v8600_v57  ;;  %v3473_v16 = vmul.f32 %v6611_v15, %v8605_v14  ;;  %v6625_v56 = vld [vmem:[#allocation8 + $0x1180] sm:$0xff]  ;;  %v6628_v3 = vld [vmem:[#allocation8 + $0x888] sm:$0xff]  ;;  %v6629_v5 = vld [vmem:[#allocation8 + $0x890] sm:$0xff] }
 0x333   :  { %v4774_v17 = vadd.f32 %v4630_v50, %v4194_v1  ;;  %v4195_v19 = vadd.f32 %v4051_v0, %v3615_v2  ;;  %v4053_v21 = vmul.f32 %v6612_v20, %v8608_v62  ;;  %v4633_v23 = vmul.f32 %v6613_v22, %v8615_v9  ;;  %v6633_v22 = vld [vmem:[#allocation8 + $0x1190] sm:$0xff] }
 0x334   :  { %5263 = vst [vmem:[#allocation9 + $0x420] sm:$0xff] %v5166_v7  ;;  %v4196_v24 = vadd.f32 %v4052_v25, %v3616_v11  ;;  %v3617_v26 = vadd.f32 %v3473_v16, %v3181_v13  ;;  %v3182_v28 = vmul.f32 %v6614_v27, %v8600_v57  ;;  %v3183_v30 = vmul.f32 %v6615_v29, %v8600_v57  ;;  %v6630_v11 = vld [vmem:[#allocation8 + $0xd08] sm:$0xff]  ;;  %v6631_v13 = vld [vmem:[#allocation8 + $0xd10] sm:$0xff] }
 0x335   :  { %v5167_v31 = vpack.c.bf16 %v4774_v17, %v4774_v17  ;;  %v4775_v32 = vadd.f32 %v4631_v4, %v4195_v19  ;;  %v3474_v34 = vmul.f32 %v6616_v33, %v8605_v14  ;;  %v3475_v36 = vmul.f32 %v6617_v35, %v8605_v14  ;;  %v6632_v16 = vld [vmem:[#allocation8 + $0x1188] sm:$0xff] }
 0x336   :  { %v4776_v37 = vadd.f32 %v4632_v6, %v4196_v24  ;;  %v4197_v38 = vadd.f32 %v4053_v21, %v3617_v26  ;;  %v4054_v40 = vmul.f32 %v6618_v39, %v8608_v62  ;;  %v4055_v42 = vmul.f32 %v6619_v41, %v8608_v62  ;;  %v6634_v26 = vld [vmem:[#allocation8 + $0x418] sm:$0xff] }
 0x337   :  { %5264 = vst [vmem:[#allocation9 + $0x428] sm:$0xf] %v5167_v31  ;;  %v3618_v43 = vadd.f32 %v3474_v34, %v3182_v28  ;;  %v3619_v44 = vadd.f32 %v3475_v36, %v3183_v30  ;;  %v4634_v46 = vmul.f32 %v6620_v45, %v8615_v9  ;;  %v4635_v48 = vmul.f32 %v6621_v47, %v8615_v9  ;;  %v6635_v28 = vld [vmem:[#allocation8 + $0x898] sm:$0xff]  ;;  %v6638_v36 = vld [vmem:[#allocation8 + $0x420] sm:$0xff] }
 0x338   :  { %v5168_v49 = vpack.c.bf16 %v4776_v37, %v4775_v32  ;;  %v4777_v50 = vadd.f32 %v4633_v23, %v4197_v38  ;;  %v3184_v52 = vmul.f32 %v6622_v51, %v8600_v57  ;;  %v3476_v54 = vmul.f32 %v6623_v53, %v8605_v14  ;;  %v6636_v30 = vld [vmem:[#allocation8 + $0xd18] sm:$0xff] }
 0x339   :  { %v4198_v55 = vadd.f32 %v4054_v40, %v3618_v43  ;;  %v4199_v58 = vadd.f32 %v4055_v42, %v3619_v44  ;;  %v4056_v60 = vmul.f32 %v6624_v59, %v8608_v62  ;;  %v4636_v61 = vmul.f32 %v6625_v56, %v8615_v9  ;;  %v6637_v34 = vld [vmem:[#allocation8 + $0x1198] sm:$0xff]  ;;  %v6639_v40 = vld [vmem:[#allocation8 + $0x428] sm:$0xff]  ;;  %v6640_v42 = vld [vmem:[#allocation8 + $0x8a0] sm:$0xff] }
 0x33a   :  { %5265 = vst [vmem:[#allocation9 + $0x42c] sm:$0xff] %v5168_v49  ;;  %v5169_v63 = vpack.c.bf16 %v4777_v50, %v4777_v50  ;;  %v3620_v8 = vadd.f32 %v3476_v54, %v3184_v52  ;;  %v3185_v0 = vmul.f32 %v6626_v18, %v8600_v57  ;;  %v3186_v25 = vmul.f32 %v6627_v10, %v8600_v57  ;;  %v6643_v52 = vld [vmem:[#allocation8 + $0xd28] sm:$0xff]  ;;  %v6644_v54 = vld [vmem:[#allocation8 + $0x11a0] sm:$0xff] }
 0x33b   :  { %v4778_v1 = vadd.f32 %v4634_v46, %v4198_v55  ;;  %v4779_v2 = vadd.f32 %v4635_v48, %v4199_v58  ;;  %v3477_v4 = vmul.f32 %v6628_v3, %v8605_v14  ;;  %v3478_v6 = vmul.f32 %v6629_v5, %v8605_v14  ;;  %v6641_v46 = vld [vmem:[#allocation8 + $0x8a8] sm:$0xff]  ;;  %v6642_v48 = vld [vmem:[#allocation8 + $0xd20] sm:$0xff]  ;;  %v6649_v3 = vld [vmem:[#allocation8 + $0x11b0] sm:$0xff] }
 0x33c   :  { %5266 = vst [vmem:[#allocation9 + $0x434] sm:$0xf] %v5169_v63  ;;  %v4200_v7 = vadd.f32 %v4056_v60, %v3620_v8  ;;  %v4057_v12 = vmul.f32 %v6630_v11, %v8608_v62  ;;  %v4058_v15 = vmul.f32 %v6631_v13, %v8608_v62  ;;  %v4637_v17 = vmul.f32 %v6632_v16, %v8615_v9  ;;  %v6645_v60 = vld [vmem:[#allocation8 + $0x11a8] sm:$0xff]  ;;  %v6650_v5 = vld [vmem:[#allocation8 + $0x438] sm:$0xff] }
 0x33d   :  { %v5170_v19 = vpack.c.bf16 %v4779_v2, %v4778_v1  ;;  %v3621_v20 = vadd.f32 %v3477_v4, %v3185_v0  ;;  %v3622_v21 = vadd.f32 %v3478_v6, %v3186_v25  ;;  %v4638_v23 = vmul.f32 %v6633_v22, %v8615_v9  ;;  %v6647_v0 = vld [vmem:[#allocation8 + $0x8b0] sm:$0xff]  ;;  %v6652_v16 = vld [vmem:[#allocation8 + $0x8b8] sm:$0xff] }
 0x33e   :  { %v4780_v24 = vadd.f32 %v4636_v61, %v4200_v7  ;;  %v3187_v27 = vmul.f32 %v6634_v26, %v8600_v57  ;;  %v3479_v29 = vmul.f32 %v6635_v28, %v8605_v14  ;;  %v4059_v31 = vmul.f32 %v6636_v30, %v8608_v62  ;;  %v6646_v61 = vld [vmem:[#allocation8 + $0x430] sm:$0xff]  ;;  %v6651_v7 = vld [vmem:[#allocation8 + $0x440] sm:$0xff]  ;;  %v6654_v22 = vld [vmem:[#allocation8 + $0xd38] sm:$0xff] }
 0x33f   :  { %5267 = vst [vmem:[#allocation9 + $0x438] sm:$0xff] %v5170_v19  ;;  %v4201_v32 = vadd.f32 %v4057_v12, %v3621_v20  ;;  %v4202_v33 = vadd.f32 %v4058_v15, %v3622_v21  ;;  %v4639_v35 = vmul.f32 %v6637_v34, %v8615_v9  ;;  %v3188_v37 = vmul.f32 %v6638_v36, %v8600_v57  ;;  %v6648_v25 = vld [vmem:[#allocation8 + $0xd30] sm:$0xff]  ;;  %v6653_v20 = vld [vmem:[#allocation8 + $0x8c0] sm:$0xff] }
 0x340   :  { %v5171_v38 = vpack.c.bf16 %v4780_v24, %v4780_v24  ;;  %v3623_v39 = vadd.f32 %v3479_v29, %v3187_v27  ;;  %v3189_v41 = vmul.f32 %v6639_v40, %v8600_v57  ;;  %v3480_v43 = vmul.f32 %v6640_v42, %v8605_v14  ;;  %v6655_v24 = vld [vmem:[#allocation8 + $0xd40] sm:$0xff]  ;;  %v6656_v29 = vld [vmem:[#allocation8 + $0x11b8] sm:$0xff] }
 0x341   :  { %v4781_v44 = vadd.f32 %v4637_v17, %v4201_v32  ;;  %v4782_v45 = vadd.f32 %v4638_v23, %v4202_v33  ;;  %v3481_v47 = vmul.f32 %v6641_v46, %v8605_v14  ;;  %v4060_v49 = vmul.f32 %v6642_v48, %v8608_v62 }
 0x342   :  { %5268 = vst [vmem:[#allocation9 + $0x440] sm:$0xf] %v5171_v38  ;;  %v4203_v50 = vadd.f32 %v4059_v31, %v3623_v39  ;;  %v3624_v51 = vadd.f32 %v3480_v43, %v3188_v37  ;;  %v4061_v53 = vmul.f32 %v6643_v52, %v8608_v62  ;;  %v4640_v55 = vmul.f32 %v6644_v54, %v8615_v9  ;;  %v6657_v31 = vld [vmem:[#allocation8 + $0x11c0] sm:$0xff]  ;;  %v6659_v37 = vld [vmem:[#allocation8 + $0x8c8] sm:$0xff] }
 0x343   :  { %v5172_v58 = vpack.c.bf16 %v4782_v45, %v4781_v44  ;;  %v3625_v59 = vadd.f32 %v3481_v47, %v3189_v41  ;;  %v4641_v56 = vmul.f32 %v6645_v60, %v8615_v9  ;;  %v3190_v63 = vmul.f32 %v6646_v61, %v8600_v57  ;;  %v6660_v41 = vld [vmem:[#allocation8 + $0xd48] sm:$0xff]  ;;  %v6662_v47 = vld [vmem:[#allocation8 + $0x450] sm:$0xff] }
 0x344   :  { %v4783_v8 = vadd.f32 %v4639_v35, %v4203_v50  ;;  %v4204_v18 = vadd.f32 %v4060_v49, %v3624_v51  ;;  %v3482_v10 = vmul.f32 %v6647_v0, %v8605_v14  ;;  %v4062_v1 = vmul.f32 %v6648_v25, %v8608_v62  ;;  %v6658_v35 = vld [vmem:[#allocation8 + $0x448] sm:$0xff]  ;;  %v6663_v49 = vld [vmem:[#allocation8 + $0x458] sm:$0xff] }
 0x345   :  { %5269 = vst [vmem:[#allocation9 + $0x444] sm:$0xff] %v5172_v58  ;;  %v4205_v2 = vadd.f32 %v4061_v53, %v3625_v59  ;;  %v4642_v4 = vmul.f32 %v6649_v3, %v8615_v9  ;;  %v3191_v6 = vmul.f32 %v6650_v5, %v8600_v57  ;;  %v3192_v11 = vmul.f32 %v6651_v7, %v8600_v57  ;;  %v6661_v43 = vld [vmem:[#allocation8 + $0x11c8] sm:$0xff]  ;;  %v6664_v53 = vld [vmem:[#allocation8 + $0x8d0] sm:$0xff]  ;;  %v6670_v5 = vld [vmem:[#allocation8 + $0x460] sm:$0xff] }
 0x346   :  { %v5173_v12 = vpack.c.bf16 %v4783_v8, %v4783_v8  ;;  %v4784_v13 = vadd.f32 %v4640_v55, %v4204_v18  ;;  %v3626_v15 = vadd.f32 %v3482_v10, %v3190_v63  ;;  %v3483_v17 = vmul.f32 %v6652_v16, %v8605_v14  ;;  %v6665_v55 = vld [vmem:[#allocation8 + $0x8d8] sm:$0xff]  ;;  %v6668_v10 = vld [vmem:[#allocation8 + $0x11d0] sm:$0xff]  ;;  %v6671_v7 = vld [vmem:[#allocation8 + $0x8e0] sm:$0xff] }
 0x347   :  { %v4785_v19 = vadd.f32 %v4641_v56, %v4205_v2  ;;  %v3484_v21 = vmul.f32 %v6653_v20, %v8605_v14  ;;  %v4063_v23 = vmul.f32 %v6654_v22, %v8608_v62  ;;  %v4064_v26 = vmul.f32 %v6655_v24, %v8608_v62  ;;  %v6666_v56 = vld [vmem:[#allocation8 + $0xd50] sm:$0xff]  ;;  %v6667_v63 = vld [vmem:[#allocation8 + $0xd58] sm:$0xff]  ;;  %v6674_v22 = vld [vmem:[#allocation8 + $0x468] sm:$0xff] }
 0x348   :  { %5270 = vst [vmem:[#allocation9 + $0x44c] sm:$0xf] %v5173_v12  ;;  %v4206_v27 = vadd.f32 %v4062_v1, %v3626_v15  ;;  %v3627_v28 = vadd.f32 %v3483_v17, %v3191_v6  ;;  %v4643_v30 = vmul.f32 %v6656_v29, %v8615_v9  ;;  %v4644_v32 = vmul.f32 %v6657_v31, %v8615_v9  ;;  %v6669_v1 = vld [vmem:[#allocation8 + $0x11d8] sm:$0xff]  ;;  %v6672_v15 = vld [vmem:[#allocation8 + $0xd60] sm:$0xff]  ;;  %v6675_v24 = vld [vmem:[#allocation8 + $0x470] sm:$0xff] }
 0x349   :  { %v5174_v33 = vpack.c.bf16 %v4785_v19, %v4784_v13  ;;  %v3628_v34 = vadd.f32 %v3484_v21, %v3192_v11  ;;  %v3193_v36 = vmul.f32 %v6658_v35, %v8600_v57  ;;  %v3485_v38 = vmul.f32 %v6659_v37, %v8605_v14  ;;  %v6673_v17 = vld [vmem:[#allocation8 + $0x11e0] sm:$0xff]  ;;  %v6676_v29 = vld [vmem:[#allocation8 + $0x8e8] sm:$0xff]  ;;  %v6677_v31 = vld [vmem:[#allocation8 + $0x8f0] sm:$0xff] }
 0x34a   :  { %v4786_v39 = vadd.f32 %v4642_v4, %v4206_v27  ;;  %v4207_v40 = vadd.f32 %v4063_v23, %v3627_v28  ;;  %v4065_v42 = vmul.f32 %v6660_v41, %v8608_v62  ;;  %v4645_v44 = vmul.f32 %v6661_v43, %v8615_v9  ;;  %v6681_v43 = vld [vmem:[#allocation8 + $0x11f0] sm:$0xff] }
 0x34b   :  { %5271 = vst [vmem:[#allocation9 + $0x450] sm:$0xff] %v5174_v33  ;;  %v4208_v45 = vadd.f32 %v4064_v26, %v3628_v34  ;;  %v3629_v46 = vadd.f32 %v3485_v38, %v3193_v36  ;;  %v3194_v48 = vmul.f32 %v6662_v47, %v8600_v57  ;;  %v3195_v50 = vmul.f32 %v6663_v49, %v8600_v57  ;;  %v6678_v34 = vld [vmem:[#allocation8 + $0xd68] sm:$0xff]  ;;  %v6679_v36 = vld [vmem:[#allocation8 + $0xd70] sm:$0xff] }
 0x34c   :  { %v5175_v51 = vpack.c.bf16 %v4786_v39, %v4786_v39  ;;  %v4787_v52 = vadd.f32 %v4643_v30, %v4207_v40  ;;  %v3486_v54 = vmul.f32 %v6664_v53, %v8605_v14  ;;  %v3487_v58 = vmul.f32 %v6665_v55, %v8605_v14  ;;  %v6680_v38 = vld [vmem:[#allocation8 + $0x11e8] sm:$0xff] }
 0x34d   :  { %v4788_v59 = vadd.f32 %v4644_v32, %v4208_v45  ;;  %v4209_v60 = vadd.f32 %v4065_v42, %v3629_v46  ;;  %v4066_v61 = vmul.f32 %v6666_v56, %v8608_v62  ;;  %v4067_v8 = vmul.f32 %v6667_v63, %v8608_v62  ;;  %v6682_v46 = vld [vmem:[#allocation8 + $0x478] sm:$0xff]  ;;  %v6686_v56 = vld [vmem:[#allocation8] sm:$0xff] }
 0x34e   :  { %5272 = vst [vmem:[#allocation9 + $0x458] sm:$0xf] %v5175_v51  ;;  %v3630_v18 = vadd.f32 %v3486_v54, %v3194_v48  ;;  %v3631_v0 = vadd.f32 %v3487_v58, %v3195_v50  ;;  %v4646_v25 = vmul.f32 %v6668_v10, %v8615_v9  ;;  %v4647_v2 = vmul.f32 %v6669_v1, %v8615_v9  ;;  %v6683_v48 = vld [vmem:[#allocation8 + $0x8f8] sm:$0xff] }
 0x34f   :  { %v5176_v3 = vpack.c.bf16 %v4788_v59, %v4787_v52  ;;  %v4789_v4 = vadd.f32 %v4645_v44, %v4209_v60  ;;  %v3196_v6 = vmul.f32 %v6670_v5, %v8600_v57  ;;  %v3488_v11 = vmul.f32 %v6671_v7, %v8605_v14  ;;  %v6684_v50 = vld [vmem:[#allocation8 + $0xd78] sm:$0xff]  ;;  %v6691_v5 = vld [vmem:[#allocation8 + $0x908] sm:$0xff] }
 0x350   :  { %v4210_v12 = vadd.f32 %v4066_v61, %v3630_v18  ;;  %v4211_v13 = vadd.f32 %v4067_v8, %v3631_v0  ;;  %v4068_v16 = vmul.f32 %v6672_v15, %v8608_v62  ;;  %v4648_v19 = vmul.f32 %v6673_v17, %v8615_v9  ;;  %v6685_v54 = vld [vmem:[#allocation8 + $0x11f8] sm:$0xff]  ;;  %v6687_v61 = vld [vmem:[#allocation8 + $0x8] sm:$0xff]  ;;  %v6693_v17 = vld [vmem:[#allocation8 + $0xd80] sm:$0xff] }
 0x351   :  { %5273 = vst [vmem:[#allocation9 + $0x45c] sm:$0xff] %v5176_v3  ;;  %v5177_v20 = vpack.c.bf16 %v4789_v4, %v4789_v4  ;;  %v3632_v21 = vadd.f32 %v3488_v11, %v3196_v6  ;;  %v3197_v23 = vmul.f32 %v6674_v22, %v8600_v57  ;;  %v3198_v26 = vmul.f32 %v6675_v24, %v8600_v57  ;;  %v6692_v11 = vld [vmem:[#allocation8 + $0x10] sm:$0xff] }
 0x352   :  { %v4790_v27 = vadd.f32 %v4646_v25, %v4210_v12  ;;  %v4791_v28 = vadd.f32 %v4647_v2, %v4211_v13  ;;  %v3489_v30 = vmul.f32 %v6676_v29, %v8605_v14  ;;  %v3490_v32 = vmul.f32 %v6677_v31, %v8605_v14  ;;  %v6689_v25 = vld [vmem:[#allocation8 + $0x488] sm:$0xff]  ;;  %v6690_v2 = vld [vmem:[#allocation8 + $0x900] sm:$0xff]  ;;  %v6695_v22 = vld [vmem:[#allocation8 + $0x490] sm:$0xff] }
 0x353   :  { %5274 = vst [vmem:[#allocation9 + $0x464] sm:$0xf] %v5177_v20  ;;  %v4212_v33 = vadd.f32 %v4068_v16, %v3632_v21  ;;  %v4069_v35 = vmul.f32 %v6678_v34, %v8608_v62  ;;  %v4070_v37 = vmul.f32 %v6679_v36, %v8608_v62  ;;  %v4649_v39 = vmul.f32 %v6680_v38, %v8615_v9  ;;  %v6694_v20 = vld [vmem:[#allocation8 + $0xd88] sm:$0xff]  ;;  %v6696_v24 = vld [vmem:[#allocation8 + $0x910] sm:$0xff] }
 0x354   :  { %v5178_v40 = vpack.c.bf16 %v4791_v28, %v4790_v27  ;;  %v3633_v41 = vadd.f32 %v3489_v30, %v3197_v23  ;;  %v3634_v42 = vadd.f32 %v3490_v32, %v3198_v26  ;;  %v4650_v44 = vmul.f32 %v6681_v43, %v8615_v9  ;;  %v6697_v27 = vld [vmem:[#allocation8 + $0xd90] sm:$0xff]  ;;  %v6698_v32 = vld [vmem:[#allocation8 + $0x18] sm:$0xff] }
 0x355   :  { %v4792_v45 = vadd.f32 %v4648_v19, %v4212_v33  ;;  %v3199_v47 = vmul.f32 %v6682_v46, %v8600_v57  ;;  %v3491_v49 = vmul.f32 %v6683_v48, %v8605_v14  ;;  %v4071_v51 = vmul.f32 %v6684_v50, %v8608_v62  ;;  %v6702_v43 = vld [vmem:[#allocation8 + $0x918] sm:$0xff] }
 0x356   :  { %5275 = vst [vmem:[#allocation9 + $0x468] sm:$0xff] %v5178_v40  ;;  %v4213_v52 = vadd.f32 %v4069_v35, %v3633_v41  ;;  %v4214_v53 = vadd.f32 %v4070_v37, %v3634_v42  ;;  %v4651_v55 = vmul.f32 %v6685_v54, %v8615_v9  ;;  %v9196_v58 = vstv %s9171_s13  ;;  %v6688_v9 = vld [vmem:[#allocation8 + $0x480] sm:$0xff]  ;;  %v6700_v37 = vld [vmem:[#allocation8 + $0x498] sm:$0xff] }
 0x357   :  { %v5179_v59 = vpack.c.bf16 %v4792_v45, %v4792_v45  ;;  %v3635_v60 = vadd.f32 %v3491_v49, %v3199_v47  ;;  %v3202_v57 = vmul.f32 %v6686_v56, %v9196_v58  ;;  %v3203_v14 = vmul.f32 %v6687_v61, %v9196_v58  ;;  %v6699_v35 = vld [vmem:[#allocation8 + $0x20] sm:$0xff]  ;;  %v6704_v50 = vld [vmem:[#allocation8 + $0xd98] sm:$0xff] }
 0x358   :  { %v4793_v63 = vadd.f32 %v4649_v39, %v4213_v52  ;;  %v4794_v62 = vadd.f32 %v4650_v44, %v4214_v53  ;;  %v9201_v8 = vstv %s9175_s14  ;;  %v9204_v18 = vstv %s9179_s15  ;;  %v6701_v39 = vld [vmem:[#allocation8 + $0x4a0] sm:$0xff] }
 0x359   :  { %5276 = vst [vmem:[#allocation9 + $0x470] sm:$0xf] %v5179_v59  ;;  %v4215_v0 = vadd.f32 %v4071_v51, %v3635_v60  ;;  %v3638_v10 = vmul.f32 %v6688_v9, %v9201_v8  ;;  %v3639_v1 = vmul.f32 %v6689_v25, %v9201_v8  ;;  %v4218_v3 = vmul.f32 %v6690_v2, %v9204_v18  ;;  %v6703_v45 = vld [vmem:[#allocation8 + $0x920] sm:$0xff]  ;;  %v6707_v60 = vld [vmem:[#allocation8 + $0x4a8] sm:$0xff]  ;;  %v6710_v25 = vld [vmem:[#allocation8 + $0x30] sm:$0xff] }
 0x35a   :  { %v5180_v4 = vpack.c.bf16 %v4794_v62, %v4793_v63  ;;  %v4219_v6 = vmul.f32 %v6691_v5, %v9204_v18  ;;  %v9211_v7 = vstv %s9185_s16  ;;  %v3204_v12 = vmul.f32 %v6692_v11, %v9196_v58  ;;  %v6705_v53 = vld [vmem:[#allocation8 + $0xda0] sm:$0xff]  ;;  %v6708_v63 = vld [vmem:[#allocation8 + $0x928] sm:$0xff]  ;;  %v6711_v2 = vld [vmem:[#allocation8 + $0x38] sm:$0xff] }
 0x35b   :  { %v4795_v13 = vadd.f32 %v4651_v55, %v4215_v0  ;;  %v3782_v15 = vadd.f32 %v3638_v10, %v3202_v57  ;;  %v3783_v16 = vadd.f32 %v3639_v1, %v3203_v14  ;;  %v4798_v19 = vmul.f32 %v6693_v17, %v9211_v7  ;;  %v6706_v55 = vld [vmem:[#allocation8 + $0x28] sm:$0xff]  ;;  %v6712_v11 = vld [vmem:[#allocation8 + $0x4b0] sm:$0xff] }
 0x35c   :  { %5277 = vst [vmem:[#allocation9 + $0x474] sm:$0xff] %v5180_v4  ;;  %v4799_v21 = vmul.f32 %v6694_v20, %v9211_v7  ;;  %v3640_v23 = vmul.f32 %v6695_v22, %v9201_v8  ;;  %v4220_v26 = vmul.f32 %v6696_v24, %v9204_v18  ;;  %v4800_v28 = vmul.f32 %v6697_v27, %v9211_v7  ;;  %v6709_v9 = vld [vmem:[#allocation8 + $0xda8] sm:$0xff]  ;;  %v6714_v17 = vld [vmem:[#allocation8 + $0x930] sm:$0xff]  ;;  %v6715_v20 = vld [vmem:[#allocation8 + $0x938] sm:$0xff] }
 0x35d   :  { %v5181_v29 = vpack.c.bf16 %v4795_v13, %v4795_v13  ;;  %v4362_v30 = vadd.f32 %v4218_v3, %v3782_v15  ;;  %v4363_v31 = vadd.f32 %v4219_v6, %v3783_v16  ;;  %v3205_v33 = vmul.f32 %v6698_v32, %v9196_v58  ;;  %v6713_v15 = vld [vmem:[#allocation8 + $0x4b8] sm:$0xff]  ;;  %v6716_v24 = vld [vmem:[#allocation8 + $0xdb0] sm:$0xff] }
 0x35e   :  { %v3784_v34 = vadd.f32 %v3640_v23, %v3204_v12  ;;  %v3206_v36 = vmul.f32 %v6699_v35, %v9196_v58  ;;  %v3641_v38 = vmul.f32 %v6700_v37, %v9201_v8  ;;  %v3642_v40 = vmul.f32 %v6701_v39, %v9201_v8  ;;  %v6717_v27 = vld [vmem:[#allocation8 + $0xdb8] sm:$0xff] }
 0x35f   :  { %5278 = vst [vmem:[#allocation9 + $0x47c] sm:$0xf] %v5181_v29  ;;  %v4942_v41 = vadd.f32 %v4798_v19, %v4362_v30  ;;  %v4943_v42 = vadd.f32 %v4799_v21, %v4363_v31  ;;  %v4221_v44 = vmul.f32 %v6702_v43, %v9204_v18  ;;  %v4222_v46 = vmul.f32 %v6703_v45, %v9204_v18  ;;  %v6718_v31 = vld [vmem:[#allocation8 + $0x40] sm:$0xff]  ;;  %v6723_v45 = vld [vmem:[#allocation8 + $0x50] sm:$0xff] }
 0x360   :  { %v4364_v47 = vadd.f32 %v4220_v26, %v3784_v34  ;;  %v3785_v48 = vadd.f32 %v3641_v38, %v3205_v33  ;;  %v3786_v49 = vadd.f32 %v3642_v40, %v3206_v36  ;;  %v4801_v51 = vmul.f32 %v6704_v50, %v9211_v7  ;;  %v6719_v33 = vld [vmem:[#allocation8 + $0x4c0] sm:$0xff]  ;;  %v6722_v40 = vld [vmem:[#allocation8 + $0x48] sm:$0xff]  ;;  %v6725_v50 = vld [vmem:[#allocation8 + $0x4d0] sm:$0xff]  ;;  %5484 = dma.vmem_to_hbm [thread:$0]  %s5477_s18, 18432, %s5479_s21, [#allocation4], %s7374_s3, %s7374_s3, %s7375_s22  }
 0x361   :  { %v5279_v52 = vpack.c.bf16 %v4943_v42, %v4942_v41  ;;  %v4802_v54 = vmul.f32 %v6705_v53, %v9211_v7  ;;  %v3207_v59 = vmul.f32 %v6706_v55, %v9196_v58  ;;  %v3643_v56 = vmul.f32 %v6707_v60, %v9201_v8  ;;  %v6720_v36 = vld [vmem:[#allocation8 + $0x940] sm:$0xff] }
 0x362   :  { %v4944_v57 = vadd.f32 %v4800_v28, %v4364_v47  ;;  %v4365_v61 = vadd.f32 %v4221_v44, %v3785_v48  ;;  %v4366_v14 = vadd.f32 %v4222_v46, %v3786_v49  ;;  %v4223_v62 = vmul.f32 %v6708_v63, %v9204_v18  ;;  %v6721_v38 = vld [vmem:[#allocation8 + $0xdc0] sm:$0xff]  ;;  %v6724_v48 = vld [vmem:[#allocation8 + $0x4c8] sm:$0xff]  ;;  %v6729_v63 = vld [vmem:[#allocation8 + $0xdd0] sm:$0xff] }
 0x363   :  { %5376 = vst [vmem:[#allocation10 + $0x240] sm:$0xff] %v5279_v52  ;;  %v3787_v0 = vadd.f32 %v3643_v56, %v3207_v59  ;;  %v4803_v10 = vmul.f32 %v6709_v9, %v9211_v7  ;;  %v3208_v1 = vmul.f32 %v6710_v25, %v9196_v58  ;;  %v3209_v3 = vmul.f32 %v6711_v2, %v9196_v58  ;;  %v6726_v52 = vld [vmem:[#allocation8 + $0x948] sm:$0xff]  ;;  %v6727_v59 = vld [vmem:[#allocation8 + $0x950] sm:$0xff] }
 0x364   :  { %v5280_v4 = vpack.c.bf16 %v4944_v57, %v4944_v57  ;;  %v4945_v5 = vadd.f32 %v4801_v51, %v4365_v61  ;;  %v4946_v6 = vadd.f32 %v4802_v54, %v4366_v14  ;;  %v3644_v12 = vmul.f32 %v6712_v11, %v9201_v8  ;;  %v6728_v56 = vld [vmem:[#allocation8 + $0xdc8] sm:$0xff]  ;;  %v6733_v11 = vld [vmem:[#allocation8 + $0xdd8] sm:$0xff] }
 0x365   :  { %v4367_v13 = vadd.f32 %v4223_v62, %v3787_v0  ;;  %v3645_v16 = vmul.f32 %v6713_v15, %v9201_v8  ;;  %v4224_v19 = vmul.f32 %v6714_v17, %v9204_v18  ;;  %v4225_v21 = vmul.f32 %v6715_v20, %v9204_v18  ;;  %v6730_v0 = vld [vmem:[#allocation8 + $0x58] sm:$0xff] }
 0x366   :  { %5377 = vst [vmem:[#allocation10 + $0x248] sm:$0xf] %v5280_v4  ;;  %v5281_v22 = vpack.c.bf16 %v4946_v6, %v4945_v5  ;;  %v3788_v23 = vadd.f32 %v3644_v12, %v3208_v1  ;;  %v4804_v26 = vmul.f32 %v6716_v24, %v9211_v7  ;;  %v4805_v28 = vmul.f32 %v6717_v27, %v9211_v7  ;;  %v6731_v1 = vld [vmem:[#allocation8 + $0x4d8] sm:$0xff] }
 0x367   :  { %v4947_v29 = vadd.f32 %v4803_v10, %v4367_v13  ;;  %v3789_v30 = vadd.f32 %v3645_v16, %v3209_v3  ;;  %v3210_v32 = vmul.f32 %v6718_v31, %v9196_v58  ;;  %v3646_v34 = vmul.f32 %v6719_v33, %v9201_v8  ;;  %v6732_v3 = vld [vmem:[#allocation8 + $0x958] sm:$0xff]  ;;  %v6734_v13 = vld [vmem:[#allocation8 + $0x60] sm:$0xff] }
 0x368   :  { %5378 = vst [vmem:[#allocation10 + $0x24c] sm:$0xff] %v5281_v22  ;;  %v4368_v35 = vadd.f32 %v4224_v19, %v3788_v23  ;;  %v4226_v37 = vmul.f32 %v6720_v36, %v9204_v18  ;;  %v4806_v39 = vmul.f32 %v6721_v38, %v9211_v7  ;;  %v3211_v41 = vmul.f32 %v6722_v40, %v9196_v58  ;;  %v6735_v19 = vld [vmem:[#allocation8 + $0x68] sm:$0xff]  ;;  %v6742_v40 = vld [vmem:[#allocation8 + $0x70] sm:$0xff] }
 0x369   :  { %v5282_v42 = vpack.c.bf16 %v4947_v29, %v4947_v29  ;;  %v4369_v43 = vadd.f32 %v4225_v21, %v3789_v30  ;;  %v3790_v44 = vadd.f32 %v3646_v34, %v3210_v32  ;;  %v3212_v46 = vmul.f32 %v6723_v45, %v9196_v58  ;;  %v6736_v21 = vld [vmem:[#allocation8 + $0x4e0] sm:$0xff]  ;;  %v6739_v32 = vld [vmem:[#allocation8 + $0x968] sm:$0xff] }
 0x36a   :  { %v4948_v47 = vadd.f32 %v4804_v26, %v4368_v35  ;;  %v3647_v49 = vmul.f32 %v6724_v48, %v9201_v8  ;;  %v3648_v51 = vmul.f32 %v6725_v50, %v9201_v8  ;;  %v4227_v53 = vmul.f32 %v6726_v52, %v9204_v18  ;;  %v6737_v26 = vld [vmem:[#allocation8 + $0x4e8] sm:$0xff]  ;;  %v6740_v34 = vld [vmem:[#allocation8 + $0xde0] sm:$0xff] }
 0x36b   :  { %5379 = vst [vmem:[#allocation10 + $0x254] sm:$0xf] %v5282_v42  ;;  %v4949_v54 = vadd.f32 %v4805_v28, %v4369_v43  ;;  %v4370_v55 = vadd.f32 %v4226_v37, %v3790_v44  ;;  %v4228_v60 = vmul.f32 %v6727_v59, %v9204_v18  ;;  %v4807_v57 = vmul.f32 %v6728_v56, %v9211_v7  ;;  %v6738_v28 = vld [vmem:[#allocation8 + $0x960] sm:$0xff]  ;;  %v6741_v38 = vld [vmem:[#allocation8 + $0xde8] sm:$0xff]  ;;  %v6743_v44 = vld [vmem:[#allocation8 + $0x4f0] sm:$0xff] }
 0x36c   :  { %v3791_v61 = vadd.f32 %v3647_v49, %v3211_v41  ;;  %v3792_v14 = vadd.f32 %v3648_v51, %v3212_v46  ;;  %v4808_v62 = vmul.f32 %v6729_v63, %v9211_v7  ;;  %v3213_v9 = vmul.f32 %v6730_v0, %v9196_v58  ;;  %v6744_v46 = vld [vmem:[#allocation8 + $0x970] sm:$0xff]  ;;  %v6746_v51 = vld [vmem:[#allocation8 + $0x78] sm:$0xff] }
 0x36d   :  { %v5283_v10 = vpack.c.bf16 %v4949_v54, %v4948_v47  ;;  %v4950_v25 = vadd.f32 %v4806_v39, %v4370_v55  ;;  %v3649_v2 = vmul.f32 %v6731_v1, %v9201_v8  ;;  %v4229_v4 = vmul.f32 %v6732_v3, %v9204_v18  ;;  %v6745_v49 = vld [vmem:[#allocation8 + $0xdf0] sm:$0xff]  ;;  %v6748_v56 = vld [vmem:[#allocation8 + $0x4f8] sm:$0xff] }
 0x36e   :  { %v4371_v5 = vadd.f32 %v4227_v53, %v3791_v61  ;;  %v4372_v6 = vadd.f32 %v4228_v60, %v3792_v14  ;;  %v4809_v12 = vmul.f32 %v6733_v11, %v9211_v7  ;;  %v3214_v15 = vmul.f32 %v6734_v13, %v9196_v58  ;;  %v6747_v53 = vld [vmem:[#allocation8 + $0x80] sm:$0xff] }
 0x36f   :  { %5380 = vst [vmem:[#allocation10 + $0x258] sm:$0xff] %v5283_v10  ;;  %v5284_v16 = vpack.c.bf16 %v4950_v25, %v4950_v25  ;;  %v3793_v17 = vadd.f32 %v3649_v2, %v3213_v9  ;;  %v3215_v20 = vmul.f32 %v6735_v19, %v9196_v58  ;;  %v3650_v22 = vmul.f32 %v6736_v21, %v9201_v8  ;;  %v6749_v14 = vld [vmem:[#allocation8 + $0x500] sm:$0xff]  ;;  %v6752_v2 = vld [vmem:[#allocation8 + $0xdf8] sm:$0xff] }
 0x370   :  { %v4951_v23 = vadd.f32 %v4807_v57, %v4371_v5  ;;  %v4952_v24 = vadd.f32 %v4808_v62, %v4372_v6  ;;  %v3651_v27 = vmul.f32 %v6737_v26, %v9201_v8  ;;  %v4230_v29 = vmul.f32 %v6738_v28, %v9204_v18  ;;  %v6750_v62 = vld [vmem:[#allocation8 + $0x978] sm:$0xff]  ;;  %v6751_v9 = vld [vmem:[#allocation8 + $0x980] sm:$0xff] }
 0x371   :  { %5381 = vst [vmem:[#allocation10 + $0x260] sm:$0xf] %v5284_v16  ;;  %v4373_v30 = vadd.f32 %v4229_v4, %v3793_v17  ;;  %v3794_v31 = vadd.f32 %v3650_v22, %v3214_v15  ;;  %v4231_v33 = vmul.f32 %v6739_v32, %v9204_v18  ;;  %v4810_v35 = vmul.f32 %v6740_v34, %v9211_v7  ;;  %v6753_v4 = vld [vmem:[#allocation8 + $0xe00] sm:$0xff]  ;;  %v6755_v15 = vld [vmem:[#allocation8 + $0x508] sm:$0xff] }
 0x372   :  { %v5285_v36 = vpack.c.bf16 %v4952_v24, %v4951_v23  ;;  %v3795_v37 = vadd.f32 %v3651_v27, %v3215_v20  ;;  %v4811_v39 = vmul.f32 %v6741_v38, %v9211_v7  ;;  %v3216_v41 = vmul.f32 %v6742_v40, %v9196_v58  ;;  %v6756_v20 = vld [vmem:[#allocation8 + $0x988] sm:$0xff]  ;;  %v6758_v27 = vld [vmem:[#allocation8 + $0x90] sm:$0xff] }
 0x373   :  { %v4953_v42 = vadd.f32 %v4809_v12, %v4373_v30  ;;  %v4374_v43 = vadd.f32 %v4230_v29, %v3794_v31  ;;  %v3652_v45 = vmul.f32 %v6743_v44, %v9201_v8  ;;  %v4232_v47 = vmul.f32 %v6744_v46, %v9204_v18  ;;  %v6754_v12 = vld [vmem:[#allocation8 + $0x88] sm:$0xff]  ;;  %v6759_v29 = vld [vmem:[#allocation8 + $0x98] sm:$0xff] }
 0x374   :  { %5382 = vst [vmem:[#allocation10 + $0x264] sm:$0xff] %v5285_v36  ;;  %v4375_v48 = vadd.f32 %v4231_v33, %v3795_v37  ;;  %v4812_v50 = vmul.f32 %v6745_v49, %v9211_v7  ;;  %v3217_v52 = vmul.f32 %v6746_v51, %v9196_v58  ;;  %v3218_v54 = vmul.f32 %v6747_v53, %v9196_v58  ;;  %v6757_v22 = vld [vmem:[#allocation8 + $0xe08] sm:$0xff]  ;;  %v6760_v33 = vld [vmem:[#allocation8 + $0x510] sm:$0xff]  ;;  %v6766_v51 = vld [vmem:[#allocation8 + $0xa0] sm:$0xff] }
 0x375   :  { %v5286_v55 = vpack.c.bf16 %v4953_v42, %v4953_v42  ;;  %v4954_v59 = vadd.f32 %v4810_v35, %v4374_v43  ;;  %v3796_v60 = vadd.f32 %v3652_v45, %v3216_v41  ;;  %v3653_v57 = vmul.f32 %v6748_v56, %v9201_v8  ;;  %v6761_v35 = vld [vmem:[#allocation8 + $0x518] sm:$0xff]  ;;  %v6764_v45 = vld [vmem:[#allocation8 + $0xe10] sm:$0xff]  ;;  %v6767_v53 = vld [vmem:[#allocation8 + $0x520] sm:$0xff] }
 0x376   :  { %v4955_v61 = vadd.f32 %v4811_v39, %v4375_v48  ;;  %v3654_v63 = vmul.f32 %v6749_v14, %v9201_v8  ;;  %v4233_v0 = vmul.f32 %v6750_v62, %v9204_v18  ;;  %v4234_v10 = vmul.f32 %v6751_v9, %v9204_v18  ;;  %v6762_v39 = vld [vmem:[#allocation8 + $0x990] sm:$0xff]  ;;  %v6763_v41 = vld [vmem:[#allocation8 + $0x998] sm:$0xff]  ;;  %v6770_v62 = vld [vmem:[#allocation8 + $0xa8] sm:$0xff] }
 0x377   :  { %5383 = vst [vmem:[#allocation10 + $0x26c] sm:$0xf] %v5286_v55  ;;  %v4376_v25 = vadd.f32 %v4232_v47, %v3796_v60  ;;  %v3797_v1 = vadd.f32 %v3653_v57, %v3217_v52  ;;  %v4813_v3 = vmul.f32 %v6752_v2, %v9211_v7  ;;  %v4814_v5 = vmul.f32 %v6753_v4, %v9211_v7  ;;  %v6765_v47 = vld [vmem:[#allocation8 + $0xe18] sm:$0xff]  ;;  %v6768_v60 = vld [vmem:[#allocation8 + $0x9a0] sm:$0xff]  ;;  %v6771_v9 = vld [vmem:[#allocation8 + $0xb0] sm:$0xff] }
 0x378   :  { %v5287_v6 = vpack.c.bf16 %v4955_v61, %v4954_v59  ;;  %v3798_v11 = vadd.f32 %v3654_v63, %v3218_v54  ;;  %v3219_v13 = vmul.f32 %v6754_v12, %v9196_v58  ;;  %v3655_v16 = vmul.f32 %v6755_v15, %v9201_v8  ;;  %v6769_v57 = vld [vmem:[#allocation8 + $0xe20] sm:$0xff]  ;;  %v6772_v2 = vld [vmem:[#allocation8 + $0x528] sm:$0xff]  ;;  %v6773_v4 = vld [vmem:[#allocation8 + $0x530] sm:$0xff] }
 0x379   :  { %v4956_v17 = vadd.f32 %v4812_v50, %v4376_v25  ;;  %v4377_v19 = vadd.f32 %v4233_v0, %v3797_v1  ;;  %v4235_v21 = vmul.f32 %v6756_v20, %v9204_v18  ;;  %v4815_v23 = vmul.f32 %v6757_v22, %v9211_v7  ;;  %v6777_v22 = vld [vmem:[#allocation8 + $0xe30] sm:$0xff] }
 0x37a   :  { %5384 = vst [vmem:[#allocation10 + $0x270] sm:$0xff] %v5287_v6  ;;  %v4378_v24 = vadd.f32 %v4234_v10, %v3798_v11  ;;  %v3799_v26 = vadd.f32 %v3655_v16, %v3219_v13  ;;  %v3220_v28 = vmul.f32 %v6758_v27, %v9196_v58  ;;  %v3221_v30 = vmul.f32 %v6759_v29, %v9196_v58  ;;  %v6774_v11 = vld [vmem:[#allocation8 + $0x9a8] sm:$0xff]  ;;  %v6775_v13 = vld [vmem:[#allocation8 + $0x9b0] sm:$0xff] }
 0x37b   :  { %v5288_v31 = vpack.c.bf16 %v4956_v17, %v4956_v17  ;;  %v4957_v32 = vadd.f32 %v4813_v3, %v4377_v19  ;;  %v3656_v34 = vmul.f32 %v6760_v33, %v9201_v8  ;;  %v3657_v36 = vmul.f32 %v6761_v35, %v9201_v8  ;;  %v6776_v16 = vld [vmem:[#allocation8 + $0xe28] sm:$0xff] }
 0x37c   :  { %v4958_v37 = vadd.f32 %v4814_v5, %v4378_v24  ;;  %v4379_v38 = vadd.f32 %v4235_v21, %v3799_v26  ;;  %v4236_v40 = vmul.f32 %v6762_v39, %v9204_v18  ;;  %v4237_v42 = vmul.f32 %v6763_v41, %v9204_v18  ;;  %v6778_v26 = vld [vmem:[#allocation8 + $0xb8] sm:$0xff] }
 0x37d   :  { %5385 = vst [vmem:[#allocation10 + $0x278] sm:$0xf] %v5288_v31  ;;  %v3800_v43 = vadd.f32 %v3656_v34, %v3220_v28  ;;  %v3801_v44 = vadd.f32 %v3657_v36, %v3221_v30  ;;  %v4816_v46 = vmul.f32 %v6764_v45, %v9211_v7  ;;  %v4817_v48 = vmul.f32 %v6765_v47, %v9211_v7  ;;  %v6779_v28 = vld [vmem:[#allocation8 + $0x538] sm:$0xff]  ;;  %v6782_v36 = vld [vmem:[#allocation8 + $0xc0] sm:$0xff] }
 0x37e   :  { %v5289_v49 = vpack.c.bf16 %v4958_v37, %v4957_v32  ;;  %v4959_v50 = vadd.f32 %v4815_v23, %v4379_v38  ;;  %v3222_v52 = vmul.f32 %v6766_v51, %v9196_v58  ;;  %v3658_v54 = vmul.f32 %v6767_v53, %v9201_v8  ;;  %v6780_v30 = vld [vmem:[#allocation8 + $0x9b8] sm:$0xff] }
 0x37f   :  { %v4380_v55 = vadd.f32 %v4236_v40, %v3800_v43  ;;  %v4381_v59 = vadd.f32 %v4237_v42, %v3801_v44  ;;  %v4238_v56 = vmul.f32 %v6768_v60, %v9204_v18  ;;  %v4818_v61 = vmul.f32 %v6769_v57, %v9211_v7  ;;  %v6781_v34 = vld [vmem:[#allocation8 + $0xe38] sm:$0xff]  ;;  %v6783_v40 = vld [vmem:[#allocation8 + $0xc8] sm:$0xff]  ;;  %v6784_v42 = vld [vmem:[#allocation8 + $0x540] sm:$0xff] }
 0x380   :  { %5386 = vst [vmem:[#allocation10 + $0x27c] sm:$0xff] %v5289_v49  ;;  %v5290_v14 = vpack.c.bf16 %v4959_v50, %v4959_v50  ;;  %v3802_v63 = vadd.f32 %v3658_v54, %v3222_v52  ;;  %v3223_v0 = vmul.f32 %v6770_v62, %v9196_v58  ;;  %v3224_v10 = vmul.f32 %v6771_v9, %v9196_v58  ;;  %v6787_v52 = vld [vmem:[#allocation8 + $0x9c8] sm:$0xff]  ;;  %v6788_v54 = vld [vmem:[#allocation8 + $0xe40] sm:$0xff] }
 0x381   :  { %v4960_v25 = vadd.f32 %v4816_v46, %v4380_v55  ;;  %v4961_v1 = vadd.f32 %v4817_v48, %v4381_v59  ;;  %v3659_v3 = vmul.f32 %v6772_v2, %v9201_v8  ;;  %v3660_v5 = vmul.f32 %v6773_v4, %v9201_v8  ;;  %v6785_v46 = vld [vmem:[#allocation8 + $0x548] sm:$0xff]  ;;  %v6786_v48 = vld [vmem:[#allocation8 + $0x9c0] sm:$0xff]  ;;  %v6793_v2 = vld [vmem:[#allocation8 + $0xe50] sm:$0xff] }
 0x382   :  { %5387 = vst [vmem:[#allocation10 + $0x284] sm:$0xf] %v5290_v14  ;;  %v4382_v6 = vadd.f32 %v4238_v56, %v3802_v63  ;;  %v4239_v12 = vmul.f32 %v6774_v11, %v9204_v18  ;;  %v4240_v15 = vmul.f32 %v6775_v13, %v9204_v18  ;;  %v4819_v17 = vmul.f32 %v6776_v16, %v9211_v7  ;;  %v6789_v56 = vld [vmem:[#allocation8 + $0xe48] sm:$0xff]  ;;  %v6794_v4 = vld [vmem:[#allocation8 + $0xd8] sm:$0xff] }
 0x383   :  { %v5291_v19 = vpack.c.bf16 %v4961_v1, %v4960_v25  ;;  %v3803_v20 = vadd.f32 %v3659_v3, %v3223_v0  ;;  %v3804_v21 = vadd.f32 %v3660_v5, %v3224_v10  ;;  %v4820_v23 = vmul.f32 %v6777_v22, %v9211_v7  ;;  %v6791_v0 = vld [vmem:[#allocation8 + $0x550] sm:$0xff]  ;;  %v6796_v16 = vld [vmem:[#allocation8 + $0x558] sm:$0xff] }
 0x384   :  { %v4962_v24 = vadd.f32 %v4818_v61, %v4382_v6  ;;  %v3225_v27 = vmul.f32 %v6778_v26, %v9196_v58  ;;  %v3661_v29 = vmul.f32 %v6779_v28, %v9201_v8  ;;  %v4241_v31 = vmul.f32 %v6780_v30, %v9204_v18  ;;  %v6790_v61 = vld [vmem:[#allocation8 + $0xd0] sm:$0xff]  ;;  %v6795_v6 = vld [vmem:[#allocation8 + $0xe0] sm:$0xff]  ;;  %v6798_v22 = vld [vmem:[#allocation8 + $0x9d8] sm:$0xff] }
 0x385   :  { %5388 = vst [vmem:[#allocation10 + $0x288] sm:$0xff] %v5291_v19  ;;  %v4383_v32 = vadd.f32 %v4239_v12, %v3803_v20  ;;  %v4384_v33 = vadd.f32 %v4240_v15, %v3804_v21  ;;  %v4821_v35 = vmul.f32 %v6781_v34, %v9211_v7  ;;  %v3226_v37 = vmul.f32 %v6782_v36, %v9196_v58  ;;  %v6792_v10 = vld [vmem:[#allocation8 + $0x9d0] sm:$0xff]  ;;  %v6797_v20 = vld [vmem:[#allocation8 + $0x560] sm:$0xff] }
 0x386   :  { %v5292_v38 = vpack.c.bf16 %v4962_v24, %v4962_v24  ;;  %v3805_v39 = vadd.f32 %v3661_v29, %v3225_v27  ;;  %v3227_v41 = vmul.f32 %v6783_v40, %v9196_v58  ;;  %v3662_v43 = vmul.f32 %v6784_v42, %v9201_v8  ;;  %v6799_v24 = vld [vmem:[#allocation8 + $0x9e0] sm:$0xff]  ;;  %v6800_v29 = vld [vmem:[#allocation8 + $0xe58] sm:$0xff] }
 0x387   :  { %v4963_v44 = vadd.f32 %v4819_v17, %v4383_v32  ;;  %v4964_v45 = vadd.f32 %v4820_v23, %v4384_v33  ;;  %v3663_v47 = vmul.f32 %v6785_v46, %v9201_v8  ;;  %v4242_v49 = vmul.f32 %v6786_v48, %v9204_v18 }
 0x388   :  { %5389 = vst [vmem:[#allocation10 + $0x290] sm:$0xf] %v5292_v38  ;;  %v4385_v50 = vadd.f32 %v4241_v31, %v3805_v39  ;;  %v3806_v51 = vadd.f32 %v3662_v43, %v3226_v37  ;;  %v4243_v53 = vmul.f32 %v6787_v52, %v9204_v18  ;;  %v4822_v55 = vmul.f32 %v6788_v54, %v9211_v7  ;;  %v6801_v31 = vld [vmem:[#allocation8 + $0xe60] sm:$0xff]  ;;  %v6803_v37 = vld [vmem:[#allocation8 + $0x568] sm:$0xff] }
 0x389   :  { %v5293_v59 = vpack.c.bf16 %v4964_v45, %v4963_v44  ;;  %v3807_v60 = vadd.f32 %v3663_v47, %v3227_v41  ;;  %v4823_v57 = vmul.f32 %v6789_v56, %v9211_v7  ;;  %v3228_v14 = vmul.f32 %v6790_v61, %v9196_v58  ;;  %v6804_v41 = vld [vmem:[#allocation8 + $0x9e8] sm:$0xff]  ;;  %v6806_v47 = vld [vmem:[#allocation8 + $0xf0] sm:$0xff] }
 0x38a   :  { %v4965_v63 = vadd.f32 %v4821_v35, %v4385_v50  ;;  %v4386_v62 = vadd.f32 %v4242_v49, %v3806_v51  ;;  %v3664_v9 = vmul.f32 %v6791_v0, %v9201_v8  ;;  %v4244_v25 = vmul.f32 %v6792_v10, %v9204_v18  ;;  %v6802_v35 = vld [vmem:[#allocation8 + $0xe8] sm:$0xff]  ;;  %v6807_v49 = vld [vmem:[#allocation8 + $0xf8] sm:$0xff] }
 0x38b   :  { %5390 = vst [vmem:[#allocation10 + $0x294] sm:$0xff] %v5293_v59  ;;  %v4387_v1 = vadd.f32 %v4243_v53, %v3807_v60  ;;  %v4824_v3 = vmul.f32 %v6793_v2, %v9211_v7  ;;  %v3229_v5 = vmul.f32 %v6794_v4, %v9196_v58  ;;  %v3230_v11 = vmul.f32 %v6795_v6, %v9196_v58  ;;  %v6805_v43 = vld [vmem:[#allocation8 + $0xe68] sm:$0xff]  ;;  %v6808_v53 = vld [vmem:[#allocation8 + $0x570] sm:$0xff]  ;;  %v6814_v4 = vld [vmem:[#allocation8 + $0x100] sm:$0xff] }
 0x38c   :  { %v5294_v12 = vpack.c.bf16 %v4965_v63, %v4965_v63  ;;  %v4966_v13 = vadd.f32 %v4822_v55, %v4386_v62  ;;  %v3808_v15 = vadd.f32 %v3664_v9, %v3228_v14  ;;  %v3665_v17 = vmul.f32 %v6796_v16, %v9201_v8  ;;  %v6809_v55 = vld [vmem:[#allocation8 + $0x578] sm:$0xff]  ;;  %v6812_v9 = vld [vmem:[#allocation8 + $0xe70] sm:$0xff]  ;;  %v6815_v6 = vld [vmem:[#allocation8 + $0x580] sm:$0xff] }
 0x38d   :  { %v4967_v19 = vadd.f32 %v4823_v57, %v4387_v1  ;;  %v3666_v21 = vmul.f32 %v6797_v20, %v9201_v8  ;;  %v4245_v23 = vmul.f32 %v6798_v22, %v9204_v18  ;;  %v4246_v26 = vmul.f32 %v6799_v24, %v9204_v18  ;;  %v6810_v57 = vld [vmem:[#allocation8 + $0x9f0] sm:$0xff]  ;;  %v6811_v14 = vld [vmem:[#allocation8 + $0x9f8] sm:$0xff]  ;;  %v6818_v22 = vld [vmem:[#allocation8 + $0x108] sm:$0xff] }
 0x38e   :  { %5391 = vst [vmem:[#allocation10 + $0x29c] sm:$0xf] %v5294_v12  ;;  %v4388_v27 = vadd.f32 %v4244_v25, %v3808_v15  ;;  %v3809_v28 = vadd.f32 %v3665_v17, %v3229_v5  ;;  %v4825_v30 = vmul.f32 %v6800_v29, %v9211_v7  ;;  %v4826_v32 = vmul.f32 %v6801_v31, %v9211_v7  ;;  %v6813_v25 = vld [vmem:[#allocation8 + $0xe78] sm:$0xff]  ;;  %v6816_v15 = vld [vmem:[#allocation8 + $0xa00] sm:$0xff]  ;;  %v6819_v24 = vld [vmem:[#allocation8 + $0x110] sm:$0xff] }
 0x38f   :  { %v5295_v33 = vpack.c.bf16 %v4967_v19, %v4966_v13  ;;  %v3810_v34 = vadd.f32 %v3666_v21, %v3230_v11  ;;  %v3231_v36 = vmul.f32 %v6802_v35, %v9196_v58  ;;  %v3667_v38 = vmul.f32 %v6803_v37, %v9201_v8  ;;  %v6817_v17 = vld [vmem:[#allocation8 + $0xe80] sm:$0xff]  ;;  %v6820_v29 = vld [vmem:[#allocation8 + $0x588] sm:$0xff]  ;;  %v6821_v31 = vld [vmem:[#allocation8 + $0x590] sm:$0xff] }
 0x390   :  { %v4968_v39 = vadd.f32 %v4824_v3, %v4388_v27  ;;  %v4389_v40 = vadd.f32 %v4245_v23, %v3809_v28  ;;  %v4247_v42 = vmul.f32 %v6804_v41, %v9204_v18  ;;  %v4827_v44 = vmul.f32 %v6805_v43, %v9211_v7  ;;  %v6825_v43 = vld [vmem:[#allocation8 + $0xe90] sm:$0xff] }
 0x391   :  { %5392 = vst [vmem:[#allocation10 + $0x2a0] sm:$0xff] %v5295_v33  ;;  %v4390_v45 = vadd.f32 %v4246_v26, %v3810_v34  ;;  %v3811_v46 = vadd.f32 %v3667_v38, %v3231_v36  ;;  %v3232_v48 = vmul.f32 %v6806_v47, %v9196_v58  ;;  %v3233_v50 = vmul.f32 %v6807_v49, %v9196_v58  ;;  %v6822_v34 = vld [vmem:[#allocation8 + $0xa08] sm:$0xff]  ;;  %v6823_v36 = vld [vmem:[#allocation8 + $0xa10] sm:$0xff] }
 0x392   :  { %v5296_v51 = vpack.c.bf16 %v4968_v39, %v4968_v39  ;;  %v4969_v52 = vadd.f32 %v4825_v30, %v4389_v40  ;;  %v3668_v54 = vmul.f32 %v6808_v53, %v9201_v8  ;;  %v3669_v59 = vmul.f32 %v6809_v55, %v9201_v8  ;;  %v6824_v38 = vld [vmem:[#allocation8 + $0xe88] sm:$0xff] }
 0x393   :  { %v4970_v60 = vadd.f32 %v4826_v32, %v4390_v45  ;;  %v4391_v56 = vadd.f32 %v4247_v42, %v3811_v46  ;;  %v4248_v61 = vmul.f32 %v6810_v57, %v9204_v18  ;;  %v4249_v63 = vmul.f32 %v6811_v14, %v9204_v18  ;;  %v6826_v46 = vld [vmem:[#allocation8 + $0x118] sm:$0xff] }
 0x394   :  { %5393 = vst [vmem:[#allocation10 + $0x2a8] sm:$0xf] %v5296_v51  ;;  %v3812_v62 = vadd.f32 %v3668_v54, %v3232_v48  ;;  %v3813_v0 = vadd.f32 %v3669_v59, %v3233_v50  ;;  %v4828_v10 = vmul.f32 %v6812_v9, %v9211_v7  ;;  %v4829_v1 = vmul.f32 %v6813_v25, %v9211_v7  ;;  %v6827_v48 = vld [vmem:[#allocation8 + $0x598] sm:$0xff]  ;;  %v6830_v59 = vld [vmem:[#allocation8 + $0x120] sm:$0xff] }
 0x395   :  { %v5297_v2 = vpack.c.bf16 %v4970_v60, %v4969_v52  ;;  %v4971_v3 = vadd.f32 %v4827_v44, %v4391_v56  ;;  %v3234_v5 = vmul.f32 %v6814_v4, %v9196_v58  ;;  %v3670_v11 = vmul.f32 %v6815_v6, %v9201_v8  ;;  %v6828_v50 = vld [vmem:[#allocation8 + $0xa18] sm:$0xff] }
 0x396   :  { %v4392_v12 = vadd.f32 %v4248_v61, %v3812_v62  ;;  %v4393_v13 = vadd.f32 %v4249_v63, %v3813_v0  ;;  %v4250_v16 = vmul.f32 %v6816_v15, %v9204_v18  ;;  %v4830_v19 = vmul.f32 %v6817_v17, %v9211_v7  ;;  %v6829_v54 = vld [vmem:[#allocation8 + $0xe98] sm:$0xff]  ;;  %v6831_v61 = vld [vmem:[#allocation8 + $0x128] sm:$0xff]  ;;  %v6832_v63 = vld [vmem:[#allocation8 + $0x5a0] sm:$0xff] }
 0x397   :  { %5394 = vst [vmem:[#allocation10 + $0x2ac] sm:$0xff] %v5297_v2  ;;  %v5298_v20 = vpack.c.bf16 %v4971_v3, %v4971_v3  ;;  %v3814_v21 = vadd.f32 %v3670_v11, %v3234_v5  ;;  %v3235_v23 = vmul.f32 %v6818_v22, %v9196_v58  ;;  %v3236_v26 = vmul.f32 %v6819_v24, %v9196_v58  ;;  %v6835_v5 = vld [vmem:[#allocation8 + $0xa28] sm:$0xff]  ;;  %v6836_v11 = vld [vmem:[#allocation8 + $0xea0] sm:$0xff] }
 0x398   :  { %v4972_v27 = vadd.f32 %v4828_v10, %v4392_v12  ;;  %v4973_v28 = vadd.f32 %v4829_v1, %v4393_v13  ;;  %v3671_v30 = vmul.f32 %v6820_v29, %v9201_v8  ;;  %v3672_v32 = vmul.f32 %v6821_v31, %v9201_v8  ;;  %v6833_v10 = vld [vmem:[#allocation8 + $0x5a8] sm:$0xff]  ;;  %v6834_v1 = vld [vmem:[#allocation8 + $0xa20] sm:$0xff]  ;;  %v6841_v29 = vld [vmem:[#allocation8 + $0xeb0] sm:$0xff] }
 0x399   :  { %5395 = vst [vmem:[#allocation10 + $0x2b4] sm:$0xf] %v5298_v20  ;;  %v4394_v33 = vadd.f32 %v4250_v16, %v3814_v21  ;;  %v4251_v35 = vmul.f32 %v6822_v34, %v9204_v18  ;;  %v4252_v37 = vmul.f32 %v6823_v36, %v9204_v18  ;;  %v4831_v39 = vmul.f32 %v6824_v38, %v9211_v7  ;;  %v6837_v16 = vld [vmem:[#allocation8 + $0xea8] sm:$0xff]  ;;  %v6842_v31 = vld [vmem:[#allocation8 + $0x138] sm:$0xff] }
 0x39a   :  { %v5299_v40 = vpack.c.bf16 %v4973_v28, %v4972_v27  ;;  %v3815_v41 = vadd.f32 %v3671_v30, %v3235_v23  ;;  %v3816_v42 = vadd.f32 %v3672_v32, %v3236_v26  ;;  %v4832_v44 = vmul.f32 %v6825_v43, %v9211_v7  ;;  %v6839_v23 = vld [vmem:[#allocation8 + $0x5b0] sm:$0xff]  ;;  %v6844_v38 = vld [vmem:[#allocation8 + $0x5b8] sm:$0xff] }
 0x39b   :  { %v4974_v45 = vadd.f32 %v4830_v19, %v4394_v33  ;;  %v3237_v47 = vmul.f32 %v6826_v46, %v9196_v58  ;;  %v3673_v49 = vmul.f32 %v6827_v48, %v9201_v8  ;;  %v4253_v51 = vmul.f32 %v6828_v50, %v9204_v18  ;;  %v6838_v19 = vld [vmem:[#allocation8 + $0x130] sm:$0xff]  ;;  %v6843_v33 = vld [vmem:[#allocation8 + $0x140] sm:$0xff]  ;;  %v6846_v43 = vld [vmem:[#allocation8 + $0xa38] sm:$0xff] }
 0x39c   :  { %5396 = vst [vmem:[#allocation10 + $0x2b8] sm:$0xff] %v5299_v40  ;;  %v4395_v52 = vadd.f32 %v4251_v35, %v3815_v41  ;;  %v4396_v53 = vadd.f32 %v4252_v37, %v3816_v42  ;;  %v4833_v55 = vmul.f32 %v6829_v54, %v9211_v7  ;;  %v3238_v60 = vmul.f32 %v6830_v59, %v9196_v58  ;;  %v6840_v26 = vld [vmem:[#allocation8 + $0xa30] sm:$0xff]  ;;  %v6845_v41 = vld [vmem:[#allocation8 + $0x5c0] sm:$0xff] }
 0x39d   :  { %v5300_v56 = vpack.c.bf16 %v4974_v45, %v4974_v45  ;;  %v3817_v57 = vadd.f32 %v3673_v49, %v3237_v47  ;;  %v3239_v14 = vmul.f32 %v6831_v61, %v9196_v58  ;;  %v3674_v62 = vmul.f32 %v6832_v63, %v9201_v8  ;;  %v6847_v45 = vld [vmem:[#allocation8 + $0xa40] sm:$0xff]  ;;  %v6848_v49 = vld [vmem:[#allocation8 + $0xeb8] sm:$0xff] }
 0x39e   :  { %v4975_v0 = vadd.f32 %v4831_v39, %v4395_v52  ;;  %v4976_v9 = vadd.f32 %v4832_v44, %v4396_v53  ;;  %v3675_v25 = vmul.f32 %v6833_v10, %v9201_v8  ;;  %v4254_v2 = vmul.f32 %v6834_v1, %v9204_v18 }
 0x39f   :  { %5397 = vst [vmem:[#allocation10 + $0x2c0] sm:$0xf] %v5300_v56  ;;  %v4397_v3 = vadd.f32 %v4253_v51, %v3817_v57  ;;  %v3818_v4 = vadd.f32 %v3674_v62, %v3238_v60  ;;  %v4255_v6 = vmul.f32 %v6835_v5, %v9204_v18  ;;  %v4834_v12 = vmul.f32 %v6836_v11, %v9211_v7  ;;  %v6849_v51 = vld [vmem:[#allocation8 + $0xec0] sm:$0xff]  ;;  %v6851_v60 = vld [vmem:[#allocation8 + $0x5c8] sm:$0xff] }
 0x3a0   :  { %v5301_v13 = vpack.c.bf16 %v4976_v9, %v4975_v0  ;;  %v3819_v15 = vadd.f32 %v3675_v25, %v3239_v14  ;;  %v4835_v17 = vmul.f32 %v6837_v16, %v9211_v7  ;;  %v3240_v20 = vmul.f32 %v6838_v19, %v9196_v58  ;;  %v6852_v14 = vld [vmem:[#allocation8 + $0xa48] sm:$0xff]  ;;  %v6854_v25 = vld [vmem:[#allocation8 + $0x150] sm:$0xff] }
 0x3a1   :  { %v4977_v21 = vadd.f32 %v4833_v55, %v4397_v3  ;;  %v4398_v22 = vadd.f32 %v4254_v2, %v3818_v4  ;;  %v3676_v24 = vmul.f32 %v6839_v23, %v9201_v8  ;;  %v4256_v27 = vmul.f32 %v6840_v26, %v9204_v18  ;;  %v6850_v55 = vld [vmem:[#allocation8 + $0x148] sm:$0xff]  ;;  %v6855_v2 = vld [vmem:[#allocation8 + $0x158] sm:$0xff] }
 0x3a2   :  { %5398 = vst [vmem:[#allocation10 + $0x2c4] sm:$0xff] %v5301_v13  ;;  %v4399_v28 = vadd.f32 %v4255_v6, %v3819_v15  ;;  %v4836_v30 = vmul.f32 %v6841_v29, %v9211_v7  ;;  %v3241_v32 = vmul.f32 %v6842_v31, %v9196_v58  ;;  %v3242_v34 = vmul.f32 %v6843_v33, %v9196_v58  ;;  %v6853_v62 = vld [vmem:[#allocation8 + $0xec8] sm:$0xff]  ;;  %v6856_v6 = vld [vmem:[#allocation8 + $0x5d0] sm:$0xff]  ;;  %v6862_v31 = vld [vmem:[#allocation8 + $0x160] sm:$0xff] }
 0x3a3   :  { %v5302_v35 = vpack.c.bf16 %v4977_v21, %v4977_v21  ;;  %v4978_v36 = vadd.f32 %v4834_v12, %v4398_v22  ;;  %v3820_v37 = vadd.f32 %v3676_v24, %v3240_v20  ;;  %v3677_v39 = vmul.f32 %v6844_v38, %v9201_v8  ;;  %v6857_v12 = vld [vmem:[#allocation8 + $0x5d8] sm:$0xff]  ;;  %v6860_v24 = vld [vmem:[#allocation8 + $0xed0] sm:$0xff]  ;;  %v6863_v33 = vld [vmem:[#allocation8 + $0x5e0] sm:$0xff] }
 0x3a4   :  { %v4979_v40 = vadd.f32 %v4835_v17, %v4399_v28  ;;  %v3678_v42 = vmul.f32 %v6845_v41, %v9201_v8  ;;  %v4257_v44 = vmul.f32 %v6846_v43, %v9204_v18  ;;  %v4258_v46 = vmul.f32 %v6847_v45, %v9204_v18  ;;  %v6858_v17 = vld [vmem:[#allocation8 + $0xa50] sm:$0xff]  ;;  %v6859_v20 = vld [vmem:[#allocation8 + $0xa58] sm:$0xff]  ;;  %v6866_v43 = vld [vmem:[#allocation8 + $0x168] sm:$0xff] }
 0x3a5   :  { %5399 = vst [vmem:[#allocation10 + $0x2cc] sm:$0xf] %v5302_v35  ;;  %v4400_v47 = vadd.f32 %v4256_v27, %v3820_v37  ;;  %v3821_v48 = vadd.f32 %v3677_v39, %v3241_v32  ;;  %v4837_v50 = vmul.f32 %v6848_v49, %v9211_v7  ;;  %v4838_v52 = vmul.f32 %v6849_v51, %v9211_v7  ;;  %v6861_v27 = vld [vmem:[#allocation8 + $0xed8] sm:$0xff]  ;;  %v6864_v37 = vld [vmem:[#allocation8 + $0xa60] sm:$0xff]  ;;  %v6867_v45 = vld [vmem:[#allocation8 + $0x170] sm:$0xff] }
 0x3a6   :  { %v5303_v53 = vpack.c.bf16 %v4979_v40, %v4978_v36  ;;  %v3822_v54 = vadd.f32 %v3678_v42, %v3242_v34  ;;  %v3243_v59 = vmul.f32 %v6850_v55, %v9196_v58  ;;  %v3679_v56 = vmul.f32 %v6851_v60, %v9201_v8  ;;  %v6865_v39 = vld [vmem:[#allocation8 + $0xee0] sm:$0xff]  ;;  %v6868_v49 = vld [vmem:[#allocation8 + $0x5e8] sm:$0xff]  ;;  %v6869_v51 = vld [vmem:[#allocation8 + $0x5f0] sm:$0xff] }
 0x3a7   :  { %v4980_v57 = vadd.f32 %v4836_v30, %v4400_v47  ;;  %v4401_v61 = vadd.f32 %v4257_v44, %v3821_v48  ;;  %v4259_v63 = vmul.f32 %v6852_v14, %v9204_v18  ;;  %v4839_v0 = vmul.f32 %v6853_v62, %v9211_v7  ;;  %v6873_v62 = vld [vmem:[#allocation8 + $0xef0] sm:$0xff] }
 0x3a8   :  { %5400 = vst [vmem:[#allocation10 + $0x2d0] sm:$0xff] %v5303_v53  ;;  %v4402_v9 = vadd.f32 %v4258_v46, %v3822_v54  ;;  %v3823_v10 = vadd.f32 %v3679_v56, %v3243_v59  ;;  %v3244_v1 = vmul.f32 %v6854_v25, %v9196_v58  ;;  %v3245_v3 = vmul.f32 %v6855_v2, %v9196_v58  ;;  %v6870_v54 = vld [vmem:[#allocation8 + $0xa68] sm:$0xff]  ;;  %v6871_v59 = vld [vmem:[#allocation8 + $0xa70] sm:$0xff] }
 0x3a9   :  { %v5304_v4 = vpack.c.bf16 %v4980_v57, %v4980_v57  ;;  %v4981_v5 = vadd.f32 %v4837_v50, %v4401_v61  ;;  %v3680_v11 = vmul.f32 %v6856_v6, %v9201_v8  ;;  %v3681_v13 = vmul.f32 %v6857_v12, %v9201_v8  ;;  %v6872_v56 = vld [vmem:[#allocation8 + $0xee8] sm:$0xff] }
 0x3aa   :  { %v4982_v15 = vadd.f32 %v4838_v52, %v4402_v9  ;;  %v4403_v16 = vadd.f32 %v4259_v63, %v3823_v10  ;;  %v4260_v19 = vmul.f32 %v6858_v17, %v9204_v18  ;;  %v4261_v21 = vmul.f32 %v6859_v20, %v9204_v18  ;;  %v6874_v10 = vld [vmem:[#allocation8 + $0x178] sm:$0xff] }
 0x3ab   :  { %5401 = vst [vmem:[#allocation10 + $0x2d8] sm:$0xf] %v5304_v4  ;;  %v3824_v22 = vadd.f32 %v3680_v11, %v3244_v1  ;;  %v3825_v23 = vadd.f32 %v3681_v13, %v3245_v3  ;;  %v4840_v26 = vmul.f32 %v6860_v24, %v9211_v7  ;;  %v4841_v28 = vmul.f32 %v6861_v27, %v9211_v7  ;;  %v6875_v1 = vld [vmem:[#allocation8 + $0x5f8] sm:$0xff]  ;;  %v6878_v13 = vld [vmem:[#allocation8 + $0x180] sm:$0xff] }
 0x3ac   :  { %v5305_v29 = vpack.c.bf16 %v4982_v15, %v4981_v5  ;;  %v4983_v30 = vadd.f32 %v4839_v0, %v4403_v16  ;;  %v3246_v32 = vmul.f32 %v6862_v31, %v9196_v58  ;;  %v3682_v34 = vmul.f32 %v6863_v33, %v9201_v8  ;;  %v6876_v3 = vld [vmem:[#allocation8 + $0xa78] sm:$0xff] }
 0x3ad   :  { %v4404_v35 = vadd.f32 %v4260_v19, %v3824_v22  ;;  %v4405_v36 = vadd.f32 %v4261_v21, %v3825_v23  ;;  %v4262_v38 = vmul.f32 %v6864_v37, %v9204_v18  ;;  %v4842_v40 = vmul.f32 %v6865_v39, %v9211_v7  ;;  %v6877_v11 = vld [vmem:[#allocation8 + $0xef8] sm:$0xff]  ;;  %v6879_v19 = vld [vmem:[#allocation8 + $0x188] sm:$0xff]  ;;  %v6880_v21 = vld [vmem:[#allocation8 + $0x600] sm:$0xff] }
 0x3ae   :  { %5402 = vst [vmem:[#allocation10 + $0x2dc] sm:$0xff] %v5305_v29  ;;  %v5306_v41 = vpack.c.bf16 %v4983_v30, %v4983_v30  ;;  %v3826_v42 = vadd.f32 %v3682_v34, %v3246_v32  ;;  %v3247_v44 = vmul.f32 %v6866_v43, %v9196_v58  ;;  %v3248_v46 = vmul.f32 %v6867_v45, %v9196_v58  ;;  %v6883_v32 = vld [vmem:[#allocation8 + $0xa88] sm:$0xff]  ;;  %v6884_v34 = vld [vmem:[#allocation8 + $0xf00] sm:$0xff] }
 0x3af   :  { %v4984_v47 = vadd.f32 %v4840_v26, %v4404_v35  ;;  %v4985_v48 = vadd.f32 %v4841_v28, %v4405_v36  ;;  %v3683_v50 = vmul.f32 %v6868_v49, %v9201_v8  ;;  %v3684_v52 = vmul.f32 %v6869_v51, %v9201_v8  ;;  %v6881_v26 = vld [vmem:[#allocation8 + $0x608] sm:$0xff]  ;;  %v6882_v28 = vld [vmem:[#allocation8 + $0xa80] sm:$0xff]  ;;  %v6889_v49 = vld [vmem:[#allocation8 + $0xf10] sm:$0xff] }
 0x3b0   :  { %5403 = vst [vmem:[#allocation10 + $0x2e4] sm:$0xf] %v5306_v41  ;;  %v4406_v53 = vadd.f32 %v4262_v38, %v3826_v42  ;;  %v4263_v55 = vmul.f32 %v6870_v54, %v9204_v18  ;;  %v4264_v60 = vmul.f32 %v6871_v59, %v9204_v18  ;;  %v4843_v57 = vmul.f32 %v6872_v56, %v9211_v7  ;;  %v6885_v38 = vld [vmem:[#allocation8 + $0xf08] sm:$0xff]  ;;  %v6890_v51 = vld [vmem:[#allocation8 + $0x198] sm:$0xff] }
 0x3b1   :  { %v5307_v61 = vpack.c.bf16 %v4985_v48, %v4984_v47  ;;  %v3827_v14 = vadd.f32 %v3683_v50, %v3247_v44  ;;  %v3828_v63 = vadd.f32 %v3684_v52, %v3248_v46  ;;  %v4844_v0 = vmul.f32 %v6873_v62, %v9211_v7  ;;  %v6887_v44 = vld [vmem:[#allocation8 + $0x610] sm:$0xff]  ;;  %v6892_v56 = vld [vmem:[#allocation8 + $0x618] sm:$0xff] }
 0x3b2   :  { %v4986_v9 = vadd.f32 %v4842_v40, %v4406_v53  ;;  %v3249_v25 = vmul.f32 %v6874_v10, %v9196_v58  ;;  %v3685_v2 = vmul.f32 %v6875_v1, %v9201_v8  ;;  %v4265_v4 = vmul.f32 %v6876_v3, %v9204_v18  ;;  %v6886_v40 = vld [vmem:[#allocation8 + $0x190] sm:$0xff]  ;;  %v6891_v53 = vld [vmem:[#allocation8 + $0x1a0] sm:$0xff]  ;;  %v6894_v62 = vld [vmem:[#allocation8 + $0xa98] sm:$0xff] }
 0x3b3   :  { %5404 = vst [vmem:[#allocation10 + $0x2e8] sm:$0xff] %v5307_v61  ;;  %v4407_v5 = vadd.f32 %v4263_v55, %v3827_v14  ;;  %v4408_v6 = vadd.f32 %v4264_v60, %v3828_v63  ;;  %v4845_v12 = vmul.f32 %v6877_v11, %v9211_v7  ;;  %v3250_v15 = vmul.f32 %v6878_v13, %v9196_v58  ;;  %v6888_v46 = vld [vmem:[#allocation8 + $0xa90] sm:$0xff]  ;;  %v6893_v14 = vld [vmem:[#allocation8 + $0x620] sm:$0xff] }
 0x3b4   :  { %v5308_v16 = vpack.c.bf16 %v4986_v9, %v4986_v9  ;;  %v3829_v17 = vadd.f32 %v3685_v2, %v3249_v25  ;;  %v3251_v20 = vmul.f32 %v6879_v19, %v9196_v58  ;;  %v3686_v22 = vmul.f32 %v6880_v21, %v9201_v8  ;;  %v6895_v9 = vld [vmem:[#allocation8 + $0xaa0] sm:$0xff]  ;;  %v6896_v2 = vld [vmem:[#allocation8 + $0xf18] sm:$0xff] }
 0x3b5   :  { %v4987_v23 = vadd.f32 %v4843_v57, %v4407_v5  ;;  %v4988_v24 = vadd.f32 %v4844_v0, %v4408_v6  ;;  %v3687_v27 = vmul.f32 %v6881_v26, %v9201_v8  ;;  %v4266_v29 = vmul.f32 %v6882_v28, %v9204_v18 }
 0x3b6   :  { %5405 = vst [vmem:[#allocation10 + $0x2f0] sm:$0xf] %v5308_v16  ;;  %v4409_v30 = vadd.f32 %v4265_v4, %v3829_v17  ;;  %v3830_v31 = vadd.f32 %v3686_v22, %v3250_v15  ;;  %v4267_v33 = vmul.f32 %v6883_v32, %v9204_v18  ;;  %v4846_v35 = vmul.f32 %v6884_v34, %v9211_v7  ;;  %v6897_v4 = vld [vmem:[#allocation8 + $0xf20] sm:$0xff]  ;;  %v6899_v15 = vld [vmem:[#allocation8 + $0x628] sm:$0xff] }
 0x3b7   :  { %v5309_v36 = vpack.c.bf16 %v4988_v24, %v4987_v23  ;;  %v3831_v37 = vadd.f32 %v3687_v27, %v3251_v20  ;;  %v4847_v39 = vmul.f32 %v6885_v38, %v9211_v7  ;;  %v3252_v41 = vmul.f32 %v6886_v40, %v9196_v58  ;;  %v6900_v20 = vld [vmem:[#allocation8 + $0xaa8] sm:$0xff]  ;;  %v6902_v27 = vld [vmem:[#allocation8 + $0x1b0] sm:$0xff] }
 0x3b8   :  { %v4989_v42 = vadd.f32 %v4845_v12, %v4409_v30  ;;  %v4410_v43 = vadd.f32 %v4266_v29, %v3830_v31  ;;  %v3688_v45 = vmul.f32 %v6887_v44, %v9201_v8  ;;  %v4268_v47 = vmul.f32 %v6888_v46, %v9204_v18  ;;  %v6898_v12 = vld [vmem:[#allocation8 + $0x1a8] sm:$0xff]  ;;  %v6903_v29 = vld [vmem:[#allocation8 + $0x1b8] sm:$0xff] }
 0x3b9   :  { %5406 = vst [vmem:[#allocation10 + $0x2f4] sm:$0xff] %v5309_v36  ;;  %v4411_v48 = vadd.f32 %v4267_v33, %v3831_v37  ;;  %v4848_v50 = vmul.f32 %v6889_v49, %v9211_v7  ;;  %v3253_v52 = vmul.f32 %v6890_v51, %v9196_v58  ;;  %v3254_v54 = vmul.f32 %v6891_v53, %v9196_v58  ;;  %v6901_v22 = vld [vmem:[#allocation8 + $0xf28] sm:$0xff]  ;;  %v6904_v33 = vld [vmem:[#allocation8 + $0x630] sm:$0xff]  ;;  %v6910_v51 = vld [vmem:[#allocation8 + $0x1c0] sm:$0xff] }
 0x3ba   :  { %v5310_v55 = vpack.c.bf16 %v4989_v42, %v4989_v42  ;;  %v4990_v59 = vadd.f32 %v4846_v35, %v4410_v43  ;;  %v3832_v60 = vadd.f32 %v3688_v45, %v3252_v41  ;;  %v3689_v57 = vmul.f32 %v6892_v56, %v9201_v8  ;;  %v6905_v35 = vld [vmem:[#allocation8 + $0x638] sm:$0xff]  ;;  %v6908_v45 = vld [vmem:[#allocation8 + $0xf30] sm:$0xff]  ;;  %v6911_v53 = vld [vmem:[#allocation8 + $0x640] sm:$0xff] }
 0x3bb   :  { %v4991_v61 = vadd.f32 %v4847_v39, %v4411_v48  ;;  %v3690_v63 = vmul.f32 %v6893_v14, %v9201_v8  ;;  %v4269_v0 = vmul.f32 %v6894_v62, %v9204_v18  ;;  %v4270_v10 = vmul.f32 %v6895_v9, %v9204_v18  ;;  %v6906_v39 = vld [vmem:[#allocation8 + $0xab0] sm:$0xff]  ;;  %v6907_v41 = vld [vmem:[#allocation8 + $0xab8] sm:$0xff]  ;;  %v6914_v62 = vld [vmem:[#allocation8 + $0x1c8] sm:$0xff] }
 0x3bc   :  { %5407 = vst [vmem:[#allocation10 + $0x2fc] sm:$0xf] %v5310_v55  ;;  %v4412_v25 = vadd.f32 %v4268_v47, %v3832_v60  ;;  %v3833_v1 = vadd.f32 %v3689_v57, %v3253_v52  ;;  %v4849_v3 = vmul.f32 %v6896_v2, %v9211_v7  ;;  %v4850_v5 = vmul.f32 %v6897_v4, %v9211_v7  ;;  %v6909_v47 = vld [vmem:[#allocation8 + $0xf38] sm:$0xff]  ;;  %v6912_v60 = vld [vmem:[#allocation8 + $0xac0] sm:$0xff]  ;;  %v6915_v9 = vld [vmem:[#allocation8 + $0x1d0] sm:$0xff] }
 0x3bd   :  { %v5311_v6 = vpack.c.bf16 %v4991_v61, %v4990_v59  ;;  %v3834_v11 = vadd.f32 %v3690_v63, %v3254_v54  ;;  %v3255_v13 = vmul.f32 %v6898_v12, %v9196_v58  ;;  %v3691_v16 = vmul.f32 %v6899_v15, %v9201_v8  ;;  %v6913_v57 = vld [vmem:[#allocation8 + $0xf40] sm:$0xff]  ;;  %v6916_v2 = vld [vmem:[#allocation8 + $0x648] sm:$0xff]  ;;  %v6917_v4 = vld [vmem:[#allocation8 + $0x650] sm:$0xff] }
 0x3be   :  { %v4992_v17 = vadd.f32 %v4848_v50, %v4412_v25  ;;  %v4413_v19 = vadd.f32 %v4269_v0, %v3833_v1  ;;  %v4271_v21 = vmul.f32 %v6900_v20, %v9204_v18  ;;  %v4851_v23 = vmul.f32 %v6901_v22, %v9211_v7  ;;  %v6921_v22 = vld [vmem:[#allocation8 + $0xf50] sm:$0xff] }
 0x3bf   :  { %5408 = vst [vmem:[#allocation10 + $0x300] sm:$0xff] %v5311_v6  ;;  %v4414_v24 = vadd.f32 %v4270_v10, %v3834_v11  ;;  %v3835_v26 = vadd.f32 %v3691_v16, %v3255_v13  ;;  %v3256_v28 = vmul.f32 %v6902_v27, %v9196_v58  ;;  %v3257_v30 = vmul.f32 %v6903_v29, %v9196_v58  ;;  %v6918_v11 = vld [vmem:[#allocation8 + $0xac8] sm:$0xff]  ;;  %v6919_v13 = vld [vmem:[#allocation8 + $0xad0] sm:$0xff] }
 0x3c0   :  { %v5312_v31 = vpack.c.bf16 %v4992_v17, %v4992_v17  ;;  %v4993_v32 = vadd.f32 %v4849_v3, %v4413_v19  ;;  %v3692_v34 = vmul.f32 %v6904_v33, %v9201_v8  ;;  %v3693_v36 = vmul.f32 %v6905_v35, %v9201_v8  ;;  %v6920_v16 = vld [vmem:[#allocation8 + $0xf48] sm:$0xff] }
 0x3c1   :  { %v4994_v37 = vadd.f32 %v4850_v5, %v4414_v24  ;;  %v4415_v38 = vadd.f32 %v4271_v21, %v3835_v26  ;;  %v4272_v40 = vmul.f32 %v6906_v39, %v9204_v18  ;;  %v4273_v42 = vmul.f32 %v6907_v41, %v9204_v18  ;;  %v6922_v26 = vld [vmem:[#allocation8 + $0x1d8] sm:$0xff] }
 0x3c2   :  { %5409 = vst [vmem:[#allocation10 + $0x308] sm:$0xf] %v5312_v31  ;;  %v3836_v43 = vadd.f32 %v3692_v34, %v3256_v28  ;;  %v3837_v44 = vadd.f32 %v3693_v36, %v3257_v30  ;;  %v4852_v46 = vmul.f32 %v6908_v45, %v9211_v7  ;;  %v4853_v48 = vmul.f32 %v6909_v47, %v9211_v7  ;;  %v6923_v28 = vld [vmem:[#allocation8 + $0x658] sm:$0xff]  ;;  %v6926_v36 = vld [vmem:[#allocation8 + $0x1e0] sm:$0xff] }
 0x3c3   :  { %v5313_v49 = vpack.c.bf16 %v4994_v37, %v4993_v32  ;;  %v4995_v50 = vadd.f32 %v4851_v23, %v4415_v38  ;;  %v3258_v52 = vmul.f32 %v6910_v51, %v9196_v58  ;;  %v3694_v54 = vmul.f32 %v6911_v53, %v9201_v8  ;;  %v6924_v30 = vld [vmem:[#allocation8 + $0xad8] sm:$0xff] }
 0x3c4   :  { %v4416_v55 = vadd.f32 %v4272_v40, %v3836_v43  ;;  %v4417_v59 = vadd.f32 %v4273_v42, %v3837_v44  ;;  %v4274_v56 = vmul.f32 %v6912_v60, %v9204_v18  ;;  %v4854_v61 = vmul.f32 %v6913_v57, %v9211_v7  ;;  %v6925_v34 = vld [vmem:[#allocation8 + $0xf58] sm:$0xff]  ;;  %v6927_v40 = vld [vmem:[#allocation8 + $0x1e8] sm:$0xff]  ;;  %v6928_v42 = vld [vmem:[#allocation8 + $0x660] sm:$0xff] }
 0x3c5   :  { %5410 = vst [vmem:[#allocation10 + $0x30c] sm:$0xff] %v5313_v49  ;;  %v5314_v14 = vpack.c.bf16 %v4995_v50, %v4995_v50  ;;  %v3838_v63 = vadd.f32 %v3694_v54, %v3258_v52  ;;  %v3259_v0 = vmul.f32 %v6914_v62, %v9196_v58  ;;  %v3260_v10 = vmul.f32 %v6915_v9, %v9196_v58  ;;  %v6931_v52 = vld [vmem:[#allocation8 + $0xae8] sm:$0xff]  ;;  %v6932_v54 = vld [vmem:[#allocation8 + $0xf60] sm:$0xff] }
 0x3c6   :  { %v4996_v25 = vadd.f32 %v4852_v46, %v4416_v55  ;;  %v4997_v1 = vadd.f32 %v4853_v48, %v4417_v59  ;;  %v3695_v3 = vmul.f32 %v6916_v2, %v9201_v8  ;;  %v3696_v5 = vmul.f32 %v6917_v4, %v9201_v8  ;;  %v6929_v46 = vld [vmem:[#allocation8 + $0x668] sm:$0xff]  ;;  %v6930_v48 = vld [vmem:[#allocation8 + $0xae0] sm:$0xff]  ;;  %v6937_v2 = vld [vmem:[#allocation8 + $0xf70] sm:$0xff] }
 0x3c7   :  { %5411 = vst [vmem:[#allocation10 + $0x314] sm:$0xf] %v5314_v14  ;;  %v4418_v6 = vadd.f32 %v4274_v56, %v3838_v63  ;;  %v4275_v12 = vmul.f32 %v6918_v11, %v9204_v18  ;;  %v4276_v15 = vmul.f32 %v6919_v13, %v9204_v18  ;;  %v4855_v17 = vmul.f32 %v6920_v16, %v9211_v7  ;;  %v6933_v56 = vld [vmem:[#allocation8 + $0xf68] sm:$0xff]  ;;  %v6938_v4 = vld [vmem:[#allocation8 + $0x1f8] sm:$0xff] }
 0x3c8   :  { %v5315_v19 = vpack.c.bf16 %v4997_v1, %v4996_v25  ;;  %v3839_v20 = vadd.f32 %v3695_v3, %v3259_v0  ;;  %v3840_v21 = vadd.f32 %v3696_v5, %v3260_v10  ;;  %v4856_v23 = vmul.f32 %v6921_v22, %v9211_v7  ;;  %v6935_v0 = vld [vmem:[#allocation8 + $0x670] sm:$0xff]  ;;  %v6940_v16 = vld [vmem:[#allocation8 + $0x678] sm:$0xff] }
 0x3c9   :  { %v4998_v24 = vadd.f32 %v4854_v61, %v4418_v6  ;;  %v3261_v27 = vmul.f32 %v6922_v26, %v9196_v58  ;;  %v3697_v29 = vmul.f32 %v6923_v28, %v9201_v8  ;;  %v4277_v31 = vmul.f32 %v6924_v30, %v9204_v18  ;;  %v6934_v61 = vld [vmem:[#allocation8 + $0x1f0] sm:$0xff]  ;;  %v6939_v6 = vld [vmem:[#allocation8 + $0x200] sm:$0xff]  ;;  %v6942_v22 = vld [vmem:[#allocation8 + $0xaf8] sm:$0xff] }
 0x3ca   :  { %5412 = vst [vmem:[#allocation10 + $0x318] sm:$0xff] %v5315_v19  ;;  %v4419_v32 = vadd.f32 %v4275_v12, %v3839_v20  ;;  %v4420_v33 = vadd.f32 %v4276_v15, %v3840_v21  ;;  %v4857_v35 = vmul.f32 %v6925_v34, %v9211_v7  ;;  %v3262_v37 = vmul.f32 %v6926_v36, %v9196_v58  ;;  %v6936_v10 = vld [vmem:[#allocation8 + $0xaf0] sm:$0xff]  ;;  %v6941_v20 = vld [vmem:[#allocation8 + $0x680] sm:$0xff] }
 0x3cb   :  { %v5316_v38 = vpack.c.bf16 %v4998_v24, %v4998_v24  ;;  %v3841_v39 = vadd.f32 %v3697_v29, %v3261_v27  ;;  %v3263_v41 = vmul.f32 %v6927_v40, %v9196_v58  ;;  %v3698_v43 = vmul.f32 %v6928_v42, %v9201_v8  ;;  %v6943_v24 = vld [vmem:[#allocation8 + $0xb00] sm:$0xff]  ;;  %v6944_v29 = vld [vmem:[#allocation8 + $0xf78] sm:$0xff] }
 0x3cc   :  { %v4999_v44 = vadd.f32 %v4855_v17, %v4419_v32  ;;  %v5000_v45 = vadd.f32 %v4856_v23, %v4420_v33  ;;  %v3699_v47 = vmul.f32 %v6929_v46, %v9201_v8  ;;  %v4278_v49 = vmul.f32 %v6930_v48, %v9204_v18 }
 0x3cd   :  { %5413 = vst [vmem:[#allocation10 + $0x320] sm:$0xf] %v5316_v38  ;;  %v4421_v50 = vadd.f32 %v4277_v31, %v3841_v39  ;;  %v3842_v51 = vadd.f32 %v3698_v43, %v3262_v37  ;;  %v4279_v53 = vmul.f32 %v6931_v52, %v9204_v18  ;;  %v4858_v55 = vmul.f32 %v6932_v54, %v9211_v7  ;;  %v6945_v31 = vld [vmem:[#allocation8 + $0xf80] sm:$0xff]  ;;  %v6947_v37 = vld [vmem:[#allocation8 + $0x688] sm:$0xff] }
 0x3ce   :  { %v5317_v59 = vpack.c.bf16 %v5000_v45, %v4999_v44  ;;  %v3843_v60 = vadd.f32 %v3699_v47, %v3263_v41  ;;  %v4859_v57 = vmul.f32 %v6933_v56, %v9211_v7  ;;  %v3264_v14 = vmul.f32 %v6934_v61, %v9196_v58  ;;  %v6948_v41 = vld [vmem:[#allocation8 + $0xb08] sm:$0xff]  ;;  %v6950_v47 = vld [vmem:[#allocation8 + $0x210] sm:$0xff] }
 0x3cf   :  { %v5001_v63 = vadd.f32 %v4857_v35, %v4421_v50  ;;  %v4422_v62 = vadd.f32 %v4278_v49, %v3842_v51  ;;  %v3700_v9 = vmul.f32 %v6935_v0, %v9201_v8  ;;  %v4280_v25 = vmul.f32 %v6936_v10, %v9204_v18  ;;  %v6946_v35 = vld [vmem:[#allocation8 + $0x208] sm:$0xff]  ;;  %v6951_v49 = vld [vmem:[#allocation8 + $0x218] sm:$0xff] }
 0x3d0   :  { %5414 = vst [vmem:[#allocation10 + $0x324] sm:$0xff] %v5317_v59  ;;  %v4423_v1 = vadd.f32 %v4279_v53, %v3843_v60  ;;  %v4860_v3 = vmul.f32 %v6937_v2, %v9211_v7  ;;  %v3265_v5 = vmul.f32 %v6938_v4, %v9196_v58  ;;  %v3266_v11 = vmul.f32 %v6939_v6, %v9196_v58  ;;  %v6949_v43 = vld [vmem:[#allocation8 + $0xf88] sm:$0xff]  ;;  %v6952_v53 = vld [vmem:[#allocation8 + $0x690] sm:$0xff]  ;;  %v6958_v4 = vld [vmem:[#allocation8 + $0x220] sm:$0xff] }
 0x3d1   :  { %v5318_v12 = vpack.c.bf16 %v5001_v63, %v5001_v63  ;;  %v5002_v13 = vadd.f32 %v4858_v55, %v4422_v62  ;;  %v3844_v15 = vadd.f32 %v3700_v9, %v3264_v14  ;;  %v3701_v17 = vmul.f32 %v6940_v16, %v9201_v8  ;;  %v6953_v55 = vld [vmem:[#allocation8 + $0x698] sm:$0xff]  ;;  %v6956_v9 = vld [vmem:[#allocation8 + $0xf90] sm:$0xff]  ;;  %v6959_v6 = vld [vmem:[#allocation8 + $0x6a0] sm:$0xff] }
 0x3d2   :  { %v5003_v19 = vadd.f32 %v4859_v57, %v4423_v1  ;;  %v3702_v21 = vmul.f32 %v6941_v20, %v9201_v8  ;;  %v4281_v23 = vmul.f32 %v6942_v22, %v9204_v18  ;;  %v4282_v26 = vmul.f32 %v6943_v24, %v9204_v18  ;;  %v6954_v57 = vld [vmem:[#allocation8 + $0xb10] sm:$0xff]  ;;  %v6955_v14 = vld [vmem:[#allocation8 + $0xb18] sm:$0xff]  ;;  %v6962_v22 = vld [vmem:[#allocation8 + $0x228] sm:$0xff] }
 0x3d3   :  { %5415 = vst [vmem:[#allocation10 + $0x32c] sm:$0xf] %v5318_v12  ;;  %v4424_v27 = vadd.f32 %v4280_v25, %v3844_v15  ;;  %v3845_v28 = vadd.f32 %v3701_v17, %v3265_v5  ;;  %v4861_v30 = vmul.f32 %v6944_v29, %v9211_v7  ;;  %v4862_v32 = vmul.f32 %v6945_v31, %v9211_v7  ;;  %v6957_v25 = vld [vmem:[#allocation8 + $0xf98] sm:$0xff]  ;;  %v6960_v15 = vld [vmem:[#allocation8 + $0xb20] sm:$0xff]  ;;  %v6963_v24 = vld [vmem:[#allocation8 + $0x230] sm:$0xff] }
 0x3d4   :  { %v5319_v33 = vpack.c.bf16 %v5003_v19, %v5002_v13  ;;  %v3846_v34 = vadd.f32 %v3702_v21, %v3266_v11  ;;  %v3267_v36 = vmul.f32 %v6946_v35, %v9196_v58  ;;  %v3703_v38 = vmul.f32 %v6947_v37, %v9201_v8  ;;  %v6961_v17 = vld [vmem:[#allocation8 + $0xfa0] sm:$0xff]  ;;  %v6964_v29 = vld [vmem:[#allocation8 + $0x6a8] sm:$0xff]  ;;  %v6965_v31 = vld [vmem:[#allocation8 + $0x6b0] sm:$0xff] }
 0x3d5   :  { %v5004_v39 = vadd.f32 %v4860_v3, %v4424_v27  ;;  %v4425_v40 = vadd.f32 %v4281_v23, %v3845_v28  ;;  %v4283_v42 = vmul.f32 %v6948_v41, %v9204_v18  ;;  %v4863_v44 = vmul.f32 %v6949_v43, %v9211_v7  ;;  %v6969_v43 = vld [vmem:[#allocation8 + $0xfb0] sm:$0xff] }
 0x3d6   :  { %5416 = vst [vmem:[#allocation10 + $0x330] sm:$0xff] %v5319_v33  ;;  %v4426_v45 = vadd.f32 %v4282_v26, %v3846_v34  ;;  %v3847_v46 = vadd.f32 %v3703_v38, %v3267_v36  ;;  %v3268_v48 = vmul.f32 %v6950_v47, %v9196_v58  ;;  %v3269_v50 = vmul.f32 %v6951_v49, %v9196_v58  ;;  %v6966_v34 = vld [vmem:[#allocation8 + $0xb28] sm:$0xff]  ;;  %v6967_v36 = vld [vmem:[#allocation8 + $0xb30] sm:$0xff] }
 0x3d7   :  { %v5320_v51 = vpack.c.bf16 %v5004_v39, %v5004_v39  ;;  %v5005_v52 = vadd.f32 %v4861_v30, %v4425_v40  ;;  %v3704_v54 = vmul.f32 %v6952_v53, %v9201_v8  ;;  %v3705_v59 = vmul.f32 %v6953_v55, %v9201_v8  ;;  %v6968_v38 = vld [vmem:[#allocation8 + $0xfa8] sm:$0xff] }
 0x3d8   :  { %v5006_v60 = vadd.f32 %v4862_v32, %v4426_v45  ;;  %v4427_v56 = vadd.f32 %v4283_v42, %v3847_v46  ;;  %v4284_v61 = vmul.f32 %v6954_v57, %v9204_v18  ;;  %v4285_v63 = vmul.f32 %v6955_v14, %v9204_v18  ;;  %v6970_v46 = vld [vmem:[#allocation8 + $0x238] sm:$0xff] }
 0x3d9   :  { %5417 = vst [vmem:[#allocation10 + $0x338] sm:$0xf] %v5320_v51  ;;  %v3848_v62 = vadd.f32 %v3704_v54, %v3268_v48  ;;  %v3849_v0 = vadd.f32 %v3705_v59, %v3269_v50  ;;  %v4864_v10 = vmul.f32 %v6956_v9, %v9211_v7  ;;  %v4865_v1 = vmul.f32 %v6957_v25, %v9211_v7  ;;  %v6971_v48 = vld [vmem:[#allocation8 + $0x6b8] sm:$0xff]  ;;  %v6974_v59 = vld [vmem:[#allocation8 + $0x240] sm:$0xff] }
 0x3da   :  { %v5321_v2 = vpack.c.bf16 %v5006_v60, %v5005_v52  ;;  %v5007_v3 = vadd.f32 %v4863_v44, %v4427_v56  ;;  %v3270_v5 = vmul.f32 %v6958_v4, %v9196_v58  ;;  %v3706_v11 = vmul.f32 %v6959_v6, %v9201_v8  ;;  %v6972_v50 = vld [vmem:[#allocation8 + $0xb38] sm:$0xff] }
 0x3db   :  { %v4428_v12 = vadd.f32 %v4284_v61, %v3848_v62  ;;  %v4429_v13 = vadd.f32 %v4285_v63, %v3849_v0  ;;  %v4286_v16 = vmul.f32 %v6960_v15, %v9204_v18  ;;  %v4866_v19 = vmul.f32 %v6961_v17, %v9211_v7  ;;  %v6973_v54 = vld [vmem:[#allocation8 + $0xfb8] sm:$0xff]  ;;  %v6975_v61 = vld [vmem:[#allocation8 + $0x248] sm:$0xff]  ;;  %v6976_v63 = vld [vmem:[#allocation8 + $0x6c0] sm:$0xff] }
 0x3dc   :  { %5418 = vst [vmem:[#allocation10 + $0x33c] sm:$0xff] %v5321_v2  ;;  %v5322_v20 = vpack.c.bf16 %v5007_v3, %v5007_v3  ;;  %v3850_v21 = vadd.f32 %v3706_v11, %v3270_v5  ;;  %v3271_v23 = vmul.f32 %v6962_v22, %v9196_v58  ;;  %v3272_v26 = vmul.f32 %v6963_v24, %v9196_v58  ;;  %v6979_v5 = vld [vmem:[#allocation8 + $0xb48] sm:$0xff]  ;;  %v6980_v11 = vld [vmem:[#allocation8 + $0xfc0] sm:$0xff] }
 0x3dd   :  { %v5008_v27 = vadd.f32 %v4864_v10, %v4428_v12  ;;  %v5009_v28 = vadd.f32 %v4865_v1, %v4429_v13  ;;  %v3707_v30 = vmul.f32 %v6964_v29, %v9201_v8  ;;  %v3708_v32 = vmul.f32 %v6965_v31, %v9201_v8  ;;  %v6977_v10 = vld [vmem:[#allocation8 + $0x6c8] sm:$0xff]  ;;  %v6978_v1 = vld [vmem:[#allocation8 + $0xb40] sm:$0xff]  ;;  %v6985_v29 = vld [vmem:[#allocation8 + $0xfd0] sm:$0xff] }
 0x3de   :  { %5419 = vst [vmem:[#allocation10 + $0x344] sm:$0xf] %v5322_v20  ;;  %v4430_v33 = vadd.f32 %v4286_v16, %v3850_v21  ;;  %v4287_v35 = vmul.f32 %v6966_v34, %v9204_v18  ;;  %v4288_v37 = vmul.f32 %v6967_v36, %v9204_v18  ;;  %v4867_v39 = vmul.f32 %v6968_v38, %v9211_v7  ;;  %v6981_v16 = vld [vmem:[#allocation8 + $0xfc8] sm:$0xff]  ;;  %v6986_v31 = vld [vmem:[#allocation8 + $0x258] sm:$0xff] }
 0x3df   :  { %v5323_v40 = vpack.c.bf16 %v5009_v28, %v5008_v27  ;;  %v3851_v41 = vadd.f32 %v3707_v30, %v3271_v23  ;;  %v3852_v42 = vadd.f32 %v3708_v32, %v3272_v26  ;;  %v4868_v44 = vmul.f32 %v6969_v43, %v9211_v7  ;;  %v6983_v23 = vld [vmem:[#allocation8 + $0x6d0] sm:$0xff]  ;;  %v6988_v38 = vld [vmem:[#allocation8 + $0x6d8] sm:$0xff] }
 0x3e0   :  { %v5010_v45 = vadd.f32 %v4866_v19, %v4430_v33  ;;  %v3273_v47 = vmul.f32 %v6970_v46, %v9196_v58  ;;  %v3709_v49 = vmul.f32 %v6971_v48, %v9201_v8  ;;  %v4289_v51 = vmul.f32 %v6972_v50, %v9204_v18  ;;  %v6982_v19 = vld [vmem:[#allocation8 + $0x250] sm:$0xff]  ;;  %v6987_v33 = vld [vmem:[#allocation8 + $0x260] sm:$0xff]  ;;  %v6990_v43 = vld [vmem:[#allocation8 + $0xb58] sm:$0xff] }
 0x3e1   :  { %5420 = vst [vmem:[#allocation10 + $0x348] sm:$0xff] %v5323_v40  ;;  %v4431_v52 = vadd.f32 %v4287_v35, %v3851_v41  ;;  %v4432_v53 = vadd.f32 %v4288_v37, %v3852_v42  ;;  %v4869_v55 = vmul.f32 %v6973_v54, %v9211_v7  ;;  %v3274_v60 = vmul.f32 %v6974_v59, %v9196_v58  ;;  %v6984_v26 = vld [vmem:[#allocation8 + $0xb50] sm:$0xff]  ;;  %v6989_v41 = vld [vmem:[#allocation8 + $0x6e0] sm:$0xff] }
 0x3e2   :  { %v5324_v56 = vpack.c.bf16 %v5010_v45, %v5010_v45  ;;  %v3853_v57 = vadd.f32 %v3709_v49, %v3273_v47  ;;  %v3275_v14 = vmul.f32 %v6975_v61, %v9196_v58  ;;  %v3710_v62 = vmul.f32 %v6976_v63, %v9201_v8  ;;  %v6991_v45 = vld [vmem:[#allocation8 + $0xb60] sm:$0xff]  ;;  %v6992_v49 = vld [vmem:[#allocation8 + $0xfd8] sm:$0xff] }
 0x3e3   :  { %v5011_v0 = vadd.f32 %v4867_v39, %v4431_v52  ;;  %v5012_v9 = vadd.f32 %v4868_v44, %v4432_v53  ;;  %v3711_v25 = vmul.f32 %v6977_v10, %v9201_v8  ;;  %v4290_v2 = vmul.f32 %v6978_v1, %v9204_v18 }
 0x3e4   :  { %5421 = vst [vmem:[#allocation10 + $0x350] sm:$0xf] %v5324_v56  ;;  %v4433_v3 = vadd.f32 %v4289_v51, %v3853_v57  ;;  %v3854_v4 = vadd.f32 %v3710_v62, %v3274_v60  ;;  %v4291_v6 = vmul.f32 %v6979_v5, %v9204_v18  ;;  %v4870_v12 = vmul.f32 %v6980_v11, %v9211_v7  ;;  %v6993_v51 = vld [vmem:[#allocation8 + $0xfe0] sm:$0xff]  ;;  %v6995_v60 = vld [vmem:[#allocation8 + $0x6e8] sm:$0xff] }
 0x3e5   :  { %v5325_v13 = vpack.c.bf16 %v5012_v9, %v5011_v0  ;;  %v3855_v15 = vadd.f32 %v3711_v25, %v3275_v14  ;;  %v4871_v17 = vmul.f32 %v6981_v16, %v9211_v7  ;;  %v3276_v20 = vmul.f32 %v6982_v19, %v9196_v58  ;;  %v6996_v14 = vld [vmem:[#allocation8 + $0xb68] sm:$0xff]  ;;  %v6998_v25 = vld [vmem:[#allocation8 + $0x270] sm:$0xff] }
 0x3e6   :  { %v5013_v21 = vadd.f32 %v4869_v55, %v4433_v3  ;;  %v4434_v22 = vadd.f32 %v4290_v2, %v3854_v4  ;;  %v3712_v24 = vmul.f32 %v6983_v23, %v9201_v8  ;;  %v4292_v27 = vmul.f32 %v6984_v26, %v9204_v18  ;;  %v6994_v55 = vld [vmem:[#allocation8 + $0x268] sm:$0xff]  ;;  %v6999_v2 = vld [vmem:[#allocation8 + $0x278] sm:$0xff] }
 0x3e7   :  { %5422 = vst [vmem:[#allocation10 + $0x354] sm:$0xff] %v5325_v13  ;;  %v4435_v28 = vadd.f32 %v4291_v6, %v3855_v15  ;;  %v4872_v30 = vmul.f32 %v6985_v29, %v9211_v7  ;;  %v3277_v32 = vmul.f32 %v6986_v31, %v9196_v58  ;;  %v3278_v34 = vmul.f32 %v6987_v33, %v9196_v58  ;;  %v6997_v62 = vld [vmem:[#allocation8 + $0xfe8] sm:$0xff]  ;;  %v7000_v6 = vld [vmem:[#allocation8 + $0x6f0] sm:$0xff]  ;;  %v7006_v31 = vld [vmem:[#allocation8 + $0x280] sm:$0xff] }
 0x3e8   :  { %v5326_v35 = vpack.c.bf16 %v5013_v21, %v5013_v21  ;;  %v5014_v36 = vadd.f32 %v4870_v12, %v4434_v22  ;;  %v3856_v37 = vadd.f32 %v3712_v24, %v3276_v20  ;;  %v3713_v39 = vmul.f32 %v6988_v38, %v9201_v8  ;;  %v7001_v12 = vld [vmem:[#allocation8 + $0x6f8] sm:$0xff]  ;;  %v7004_v24 = vld [vmem:[#allocation8 + $0xff0] sm:$0xff]  ;;  %v7007_v33 = vld [vmem:[#allocation8 + $0x700] sm:$0xff] }
 0x3e9   :  { %v5015_v40 = vadd.f32 %v4871_v17, %v4435_v28  ;;  %v3714_v42 = vmul.f32 %v6989_v41, %v9201_v8  ;;  %v4293_v44 = vmul.f32 %v6990_v43, %v9204_v18  ;;  %v4294_v46 = vmul.f32 %v6991_v45, %v9204_v18  ;;  %v7002_v17 = vld [vmem:[#allocation8 + $0xb70] sm:$0xff]  ;;  %v7003_v20 = vld [vmem:[#allocation8 + $0xb78] sm:$0xff]  ;;  %v7010_v43 = vld [vmem:[#allocation8 + $0x288] sm:$0xff] }
 0x3ea   :  { %5423 = vst [vmem:[#allocation10 + $0x35c] sm:$0xf] %v5326_v35  ;;  %v4436_v47 = vadd.f32 %v4292_v27, %v3856_v37  ;;  %v3857_v48 = vadd.f32 %v3713_v39, %v3277_v32  ;;  %v4873_v50 = vmul.f32 %v6992_v49, %v9211_v7  ;;  %v4874_v52 = vmul.f32 %v6993_v51, %v9211_v7  ;;  %v7005_v27 = vld [vmem:[#allocation8 + $0xff8] sm:$0xff]  ;;  %v7008_v37 = vld [vmem:[#allocation8 + $0xb80] sm:$0xff]  ;;  %v7011_v45 = vld [vmem:[#allocation8 + $0x290] sm:$0xff] }
 0x3eb   :  { %v5327_v53 = vpack.c.bf16 %v5015_v40, %v5014_v36  ;;  %v3858_v54 = vadd.f32 %v3714_v42, %v3278_v34  ;;  %v3279_v59 = vmul.f32 %v6994_v55, %v9196_v58  ;;  %v3715_v56 = vmul.f32 %v6995_v60, %v9201_v8  ;;  %v7009_v39 = vld [vmem:[#allocation8 + $0x1000] sm:$0xff]  ;;  %v7012_v49 = vld [vmem:[#allocation8 + $0x708] sm:$0xff]  ;;  %v7013_v51 = vld [vmem:[#allocation8 + $0x710] sm:$0xff] }
 0x3ec   :  { %v5016_v57 = vadd.f32 %v4872_v30, %v4436_v47  ;;  %v4437_v61 = vadd.f32 %v4293_v44, %v3857_v48  ;;  %v4295_v63 = vmul.f32 %v6996_v14, %v9204_v18  ;;  %v4875_v0 = vmul.f32 %v6997_v62, %v9211_v7  ;;  %v7017_v62 = vld [vmem:[#allocation8 + $0x1010] sm:$0xff] }
 0x3ed   :  { %5424 = vst [vmem:[#allocation10 + $0x360] sm:$0xff] %v5327_v53  ;;  %v4438_v9 = vadd.f32 %v4294_v46, %v3858_v54  ;;  %v3859_v10 = vadd.f32 %v3715_v56, %v3279_v59  ;;  %v3280_v1 = vmul.f32 %v6998_v25, %v9196_v58  ;;  %v3281_v3 = vmul.f32 %v6999_v2, %v9196_v58  ;;  %v7014_v54 = vld [vmem:[#allocation8 + $0xb88] sm:$0xff]  ;;  %v7015_v59 = vld [vmem:[#allocation8 + $0xb90] sm:$0xff] }
 0x3ee   :  { %v5328_v4 = vpack.c.bf16 %v5016_v57, %v5016_v57  ;;  %v5017_v5 = vadd.f32 %v4873_v50, %v4437_v61  ;;  %v3716_v11 = vmul.f32 %v7000_v6, %v9201_v8  ;;  %v3717_v13 = vmul.f32 %v7001_v12, %v9201_v8  ;;  %v7016_v56 = vld [vmem:[#allocation8 + $0x1008] sm:$0xff] }
 0x3ef   :  { %v5018_v15 = vadd.f32 %v4874_v52, %v4438_v9  ;;  %v4439_v16 = vadd.f32 %v4295_v63, %v3859_v10  ;;  %v4296_v19 = vmul.f32 %v7002_v17, %v9204_v18  ;;  %v4297_v21 = vmul.f32 %v7003_v20, %v9204_v18  ;;  %v7018_v10 = vld [vmem:[#allocation8 + $0x298] sm:$0xff] }
 0x3f0   :  { %5425 = vst [vmem:[#allocation10 + $0x368] sm:$0xf] %v5328_v4  ;;  %v3860_v22 = vadd.f32 %v3716_v11, %v3280_v1  ;;  %v3861_v23 = vadd.f32 %v3717_v13, %v3281_v3  ;;  %v4876_v26 = vmul.f32 %v7004_v24, %v9211_v7  ;;  %v4877_v28 = vmul.f32 %v7005_v27, %v9211_v7  ;;  %v7019_v1 = vld [vmem:[#allocation8 + $0x718] sm:$0xff]  ;;  %v7022_v13 = vld [vmem:[#allocation8 + $0x2a0] sm:$0xff] }
 0x3f1   :  { %v5329_v29 = vpack.c.bf16 %v5018_v15, %v5017_v5  ;;  %v5019_v30 = vadd.f32 %v4875_v0, %v4439_v16  ;;  %v3282_v32 = vmul.f32 %v7006_v31, %v9196_v58  ;;  %v3718_v34 = vmul.f32 %v7007_v33, %v9201_v8  ;;  %v7020_v3 = vld [vmem:[#allocation8 + $0xb98] sm:$0xff] }
 0x3f2   :  { %v4440_v35 = vadd.f32 %v4296_v19, %v3860_v22  ;;  %v4441_v36 = vadd.f32 %v4297_v21, %v3861_v23  ;;  %v4298_v38 = vmul.f32 %v7008_v37, %v9204_v18  ;;  %v4878_v40 = vmul.f32 %v7009_v39, %v9211_v7  ;;  %v7021_v11 = vld [vmem:[#allocation8 + $0x1018] sm:$0xff]  ;;  %v7023_v19 = vld [vmem:[#allocation8 + $0x2a8] sm:$0xff]  ;;  %v7024_v21 = vld [vmem:[#allocation8 + $0x720] sm:$0xff] }
 0x3f3   :  { %5426 = vst [vmem:[#allocation10 + $0x36c] sm:$0xff] %v5329_v29  ;;  %v5330_v41 = vpack.c.bf16 %v5019_v30, %v5019_v30  ;;  %v3862_v42 = vadd.f32 %v3718_v34, %v3282_v32  ;;  %v3283_v44 = vmul.f32 %v7010_v43, %v9196_v58  ;;  %v3284_v46 = vmul.f32 %v7011_v45, %v9196_v58  ;;  %v7027_v32 = vld [vmem:[#allocation8 + $0xba8] sm:$0xff]  ;;  %v7028_v34 = vld [vmem:[#allocation8 + $0x1020] sm:$0xff] }
 0x3f4   :  { %v5020_v47 = vadd.f32 %v4876_v26, %v4440_v35  ;;  %v5021_v48 = vadd.f32 %v4877_v28, %v4441_v36  ;;  %v3719_v50 = vmul.f32 %v7012_v49, %v9201_v8  ;;  %v3720_v52 = vmul.f32 %v7013_v51, %v9201_v8  ;;  %v7025_v26 = vld [vmem:[#allocation8 + $0x728] sm:$0xff]  ;;  %v7026_v28 = vld [vmem:[#allocation8 + $0xba0] sm:$0xff]  ;;  %v7033_v49 = vld [vmem:[#allocation8 + $0x1030] sm:$0xff] }
 0x3f5   :  { %5427 = vst [vmem:[#allocation10 + $0x374] sm:$0xf] %v5330_v41  ;;  %v4442_v53 = vadd.f32 %v4298_v38, %v3862_v42  ;;  %v4299_v55 = vmul.f32 %v7014_v54, %v9204_v18  ;;  %v4300_v60 = vmul.f32 %v7015_v59, %v9204_v18  ;;  %v4879_v57 = vmul.f32 %v7016_v56, %v9211_v7  ;;  %v7029_v38 = vld [vmem:[#allocation8 + $0x1028] sm:$0xff]  ;;  %v7034_v51 = vld [vmem:[#allocation8 + $0x2b8] sm:$0xff] }
 0x3f6   :  { %v5331_v61 = vpack.c.bf16 %v5021_v48, %v5020_v47  ;;  %v3863_v14 = vadd.f32 %v3719_v50, %v3283_v44  ;;  %v3864_v63 = vadd.f32 %v3720_v52, %v3284_v46  ;;  %v4880_v0 = vmul.f32 %v7017_v62, %v9211_v7  ;;  %v7031_v44 = vld [vmem:[#allocation8 + $0x730] sm:$0xff]  ;;  %v7036_v56 = vld [vmem:[#allocation8 + $0x738] sm:$0xff] }
 0x3f7   :  { %v5022_v9 = vadd.f32 %v4878_v40, %v4442_v53  ;;  %v3285_v25 = vmul.f32 %v7018_v10, %v9196_v58  ;;  %v3721_v2 = vmul.f32 %v7019_v1, %v9201_v8  ;;  %v4301_v4 = vmul.f32 %v7020_v3, %v9204_v18  ;;  %v7030_v40 = vld [vmem:[#allocation8 + $0x2b0] sm:$0xff]  ;;  %v7035_v53 = vld [vmem:[#allocation8 + $0x2c0] sm:$0xff]  ;;  %v7038_v62 = vld [vmem:[#allocation8 + $0xbb8] sm:$0xff] }
 0x3f8   :  { %5428 = vst [vmem:[#allocation10 + $0x378] sm:$0xff] %v5331_v61  ;;  %v4443_v5 = vadd.f32 %v4299_v55, %v3863_v14  ;;  %v4444_v6 = vadd.f32 %v4300_v60, %v3864_v63  ;;  %v4881_v12 = vmul.f32 %v7021_v11, %v9211_v7  ;;  %v3286_v15 = vmul.f32 %v7022_v13, %v9196_v58  ;;  %v7032_v46 = vld [vmem:[#allocation8 + $0xbb0] sm:$0xff]  ;;  %v7037_v14 = vld [vmem:[#allocation8 + $0x740] sm:$0xff] }
 0x3f9   :  { %v5332_v16 = vpack.c.bf16 %v5022_v9, %v5022_v9  ;;  %v3865_v17 = vadd.f32 %v3721_v2, %v3285_v25  ;;  %v3287_v20 = vmul.f32 %v7023_v19, %v9196_v58  ;;  %v3722_v22 = vmul.f32 %v7024_v21, %v9201_v8  ;;  %v7039_v9 = vld [vmem:[#allocation8 + $0xbc0] sm:$0xff]  ;;  %v7040_v2 = vld [vmem:[#allocation8 + $0x1038] sm:$0xff] }
 0x3fa   :  { %v5023_v23 = vadd.f32 %v4879_v57, %v4443_v5  ;;  %v5024_v24 = vadd.f32 %v4880_v0, %v4444_v6  ;;  %v3723_v27 = vmul.f32 %v7025_v26, %v9201_v8  ;;  %v4302_v29 = vmul.f32 %v7026_v28, %v9204_v18 }
 0x3fb   :  { %5429 = vst [vmem:[#allocation10 + $0x380] sm:$0xf] %v5332_v16  ;;  %v4445_v30 = vadd.f32 %v4301_v4, %v3865_v17  ;;  %v3866_v31 = vadd.f32 %v3722_v22, %v3286_v15  ;;  %v4303_v33 = vmul.f32 %v7027_v32, %v9204_v18  ;;  %v4882_v35 = vmul.f32 %v7028_v34, %v9211_v7  ;;  %v7041_v4 = vld [vmem:[#allocation8 + $0x1040] sm:$0xff]  ;;  %v7043_v15 = vld [vmem:[#allocation8 + $0x748] sm:$0xff] }
 0x3fc   :  { %v5333_v36 = vpack.c.bf16 %v5024_v24, %v5023_v23  ;;  %v3867_v37 = vadd.f32 %v3723_v27, %v3287_v20  ;;  %v4883_v39 = vmul.f32 %v7029_v38, %v9211_v7  ;;  %v3288_v41 = vmul.f32 %v7030_v40, %v9196_v58  ;;  %v7044_v20 = vld [vmem:[#allocation8 + $0xbc8] sm:$0xff]  ;;  %v7046_v27 = vld [vmem:[#allocation8 + $0x2d0] sm:$0xff] }
 0x3fd   :  { %v5025_v42 = vadd.f32 %v4881_v12, %v4445_v30  ;;  %v4446_v43 = vadd.f32 %v4302_v29, %v3866_v31  ;;  %v3724_v45 = vmul.f32 %v7031_v44, %v9201_v8  ;;  %v4304_v47 = vmul.f32 %v7032_v46, %v9204_v18  ;;  %v7042_v12 = vld [vmem:[#allocation8 + $0x2c8] sm:$0xff]  ;;  %v7047_v29 = vld [vmem:[#allocation8 + $0x2d8] sm:$0xff] }
 0x3fe   :  { %5430 = vst [vmem:[#allocation10 + $0x384] sm:$0xff] %v5333_v36  ;;  %v4447_v48 = vadd.f32 %v4303_v33, %v3867_v37  ;;  %v4884_v50 = vmul.f32 %v7033_v49, %v9211_v7  ;;  %v3289_v52 = vmul.f32 %v7034_v51, %v9196_v58  ;;  %v3290_v54 = vmul.f32 %v7035_v53, %v9196_v58  ;;  %v7045_v22 = vld [vmem:[#allocation8 + $0x1048] sm:$0xff]  ;;  %v7048_v33 = vld [vmem:[#allocation8 + $0x750] sm:$0xff]  ;;  %v7054_v51 = vld [vmem:[#allocation8 + $0x2e0] sm:$0xff] }
 0x3ff   :  { %v5334_v55 = vpack.c.bf16 %v5025_v42, %v5025_v42  ;;  %v5026_v59 = vadd.f32 %v4882_v35, %v4446_v43  ;;  %v3868_v60 = vadd.f32 %v3724_v45, %v3288_v41  ;;  %v3725_v57 = vmul.f32 %v7036_v56, %v9201_v8  ;;  %v7049_v35 = vld [vmem:[#allocation8 + $0x758] sm:$0xff]  ;;  %v7052_v45 = vld [vmem:[#allocation8 + $0x1050] sm:$0xff]  ;;  %v7055_v53 = vld [vmem:[#allocation8 + $0x760] sm:$0xff] }
 0x400   :  { %v5027_v61 = vadd.f32 %v4883_v39, %v4447_v48  ;;  %v3726_v63 = vmul.f32 %v7037_v14, %v9201_v8  ;;  %v4305_v0 = vmul.f32 %v7038_v62, %v9204_v18  ;;  %v4306_v10 = vmul.f32 %v7039_v9, %v9204_v18  ;;  %v7050_v39 = vld [vmem:[#allocation8 + $0xbd0] sm:$0xff]  ;;  %v7051_v41 = vld [vmem:[#allocation8 + $0xbd8] sm:$0xff]  ;;  %v7058_v62 = vld [vmem:[#allocation8 + $0x2e8] sm:$0xff] }
 0x401   :  { %5431 = vst [vmem:[#allocation10 + $0x38c] sm:$0xf] %v5334_v55  ;;  %v4448_v25 = vadd.f32 %v4304_v47, %v3868_v60  ;;  %v3869_v1 = vadd.f32 %v3725_v57, %v3289_v52  ;;  %v4885_v3 = vmul.f32 %v7040_v2, %v9211_v7  ;;  %v4886_v5 = vmul.f32 %v7041_v4, %v9211_v7  ;;  %v7053_v47 = vld [vmem:[#allocation8 + $0x1058] sm:$0xff]  ;;  %v7056_v60 = vld [vmem:[#allocation8 + $0xbe0] sm:$0xff]  ;;  %v7059_v9 = vld [vmem:[#allocation8 + $0x2f0] sm:$0xff] }
 0x402   :  { %v5335_v6 = vpack.c.bf16 %v5027_v61, %v5026_v59  ;;  %v3870_v11 = vadd.f32 %v3726_v63, %v3290_v54  ;;  %v3291_v13 = vmul.f32 %v7042_v12, %v9196_v58  ;;  %v3727_v16 = vmul.f32 %v7043_v15, %v9201_v8  ;;  %v7057_v57 = vld [vmem:[#allocation8 + $0x1060] sm:$0xff]  ;;  %v7060_v2 = vld [vmem:[#allocation8 + $0x768] sm:$0xff]  ;;  %v7061_v4 = vld [vmem:[#allocation8 + $0x770] sm:$0xff] }
 0x403   :  { %v5028_v17 = vadd.f32 %v4884_v50, %v4448_v25  ;;  %v4449_v19 = vadd.f32 %v4305_v0, %v3869_v1  ;;  %v4307_v21 = vmul.f32 %v7044_v20, %v9204_v18  ;;  %v4887_v23 = vmul.f32 %v7045_v22, %v9211_v7  ;;  %v7065_v22 = vld [vmem:[#allocation8 + $0x1070] sm:$0xff] }
 0x404   :  { %5432 = vst [vmem:[#allocation10 + $0x390] sm:$0xff] %v5335_v6  ;;  %v4450_v24 = vadd.f32 %v4306_v10, %v3870_v11  ;;  %v3871_v26 = vadd.f32 %v3727_v16, %v3291_v13  ;;  %v3292_v28 = vmul.f32 %v7046_v27, %v9196_v58  ;;  %v3293_v30 = vmul.f32 %v7047_v29, %v9196_v58  ;;  %v7062_v11 = vld [vmem:[#allocation8 + $0xbe8] sm:$0xff]  ;;  %v7063_v13 = vld [vmem:[#allocation8 + $0xbf0] sm:$0xff] }
 0x405   :  { %v5336_v31 = vpack.c.bf16 %v5028_v17, %v5028_v17  ;;  %v5029_v32 = vadd.f32 %v4885_v3, %v4449_v19  ;;  %v3728_v34 = vmul.f32 %v7048_v33, %v9201_v8  ;;  %v3729_v36 = vmul.f32 %v7049_v35, %v9201_v8  ;;  %v7064_v16 = vld [vmem:[#allocation8 + $0x1068] sm:$0xff] }
 0x406   :  { %v5030_v37 = vadd.f32 %v4886_v5, %v4450_v24  ;;  %v4451_v38 = vadd.f32 %v4307_v21, %v3871_v26  ;;  %v4308_v40 = vmul.f32 %v7050_v39, %v9204_v18  ;;  %v4309_v42 = vmul.f32 %v7051_v41, %v9204_v18  ;;  %v7066_v26 = vld [vmem:[#allocation8 + $0x2f8] sm:$0xff] }
 0x407   :  { %5433 = vst [vmem:[#allocation10 + $0x398] sm:$0xf] %v5336_v31  ;;  %v3872_v43 = vadd.f32 %v3728_v34, %v3292_v28  ;;  %v3873_v44 = vadd.f32 %v3729_v36, %v3293_v30  ;;  %v4888_v46 = vmul.f32 %v7052_v45, %v9211_v7  ;;  %v4889_v48 = vmul.f32 %v7053_v47, %v9211_v7  ;;  %v7067_v28 = vld [vmem:[#allocation8 + $0x778] sm:$0xff]  ;;  %v7070_v36 = vld [vmem:[#allocation8 + $0x300] sm:$0xff] }
 0x408   :  { %v5337_v49 = vpack.c.bf16 %v5030_v37, %v5029_v32  ;;  %v5031_v50 = vadd.f32 %v4887_v23, %v4451_v38  ;;  %v3294_v52 = vmul.f32 %v7054_v51, %v9196_v58  ;;  %v3730_v54 = vmul.f32 %v7055_v53, %v9201_v8  ;;  %v7068_v30 = vld [vmem:[#allocation8 + $0xbf8] sm:$0xff] }
 0x409   :  { %v4452_v55 = vadd.f32 %v4308_v40, %v3872_v43  ;;  %v4453_v59 = vadd.f32 %v4309_v42, %v3873_v44  ;;  %v4310_v56 = vmul.f32 %v7056_v60, %v9204_v18  ;;  %v4890_v61 = vmul.f32 %v7057_v57, %v9211_v7  ;;  %v7069_v34 = vld [vmem:[#allocation8 + $0x1078] sm:$0xff]  ;;  %v7071_v40 = vld [vmem:[#allocation8 + $0x308] sm:$0xff]  ;;  %v7072_v42 = vld [vmem:[#allocation8 + $0x780] sm:$0xff] }
 0x40a   :  { %5434 = vst [vmem:[#allocation10 + $0x39c] sm:$0xff] %v5337_v49  ;;  %v5338_v14 = vpack.c.bf16 %v5031_v50, %v5031_v50  ;;  %v3874_v63 = vadd.f32 %v3730_v54, %v3294_v52  ;;  %v3295_v0 = vmul.f32 %v7058_v62, %v9196_v58  ;;  %v3296_v10 = vmul.f32 %v7059_v9, %v9196_v58  ;;  %v7075_v52 = vld [vmem:[#allocation8 + $0xc08] sm:$0xff]  ;;  %v7076_v54 = vld [vmem:[#allocation8 + $0x1080] sm:$0xff] }
 0x40b   :  { %v5032_v25 = vadd.f32 %v4888_v46, %v4452_v55  ;;  %v5033_v1 = vadd.f32 %v4889_v48, %v4453_v59  ;;  %v3731_v3 = vmul.f32 %v7060_v2, %v9201_v8  ;;  %v3732_v5 = vmul.f32 %v7061_v4, %v9201_v8  ;;  %v7073_v46 = vld [vmem:[#allocation8 + $0x788] sm:$0xff]  ;;  %v7074_v48 = vld [vmem:[#allocation8 + $0xc00] sm:$0xff]  ;;  %v7081_v2 = vld [vmem:[#allocation8 + $0x1090] sm:$0xff] }
 0x40c   :  { %5435 = vst [vmem:[#allocation10 + $0x3a4] sm:$0xf] %v5338_v14  ;;  %v4454_v6 = vadd.f32 %v4310_v56, %v3874_v63  ;;  %v4311_v12 = vmul.f32 %v7062_v11, %v9204_v18  ;;  %v4312_v15 = vmul.f32 %v7063_v13, %v9204_v18  ;;  %v4891_v17 = vmul.f32 %v7064_v16, %v9211_v7  ;;  %v7077_v56 = vld [vmem:[#allocation8 + $0x1088] sm:$0xff]  ;;  %v7082_v4 = vld [vmem:[#allocation8 + $0x318] sm:$0xff] }
 0x40d   :  { %v5339_v19 = vpack.c.bf16 %v5033_v1, %v5032_v25  ;;  %v3875_v20 = vadd.f32 %v3731_v3, %v3295_v0  ;;  %v3876_v21 = vadd.f32 %v3732_v5, %v3296_v10  ;;  %v4892_v23 = vmul.f32 %v7065_v22, %v9211_v7  ;;  %v7079_v0 = vld [vmem:[#allocation8 + $0x790] sm:$0xff]  ;;  %v7084_v16 = vld [vmem:[#allocation8 + $0x798] sm:$0xff] }
 0x40e   :  { %v5034_v24 = vadd.f32 %v4890_v61, %v4454_v6  ;;  %v3297_v27 = vmul.f32 %v7066_v26, %v9196_v58  ;;  %v3733_v29 = vmul.f32 %v7067_v28, %v9201_v8  ;;  %v4313_v31 = vmul.f32 %v7068_v30, %v9204_v18  ;;  %v7078_v61 = vld [vmem:[#allocation8 + $0x310] sm:$0xff]  ;;  %v7083_v6 = vld [vmem:[#allocation8 + $0x320] sm:$0xff]  ;;  %v7086_v22 = vld [vmem:[#allocation8 + $0xc18] sm:$0xff] }
 0x40f   :  { %5436 = vst [vmem:[#allocation10 + $0x3a8] sm:$0xff] %v5339_v19  ;;  %v4455_v32 = vadd.f32 %v4311_v12, %v3875_v20  ;;  %v4456_v33 = vadd.f32 %v4312_v15, %v3876_v21  ;;  %v4893_v35 = vmul.f32 %v7069_v34, %v9211_v7  ;;  %v3298_v37 = vmul.f32 %v7070_v36, %v9196_v58  ;;  %v7080_v10 = vld [vmem:[#allocation8 + $0xc10] sm:$0xff]  ;;  %v7085_v20 = vld [vmem:[#allocation8 + $0x7a0] sm:$0xff] }
 0x410   :  { %v5340_v38 = vpack.c.bf16 %v5034_v24, %v5034_v24  ;;  %v3877_v39 = vadd.f32 %v3733_v29, %v3297_v27  ;;  %v3299_v41 = vmul.f32 %v7071_v40, %v9196_v58  ;;  %v3734_v43 = vmul.f32 %v7072_v42, %v9201_v8  ;;  %v7087_v24 = vld [vmem:[#allocation8 + $0xc20] sm:$0xff]  ;;  %v7088_v29 = vld [vmem:[#allocation8 + $0x1098] sm:$0xff] }
 0x411   :  { %v5035_v44 = vadd.f32 %v4891_v17, %v4455_v32  ;;  %v5036_v45 = vadd.f32 %v4892_v23, %v4456_v33  ;;  %v3735_v47 = vmul.f32 %v7073_v46, %v9201_v8  ;;  %v4314_v49 = vmul.f32 %v7074_v48, %v9204_v18 }
 0x412   :  { %5437 = vst [vmem:[#allocation10 + $0x3b0] sm:$0xf] %v5340_v38  ;;  %v4457_v50 = vadd.f32 %v4313_v31, %v3877_v39  ;;  %v3878_v51 = vadd.f32 %v3734_v43, %v3298_v37  ;;  %v4315_v53 = vmul.f32 %v7075_v52, %v9204_v18  ;;  %v4894_v55 = vmul.f32 %v7076_v54, %v9211_v7  ;;  %v7089_v31 = vld [vmem:[#allocation8 + $0x10a0] sm:$0xff]  ;;  %v7091_v37 = vld [vmem:[#allocation8 + $0x7a8] sm:$0xff] }
 0x413   :  { %v5341_v59 = vpack.c.bf16 %v5036_v45, %v5035_v44  ;;  %v3879_v60 = vadd.f32 %v3735_v47, %v3299_v41  ;;  %v4895_v57 = vmul.f32 %v7077_v56, %v9211_v7  ;;  %v3300_v14 = vmul.f32 %v7078_v61, %v9196_v58  ;;  %v7092_v41 = vld [vmem:[#allocation8 + $0xc28] sm:$0xff]  ;;  %v7094_v47 = vld [vmem:[#allocation8 + $0x330] sm:$0xff] }
 0x414   :  { %v5037_v63 = vadd.f32 %v4893_v35, %v4457_v50  ;;  %v4458_v62 = vadd.f32 %v4314_v49, %v3878_v51  ;;  %v3736_v9 = vmul.f32 %v7079_v0, %v9201_v8  ;;  %v4316_v25 = vmul.f32 %v7080_v10, %v9204_v18  ;;  %v7090_v35 = vld [vmem:[#allocation8 + $0x328] sm:$0xff]  ;;  %v7095_v49 = vld [vmem:[#allocation8 + $0x338] sm:$0xff] }
 0x415   :  { %5438 = vst [vmem:[#allocation10 + $0x3b4] sm:$0xff] %v5341_v59  ;;  %v4459_v1 = vadd.f32 %v4315_v53, %v3879_v60  ;;  %v4896_v3 = vmul.f32 %v7081_v2, %v9211_v7  ;;  %v3301_v5 = vmul.f32 %v7082_v4, %v9196_v58  ;;  %v3302_v11 = vmul.f32 %v7083_v6, %v9196_v58  ;;  %v7093_v43 = vld [vmem:[#allocation8 + $0x10a8] sm:$0xff]  ;;  %v7096_v53 = vld [vmem:[#allocation8 + $0x7b0] sm:$0xff]  ;;  %v7102_v4 = vld [vmem:[#allocation8 + $0x340] sm:$0xff] }
 0x416   :  { %v5342_v12 = vpack.c.bf16 %v5037_v63, %v5037_v63  ;;  %v5038_v13 = vadd.f32 %v4894_v55, %v4458_v62  ;;  %v3880_v15 = vadd.f32 %v3736_v9, %v3300_v14  ;;  %v3737_v17 = vmul.f32 %v7084_v16, %v9201_v8  ;;  %v7097_v55 = vld [vmem:[#allocation8 + $0x7b8] sm:$0xff]  ;;  %v7100_v9 = vld [vmem:[#allocation8 + $0x10b0] sm:$0xff]  ;;  %v7103_v6 = vld [vmem:[#allocation8 + $0x7c0] sm:$0xff] }
 0x417   :  { %v5039_v19 = vadd.f32 %v4895_v57, %v4459_v1  ;;  %v3738_v21 = vmul.f32 %v7085_v20, %v9201_v8  ;;  %v4317_v23 = vmul.f32 %v7086_v22, %v9204_v18  ;;  %v4318_v26 = vmul.f32 %v7087_v24, %v9204_v18  ;;  %v7098_v57 = vld [vmem:[#allocation8 + $0xc30] sm:$0xff]  ;;  %v7099_v14 = vld [vmem:[#allocation8 + $0xc38] sm:$0xff]  ;;  %v7106_v22 = vld [vmem:[#allocation8 + $0x348] sm:$0xff] }
 0x418   :  { %5439 = vst [vmem:[#allocation10 + $0x3bc] sm:$0xf] %v5342_v12  ;;  %v4460_v27 = vadd.f32 %v4316_v25, %v3880_v15  ;;  %v3881_v28 = vadd.f32 %v3737_v17, %v3301_v5  ;;  %v4897_v30 = vmul.f32 %v7088_v29, %v9211_v7  ;;  %v4898_v32 = vmul.f32 %v7089_v31, %v9211_v7  ;;  %v7101_v25 = vld [vmem:[#allocation8 + $0x10b8] sm:$0xff]  ;;  %v7104_v15 = vld [vmem:[#allocation8 + $0xc40] sm:$0xff]  ;;  %v7107_v24 = vld [vmem:[#allocation8 + $0x350] sm:$0xff] }
 0x419   :  { %v5343_v33 = vpack.c.bf16 %v5039_v19, %v5038_v13  ;;  %v3882_v34 = vadd.f32 %v3738_v21, %v3302_v11  ;;  %v3303_v36 = vmul.f32 %v7090_v35, %v9196_v58  ;;  %v3739_v38 = vmul.f32 %v7091_v37, %v9201_v8  ;;  %v7105_v17 = vld [vmem:[#allocation8 + $0x10c0] sm:$0xff]  ;;  %v7108_v29 = vld [vmem:[#allocation8 + $0x7c8] sm:$0xff]  ;;  %v7109_v31 = vld [vmem:[#allocation8 + $0x7d0] sm:$0xff] }
 0x41a   :  { %v5040_v39 = vadd.f32 %v4896_v3, %v4460_v27  ;;  %v4461_v40 = vadd.f32 %v4317_v23, %v3881_v28  ;;  %v4319_v42 = vmul.f32 %v7092_v41, %v9204_v18  ;;  %v4899_v44 = vmul.f32 %v7093_v43, %v9211_v7  ;;  %v7113_v43 = vld [vmem:[#allocation8 + $0x10d0] sm:$0xff] }
 0x41b   :  { %5440 = vst [vmem:[#allocation10 + $0x3c0] sm:$0xff] %v5343_v33  ;;  %v4462_v45 = vadd.f32 %v4318_v26, %v3882_v34  ;;  %v3883_v46 = vadd.f32 %v3739_v38, %v3303_v36  ;;  %v3304_v48 = vmul.f32 %v7094_v47, %v9196_v58  ;;  %v3305_v50 = vmul.f32 %v7095_v49, %v9196_v58  ;;  %v7110_v34 = vld [vmem:[#allocation8 + $0xc48] sm:$0xff]  ;;  %v7111_v36 = vld [vmem:[#allocation8 + $0xc50] sm:$0xff] }
 0x41c   :  { %v5344_v51 = vpack.c.bf16 %v5040_v39, %v5040_v39  ;;  %v5041_v52 = vadd.f32 %v4897_v30, %v4461_v40  ;;  %v3740_v54 = vmul.f32 %v7096_v53, %v9201_v8  ;;  %v3741_v59 = vmul.f32 %v7097_v55, %v9201_v8  ;;  %v7112_v38 = vld [vmem:[#allocation8 + $0x10c8] sm:$0xff] }
 0x41d   :  { %v5042_v60 = vadd.f32 %v4898_v32, %v4462_v45  ;;  %v4463_v56 = vadd.f32 %v4319_v42, %v3883_v46  ;;  %v4320_v61 = vmul.f32 %v7098_v57, %v9204_v18  ;;  %v4321_v63 = vmul.f32 %v7099_v14, %v9204_v18  ;;  %v7114_v46 = vld [vmem:[#allocation8 + $0x358] sm:$0xff] }
 0x41e   :  { %5441 = vst [vmem:[#allocation10 + $0x3c8] sm:$0xf] %v5344_v51  ;;  %v3884_v62 = vadd.f32 %v3740_v54, %v3304_v48  ;;  %v3885_v0 = vadd.f32 %v3741_v59, %v3305_v50  ;;  %v4900_v10 = vmul.f32 %v7100_v9, %v9211_v7  ;;  %v4901_v1 = vmul.f32 %v7101_v25, %v9211_v7  ;;  %v7115_v48 = vld [vmem:[#allocation8 + $0x7d8] sm:$0xff]  ;;  %v7118_v59 = vld [vmem:[#allocation8 + $0x360] sm:$0xff] }
 0x41f   :  { %v5345_v2 = vpack.c.bf16 %v5042_v60, %v5041_v52  ;;  %v5043_v3 = vadd.f32 %v4899_v44, %v4463_v56  ;;  %v3306_v5 = vmul.f32 %v7102_v4, %v9196_v58  ;;  %v3742_v11 = vmul.f32 %v7103_v6, %v9201_v8  ;;  %v7116_v50 = vld [vmem:[#allocation8 + $0xc58] sm:$0xff] }
 0x420   :  { %v4464_v12 = vadd.f32 %v4320_v61, %v3884_v62  ;;  %v4465_v13 = vadd.f32 %v4321_v63, %v3885_v0  ;;  %v4322_v16 = vmul.f32 %v7104_v15, %v9204_v18  ;;  %v4902_v19 = vmul.f32 %v7105_v17, %v9211_v7  ;;  %v7117_v54 = vld [vmem:[#allocation8 + $0x10d8] sm:$0xff]  ;;  %v7119_v61 = vld [vmem:[#allocation8 + $0x368] sm:$0xff]  ;;  %v7120_v63 = vld [vmem:[#allocation8 + $0x7e0] sm:$0xff] }
 0x421   :  { %5442 = vst [vmem:[#allocation10 + $0x3cc] sm:$0xff] %v5345_v2  ;;  %v5346_v20 = vpack.c.bf16 %v5043_v3, %v5043_v3  ;;  %v3886_v21 = vadd.f32 %v3742_v11, %v3306_v5  ;;  %v3307_v23 = vmul.f32 %v7106_v22, %v9196_v58  ;;  %v3308_v26 = vmul.f32 %v7107_v24, %v9196_v58  ;;  %v7123_v5 = vld [vmem:[#allocation8 + $0xc68] sm:$0xff]  ;;  %v7124_v11 = vld [vmem:[#allocation8 + $0x10e0] sm:$0xff] }
 0x422   :  { %v5044_v27 = vadd.f32 %v4900_v10, %v4464_v12  ;;  %v5045_v28 = vadd.f32 %v4901_v1, %v4465_v13  ;;  %v3743_v30 = vmul.f32 %v7108_v29, %v9201_v8  ;;  %v3744_v32 = vmul.f32 %v7109_v31, %v9201_v8  ;;  %v7121_v10 = vld [vmem:[#allocation8 + $0x7e8] sm:$0xff]  ;;  %v7122_v1 = vld [vmem:[#allocation8 + $0xc60] sm:$0xff]  ;;  %v7129_v29 = vld [vmem:[#allocation8 + $0x10f0] sm:$0xff] }
 0x423   :  { %5443 = vst [vmem:[#allocation10 + $0x3d4] sm:$0xf] %v5346_v20  ;;  %v4466_v33 = vadd.f32 %v4322_v16, %v3886_v21  ;;  %v4323_v35 = vmul.f32 %v7110_v34, %v9204_v18  ;;  %v4324_v37 = vmul.f32 %v7111_v36, %v9204_v18  ;;  %v4903_v39 = vmul.f32 %v7112_v38, %v9211_v7  ;;  %v7125_v16 = vld [vmem:[#allocation8 + $0x10e8] sm:$0xff]  ;;  %v7130_v31 = vld [vmem:[#allocation8 + $0x378] sm:$0xff] }
 0x424   :  { %v5347_v40 = vpack.c.bf16 %v5045_v28, %v5044_v27  ;;  %v3887_v41 = vadd.f32 %v3743_v30, %v3307_v23  ;;  %v3888_v42 = vadd.f32 %v3744_v32, %v3308_v26  ;;  %v4904_v44 = vmul.f32 %v7113_v43, %v9211_v7  ;;  %v7127_v23 = vld [vmem:[#allocation8 + $0x7f0] sm:$0xff]  ;;  %v7132_v38 = vld [vmem:[#allocation8 + $0x7f8] sm:$0xff] }
 0x425   :  { %v5046_v45 = vadd.f32 %v4902_v19, %v4466_v33  ;;  %v3309_v47 = vmul.f32 %v7114_v46, %v9196_v58  ;;  %v3745_v49 = vmul.f32 %v7115_v48, %v9201_v8  ;;  %v4325_v51 = vmul.f32 %v7116_v50, %v9204_v18  ;;  %v7126_v19 = vld [vmem:[#allocation8 + $0x370] sm:$0xff]  ;;  %v7131_v33 = vld [vmem:[#allocation8 + $0x380] sm:$0xff]  ;;  %v7134_v43 = vld [vmem:[#allocation8 + $0xc78] sm:$0xff] }
 0x426   :  { %5444 = vst [vmem:[#allocation10 + $0x3d8] sm:$0xff] %v5347_v40  ;;  %v4467_v52 = vadd.f32 %v4323_v35, %v3887_v41  ;;  %v4468_v53 = vadd.f32 %v4324_v37, %v3888_v42  ;;  %v4905_v55 = vmul.f32 %v7117_v54, %v9211_v7  ;;  %v3310_v60 = vmul.f32 %v7118_v59, %v9196_v58  ;;  %v7128_v26 = vld [vmem:[#allocation8 + $0xc70] sm:$0xff]  ;;  %v7133_v41 = vld [vmem:[#allocation8 + $0x800] sm:$0xff] }
 0x427   :  { %v5348_v56 = vpack.c.bf16 %v5046_v45, %v5046_v45  ;;  %v3889_v57 = vadd.f32 %v3745_v49, %v3309_v47  ;;  %v3311_v14 = vmul.f32 %v7119_v61, %v9196_v58  ;;  %v3746_v62 = vmul.f32 %v7120_v63, %v9201_v8  ;;  %v7135_v45 = vld [vmem:[#allocation8 + $0xc80] sm:$0xff]  ;;  %v7136_v49 = vld [vmem:[#allocation8 + $0x10f8] sm:$0xff] }
 0x428   :  { %v5047_v0 = vadd.f32 %v4903_v39, %v4467_v52  ;;  %v5048_v9 = vadd.f32 %v4904_v44, %v4468_v53  ;;  %v3747_v25 = vmul.f32 %v7121_v10, %v9201_v8  ;;  %v4326_v2 = vmul.f32 %v7122_v1, %v9204_v18 }
 0x429   :  { %5445 = vst [vmem:[#allocation10 + $0x3e0] sm:$0xf] %v5348_v56  ;;  %v4469_v3 = vadd.f32 %v4325_v51, %v3889_v57  ;;  %v3890_v4 = vadd.f32 %v3746_v62, %v3310_v60  ;;  %v4327_v6 = vmul.f32 %v7123_v5, %v9204_v18  ;;  %v4906_v12 = vmul.f32 %v7124_v11, %v9211_v7  ;;  %v7137_v51 = vld [vmem:[#allocation8 + $0x1100] sm:$0xff]  ;;  %v7139_v60 = vld [vmem:[#allocation8 + $0x808] sm:$0xff] }
 0x42a   :  { %v5349_v13 = vpack.c.bf16 %v5048_v9, %v5047_v0  ;;  %v3891_v15 = vadd.f32 %v3747_v25, %v3311_v14  ;;  %v4907_v17 = vmul.f32 %v7125_v16, %v9211_v7  ;;  %v3312_v20 = vmul.f32 %v7126_v19, %v9196_v58  ;;  %v7140_v14 = vld [vmem:[#allocation8 + $0xc88] sm:$0xff]  ;;  %v7142_v25 = vld [vmem:[#allocation8 + $0x390] sm:$0xff] }
 0x42b   :  { %v5049_v21 = vadd.f32 %v4905_v55, %v4469_v3  ;;  %v4470_v22 = vadd.f32 %v4326_v2, %v3890_v4  ;;  %v3748_v24 = vmul.f32 %v7127_v23, %v9201_v8  ;;  %v4328_v27 = vmul.f32 %v7128_v26, %v9204_v18  ;;  %v7138_v55 = vld [vmem:[#allocation8 + $0x388] sm:$0xff]  ;;  %v7143_v2 = vld [vmem:[#allocation8 + $0x398] sm:$0xff] }
 0x42c   :  { %5446 = vst [vmem:[#allocation10 + $0x3e4] sm:$0xff] %v5349_v13  ;;  %v4471_v28 = vadd.f32 %v4327_v6, %v3891_v15  ;;  %v4908_v30 = vmul.f32 %v7129_v29, %v9211_v7  ;;  %v3313_v32 = vmul.f32 %v7130_v31, %v9196_v58  ;;  %v3314_v34 = vmul.f32 %v7131_v33, %v9196_v58  ;;  %v7141_v62 = vld [vmem:[#allocation8 + $0x1108] sm:$0xff]  ;;  %v7144_v6 = vld [vmem:[#allocation8 + $0x810] sm:$0xff]  ;;  %v7150_v31 = vld [vmem:[#allocation8 + $0x3a0] sm:$0xff] }
 0x42d   :  { %v5350_v35 = vpack.c.bf16 %v5049_v21, %v5049_v21  ;;  %v5050_v36 = vadd.f32 %v4906_v12, %v4470_v22  ;;  %v3892_v37 = vadd.f32 %v3748_v24, %v3312_v20  ;;  %v3749_v39 = vmul.f32 %v7132_v38, %v9201_v8  ;;  %v7145_v12 = vld [vmem:[#allocation8 + $0x818] sm:$0xff]  ;;  %v7148_v24 = vld [vmem:[#allocation8 + $0x1110] sm:$0xff]  ;;  %v7151_v33 = vld [vmem:[#allocation8 + $0x820] sm:$0xff] }
 0x42e   :  { %v5051_v40 = vadd.f32 %v4907_v17, %v4471_v28  ;;  %v3750_v42 = vmul.f32 %v7133_v41, %v9201_v8  ;;  %v4329_v44 = vmul.f32 %v7134_v43, %v9204_v18  ;;  %v4330_v46 = vmul.f32 %v7135_v45, %v9204_v18  ;;  %v7146_v17 = vld [vmem:[#allocation8 + $0xc90] sm:$0xff]  ;;  %v7147_v20 = vld [vmem:[#allocation8 + $0xc98] sm:$0xff]  ;;  %v7154_v43 = vld [vmem:[#allocation8 + $0x3a8] sm:$0xff] }
 0x42f   :  { %5447 = vst [vmem:[#allocation10 + $0x3ec] sm:$0xf] %v5350_v35  ;;  %v4472_v47 = vadd.f32 %v4328_v27, %v3892_v37  ;;  %v3893_v48 = vadd.f32 %v3749_v39, %v3313_v32  ;;  %v4909_v50 = vmul.f32 %v7136_v49, %v9211_v7  ;;  %v4910_v52 = vmul.f32 %v7137_v51, %v9211_v7  ;;  %v7149_v27 = vld [vmem:[#allocation8 + $0x1118] sm:$0xff]  ;;  %v7152_v37 = vld [vmem:[#allocation8 + $0xca0] sm:$0xff]  ;;  %v7155_v45 = vld [vmem:[#allocation8 + $0x3b0] sm:$0xff] }
 0x430   :  { %v5351_v53 = vpack.c.bf16 %v5051_v40, %v5050_v36  ;;  %v3894_v54 = vadd.f32 %v3750_v42, %v3314_v34  ;;  %v3315_v59 = vmul.f32 %v7138_v55, %v9196_v58  ;;  %v3751_v56 = vmul.f32 %v7139_v60, %v9201_v8  ;;  %v7153_v39 = vld [vmem:[#allocation8 + $0x1120] sm:$0xff]  ;;  %v7156_v49 = vld [vmem:[#allocation8 + $0x828] sm:$0xff]  ;;  %v7157_v51 = vld [vmem:[#allocation8 + $0x830] sm:$0xff] }
 0x431   :  { %v5052_v57 = vadd.f32 %v4908_v30, %v4472_v47  ;;  %v4473_v61 = vadd.f32 %v4329_v44, %v3893_v48  ;;  %v4331_v63 = vmul.f32 %v7140_v14, %v9204_v18  ;;  %v4911_v0 = vmul.f32 %v7141_v62, %v9211_v7  ;;  %v7161_v62 = vld [vmem:[#allocation8 + $0x1130] sm:$0xff] }
 0x432   :  { %5448 = vst [vmem:[#allocation10 + $0x3f0] sm:$0xff] %v5351_v53  ;;  %v4474_v9 = vadd.f32 %v4330_v46, %v3894_v54  ;;  %v3895_v10 = vadd.f32 %v3751_v56, %v3315_v59  ;;  %v3316_v1 = vmul.f32 %v7142_v25, %v9196_v58  ;;  %v3317_v3 = vmul.f32 %v7143_v2, %v9196_v58  ;;  %v7158_v54 = vld [vmem:[#allocation8 + $0xca8] sm:$0xff]  ;;  %v7159_v59 = vld [vmem:[#allocation8 + $0xcb0] sm:$0xff] }
 0x433   :  { %v5352_v4 = vpack.c.bf16 %v5052_v57, %v5052_v57  ;;  %v5053_v5 = vadd.f32 %v4909_v50, %v4473_v61  ;;  %v3752_v11 = vmul.f32 %v7144_v6, %v9201_v8  ;;  %v3753_v13 = vmul.f32 %v7145_v12, %v9201_v8  ;;  %v7160_v56 = vld [vmem:[#allocation8 + $0x1128] sm:$0xff] }
 0x434   :  { %v5054_v15 = vadd.f32 %v4910_v52, %v4474_v9  ;;  %v4475_v16 = vadd.f32 %v4331_v63, %v3895_v10  ;;  %v4332_v19 = vmul.f32 %v7146_v17, %v9204_v18  ;;  %v4333_v21 = vmul.f32 %v7147_v20, %v9204_v18  ;;  %v7162_v10 = vld [vmem:[#allocation8 + $0x3b8] sm:$0xff] }
 0x435   :  { %5449 = vst [vmem:[#allocation10 + $0x3f8] sm:$0xf] %v5352_v4  ;;  %v3896_v22 = vadd.f32 %v3752_v11, %v3316_v1  ;;  %v3897_v23 = vadd.f32 %v3753_v13, %v3317_v3  ;;  %v4912_v26 = vmul.f32 %v7148_v24, %v9211_v7  ;;  %v4913_v28 = vmul.f32 %v7149_v27, %v9211_v7  ;;  %v7163_v1 = vld [vmem:[#allocation8 + $0x838] sm:$0xff]  ;;  %v7166_v13 = vld [vmem:[#allocation8 + $0x3c0] sm:$0xff] }
 0x436   :  { %v5353_v29 = vpack.c.bf16 %v5054_v15, %v5053_v5  ;;  %v5055_v30 = vadd.f32 %v4911_v0, %v4475_v16  ;;  %v3318_v32 = vmul.f32 %v7150_v31, %v9196_v58  ;;  %v3754_v34 = vmul.f32 %v7151_v33, %v9201_v8  ;;  %v7164_v3 = vld [vmem:[#allocation8 + $0xcb8] sm:$0xff] }
 0x437   :  { %v4476_v35 = vadd.f32 %v4332_v19, %v3896_v22  ;;  %v4477_v36 = vadd.f32 %v4333_v21, %v3897_v23  ;;  %v4334_v38 = vmul.f32 %v7152_v37, %v9204_v18  ;;  %v4914_v40 = vmul.f32 %v7153_v39, %v9211_v7  ;;  %v7165_v11 = vld [vmem:[#allocation8 + $0x1138] sm:$0xff]  ;;  %v7167_v19 = vld [vmem:[#allocation8 + $0x3c8] sm:$0xff]  ;;  %v7168_v21 = vld [vmem:[#allocation8 + $0x840] sm:$0xff] }
 0x438   :  { %5450 = vst [vmem:[#allocation10 + $0x3fc] sm:$0xff] %v5353_v29  ;;  %v5354_v41 = vpack.c.bf16 %v5055_v30, %v5055_v30  ;;  %v3898_v42 = vadd.f32 %v3754_v34, %v3318_v32  ;;  %v3319_v44 = vmul.f32 %v7154_v43, %v9196_v58  ;;  %v3320_v46 = vmul.f32 %v7155_v45, %v9196_v58  ;;  %v7171_v32 = vld [vmem:[#allocation8 + $0xcc8] sm:$0xff]  ;;  %v7172_v34 = vld [vmem:[#allocation8 + $0x1140] sm:$0xff] }
 0x439   :  { %v5056_v47 = vadd.f32 %v4912_v26, %v4476_v35  ;;  %v5057_v48 = vadd.f32 %v4913_v28, %v4477_v36  ;;  %v3755_v50 = vmul.f32 %v7156_v49, %v9201_v8  ;;  %v3756_v52 = vmul.f32 %v7157_v51, %v9201_v8  ;;  %v7169_v26 = vld [vmem:[#allocation8 + $0x848] sm:$0xff]  ;;  %v7170_v28 = vld [vmem:[#allocation8 + $0xcc0] sm:$0xff]  ;;  %v7177_v49 = vld [vmem:[#allocation8 + $0x1150] sm:$0xff] }
 0x43a   :  { %5451 = vst [vmem:[#allocation10 + $0x404] sm:$0xf] %v5354_v41  ;;  %v4478_v53 = vadd.f32 %v4334_v38, %v3898_v42  ;;  %v4335_v55 = vmul.f32 %v7158_v54, %v9204_v18  ;;  %v4336_v60 = vmul.f32 %v7159_v59, %v9204_v18  ;;  %v4915_v57 = vmul.f32 %v7160_v56, %v9211_v7  ;;  %v7173_v38 = vld [vmem:[#allocation8 + $0x1148] sm:$0xff]  ;;  %v7178_v51 = vld [vmem:[#allocation8 + $0x3d8] sm:$0xff] }
 0x43b   :  { %v5355_v61 = vpack.c.bf16 %v5057_v48, %v5056_v47  ;;  %v3899_v14 = vadd.f32 %v3755_v50, %v3319_v44  ;;  %v3900_v63 = vadd.f32 %v3756_v52, %v3320_v46  ;;  %v4916_v0 = vmul.f32 %v7161_v62, %v9211_v7  ;;  %v7175_v44 = vld [vmem:[#allocation8 + $0x850] sm:$0xff]  ;;  %v7180_v56 = vld [vmem:[#allocation8 + $0x858] sm:$0xff] }
 0x43c   :  { %v5058_v9 = vadd.f32 %v4914_v40, %v4478_v53  ;;  %v3321_v25 = vmul.f32 %v7162_v10, %v9196_v58  ;;  %v3757_v2 = vmul.f32 %v7163_v1, %v9201_v8  ;;  %v4337_v4 = vmul.f32 %v7164_v3, %v9204_v18  ;;  %v7174_v40 = vld [vmem:[#allocation8 + $0x3d0] sm:$0xff]  ;;  %v7179_v53 = vld [vmem:[#allocation8 + $0x3e0] sm:$0xff]  ;;  %v7182_v62 = vld [vmem:[#allocation8 + $0xcd8] sm:$0xff] }
 0x43d   :  { %5452 = vst [vmem:[#allocation10 + $0x408] sm:$0xff] %v5355_v61  ;;  %v4479_v5 = vadd.f32 %v4335_v55, %v3899_v14  ;;  %v4480_v6 = vadd.f32 %v4336_v60, %v3900_v63  ;;  %v4917_v12 = vmul.f32 %v7165_v11, %v9211_v7  ;;  %v3322_v15 = vmul.f32 %v7166_v13, %v9196_v58  ;;  %v7176_v46 = vld [vmem:[#allocation8 + $0xcd0] sm:$0xff]  ;;  %v7181_v14 = vld [vmem:[#allocation8 + $0x860] sm:$0xff] }
 0x43e   :  { %v5356_v16 = vpack.c.bf16 %v5058_v9, %v5058_v9  ;;  %v3901_v17 = vadd.f32 %v3757_v2, %v3321_v25  ;;  %v3323_v20 = vmul.f32 %v7167_v19, %v9196_v58  ;;  %v3758_v22 = vmul.f32 %v7168_v21, %v9201_v8  ;;  %v7183_v9 = vld [vmem:[#allocation8 + $0xce0] sm:$0xff]  ;;  %v7184_v2 = vld [vmem:[#allocation8 + $0x1158] sm:$0xff] }
 0x43f   :  { %v5059_v23 = vadd.f32 %v4915_v57, %v4479_v5  ;;  %v5060_v24 = vadd.f32 %v4916_v0, %v4480_v6  ;;  %v3759_v27 = vmul.f32 %v7169_v26, %v9201_v8  ;;  %v4338_v29 = vmul.f32 %v7170_v28, %v9204_v18 }
 0x440   :  { %5453 = vst [vmem:[#allocation10 + $0x410] sm:$0xf] %v5356_v16  ;;  %v4481_v30 = vadd.f32 %v4337_v4, %v3901_v17  ;;  %v3902_v31 = vadd.f32 %v3758_v22, %v3322_v15  ;;  %v4339_v33 = vmul.f32 %v7171_v32, %v9204_v18  ;;  %v4918_v35 = vmul.f32 %v7172_v34, %v9211_v7  ;;  %v7185_v4 = vld [vmem:[#allocation8 + $0x1160] sm:$0xff]  ;;  %v7187_v15 = vld [vmem:[#allocation8 + $0x868] sm:$0xff] }
 0x441   :  { %v5357_v36 = vpack.c.bf16 %v5060_v24, %v5059_v23  ;;  %v3903_v37 = vadd.f32 %v3759_v27, %v3323_v20  ;;  %v4919_v39 = vmul.f32 %v7173_v38, %v9211_v7  ;;  %v3324_v41 = vmul.f32 %v7174_v40, %v9196_v58  ;;  %v7188_v20 = vld [vmem:[#allocation8 + $0xce8] sm:$0xff]  ;;  %v7190_v27 = vld [vmem:[#allocation8 + $0x3f0] sm:$0xff] }
 0x442   :  { %v5061_v42 = vadd.f32 %v4917_v12, %v4481_v30  ;;  %v4482_v43 = vadd.f32 %v4338_v29, %v3902_v31  ;;  %v3760_v45 = vmul.f32 %v7175_v44, %v9201_v8  ;;  %v4340_v47 = vmul.f32 %v7176_v46, %v9204_v18  ;;  %v7186_v12 = vld [vmem:[#allocation8 + $0x3e8] sm:$0xff]  ;;  %v7191_v29 = vld [vmem:[#allocation8 + $0x3f8] sm:$0xff] }
 0x443   :  { %5454 = vst [vmem:[#allocation10 + $0x414] sm:$0xff] %v5357_v36  ;;  %v4483_v48 = vadd.f32 %v4339_v33, %v3903_v37  ;;  %v4920_v50 = vmul.f32 %v7177_v49, %v9211_v7  ;;  %v3325_v52 = vmul.f32 %v7178_v51, %v9196_v58  ;;  %v3326_v54 = vmul.f32 %v7179_v53, %v9196_v58  ;;  %v7189_v22 = vld [vmem:[#allocation8 + $0x1168] sm:$0xff]  ;;  %v7192_v33 = vld [vmem:[#allocation8 + $0x870] sm:$0xff]  ;;  %v7198_v51 = vld [vmem:[#allocation8 + $0x400] sm:$0xff] }
 0x444   :  { %v5358_v55 = vpack.c.bf16 %v5061_v42, %v5061_v42  ;;  %v5062_v59 = vadd.f32 %v4918_v35, %v4482_v43  ;;  %v3904_v60 = vadd.f32 %v3760_v45, %v3324_v41  ;;  %v3761_v57 = vmul.f32 %v7180_v56, %v9201_v8  ;;  %v7193_v35 = vld [vmem:[#allocation8 + $0x878] sm:$0xff]  ;;  %v7196_v45 = vld [vmem:[#allocation8 + $0x1170] sm:$0xff]  ;;  %v7199_v53 = vld [vmem:[#allocation8 + $0x880] sm:$0xff] }
 0x445   :  { %v5063_v61 = vadd.f32 %v4919_v39, %v4483_v48  ;;  %v3762_v63 = vmul.f32 %v7181_v14, %v9201_v8  ;;  %v4341_v0 = vmul.f32 %v7182_v62, %v9204_v18  ;;  %v4342_v10 = vmul.f32 %v7183_v9, %v9204_v18  ;;  %v7194_v39 = vld [vmem:[#allocation8 + $0xcf0] sm:$0xff]  ;;  %v7195_v41 = vld [vmem:[#allocation8 + $0xcf8] sm:$0xff]  ;;  %v7202_v62 = vld [vmem:[#allocation8 + $0x408] sm:$0xff] }
 0x446   :  { %5455 = vst [vmem:[#allocation10 + $0x41c] sm:$0xf] %v5358_v55  ;;  %v4484_v25 = vadd.f32 %v4340_v47, %v3904_v60  ;;  %v3905_v1 = vadd.f32 %v3761_v57, %v3325_v52  ;;  %v4921_v3 = vmul.f32 %v7184_v2, %v9211_v7  ;;  %v4922_v5 = vmul.f32 %v7185_v4, %v9211_v7  ;;  %v7197_v47 = vld [vmem:[#allocation8 + $0x1178] sm:$0xff]  ;;  %v7200_v60 = vld [vmem:[#allocation8 + $0xd00] sm:$0xff]  ;;  %v7203_v9 = vld [vmem:[#allocation8 + $0x410] sm:$0xff] }
 0x447   :  { %v5359_v6 = vpack.c.bf16 %v5063_v61, %v5062_v59  ;;  %v3906_v11 = vadd.f32 %v3762_v63, %v3326_v54  ;;  %v3327_v13 = vmul.f32 %v7186_v12, %v9196_v58  ;;  %v3763_v16 = vmul.f32 %v7187_v15, %v9201_v8  ;;  %v7201_v57 = vld [vmem:[#allocation8 + $0x1180] sm:$0xff]  ;;  %v7204_v2 = vld [vmem:[#allocation8 + $0x888] sm:$0xff]  ;;  %v7205_v4 = vld [vmem:[#allocation8 + $0x890] sm:$0xff] }
 0x448   :  { %v5064_v17 = vadd.f32 %v4920_v50, %v4484_v25  ;;  %v4485_v19 = vadd.f32 %v4341_v0, %v3905_v1  ;;  %v4343_v21 = vmul.f32 %v7188_v20, %v9204_v18  ;;  %v4923_v23 = vmul.f32 %v7189_v22, %v9211_v7  ;;  %v7209_v22 = vld [vmem:[#allocation8 + $0x1190] sm:$0xff] }
 0x449   :  { %5456 = vst [vmem:[#allocation10 + $0x420] sm:$0xff] %v5359_v6  ;;  %v4486_v24 = vadd.f32 %v4342_v10, %v3906_v11  ;;  %v3907_v26 = vadd.f32 %v3763_v16, %v3327_v13  ;;  %v3328_v28 = vmul.f32 %v7190_v27, %v9196_v58  ;;  %v3329_v30 = vmul.f32 %v7191_v29, %v9196_v58  ;;  %v7206_v11 = vld [vmem:[#allocation8 + $0xd08] sm:$0xff]  ;;  %v7207_v13 = vld [vmem:[#allocation8 + $0xd10] sm:$0xff] }
 0x44a   :  { %v5360_v31 = vpack.c.bf16 %v5064_v17, %v5064_v17  ;;  %v5065_v32 = vadd.f32 %v4921_v3, %v4485_v19  ;;  %v3764_v34 = vmul.f32 %v7192_v33, %v9201_v8  ;;  %v3765_v36 = vmul.f32 %v7193_v35, %v9201_v8  ;;  %v7208_v16 = vld [vmem:[#allocation8 + $0x1188] sm:$0xff] }
 0x44b   :  { %v5066_v37 = vadd.f32 %v4922_v5, %v4486_v24  ;;  %v4487_v38 = vadd.f32 %v4343_v21, %v3907_v26  ;;  %v4344_v40 = vmul.f32 %v7194_v39, %v9204_v18  ;;  %v4345_v42 = vmul.f32 %v7195_v41, %v9204_v18  ;;  %v7210_v26 = vld [vmem:[#allocation8 + $0x418] sm:$0xff] }
 0x44c   :  { %5457 = vst [vmem:[#allocation10 + $0x428] sm:$0xf] %v5360_v31  ;;  %v3908_v43 = vadd.f32 %v3764_v34, %v3328_v28  ;;  %v3909_v44 = vadd.f32 %v3765_v36, %v3329_v30  ;;  %v4924_v46 = vmul.f32 %v7196_v45, %v9211_v7  ;;  %v4925_v48 = vmul.f32 %v7197_v47, %v9211_v7  ;;  %v7211_v28 = vld [vmem:[#allocation8 + $0x898] sm:$0xff]  ;;  %v7214_v36 = vld [vmem:[#allocation8 + $0x420] sm:$0xff] }
 0x44d   :  { %v5361_v49 = vpack.c.bf16 %v5066_v37, %v5065_v32  ;;  %v5067_v50 = vadd.f32 %v4923_v23, %v4487_v38  ;;  %v3330_v52 = vmul.f32 %v7198_v51, %v9196_v58  ;;  %v3766_v54 = vmul.f32 %v7199_v53, %v9201_v8  ;;  %v7212_v30 = vld [vmem:[#allocation8 + $0xd18] sm:$0xff] }
 0x44e   :  { %v4488_v55 = vadd.f32 %v4344_v40, %v3908_v43  ;;  %v4489_v59 = vadd.f32 %v4345_v42, %v3909_v44  ;;  %v4346_v56 = vmul.f32 %v7200_v60, %v9204_v18  ;;  %v4926_v61 = vmul.f32 %v7201_v57, %v9211_v7  ;;  %v7213_v34 = vld [vmem:[#allocation8 + $0x1198] sm:$0xff]  ;;  %v7215_v40 = vld [vmem:[#allocation8 + $0x428] sm:$0xff]  ;;  %v7216_v42 = vld [vmem:[#allocation8 + $0x8a0] sm:$0xff] }
 0x44f   :  { %5458 = vst [vmem:[#allocation10 + $0x42c] sm:$0xff] %v5361_v49  ;;  %v5362_v14 = vpack.c.bf16 %v5067_v50, %v5067_v50  ;;  %v3910_v63 = vadd.f32 %v3766_v54, %v3330_v52  ;;  %v3331_v0 = vmul.f32 %v7202_v62, %v9196_v58  ;;  %v3332_v10 = vmul.f32 %v7203_v9, %v9196_v58  ;;  %v7219_v52 = vld [vmem:[#allocation8 + $0xd28] sm:$0xff]  ;;  %v7220_v54 = vld [vmem:[#allocation8 + $0x11a0] sm:$0xff] }
 0x450   :  { %v5068_v25 = vadd.f32 %v4924_v46, %v4488_v55  ;;  %v5069_v1 = vadd.f32 %v4925_v48, %v4489_v59  ;;  %v3767_v3 = vmul.f32 %v7204_v2, %v9201_v8  ;;  %v3768_v5 = vmul.f32 %v7205_v4, %v9201_v8  ;;  %v7217_v46 = vld [vmem:[#allocation8 + $0x8a8] sm:$0xff]  ;;  %v7218_v48 = vld [vmem:[#allocation8 + $0xd20] sm:$0xff]  ;;  %v7225_v2 = vld [vmem:[#allocation8 + $0x11b0] sm:$0xff] }
 0x451   :  { %5459 = vst [vmem:[#allocation10 + $0x434] sm:$0xf] %v5362_v14  ;;  %v4490_v6 = vadd.f32 %v4346_v56, %v3910_v63  ;;  %v4347_v12 = vmul.f32 %v7206_v11, %v9204_v18  ;;  %v4348_v15 = vmul.f32 %v7207_v13, %v9204_v18  ;;  %v4927_v17 = vmul.f32 %v7208_v16, %v9211_v7  ;;  %v7221_v56 = vld [vmem:[#allocation8 + $0x11a8] sm:$0xff]  ;;  %v7226_v4 = vld [vmem:[#allocation8 + $0x438] sm:$0xff] }
 0x452   :  { %v5363_v19 = vpack.c.bf16 %v5069_v1, %v5068_v25  ;;  %v3911_v20 = vadd.f32 %v3767_v3, %v3331_v0  ;;  %v3912_v21 = vadd.f32 %v3768_v5, %v3332_v10  ;;  %v4928_v23 = vmul.f32 %v7209_v22, %v9211_v7  ;;  %v7223_v0 = vld [vmem:[#allocation8 + $0x8b0] sm:$0xff]  ;;  %v7228_v16 = vld [vmem:[#allocation8 + $0x8b8] sm:$0xff] }
 0x453   :  { %v5070_v24 = vadd.f32 %v4926_v61, %v4490_v6  ;;  %v3333_v27 = vmul.f32 %v7210_v26, %v9196_v58  ;;  %v3769_v29 = vmul.f32 %v7211_v28, %v9201_v8  ;;  %v4349_v31 = vmul.f32 %v7212_v30, %v9204_v18  ;;  %v7222_v61 = vld [vmem:[#allocation8 + $0x430] sm:$0xff]  ;;  %v7227_v6 = vld [vmem:[#allocation8 + $0x440] sm:$0xff]  ;;  %v7230_v22 = vld [vmem:[#allocation8 + $0xd38] sm:$0xff] }
 0x454   :  { %5460 = vst [vmem:[#allocation10 + $0x438] sm:$0xff] %v5363_v19  ;;  %v4491_v32 = vadd.f32 %v4347_v12, %v3911_v20  ;;  %v4492_v33 = vadd.f32 %v4348_v15, %v3912_v21  ;;  %v4929_v35 = vmul.f32 %v7213_v34, %v9211_v7  ;;  %v3334_v37 = vmul.f32 %v7214_v36, %v9196_v58  ;;  %v7224_v10 = vld [vmem:[#allocation8 + $0xd30] sm:$0xff]  ;;  %v7229_v20 = vld [vmem:[#allocation8 + $0x8c0] sm:$0xff] }
 0x455   :  { %v5364_v38 = vpack.c.bf16 %v5070_v24, %v5070_v24  ;;  %v3913_v39 = vadd.f32 %v3769_v29, %v3333_v27  ;;  %v3335_v41 = vmul.f32 %v7215_v40, %v9196_v58  ;;  %v3770_v43 = vmul.f32 %v7216_v42, %v9201_v8  ;;  %v7231_v24 = vld [vmem:[#allocation8 + $0xd40] sm:$0xff]  ;;  %v7232_v29 = vld [vmem:[#allocation8 + $0x11b8] sm:$0xff] }
 0x456   :  { %v5071_v44 = vadd.f32 %v4927_v17, %v4491_v32  ;;  %v5072_v45 = vadd.f32 %v4928_v23, %v4492_v33  ;;  %v3771_v47 = vmul.f32 %v7217_v46, %v9201_v8  ;;  %v4350_v49 = vmul.f32 %v7218_v48, %v9204_v18 }
 0x457   :  { %5461 = vst [vmem:[#allocation10 + $0x440] sm:$0xf] %v5364_v38  ;;  %v4493_v50 = vadd.f32 %v4349_v31, %v3913_v39  ;;  %v3914_v51 = vadd.f32 %v3770_v43, %v3334_v37  ;;  %v4351_v53 = vmul.f32 %v7219_v52, %v9204_v18  ;;  %v4930_v55 = vmul.f32 %v7220_v54, %v9211_v7  ;;  %v7233_v31 = vld [vmem:[#allocation8 + $0x11c0] sm:$0xff]  ;;  %v7235_v37 = vld [vmem:[#allocation8 + $0x8c8] sm:$0xff] }
 0x458   :  { %v5365_v59 = vpack.c.bf16 %v5072_v45, %v5071_v44  ;;  %v3915_v60 = vadd.f32 %v3771_v47, %v3335_v41  ;;  %v4931_v57 = vmul.f32 %v7221_v56, %v9211_v7  ;;  %v3336_v14 = vmul.f32 %v7222_v61, %v9196_v58  ;;  %v7236_v41 = vld [vmem:[#allocation8 + $0xd48] sm:$0xff]  ;;  %v7238_v47 = vld [vmem:[#allocation8 + $0x450] sm:$0xff] }
 0x459   :  { %v5073_v63 = vadd.f32 %v4929_v35, %v4493_v50  ;;  %v4494_v62 = vadd.f32 %v4350_v49, %v3914_v51  ;;  %v3772_v9 = vmul.f32 %v7223_v0, %v9201_v8  ;;  %v4352_v25 = vmul.f32 %v7224_v10, %v9204_v18  ;;  %v7234_v35 = vld [vmem:[#allocation8 + $0x448] sm:$0xff]  ;;  %v7239_v49 = vld [vmem:[#allocation8 + $0x458] sm:$0xff] }
 0x45a   :  { %5462 = vst [vmem:[#allocation10 + $0x444] sm:$0xff] %v5365_v59  ;;  %v4495_v1 = vadd.f32 %v4351_v53, %v3915_v60  ;;  %v4932_v3 = vmul.f32 %v7225_v2, %v9211_v7  ;;  %v3337_v5 = vmul.f32 %v7226_v4, %v9196_v58  ;;  %v3338_v11 = vmul.f32 %v7227_v6, %v9196_v58  ;;  %v7237_v43 = vld [vmem:[#allocation8 + $0x11c8] sm:$0xff]  ;;  %v7240_v53 = vld [vmem:[#allocation8 + $0x8d0] sm:$0xff]  ;;  %v7246_v4 = vld [vmem:[#allocation8 + $0x460] sm:$0xff] }
 0x45b   :  { %v5366_v12 = vpack.c.bf16 %v5073_v63, %v5073_v63  ;;  %v5074_v13 = vadd.f32 %v4930_v55, %v4494_v62  ;;  %v3916_v15 = vadd.f32 %v3772_v9, %v3336_v14  ;;  %v3773_v17 = vmul.f32 %v7228_v16, %v9201_v8  ;;  %v7241_v55 = vld [vmem:[#allocation8 + $0x8d8] sm:$0xff]  ;;  %v7244_v9 = vld [vmem:[#allocation8 + $0x11d0] sm:$0xff]  ;;  %v7247_v6 = vld [vmem:[#allocation8 + $0x8e0] sm:$0xff] }
 0x45c   :  { %v5075_v19 = vadd.f32 %v4931_v57, %v4495_v1  ;;  %v3774_v21 = vmul.f32 %v7229_v20, %v9201_v8  ;;  %v4353_v23 = vmul.f32 %v7230_v22, %v9204_v18  ;;  %v4354_v26 = vmul.f32 %v7231_v24, %v9204_v18  ;;  %v7242_v57 = vld [vmem:[#allocation8 + $0xd50] sm:$0xff]  ;;  %v7243_v14 = vld [vmem:[#allocation8 + $0xd58] sm:$0xff]  ;;  %v7250_v22 = vld [vmem:[#allocation8 + $0x468] sm:$0xff] }
 0x45d   :  { %5463 = vst [vmem:[#allocation10 + $0x44c] sm:$0xf] %v5366_v12  ;;  %v4496_v27 = vadd.f32 %v4352_v25, %v3916_v15  ;;  %v3917_v28 = vadd.f32 %v3773_v17, %v3337_v5  ;;  %v4933_v30 = vmul.f32 %v7232_v29, %v9211_v7  ;;  %v4934_v32 = vmul.f32 %v7233_v31, %v9211_v7  ;;  %v7245_v25 = vld [vmem:[#allocation8 + $0x11d8] sm:$0xff]  ;;  %v7248_v15 = vld [vmem:[#allocation8 + $0xd60] sm:$0xff]  ;;  %v7251_v24 = vld [vmem:[#allocation8 + $0x470] sm:$0xff] }
 0x45e   :  { %v5367_v33 = vpack.c.bf16 %v5075_v19, %v5074_v13  ;;  %v3918_v34 = vadd.f32 %v3774_v21, %v3338_v11  ;;  %v3339_v36 = vmul.f32 %v7234_v35, %v9196_v58  ;;  %v3775_v38 = vmul.f32 %v7235_v37, %v9201_v8  ;;  %v7249_v17 = vld [vmem:[#allocation8 + $0x11e0] sm:$0xff]  ;;  %v7252_v29 = vld [vmem:[#allocation8 + $0x8e8] sm:$0xff]  ;;  %v7253_v31 = vld [vmem:[#allocation8 + $0x8f0] sm:$0xff] }
 0x45f   :  { %v5076_v39 = vadd.f32 %v4932_v3, %v4496_v27  ;;  %v4497_v40 = vadd.f32 %v4353_v23, %v3917_v28  ;;  %v4355_v42 = vmul.f32 %v7236_v41, %v9204_v18  ;;  %v4935_v44 = vmul.f32 %v7237_v43, %v9211_v7  ;;  %v7257_v43 = vld [vmem:[#allocation8 + $0x11f0] sm:$0xff] }
 0x460   :  { %5464 = vst [vmem:[#allocation10 + $0x450] sm:$0xff] %v5367_v33  ;;  %v4498_v45 = vadd.f32 %v4354_v26, %v3918_v34  ;;  %v3919_v46 = vadd.f32 %v3775_v38, %v3339_v36  ;;  %v3340_v48 = vmul.f32 %v7238_v47, %v9196_v58  ;;  %v3341_v50 = vmul.f32 %v7239_v49, %v9196_v58  ;;  %v7254_v34 = vld [vmem:[#allocation8 + $0xd68] sm:$0xff]  ;;  %v7255_v36 = vld [vmem:[#allocation8 + $0xd70] sm:$0xff] }
 0x461   :  { %v5368_v51 = vpack.c.bf16 %v5076_v39, %v5076_v39  ;;  %v5077_v52 = vadd.f32 %v4933_v30, %v4497_v40  ;;  %v3776_v54 = vmul.f32 %v7240_v53, %v9201_v8  ;;  %v3777_v59 = vmul.f32 %v7241_v55, %v9201_v8  ;;  %v7256_v38 = vld [vmem:[#allocation8 + $0x11e8] sm:$0xff] }
 0x462   :  { %v5078_v60 = vadd.f32 %v4934_v32, %v4498_v45  ;;  %v4499_v56 = vadd.f32 %v4355_v42, %v3919_v46  ;;  %v4356_v61 = vmul.f32 %v7242_v57, %v9204_v18  ;;  %v4357_v63 = vmul.f32 %v7243_v14, %v9204_v18  ;;  %v7258_v46 = vld [vmem:[#allocation8 + $0x478] sm:$0xff] }
 0x463   :  { %5465 = vst [vmem:[#allocation10 + $0x458] sm:$0xf] %v5368_v51  ;;  %v3920_v62 = vadd.f32 %v3776_v54, %v3340_v48  ;;  %v3921_v0 = vadd.f32 %v3777_v59, %v3341_v50  ;;  %v4936_v10 = vmul.f32 %v7244_v9, %v9211_v7  ;;  %v4937_v1 = vmul.f32 %v7245_v25, %v9211_v7  ;;  %v7259_v48 = vld [vmem:[#allocation8 + $0x8f8] sm:$0xff] }
 0x464   :  { %v5369_v2 = vpack.c.bf16 %v5078_v60, %v5077_v52  ;;  %v5079_v3 = vadd.f32 %v4935_v44, %v4499_v56  ;;  %v3342_v5 = vmul.f32 %v7246_v4, %v9196_v58  ;;  %v3778_v11 = vmul.f32 %v7247_v6, %v9201_v8  ;;  %v7260_v50 = vld [vmem:[#allocation8 + $0xd78] sm:$0xff] }
 0x465   :  { %v4500_v12 = vadd.f32 %v4356_v61, %v3920_v62  ;;  %v4501_v13 = vadd.f32 %v4357_v63, %v3921_v0  ;;  %v4358_v16 = vmul.f32 %v7248_v15, %v9204_v18  ;;  %v4938_v19 = vmul.f32 %v7249_v17, %v9211_v7  ;;  %v7261_v59 = vld [vmem:[#allocation8 + $0x11f8] sm:$0xff] }
 0x466   :  { %5466 = vst [vmem:[#allocation10 + $0x45c] sm:$0xff] %v5369_v2  ;;  %v5370_v20 = vpack.c.bf16 %v5079_v3, %v5079_v3  ;;  %v3922_v21 = vadd.f32 %v3778_v11, %v3342_v5  ;;  %v3343_v23 = vmul.f32 %v7250_v22, %v9196_v58  ;;  %v3344_v26 = vmul.f32 %v7251_v24, %v9196_v58 }
 0x467   :  { %v5080_v27 = vadd.f32 %v4936_v10, %v4500_v12  ;;  %v5081_v28 = vadd.f32 %v4937_v1, %v4501_v13  ;;  %v3779_v30 = vmul.f32 %v7252_v29, %v9201_v8  ;;  %v3780_v32 = vmul.f32 %v7253_v31, %v9201_v8 }
 0x468   :  { %5467 = vst [vmem:[#allocation10 + $0x464] sm:$0xf] %v5370_v20  ;;  %v4502_v33 = vadd.f32 %v4358_v16, %v3922_v21  ;;  %v4359_v35 = vmul.f32 %v7254_v34, %v9204_v18  ;;  %v4360_v37 = vmul.f32 %v7255_v36, %v9204_v18  ;;  %v4939_v39 = vmul.f32 %v7256_v38, %v9211_v7 }
 0x469   :  { %v5371_v40 = vpack.c.bf16 %v5081_v28, %v5080_v27  ;;  %v3923_v41 = vadd.f32 %v3779_v30, %v3343_v23  ;;  %v3924_v42 = vadd.f32 %v3780_v32, %v3344_v26  ;;  %v4940_v44 = vmul.f32 %v7257_v43, %v9211_v7 }
 0x46a   :  { %v5082_v45 = vadd.f32 %v4938_v19, %v4502_v33  ;;  %v3345_v47 = vmul.f32 %v7258_v46, %v9196_v58  ;;  %v3781_v49 = vmul.f32 %v7259_v48, %v9201_v8  ;;  %v4361_v51 = vmul.f32 %v7260_v50, %v9204_v18 }
 0x46b   :  { %5468 = vst [vmem:[#allocation10 + $0x468] sm:$0xff] %v5371_v40  ;;  %v4503_v52 = vadd.f32 %v4359_v35, %v3923_v41  ;;  %v4504_v53 = vadd.f32 %v4360_v37, %v3924_v42  ;;  %v4941_v60 = vmul.f32 %v7261_v59, %v9211_v7 }
 0x46c   :  { %v5372_v54 = vpack.c.bf16 %v5082_v45, %v5082_v45  ;;  %v3925_v55 = vadd.f32 %v3781_v49, %v3345_v47 }
 0x46d   :  { %v5083_v56 = vadd.f32 %v4939_v39, %v4503_v52  ;;  %v5084_v57 = vadd.f32 %v4940_v44, %v4504_v53 }
 0x46e   :  { %5469 = vst [vmem:[#allocation10 + $0x470] sm:$0xf] %v5372_v54  ;;  %v4505_v61 = vadd.f32 %v4361_v51, %v3925_v55 }
 0x46f   :  { %v5373_v14 = vpack.c.bf16 %v5084_v57, %v5083_v56 }
 0x470   :  { %v5085_v58 = vadd.f32 %v4941_v60, %v4505_v61 }
 0x471   :  { %5470 = vst [vmem:[#allocation10 + $0x474] sm:$0xff] %v5373_v14 }
 0x472   :  { %v5374_v8 = vpack.c.bf16 %v5085_v58, %v5085_v58 }
 0x474   :  { %5471 = vst [vmem:[#allocation10 + $0x47c] sm:$0xf] %v5374_v8 }
 0x475   :  { %5497 = dma.vmem_to_hbm [thread:$0]  %s5490_s24, 18432, %s5492_s27, [#allocation11], %s7374_s3, %s7374_s3, %s7375_s22  }
 0x476   :  { %7364 = dma.done.wait [#allocation4], 18432  }
 0x477   :  { %7365 = vsyncadd [#allocation4], 4294948864 }
 0x478   :  { %7366 = dma.done.wait [#allocation11], 18432  }
 0x479   :  { %7367 = vsyncadd [#allocation11], 4294948864 }
 0x47a   :  { %5506 = vsyncpa [#allocation3], 1 }
 0x47b   :  { %5507 = vsyncpa [#allocation4], 1 }
 0x47c   :  { %5508 = vsyncpa [#allocation11], 1 }
 0x47d   :  { %5509 = vsyncpa [#allocation5], 1 }
 0x47e   :  { %5510 = vsyncpa [#allocation7], 1 }

</bundles_post_ra>
